<compile_context>
chip_gen: v6e
topology: v6e:2x2x1
jax: 0.10.0
libtpu: 0.0.40
codegen_flags: <defaults>
</compile_context>

<pallas_src>
import functools
import math

import jax
import jax.numpy as jnp
from jax.experimental import pallas as pl
from jax.experimental.pallas import tpu as pltpu

LEAKY_SLOPE = 0.01   # ABN default activation_param
BN_EPS = 1e-5


def _leaky_relu(x):
    return jnp.where(x >= 0, x, LEAKY_SLOPE * x)


def _cparams():
    return pltpu.CompilerParams(
        dimension_semantics=("parallel",),
        vmem_limit_bytes=32 * 1024 * 1024,
    )


# ----------------------------- _MiniDL fused kernel -------------------------------
def _minidl_kernel(H, W, Cin, Cout, d,
                   x_ref, w3_ref, wd_ref, wg_ref,
                   b1a_ref, b1b_ref, b1g_ref, w2a_ref, w2b_ref, w2g_ref, b2_ref,
                   o_ref, xpad_ref, col3_ref, cold_ref):
    """One batch element of the Deeplab-mini block:
       conv1_3x3 + conv1_dil + conv1_glb(global pool) -> [cat] -> BN+lrelu
       -> 1x1 conv -> BN+lrelu.
       Padding is built in a persistent VMEM scratch; conv1 branches are im2col'd
       so each is ONE K=9*Cin matmul; the global branch is constant over (H, W)
       and collapses to a bias row through conv2."""
    HW = H * W

    # ---- in-kernel zero padding: borders of the persistent scratch are zeroed
    #      once (grid step 0, never overwritten); interior refreshed per element. ----
    @pl.when(pl.program_id(0) == 0)
    def _():
        xpad_ref[...] = jnp.zeros(xpad_ref.shape, xpad_ref.dtype)

    xpad_ref[d:d + H, d:d + W, :] = x_ref[0].astype(xpad_ref.dtype)

    # ---- im2col: 18 static same-shape block stores into scratch. ----
    for ky in range(3):
        for kx in range(3):
            t = ky * 3 + kx
            # conv1_3x3 (padding=1): window offset (d-1+ky, d-1+kx) in the pad-d map.
            col3_ref[:, :, t * Cin:(t + 1) * Cin] = \
                xpad_ref[d - 1 + ky:d - 1 + ky + H, d - 1 + kx:d - 1 + kx + W, :]
            # conv1_dil (padding=d, dilation=d): window offset (ky*d, kx*d).
            cold_ref[:, :, t * Cin:(t + 1) * Cin] = \
                xpad_ref[ky * d:ky * d + H, kx * d:kx * d + W, :]

    acc3 = jnp.dot(col3_ref[...].reshape(HW, 9 * Cin), w3_ref[...],
                   preferred_element_type=jnp.float32)          # (HW, Cout) fp32
    accd = jnp.dot(cold_ref[...].reshape(HW, 9 * Cin), wd_ref[...],
                   preferred_element_type=jnp.float32)          # (HW, Cout) fp32

    # BN1 scale is folded into the weights; bias + leaky_relu kept in f32.
    a = _leaky_relu(acc3 + b1a_ref[...])
    b = _leaky_relu(accd + b1b_ref[...])

    # Global-pooling branch: the pooling window covers the whole map -> global mean,
    # 1x1 conv; constant over (H, W), so it becomes a bias row through conv2.
    xm = jnp.mean(x_ref[0].astype(jnp.float32).reshape(HW, Cin),
                  axis=0, keepdims=True)                        # (1, Cin)
    g = _leaky_relu(jnp.dot(xm, wg_ref[...],
                            preferred_element_type=jnp.float32) + b1g_ref[...])
    gbias = jnp.dot(g, w2g_ref[...], preferred_element_type=jnp.float32)  # (1, Cout)

    # conv2 over the [3x3 | dil] halves: two direct dots from the live activations
    # (no packing scratch / extra VMEM pass).
    y = (jnp.dot(a.astype(jnp.bfloat16), w2a_ref[...],
                 preferred_element_type=jnp.float32)
         + jnp.dot(b.astype(jnp.bfloat16), w2b_ref[...],
                   preferred_element_type=jnp.float32))
    y = _leaky_relu(y + gbias + b2_ref[...])                    # BN2 scale folded
    o_ref[0] = y.reshape(H, W, Cout).astype(o_ref.dtype)


def minidl_forward(x, p, dilation, pooling_size, out_dtype):
    N, H, W, Cin = x.shape
    Cout = p["w2a"].shape[1]
    # PyTorch _global_pooling clips the window to the feature size; when the window
    # covers the whole map the result is the global mean replicated over HxW.
    assert H <= pooling_size[0] and W <= pooling_size[1], \
        "sliding-window pooling path not implemented"
    d = dilation
    Hp, Wp = H + 2 * d, W + 2 * d

    kernel = functools.partial(_minidl_kernel, H, W, Cin, Cout, d)
    full2 = lambda n: (0, 0)
    return pl.pallas_call(
        kernel,
        out_shape=jax.ShapeDtypeStruct((N, H, W, Cout), out_dtype),
        grid=(N,),
        in_specs=[
            pl.BlockSpec((1, H, W, Cin), lambda n: (n, 0, 0, 0)),   # raw input block
            pl.BlockSpec((9 * Cin, Cout), full2),     # w3 (im2col-flattened, bf16)
            pl.BlockSpec((9 * Cin, Cout), full2),     # wd
            pl.BlockSpec((Cin, Cout), full2),         # wg (f32, tiny branch)
            pl.BlockSpec((1, Cout), full2),           # b1a
            pl.BlockSpec((1, Cout), full2),           # b1b
            pl.BlockSpec((1, Cout), full2),           # b1g
            pl.BlockSpec((Cout, Cout), full2),        # w2 rows for 3x3 half
            pl.BlockSpec((Cout, Cout), full2),        # w2 rows for dilated half
            pl.BlockSpec((Cout, Cout), full2),        # w2 rows for glb branch (f32)
            pl.BlockSpec((1, Cout), full2),           # b2
        ],
        out_specs=pl.BlockSpec((1, H, W, Cout), lambda n: (n, 0, 0, 0)),
        scratch_shapes=[
            pltpu.VMEM((Hp, Wp, Cin), jnp.bfloat16),     # in-kernel padded input
            pltpu.VMEM((H, W, 9 * Cin), jnp.bfloat16),   # im2col, 3x3 branch
            pltpu.VMEM((H, W, 9 * Cin), jnp.bfloat16),   # im2col, dilated branch
        ],
        compiler_params=_cparams(),
    )(x, p["w3f"], p["wdf"], p["wg"],
      p["b1a"], p["b1b"], p["b1g"], p["w2a"], p["w2b"], p["w2g"], p["b2"])


# ----------------------------- separable bilinear resize ---------------------------
def _bilinear_matrix(out_size, in_size):
    # Matches F.interpolate(mode='bilinear', align_corners=False) source indexing.
    scale = in_size / out_size
    dst = jnp.arange(out_size, dtype=jnp.float32)
    src = jnp.maximum(scale * (dst + 0.5) - 0.5, 0.0)
    i0 = jnp.clip(jnp.floor(src).astype(jnp.int32), 0, in_size - 1)
    i1 = jnp.minimum(i0 + 1, in_size - 1)
    w1 = src - i0.astype(jnp.float32)
    w0 = 1.0 - w1
    rows = jnp.arange(out_size)
    R = jnp.zeros((out_size, in_size), jnp.float32)
    R = R.at[rows, i0].add(w0)
    R = R.at[rows, i1].add(w1)
    return R


def _resize_axis_kernel(r_ref, x_ref, o_ref):
    # One lane-dense 2-D matmul: (Mo, Mi) @ (Mi, L) -> (Mo, L).
    o_ref[0] = jnp.dot(r_ref[...], x_ref[0],
                       preferred_element_type=jnp.float32).astype(o_ref.dtype)


def _resize_axis(r, x, out_dtype):
    # x: (N, Mi, L), r: (Mo, Mi) -> (N, Mo, L)
    N, Mi, L = x.shape
    Mo = r.shape[0]
    return pl.pallas_call(
        _resize_axis_kernel,
        out_shape=jax.ShapeDtypeStruct((N, Mo, L), out_dtype),
        grid=(N,),
        in_specs=[
            pl.BlockSpec((Mo, Mi), lambda n: (0, 0)),
            pl.BlockSpec((1, Mi, L), lambda n: (n, 0, 0)),
        ],
        out_specs=pl.BlockSpec((1, Mo, L), lambda n: (n, 0, 0)),
        compiler_params=_cparams(),
    )(r, x)


def bilinear_resize(x, out_hw):
    """Separable bilinear resize (align_corners=False). x: (N, Hi, Wi, C) -> f32
    (N, Ho, Wo, C). Axis transposes happen at the HBM boundary (XLA layout
    plumbing); each Pallas pass is a plain 2-D matmul with a lane-dense output."""
    N, Hi, Wi, C = x.shape
    Ho, Wo = out_hw
    if (Hi, Wi) == (Ho, Wo):
        return x.astype(jnp.float32)
    xb = x.astype(jnp.bfloat16)
    rw = _bilinear_matrix(Wo, Wi).astype(jnp.bfloat16)   # (Wo, Wi)
    rh = _bilinear_matrix(Ho, Hi).astype(jnp.bfloat16)   # (Ho, Hi)
    # W pass: contract over Wi with the W axis presented as rows.
    xt = jnp.transpose(xb, (0, 2, 1, 3)).reshape(N, Wi, Hi * C)
    t = _resize_axis(rw, xt, jnp.bfloat16)               # (N, Wo, Hi*C)
    # H pass: contract over Hi.
    tt = jnp.transpose(t.reshape(N, Wo, Hi, C), (0, 2, 1, 3)).reshape(N, Hi, Wo * C)
    u = _resize_axis(rh, tt, jnp.float32)                # (N, Ho, Wo*C) lane-dense
    return u.reshape(N, Ho, Wo, C)


# ----------------------------- conv_sem (1x1 conv + bias) --------------------------
def _convsem_kernel(H, W, Cf, Kp, x_ref, w_ref, b_ref, o_ref):
    x = x_ref[0].reshape(H * W, Cf).astype(jnp.bfloat16)
    y = jnp.dot(x, w_ref[...], preferred_element_type=jnp.float32) + b_ref[...]
    o_ref[0] = y.reshape(H, W, Kp).astype(o_ref.dtype)


def conv_sem_forward(feats, w_pad, b_pad, num_classes):
    # Output channels zero-padded to 128 lanes for lane-dense stores; sliced back.
    N, H, W, Cf = feats.shape
    Kp = w_pad.shape[1]
    kernel = functools.partial(_convsem_kernel, H, W, Cf, Kp)
    out = pl.pallas_call(
        kernel,
        out_shape=jax.ShapeDtypeStruct((N, H, W, Kp), jnp.float32),
        grid=(N,),
        in_specs=[
            pl.BlockSpec((1, H, W, Cf), lambda n: (n, 0, 0, 0)),
            pl.BlockSpec((Cf, Kp), lambda n: (0, 0)),
            pl.BlockSpec((1, Kp), lambda n: (0, 0)),
        ],
        out_specs=pl.BlockSpec((1, H, W, Kp), lambda n: (n, 0, 0, 0)),
        compiler_params=_cparams(),
    )(feats, w_pad, b_pad)
    return out[..., :num_classes]


# ----------------------------- parameters ------------------------------------------
def _xavier_normal(key, torch_shape, gain):
    cout, cin, kh, kw = torch_shape
    fan_in, fan_out = cin * kh * kw, cout * kh * kw
    std = gain * math.sqrt(2.0 / (fan_in + fan_out))
    return std * jax.random.normal(key, torch_shape, dtype=jnp.float32)


def init_params(key, in_channels, hidden, levels, num_classes):
    gain = math.sqrt(2.0 / (1.0 + LEAKY_SLOPE ** 2))  # calculate_gain('leaky_relu', .01)
    s_bn = 1.0 / math.sqrt(1.0 + BN_EPS)              # folded inference-mode ABN scale
    C = hidden
    params = {"levels": [], "num_classes": num_classes}
    keys = jax.random.split(key, 4 * levels + 1)
    for i in range(levels):
        k3, kd, kg, k2 = keys[4 * i:4 * i + 4]
        w3 = _xavier_normal(k3, (C, in_channels, 3, 3), gain)            # (O,I,kh,kw)
        wd = _xavier_normal(kd, (C, in_channels, 3, 3), gain)
        wg = _xavier_normal(kg, (C, in_channels, 1, 1), gain)[:, :, 0, 0]  # (O, I)
        w2 = _xavier_normal(k2, (C, 3 * C, 1, 1), gain)[:, :, 0, 0]        # (O, 3C)
        s1 = jnp.full((3 * C,), s_bn, jnp.float32)   # bn1 scale per concat channel
        s2 = jnp.full((C,), s_bn, jnp.float32)       # bn2 scale
        # im2col-flattened conv1 weights, (ky, kx, cin)-major rows, bn1 scale folded.
        w3f = w3.transpose(2, 3, 1, 0).reshape(9 * in_channels, C) * s1[None, 0:C]
        wdf = wd.transpose(2, 3, 1, 0).reshape(9 * in_channels, C) * s1[None, C:2 * C]
        wgf = wg.T * s1[None, 2 * C:3 * C]                                 # (I, C)
        w2t = w2.T * s2[None, :]                                           # (3C, C)
        params["levels"].append({
            "w3f": w3f.astype(jnp.bfloat16),
            "wdf": wdf.astype(jnp.bfloat16),
            "wg": wgf,                                   # f32 (tiny global branch)
            "b1a": jnp.zeros((1, C), jnp.float32),
            "b1b": jnp.zeros((1, C), jnp.float32),
            "b1g": jnp.zeros((1, C), jnp.float32),
            "w2a": w2t[0:C, :].astype(jnp.bfloat16),     # conv2 rows for 3x3 half
            "w2b": w2t[C:2 * C, :].astype(jnp.bfloat16),  # conv2 rows for dil half
            "w2g": w2t[2 * C:3 * C, :],                   # f32 rows for glb branch
            "b2": jnp.zeros((1, C), jnp.float32),
        })
    Cf = C * levels
    Kp = ((num_classes + 127) // 128) * 128
    wsem = _xavier_normal(keys[-1], (num_classes, Cf, 1, 1), 0.1)[:, :, 0, 0].T  # (Cf,K)
    wsem_pad = jnp.zeros((Cf, Kp), jnp.float32).at[:, :num_classes].set(wsem)
    params["w_sem"] = wsem_pad.astype(jnp.bfloat16)
    params["b_sem"] = jnp.zeros((1, Kp), jnp.float32)
    return params


# ----------------------------- full head forward -----------------------------------
def fpn_semantic_head_forward(xs, params, *, min_level, levels, dilation=6,
                              pooling_size=(64, 64)):
    xs = list(xs)[min_level:min_level + levels]
    ref_hw = xs[0].shape[1:3]
    feats_levels = []
    for i in range(levels):
        # Level 0 feeds the feats output directly (f32); coarser levels are
        # intermediates that get resized, so keep them bf16 to halve HBM traffic.
        out_dtype = jnp.float32 if i == 0 else jnp.bfloat16
        y = minidl_forward(xs[i], params["levels"][i], dilation, pooling_size,
                           out_dtype)
        if i > 0:
            y = bilinear_resize(y, ref_hw)
        feats_levels.append(y)
    xs_feats = jnp.concatenate(feats_levels, axis=-1)     # channel concat (NHWC)
    xs_sem = conv_sem_forward(xs_feats, params["w_sem"], params["b_sem"],
                              params["num_classes"])
    return xs_sem, xs_feats


if __name__ == "__main__":
    key = jax.random.PRNGKey(0)
    N, Cin, hidden, levels, num_classes = 2, 16, 32, 2, 8
    min_level = 0
    dilation = 6
    spatial = [(16, 16), (8, 8)]   # FPN levels: level 0 is the reference size

    kp, kx = jax.random.split(key)
    params = init_params(kp, Cin, hidden, levels, num_classes)
    xkeys = jax.random.split(kx, levels)
    xs = [jax.random.normal(xkeys[i], (N, h, w, Cin), dtype=jnp.float32)
          for i, (h, w) in enumerate(spatial)]

    sem, feats = fpn_semantic_head_forward(xs, params, min_level=min_level,
                                           levels=levels, dilation=dilation,
                                           pooling_size=(64, 64))
    jax.block_until_ready((sem, feats))
    assert sem.shape == (N, spatial[0][0], spatial[0][1], num_classes)
    assert feats.shape == (N, spatial[0][0], spatial[0][1], hidden * levels)
    assert sem.dtype == jnp.float32 and feats.dtype == jnp.float32
    print("KERNEL_OK")
</pallas_src>

<mosaic_0001>
module attributes {stable_mosaic.version = 11 : i64} {
  func.func @_minidl_kernel(%arg0: i32, %arg1: memref<1x16x16x16xf32, #tpu.memory_space<vmem>>, %arg2: memref<144x32xbf16, #tpu.memory_space<vmem>>, %arg3: memref<144x32xbf16, #tpu.memory_space<vmem>>, %arg4: memref<16x32xf32, #tpu.memory_space<vmem>>, %arg5: memref<1x32xf32, #tpu.memory_space<vmem>>, %arg6: memref<1x32xf32, #tpu.memory_space<vmem>>, %arg7: memref<1x32xf32, #tpu.memory_space<vmem>>, %arg8: memref<32x32xbf16, #tpu.memory_space<vmem>>, %arg9: memref<32x32xbf16, #tpu.memory_space<vmem>>, %arg10: memref<32x32xf32, #tpu.memory_space<vmem>>, %arg11: memref<1x32xf32, #tpu.memory_space<vmem>>, %arg12: memref<1x16x16x32xf32, #tpu.memory_space<vmem>>, %arg13: memref<28x28x16xbf16, #tpu.memory_space<vmem>>, %arg14: memref<16x16x144xbf16, #tpu.memory_space<vmem>>, %arg15: memref<16x16x144xbf16, #tpu.memory_space<vmem>>) attributes {dimension_semantics = [#tpu.dimension_semantics<parallel>], iteration_bounds = array<i64: 2>, scalar_prefetch = 0 : i64, scratch_operands = 3 : i64, tpu.core_type = #tpu.core_type<tc>, window_params = [{transform_indices = @transform_0, window_bounds = array<i64: 1, 16, 16, 16>}, {pipeline_mode = #tpu.pipeline_mode<synchronous>, transform_indices = @transform_1, window_bounds = array<i64: 144, 32>}, {pipeline_mode = #tpu.pipeline_mode<synchronous>, transform_indices = @transform_2, window_bounds = array<i64: 144, 32>}, {pipeline_mode = #tpu.pipeline_mode<synchronous>, transform_indices = @transform_3, window_bounds = array<i64: 16, 32>}, {pipeline_mode = #tpu.pipeline_mode<synchronous>, transform_indices = @transform_4, window_bounds = array<i64: 1, 32>}, {pipeline_mode = #tpu.pipeline_mode<synchronous>, transform_indices = @transform_5, window_bounds = array<i64: 1, 32>}, {pipeline_mode = #tpu.pipeline_mode<synchronous>, transform_indices = @transform_6, window_bounds = array<i64: 1, 32>}, {pipeline_mode = #tpu.pipeline_mode<synchronous>, transform_indices = @transform_7, window_bounds = array<i64: 32, 32>}, {pipeline_mode = #tpu.pipeline_mode<synchronous>, transform_indices = @transform_8, window_bounds = array<i64: 32, 32>}, {pipeline_mode = #tpu.pipeline_mode<synchronous>, transform_indices = @transform_9, window_bounds = array<i64: 32, 32>}, {pipeline_mode = #tpu.pipeline_mode<synchronous>, transform_indices = @transform_10, window_bounds = array<i64: 1, 32>}, {transform_indices = @transform_11, window_bounds = array<i64: 1, 16, 16, 32>}]} {
    %c0_i32 = arith.constant 0 : i32
    %0 = arith.cmpi eq, %arg0, %c0_i32 : i32
    %1 = arith.extui %0 : i1 to i32
    %c0_i32_0 = arith.constant 0 : i32
    %2 = arith.cmpi ne, %1, %c0_i32_0 : i32
    scf.if %2 {
      %cst_152 = arith.constant 0.000000e+00 : bf16
      %106 = vector.broadcast %cst_152 : bf16 to vector<28x28x16xbf16>
      %c0_153 = arith.constant 0 : index
      %c0_154 = arith.constant 0 : index
      %c0_155 = arith.constant 0 : index
      %107 = vector.load %arg13[%c0_153, %c0_154, %c0_155] : memref<28x28x16xbf16, #tpu.memory_space<vmem>>, vector<28x28x16xbf16>
      tpu.vector_store %arg13[%c0_153, %c0_154, %c0_155], %106 {strides = array<i32>} : memref<28x28x16xbf16, #tpu.memory_space<vmem>>, vector<28x28x16xbf16>,
    } else {
    }
    %c0 = arith.constant 0 : index
    %c0_1 = arith.constant 0 : index
    %c0_2 = arith.constant 0 : index
    %c0_3 = arith.constant 0 : index
    %3 = vector.load %arg1[%c0, %c0_1, %c0_2, %c0_3] : memref<1x16x16x16xf32, #tpu.memory_space<vmem>>, vector<1x16x16x16xf32>
    %4 = vector.shape_cast %3 : vector<1x16x16x16xf32> to vector<16x16x16xf32>
    %5 = arith.truncf %4 : vector<16x16x16xf32> to vector<16x16x16xbf16>
    %c6 = arith.constant 6 : index
    %c6_4 = arith.constant 6 : index
    %c0_5 = arith.constant 0 : index
    %6 = vector.load %arg13[%c6, %c6_4, %c0_5] : memref<28x28x16xbf16, #tpu.memory_space<vmem>>, vector<16x16x16xbf16>
    tpu.vector_store %arg13[%c6, %c6_4, %c0_5], %5 {strides = array<i32>} : memref<28x28x16xbf16, #tpu.memory_space<vmem>>, vector<16x16x16xbf16>,
    %c5 = arith.constant 5 : index
    %c5_6 = arith.constant 5 : index
    %c0_7 = arith.constant 0 : index
    %7 = vector.load %arg13[%c5, %c5_6, %c0_7] : memref<28x28x16xbf16, #tpu.memory_space<vmem>>, vector<16x16x16xbf16>
    %c0_8 = arith.constant 0 : index
    %c0_9 = arith.constant 0 : index
    %c0_10 = arith.constant 0 : index
    %8 = vector.load %arg14[%c0_8, %c0_9, %c0_10] : memref<16x16x144xbf16, #tpu.memory_space<vmem>>, vector<16x16x16xbf16>
    tpu.vector_store %arg14[%c0_8, %c0_9, %c0_10], %7 {strides = array<i32>} : memref<16x16x144xbf16, #tpu.memory_space<vmem>>, vector<16x16x16xbf16>,
    %c0_11 = arith.constant 0 : index
    %c0_12 = arith.constant 0 : index
    %c0_13 = arith.constant 0 : index
    %9 = vector.load %arg13[%c0_11, %c0_12, %c0_13] : memref<28x28x16xbf16, #tpu.memory_space<vmem>>, vector<16x16x16xbf16>
    %c0_14 = arith.constant 0 : index
    %c0_15 = arith.constant 0 : index
    %c0_16 = arith.constant 0 : index
    %10 = vector.load %arg15[%c0_14, %c0_15, %c0_16] : memref<16x16x144xbf16, #tpu.memory_space<vmem>>, vector<16x16x16xbf16>
    tpu.vector_store %arg15[%c0_14, %c0_15, %c0_16], %9 {strides = array<i32>} : memref<16x16x144xbf16, #tpu.memory_space<vmem>>, vector<16x16x16xbf16>,
    %c5_17 = arith.constant 5 : index
    %c6_18 = arith.constant 6 : index
    %c0_19 = arith.constant 0 : index
    %11 = vector.load %arg13[%c5_17, %c6_18, %c0_19] : memref<28x28x16xbf16, #tpu.memory_space<vmem>>, vector<16x16x16xbf16>
    %c0_20 = arith.constant 0 : index
    %c0_21 = arith.constant 0 : index
    %c16 = arith.constant 16 : index
    %12 = vector.load %arg14[%c0_20, %c0_21, %c16] : memref<16x16x144xbf16, #tpu.memory_space<vmem>>, vector<16x16x16xbf16>
    tpu.vector_store %arg14[%c0_20, %c0_21, %c16], %11 {strides = array<i32>} : memref<16x16x144xbf16, #tpu.memory_space<vmem>>, vector<16x16x16xbf16>,
    %c0_22 = arith.constant 0 : index
    %c6_23 = arith.constant 6 : index
    %c0_24 = arith.constant 0 : index
    %13 = vector.load %arg13[%c0_22, %c6_23, %c0_24] : memref<28x28x16xbf16, #tpu.memory_space<vmem>>, vector<16x16x16xbf16>
    %c0_25 = arith.constant 0 : index
    %c0_26 = arith.constant 0 : index
    %c16_27 = arith.constant 16 : index
    %14 = vector.load %arg15[%c0_25, %c0_26, %c16_27] : memref<16x16x144xbf16, #tpu.memory_space<vmem>>, vector<16x16x16xbf16>
    tpu.vector_store %arg15[%c0_25, %c0_26, %c16_27], %13 {strides = array<i32>} : memref<16x16x144xbf16, #tpu.memory_space<vmem>>, vector<16x16x16xbf16>,
    %c5_28 = arith.constant 5 : index
    %c7 = arith.constant 7 : index
    %c0_29 = arith.constant 0 : index
    %15 = vector.load %arg13[%c5_28, %c7, %c0_29] : memref<28x28x16xbf16, #tpu.memory_space<vmem>>, vector<16x16x16xbf16>
    %c0_30 = arith.constant 0 : index
    %c0_31 = arith.constant 0 : index
    %c32 = arith.constant 32 : index
    %16 = vector.load %arg14[%c0_30, %c0_31, %c32] : memref<16x16x144xbf16, #tpu.memory_space<vmem>>, vector<16x16x16xbf16>
    tpu.vector_store %arg14[%c0_30, %c0_31, %c32], %15 {strides = array<i32>} : memref<16x16x144xbf16, #tpu.memory_space<vmem>>, vector<16x16x16xbf16>,
    %c0_32 = arith.constant 0 : index
    %c12 = arith.constant 12 : index
    %c0_33 = arith.constant 0 : index
    %17 = vector.load %arg13[%c0_32, %c12, %c0_33] : memref<28x28x16xbf16, #tpu.memory_space<vmem>>, vector<16x16x16xbf16>
    %c0_34 = arith.constant 0 : index
    %c0_35 = arith.constant 0 : index
    %c32_36 = arith.constant 32 : index
    %18 = vector.load %arg15[%c0_34, %c0_35, %c32_36] : memref<16x16x144xbf16, #tpu.memory_space<vmem>>, vector<16x16x16xbf16>
    tpu.vector_store %arg15[%c0_34, %c0_35, %c32_36], %17 {strides = array<i32>} : memref<16x16x144xbf16, #tpu.memory_space<vmem>>, vector<16x16x16xbf16>,
    %c6_37 = arith.constant 6 : index
    %c5_38 = arith.constant 5 : index
    %c0_39 = arith.constant 0 : index
    %19 = vector.load %arg13[%c6_37, %c5_38, %c0_39] : memref<28x28x16xbf16, #tpu.memory_space<vmem>>, vector<16x16x16xbf16>
    %c0_40 = arith.constant 0 : index
    %c0_41 = arith.constant 0 : index
    %c48 = arith.constant 48 : index
    %20 = vector.load %arg14[%c0_40, %c0_41, %c48] : memref<16x16x144xbf16, #tpu.memory_space<vmem>>, vector<16x16x16xbf16>
    tpu.vector_store %arg14[%c0_40, %c0_41, %c48], %19 {strides = array<i32>} : memref<16x16x144xbf16, #tpu.memory_space<vmem>>, vector<16x16x16xbf16>,
    %c6_42 = arith.constant 6 : index
    %c0_43 = arith.constant 0 : index
    %c0_44 = arith.constant 0 : index
    %21 = vector.load %arg13[%c6_42, %c0_43, %c0_44] : memref<28x28x16xbf16, #tpu.memory_space<vmem>>, vector<16x16x16xbf16>
    %c0_45 = arith.constant 0 : index
    %c0_46 = arith.constant 0 : index
    %c48_47 = arith.constant 48 : index
    %22 = vector.load %arg15[%c0_45, %c0_46, %c48_47] : memref<16x16x144xbf16, #tpu.memory_space<vmem>>, vector<16x16x16xbf16>
    tpu.vector_store %arg15[%c0_45, %c0_46, %c48_47], %21 {strides = array<i32>} : memref<16x16x144xbf16, #tpu.memory_space<vmem>>, vector<16x16x16xbf16>,
    %c6_48 = arith.constant 6 : index
    %c6_49 = arith.constant 6 : index
    %c0_50 = arith.constant 0 : index
    %23 = vector.load %arg13[%c6_48, %c6_49, %c0_50] : memref<28x28x16xbf16, #tpu.memory_space<vmem>>, vector<16x16x16xbf16>
    %c0_51 = arith.constant 0 : index
    %c0_52 = arith.constant 0 : index
    %c64 = arith.constant 64 : index
    %24 = vector.load %arg14[%c0_51, %c0_52, %c64] : memref<16x16x144xbf16, #tpu.memory_space<vmem>>, vector<16x16x16xbf16>
    tpu.vector_store %arg14[%c0_51, %c0_52, %c64], %23 {strides = array<i32>} : memref<16x16x144xbf16, #tpu.memory_space<vmem>>, vector<16x16x16xbf16>,
    %c6_53 = arith.constant 6 : index
    %c6_54 = arith.constant 6 : index
    %c0_55 = arith.constant 0 : index
    %25 = vector.load %arg13[%c6_53, %c6_54, %c0_55] : memref<28x28x16xbf16, #tpu.memory_space<vmem>>, vector<16x16x16xbf16>
    %c0_56 = arith.constant 0 : index
    %c0_57 = arith.constant 0 : index
    %c64_58 = arith.constant 64 : index
    %26 = vector.load %arg15[%c0_56, %c0_57, %c64_58] : memref<16x16x144xbf16, #tpu.memory_space<vmem>>, vector<16x16x16xbf16>
    tpu.vector_store %arg15[%c0_56, %c0_57, %c64_58], %25 {strides = array<i32>} : memref<16x16x144xbf16, #tpu.memory_space<vmem>>, vector<16x16x16xbf16>,
    %c6_59 = arith.constant 6 : index
    %c7_60 = arith.constant 7 : index
    %c0_61 = arith.constant 0 : index
    %27 = vector.load %arg13[%c6_59, %c7_60, %c0_61] : memref<28x28x16xbf16, #tpu.memory_space<vmem>>, vector<16x16x16xbf16>
    %c0_62 = arith.constant 0 : index
    %c0_63 = arith.constant 0 : index
    %c80 = arith.constant 80 : index
    %28 = vector.load %arg14[%c0_62, %c0_63, %c80] : memref<16x16x144xbf16, #tpu.memory_space<vmem>>, vector<16x16x16xbf16>
    tpu.vector_store %arg14[%c0_62, %c0_63, %c80], %27 {strides = array<i32>} : memref<16x16x144xbf16, #tpu.memory_space<vmem>>, vector<16x16x16xbf16>,
    %c6_64 = arith.constant 6 : index
    %c12_65 = arith.constant 12 : index
    %c0_66 = arith.constant 0 : index
    %29 = vector.load %arg13[%c6_64, %c12_65, %c0_66] : memref<28x28x16xbf16, #tpu.memory_space<vmem>>, vector<16x16x16xbf16>
    %c0_67 = arith.constant 0 : index
    %c0_68 = arith.constant 0 : index
    %c80_69 = arith.constant 80 : index
    %30 = vector.load %arg15[%c0_67, %c0_68, %c80_69] : memref<16x16x144xbf16, #tpu.memory_space<vmem>>, vector<16x16x16xbf16>
    tpu.vector_store %arg15[%c0_67, %c0_68, %c80_69], %29 {strides = array<i32>} : memref<16x16x144xbf16, #tpu.memory_space<vmem>>, vector<16x16x16xbf16>,
    %c7_70 = arith.constant 7 : index
    %c5_71 = arith.constant 5 : index
    %c0_72 = arith.constant 0 : index
    %31 = vector.load %arg13[%c7_70, %c5_71, %c0_72] : memref<28x28x16xbf16, #tpu.memory_space<vmem>>, vector<16x16x16xbf16>
    %c0_73 = arith.constant 0 : index
    %c0_74 = arith.constant 0 : index
    %c96 = arith.constant 96 : index
    %32 = vector.load %arg14[%c0_73, %c0_74, %c96] : memref<16x16x144xbf16, #tpu.memory_space<vmem>>, vector<16x16x16xbf16>
    tpu.vector_store %arg14[%c0_73, %c0_74, %c96], %31 {strides = array<i32>} : memref<16x16x144xbf16, #tpu.memory_space<vmem>>, vector<16x16x16xbf16>,
    %c12_75 = arith.constant 12 : index
    %c0_76 = arith.constant 0 : index
    %c0_77 = arith.constant 0 : index
    %33 = vector.load %arg13[%c12_75, %c0_76, %c0_77] : memref<28x28x16xbf16, #tpu.memory_space<vmem>>, vector<16x16x16xbf16>
    %c0_78 = arith.constant 0 : index
    %c0_79 = arith.constant 0 : index
    %c96_80 = arith.constant 96 : index
    %34 = vector.load %arg15[%c0_78, %c0_79, %c96_80] : memref<16x16x144xbf16, #tpu.memory_space<vmem>>, vector<16x16x16xbf16>
    tpu.vector_store %arg15[%c0_78, %c0_79, %c96_80], %33 {strides = array<i32>} : memref<16x16x144xbf16, #tpu.memory_space<vmem>>, vector<16x16x16xbf16>,
    %c7_81 = arith.constant 7 : index
    %c6_82 = arith.constant 6 : index
    %c0_83 = arith.constant 0 : index
    %35 = vector.load %arg13[%c7_81, %c6_82, %c0_83] : memref<28x28x16xbf16, #tpu.memory_space<vmem>>, vector<16x16x16xbf16>
    %c0_84 = arith.constant 0 : index
    %c0_85 = arith.constant 0 : index
    %c112 = arith.constant 112 : index
    %36 = vector.load %arg14[%c0_84, %c0_85, %c112] : memref<16x16x144xbf16, #tpu.memory_space<vmem>>, vector<16x16x16xbf16>
    tpu.vector_store %arg14[%c0_84, %c0_85, %c112], %35 {strides = array<i32>} : memref<16x16x144xbf16, #tpu.memory_space<vmem>>, vector<16x16x16xbf16>,
    %c12_86 = arith.constant 12 : index
    %c6_87 = arith.constant 6 : index
    %c0_88 = arith.constant 0 : index
    %37 = vector.load %arg13[%c12_86, %c6_87, %c0_88] : memref<28x28x16xbf16, #tpu.memory_space<vmem>>, vector<16x16x16xbf16>
    %c0_89 = arith.constant 0 : index
    %c0_90 = arith.constant 0 : index
    %c112_91 = arith.constant 112 : index
    %38 = vector.load %arg15[%c0_89, %c0_90, %c112_91] : memref<16x16x144xbf16, #tpu.memory_space<vmem>>, vector<16x16x16xbf16>
    tpu.vector_store %arg15[%c0_89, %c0_90, %c112_91], %37 {strides = array<i32>} : memref<16x16x144xbf16, #tpu.memory_space<vmem>>, vector<16x16x16xbf16>,
    %c7_92 = arith.constant 7 : index
    %c7_93 = arith.constant 7 : index
    %c0_94 = arith.constant 0 : index
    %39 = vector.load %arg13[%c7_92, %c7_93, %c0_94] : memref<28x28x16xbf16, #tpu.memory_space<vmem>>, vector<16x16x16xbf16>
    %c0_95 = arith.constant 0 : index
    %c0_96 = arith.constant 0 : index
    %c128 = arith.constant 128 : index
    %40 = vector.load %arg14[%c0_95, %c0_96, %c128] : memref<16x16x144xbf16, #tpu.memory_space<vmem>>, vector<16x16x16xbf16>
    tpu.vector_store %arg14[%c0_95, %c0_96, %c128], %39 {strides = array<i32>} : memref<16x16x144xbf16, #tpu.memory_space<vmem>>, vector<16x16x16xbf16>,
    %c12_97 = arith.constant 12 : index
    %c12_98 = arith.constant 12 : index
    %c0_99 = arith.constant 0 : index
    %41 = vector.load %arg13[%c12_97, %c12_98, %c0_99] : memref<28x28x16xbf16, #tpu.memory_space<vmem>>, vector<16x16x16xbf16>
    %c0_100 = arith.constant 0 : index
    %c0_101 = arith.constant 0 : index
    %c128_102 = arith.constant 128 : index
    %42 = vector.load %arg15[%c0_100, %c0_101, %c128_102] : memref<16x16x144xbf16, #tpu.memory_space<vmem>>, vector<16x16x16xbf16>
    tpu.vector_store %arg15[%c0_100, %c0_101, %c128_102], %41 {strides = array<i32>} : memref<16x16x144xbf16, #tpu.memory_space<vmem>>, vector<16x16x16xbf16>,
    %c0_103 = arith.constant 0 : index
    %c0_104 = arith.constant 0 : index
    %c0_105 = arith.constant 0 : index
    %43 = vector.load %arg14[%c0_103, %c0_104, %c0_105] : memref<16x16x144xbf16, #tpu.memory_space<vmem>>, vector<16x16x144xbf16>
    %44 = vector.shape_cast %43 : vector<16x16x144xbf16> to vector<256x144xbf16>
    %c0_106 = arith.constant 0 : index
    %c0_107 = arith.constant 0 : index
    %45 = vector.load %arg2[%c0_106, %c0_107] : memref<144x32xbf16, #tpu.memory_space<vmem>>, vector<144x32xbf16>
    %cst = arith.constant dense<0.000000e+00> : vector<256x32xf32>
    %46 = tpu.matmul %44, %45, %cst {dimension_numbers = #tpu.dot_dimension_numbers<[1], [0], [0], [1], [0, 0, 1, 1], [], []>} : vector<256x144xbf16>, vector<144x32xbf16>, vector<256x32xf32> -> vector<256x32xf32>
    %c0_108 = arith.constant 0 : index
    %c0_109 = arith.constant 0 : index
    %c0_110 = arith.constant 0 : index
    %47 = vector.load %arg15[%c0_108, %c0_109, %c0_110] : memref<16x16x144xbf16, #tpu.memory_space<vmem>>, vector<16x16x144xbf16>
    %48 = vector.shape_cast %47 : vector<16x16x144xbf16> to vector<256x144xbf16>
    %c0_111 = arith.constant 0 : index
    %c0_112 = arith.constant 0 : index
    %49 = vector.load %arg3[%c0_111, %c0_112] : memref<144x32xbf16, #tpu.memory_space<vmem>>, vector<144x32xbf16>
    %cst_113 = arith.constant dense<0.000000e+00> : vector<256x32xf32>
    %50 = tpu.matmul %48, %49, %cst_113 {dimension_numbers = #tpu.dot_dimension_numbers<[1], [0], [0], [1], [0, 0, 1, 1], [], []>} : vector<256x144xbf16>, vector<144x32xbf16>, vector<256x32xf32> -> vector<256x32xf32>
    %c0_114 = arith.constant 0 : index
    %c0_115 = arith.constant 0 : index
    %51 = vector.load %arg5[%c0_114, %c0_115] : memref<1x32xf32, #tpu.memory_space<vmem>>, vector<1x32xf32>
    %52 = vector.broadcast %51 : vector<1x32xf32> to vector<256x32xf32>
    %53 = arith.addf %46, %52 : vector<256x32xf32>
    %cst_116 = arith.constant 0.000000e+00 : f32
    %54 = vector.broadcast %cst_116 : f32 to vector<256x32xf32>
    %55 = arith.cmpf oge, %53, %54 : vector<256x32xf32>
    %cst_117 = arith.constant 0.00999999977 : f32
    %56 = vector.broadcast %cst_117 : f32 to vector<256x32xf32>
    %57 = arith.mulf %56, %53 : vector<256x32xf32>
    %58 = arith.select %55, %53, %57 : vector<256x32xi1>, vector<256x32xf32>
    %c0_118 = arith.constant 0 : index
    %c0_119 = arith.constant 0 : index
    %59 = vector.load %arg6[%c0_118, %c0_119] : memref<1x32xf32, #tpu.memory_space<vmem>>, vector<1x32xf32>
    %60 = vector.broadcast %59 : vector<1x32xf32> to vector<256x32xf32>
    %61 = arith.addf %50, %60 : vector<256x32xf32>
    %cst_120 = arith.constant 0.000000e+00 : f32
    %62 = vector.broadcast %cst_120 : f32 to vector<256x32xf32>
    %63 = arith.cmpf oge, %61, %62 : vector<256x32xf32>
    %cst_121 = arith.constant 0.00999999977 : f32
    %64 = vector.broadcast %cst_121 : f32 to vector<256x32xf32>
    %65 = arith.mulf %64, %61 : vector<256x32xf32>
    %66 = arith.select %63, %61, %65 : vector<256x32xi1>, vector<256x32xf32>
    %c0_122 = arith.constant 0 : index
    %c0_123 = arith.constant 0 : index
    %c0_124 = arith.constant 0 : index
    %c0_125 = arith.constant 0 : index
    %67 = vector.load %arg1[%c0_122, %c0_123, %c0_124, %c0_125] : memref<1x16x16x16xf32, #tpu.memory_space<vmem>>, vector<1x16x16x16xf32>
    %68 = vector.shape_cast %67 : vector<1x16x16x16xf32> to vector<16x16x16xf32>
    %69 = vector.shape_cast %68 : vector<16x16x16xf32> to vector<256x16xf32>
    %cst_126 = arith.constant dense<0.000000e+00> : vector<16xf32>
    %70 = vector.multi_reduction <add>, %69, %cst_126 [0] : vector<256x16xf32> to vector<16xf32>
    %71 = vector.shape_cast %70 : vector<16xf32> to vector<1x16xf32>
    %cst_127 = arith.constant 2.560000e+02 : f32
    %72 = vector.broadcast %cst_127 : f32 to vector<1x16xf32>
    %73 = arith.divf %71, %72 : vector<1x16xf32>
    %c0_128 = arith.constant 0 : index
    %c0_129 = arith.constant 0 : index
    %74 = vector.load %arg4[%c0_128, %c0_129] : memref<16x32xf32, #tpu.memory_space<vmem>>, vector<16x32xf32>
    %cst_130 = arith.constant dense<0.000000e+00> : vector<1x32xf32>
    %75 = tpu.matmul %73, %74, %cst_130 {dimension_numbers = #tpu.dot_dimension_numbers<[1], [0], [0], [1], [0, 0, 1, 1], [], []>} : vector<1x16xf32>, vector<16x32xf32>, vector<1x32xf32> -> vector<1x32xf32>
    %c0_131 = arith.constant 0 : index
    %c0_132 = arith.constant 0 : index
    %76 = vector.load %arg7[%c0_131, %c0_132] : memref<1x32xf32, #tpu.memory_space<vmem>>, vector<1x32xf32>
    %77 = arith.addf %75, %76 : vector<1x32xf32>
    %cst_133 = arith.constant 0.000000e+00 : f32
    %78 = vector.broadcast %cst_133 : f32 to vector<1x32xf32>
    %79 = arith.cmpf oge, %77, %78 : vector<1x32xf32>
    %cst_134 = arith.constant 0.00999999977 : f32
    %80 = vector.broadcast %cst_134 : f32 to vector<1x32xf32>
    %81 = arith.mulf %80, %77 : vector<1x32xf32>
    %82 = arith.select %79, %77, %81 : vector<1x32xi1>, vector<1x32xf32>
    %c0_135 = arith.constant 0 : index
    %c0_136 = arith.constant 0 : index
    %83 = vector.load %arg10[%c0_135, %c0_136] : memref<32x32xf32, #tpu.memory_space<vmem>>, vector<32x32xf32>
    %cst_137 = arith.constant dense<0.000000e+00> : vector<1x32xf32>
    %84 = tpu.matmul %82, %83, %cst_137 {dimension_numbers = #tpu.dot_dimension_numbers<[1], [0], [0], [1], [0, 0, 1, 1], [], []>} : vector<1x32xf32>, vector<32x32xf32>, vector<1x32xf32> -> vector<1x32xf32>
    %85 = arith.truncf %58 : vector<256x32xf32> to vector<256x32xbf16>
    %c0_138 = arith.constant 0 : index
    %c0_139 = arith.constant 0 : index
    %86 = vector.load %arg8[%c0_138, %c0_139] : memref<32x32xbf16, #tpu.memory_space<vmem>>, vector<32x32xbf16>
    %cst_140 = arith.constant dense<0.000000e+00> : vector<256x32xf32>
    %87 = tpu.matmul %85, %86, %cst_140 {dimension_numbers = #tpu.dot_dimension_numbers<[1], [0], [0], [1], [0, 0, 1, 1], [], []>} : vector<256x32xbf16>, vector<32x32xbf16>, vector<256x32xf32> -> vector<256x32xf32>
    %88 = arith.truncf %66 : vector<256x32xf32> to vector<256x32xbf16>
    %c0_141 = arith.constant 0 : index
    %c0_142 = arith.constant 0 : index
    %89 = vector.load %arg9[%c0_141, %c0_142] : memref<32x32xbf16, #tpu.memory_space<vmem>>, vector<32x32xbf16>
    %cst_143 = arith.constant dense<0.000000e+00> : vector<256x32xf32>
    %90 = tpu.matmul %88, %89, %cst_143 {dimension_numbers = #tpu.dot_dimension_numbers<[1], [0], [0], [1], [0, 0, 1, 1], [], []>} : vector<256x32xbf16>, vector<32x32xbf16>, vector<256x32xf32> -> vector<256x32xf32>
    %91 = arith.addf %87, %90 : vector<256x32xf32>
    %92 = vector.broadcast %84 : vector<1x32xf32> to vector<256x32xf32>
    %93 = arith.addf %91, %92 : vector<256x32xf32>
    %c0_144 = arith.constant 0 : index
    %c0_145 = arith.constant 0 : index
    %94 = vector.load %arg11[%c0_144, %c0_145] : memref<1x32xf32, #tpu.memory_space<vmem>>, vector<1x32xf32>
    %95 = vector.broadcast %94 : vector<1x32xf32> to vector<256x32xf32>
    %96 = arith.addf %93, %95 : vector<256x32xf32>
    %cst_146 = arith.constant 0.000000e+00 : f32
    %97 = vector.broadcast %cst_146 : f32 to vector<256x32xf32>
    %98 = arith.cmpf oge, %96, %97 : vector<256x32xf32>
    %cst_147 = arith.constant 0.00999999977 : f32
    %99 = vector.broadcast %cst_147 : f32 to vector<256x32xf32>
    %100 = arith.mulf %99, %96 : vector<256x32xf32>
    %101 = arith.select %98, %96, %100 : vector<256x32xi1>, vector<256x32xf32>
    %102 = vector.shape_cast %101 : vector<256x32xf32> to vector<16x16x32xf32>
    %c0_148 = arith.constant 0 : index
    %c0_149 = arith.constant 0 : index
    %c0_150 = arith.constant 0 : index
    %c0_151 = arith.constant 0 : index
    %103 = vector.load %arg12[%c0_148, %c0_149, %c0_150, %c0_151] : memref<1x16x16x32xf32, #tpu.memory_space<vmem>>, vector<1x16x16x32xf32>
    %104 = vector.shape_cast %103 : vector<1x16x16x32xf32> to vector<16x16x32xf32>
    %105 = vector.shape_cast %102 : vector<16x16x32xf32> to vector<1x16x16x32xf32>
    tpu.vector_store %arg12[%c0_148, %c0_149, %c0_150, %c0_151], %105 {strides = array<i32>} : memref<1x16x16x32xf32, #tpu.memory_space<vmem>>, vector<1x16x16x32xf32>,
    return
  }
  func.func @transform_0(%arg0: i32) -> (i32, i32, i32, i32) {
    %c0_i32 = arith.constant 0 : i32
    %c0_i32_0 = arith.constant 0 : i32
    %c0_i32_1 = arith.constant 0 : i32
    %c0_i32_2 = arith.constant 0 : i32
    return %arg0, %c0_i32, %c0_i32_0, %c0_i32_1 : i32, i32, i32, i32
  }
  func.func @transform_1(%arg0: i32) -> (i32, i32) {
    %c0_i32 = arith.constant 0 : i32
    %c0_i32_0 = arith.constant 0 : i32
    %c0_i32_1 = arith.constant 0 : i32
    return %c0_i32, %c0_i32_0 : i32, i32
  }
  func.func @transform_2(%arg0: i32) -> (i32, i32) {
    %c0_i32 = arith.constant 0 : i32
    %c0_i32_0 = arith.constant 0 : i32
    %c0_i32_1 = arith.constant 0 : i32
    return %c0_i32, %c0_i32_0 : i32, i32
  }
  func.func @transform_3(%arg0: i32) -> (i32, i32) {
    %c0_i32 = arith.constant 0 : i32
    %c0_i32_0 = arith.constant 0 : i32
    %c0_i32_1 = arith.constant 0 : i32
    return %c0_i32, %c0_i32_0 : i32, i32
  }
  func.func @transform_4(%arg0: i32) -> (i32, i32) {
    %c0_i32 = arith.constant 0 : i32
    %c0_i32_0 = arith.constant 0 : i32
    %c0_i32_1 = arith.constant 0 : i32
    return %c0_i32, %c0_i32_0 : i32, i32
  }
  func.func @transform_5(%arg0: i32) -> (i32, i32) {
    %c0_i32 = arith.constant 0 : i32
    %c0_i32_0 = arith.constant 0 : i32
    %c0_i32_1 = arith.constant 0 : i32
    return %c0_i32, %c0_i32_0 : i32, i32
  }
  func.func @transform_6(%arg0: i32) -> (i32, i32) {
    %c0_i32 = arith.constant 0 : i32
    %c0_i32_0 = arith.constant 0 : i32
    %c0_i32_1 = arith.constant 0 : i32
    return %c0_i32, %c0_i32_0 : i32, i32
  }
  func.func @transform_7(%arg0: i32) -> (i32, i32) {
    %c0_i32 = arith.constant 0 : i32
    %c0_i32_0 = arith.constant 0 : i32
    %c0_i32_1 = arith.constant 0 : i32
    return %c0_i32, %c0_i32_0 : i32, i32
  }
  func.func @transform_8(%arg0: i32) -> (i32, i32) {
    %c0_i32 = arith.constant 0 : i32
    %c0_i32_0 = arith.constant 0 : i32
    %c0_i32_1 = arith.constant 0 : i32
    return %c0_i32, %c0_i32_0 : i32, i32
  }
  func.func @transform_9(%arg0: i32) -> (i32, i32) {
    %c0_i32 = arith.constant 0 : i32
    %c0_i32_0 = arith.constant 0 : i32
    %c0_i32_1 = arith.constant 0 : i32
    return %c0_i32, %c0_i32_0 : i32, i32
  }
  func.func @transform_10(%arg0: i32) -> (i32, i32) {
    %c0_i32 = arith.constant 0 : i32
    %c0_i32_0 = arith.constant 0 : i32
    %c0_i32_1 = arith.constant 0 : i32
    return %c0_i32, %c0_i32_0 : i32, i32
  }
  func.func @transform_11(%arg0: i32) -> (i32, i32, i32, i32) {
    %c0_i32 = arith.constant 0 : i32
    %c0_i32_0 = arith.constant 0 : i32
    %c0_i32_1 = arith.constant 0 : i32
    %c0_i32_2 = arith.constant 0 : i32
    return %arg0, %c0_i32, %c0_i32_0, %c0_i32_1 : i32, i32, i32, i32
  }
}

</mosaic_0001>

<bundles_post_ra>
// kernel: tpu_custom_call.1
= control target key start
LH: loop header
LB: loop body
LE: loop exit
PB: predicated region body
PF: predicated region fallthrough
CT: control target
= control target key end

     0   :  { %16 = vsyncpa [#allocation6], 0  ;;  %s15075_s0 = inlined_call_operand.hbm [shape: f32[2,16,16,16], index: 0, kind: input, shape index: {}]   ;;  %s15076_s1 = inlined_call_operand.vmem [shape: bf16[144,32], index: 1, kind: input, shape index: {}]   ;;  %s15077_s2 = inlined_call_operand.vmem [shape: bf16[144,32], index: 2, kind: input, shape index: {}]   ;;  %s15078_s3 = inlined_call_operand.vmem [shape: f32[16,32], index: 3, kind: input, shape index: {}]   ;;  %s15079_s4 = inlined_call_operand.vmem [shape: f32[1,32], index: 4, kind: input, shape index: {}]   ;;  %s15080_s5 = inlined_call_operand.vmem [shape: f32[1,32], index: 5, kind: input, shape index: {}]   ;;  %s15081_s6 = inlined_call_operand.vmem [shape: f32[1,32], index: 6, kind: input, shape index: {}]   ;;  %s15082_s7 = inlined_call_operand.vmem [shape: bf16[32,32], index: 7, kind: input, shape index: {}]   ;;  %s15083_s8 = inlined_call_operand.vmem [shape: bf16[32,32], index: 8, kind: input, shape index: {}]   ;;  %s15084_s9 = inlined_call_operand.vmem [shape: f32[32,32], index: 9, kind: input, shape index: {}]   ;;  %s15085_s10 = inlined_call_operand.vmem [shape: f32[1,32], index: 10, kind: input, shape index: {}]   ;;  %s15086_s11 = inlined_call_operand.hbm [shape: f32[2,16,16,32], index: 11, kind: output, shape index: {}]  }
   0x1   :  { %18 = vsyncpa [#allocation6 + $0x1], 0 }
   0x2   :  { %19 = vsyncpa [#allocation7], 0 }
   0x3   :  { %21 = vsyncpa [#allocation7 + $0x1], 0  ;;  %s10635_s17 = smov 0   ;;  %s10637_s18 = smov 0  }
   0x4   :  { %s10639_s19 = smov 0   ;;  %s10641_s20 = smov 0  }
   0x5 LB: > { %15093 = sst [smem:[#allocation11_spill]] %s10552_s19  ;;  %s10656_s21 = sadd.s32 4294967295, %s10556_s20   ;;  %s10556_s20 = sphi %s10641_s20, %s15120_s20   ;;  %s10552_s19 = sphi %s10639_s19, %s15125_s19   ;;  %s10548_s18 = sphi %s10637_s18, %s15124_s18   ;;  %s10544_s17 = sphi %s10635_s17, %s15123_s17  }
   0x6   : > { %s9746_s22 = sadd.s32 4294967294, %s10556_s20   ;;  %s10660_s23 = sadd.s32 1, %s10556_s20  }
   0x7   : > { %15094 = sst [smem:[#allocation12_spill]] %s10660_s23  ;;  %s34_s24 = sadd.s32 1, %s10552_s19 }
   0x8   : > { %s31_s25 = ssub.s32 %s10556_s20, %s10660_s23  ;;  %p41_p0 = scmp.ne.s32.totalorder %s10552_s19, %s10548_s18 }
   0x9   : > { %p32_p1 = scmp.eq.s32.totalorder %s31_s25, 0  ;;  %p42_p2 = scmp.eq.s32.totalorder %s10556_s20, 0 }
   0xa   : > { %p47_p3 = scmp.ne.s32.totalorder %s10548_s18, %s10544_s17  ;;  %p48_p4 = scmp.eq.s32.totalorder %s10656_s21, 0 }
   0xb   : > { %s10672_s26 = scalar_select %p32_p1, %s10552_s19, %s34_s24  }
   0xc   : > { %p10674_p5 = por %p42_p2, %p41_p0  ;;  %p10678_p6 = por %p48_p4, %p47_p3 }
   0xd   : > { %15095 = sst [smem:[#allocation13_spill]] %s10672_s26  ;;  %p281_p7 = scmp.eq.s32.totalorder %s10656_s21, 1 }
   0xe   : > { %s15097_s28 = scalar_select %p10678_p6, 1, 0 }
   0xf   : > { %p287_p8 = scmp.eq.s32.totalorder %s9746_s22, 1  ;;  %p10320_p10 = scmp.lt.s32.totalorder %s10556_s20, 2 }
  0x10   : > { %p10685_p11 = por %p281_p7, %p41_p0  ;;  %s337_s12 = sand.u32 1, %s10552_s19  }
  0x11   : > { %p10689_p12 = por %p287_p8, %p47_p3  ;;  %s10140_s13 = sshll.u32 %s10556_s20, 12 }
  0x12   : > { %s15098_s29 = scalar_select %p10685_p11, 1, 0 }
  0x13   : > { %s15099_s30 = scalar_select %p10689_p12, 1, 0 }
  0x14   : > { %s9749_s14 = sshll.u32 %s337_s12, 8  ;;  %s10698_s24 = scalar_lea.hbm %s15075_s0, %s10140_s13 }
  0x15   : > { %15100 = sst [smem:[#allocation14_spill]] %s15099_s30  ;;  %s341_s22 = scalar_lea.vmem [#allocation5], %s9749_s14 }
  0x16   : > { %s348_s25 = sshll.u32 %s341_s22, 4  ;;  %p10702_p13 = pnand %p10320_p10, %p10674_p5  ;;  %s10706_s25 = int_to_ptr.vmem [resolvable:$true] %s348_s25 }
  0x17   : > { %s10708_s19 = scalar_lea.sflag [#allocation6], %s337_s12  ;;  %s10464_s23 = scalar_lea.hbm %s10698_s24, 4096 }
  0x18   : > { %p10465_p0 = scmp.ne.s32.totalorder %s10698_s24, %s10464_s23  ;;  %p10466_p1 = pneg %p10702_p13 }
  0x19   : > { %s10469_s14 = scalar_lea.hbm %s15075_s0, 8192  ;;  %p10470_p4 = scmp.lt.s32.totalorder %s10698_s24, %s15075_s0 }
  0x1a   : > { %p10467_p2 = pnand %p10466_p1, %p10465_p0  ;;  %p10471_p5 = scmp.lt.s32.totalorder %s10469_s14, %s10464_s23 }
  0x1c   : > { %p10468_p3 = pneg %p10467_p2  ;;  %p10472_p7 = por %p10471_p5, %p10470_p4 }
  0x1e   : > { %p10473_p8 = pnand %p10472_p7, %p10468_p3 }
  0x20   : > { %10476 = shalt.err (!%p10473_p8)
}
  0x21   : > { %s10477_s12 = scalar_lea.vmem %s10706_s25, 4096  ;;  %s10558_s22 = smov [#allocation5]  }
  0x22   : > { %p10478_p10 = scmp.ne.s32.totalorder %s10706_s25, %s10477_s12  ;;  %s10482_s30 = sshll.u32 %s10558_s22, 4  ;;  %s10483_s30 = int_to_ptr.vmem [resolvable:$false] %s10482_s30 }
  0x23   : > { %s10484_s13 = scalar_lea.vmem %s10483_s30, 8192  ;;  %p10485_p2 = scmp.lt.s32.totalorder %s10706_s25, %s10483_s30 }
  0x24   : > { %p10480_p9 = pnand %p10478_p10, %p10466_p1  ;;  %p10486_p12 = scmp.lt.s32.totalorder %s10484_s13, %s10477_s12 }
  0x26   : > { %p10481_p0 = pneg %p10480_p9  ;;  %p10487_p11 = por %p10486_p12, %p10485_p2 }
  0x28   : > { %p10488_p6 = pnand %p10487_p11, %p10481_p0 }
  0x2a   : > { %10491 = shalt.err (!%p10488_p6)
}
  0x2b   : > { %s10559_s23 = smov 128   ;;  %s10560_s15 = smov 8  }
  0x2c   : > { %10315 = dma.hbm_to_vmem [thread:$0]  (!%p10702_p13), %s10698_s24, 4096, %s10706_s25, %s10708_s19, %s10559_s23, %s10559_s23, %s10560_s15  }
  0x2d   : > { %p9752_p9 = scmp.ge.s32.totalorder %s10556_s20, 1  ;;  %p356_p1 = scmp.lt.s32.totalorder %s10556_s20, 3 }
  0x2f   : > { %p357_p3 = pnand %p9752_p9, %p356_p1 }
  0x30   : > { %s10732_s30 = sand.u32 (!%p357_p3), 1, %s10548_s18   ;;  %p15102_p6 = scmp.ne.s32.totalorder (!%p357_p3), %s15097_s28, 0 }
  0x31   : > { %360 = sbr.rel (%p357_p3) target bundleno = 1618 (0x652), region = 64  ;;  %s9753_s14 = sshll.u32 (!%p357_p3), %s10732_s30, 8 }
  0x32   : > { %s363_s27 = scalar_lea.sflag (!%p357_p3), [#allocation6], %s10732_s30  ;;  %s10736_s16 = scalar_lea.vmem (!%p357_p3), [#allocation5], %s9753_s14 }
  0x36   : > { %10535 = dma.done.wait (%p15102_p6), %s363_s27, 4096  }
  0x37   : > { %10537 = vsyncadd (%p15102_p6), %s363_s27, 4294963200  ;;  %s10742_s19 = scalar_lea.vmem [#allocation8], %s9753_s14  ;;  %p9755_p11 = scmp.ne.s32.totalorder %s10656_s21, 0 }
  0x39   : > { %409 = sbr.rel (%p9755_p11) target bundleno = 119 (0x77), region = 72 }
  0x3e   : > { %vm410_vm0 = vcmask 125952   ;;  %vm414_vm1 = vcmask 123904   ;;  %v10561_v0 = vmov 0  }
  0x3f   : > { %411 = vst.msk [vmem:[#allocation2] sm:$0xf] %vm410_vm0, %v10561_v0  ;;  %412 = vst.msk [vmem:[#allocation2 + $0x4] sm:$0xf] %vm410_vm0, %v10561_v0 }
  0x40   : > { %413 = vst.msk [vmem:[#allocation2 + $0x8] sm:$0xf] %vm410_vm0, %v10561_v0  ;;  %416 = vst.msk [vmem:[#allocation2 + $0x10] sm:$0xf] %vm410_vm0, %v10561_v0 }
  0x41   : > { %417 = vst.msk [vmem:[#allocation2 + $0x14] sm:$0xf] %vm410_vm0, %v10561_v0  ;;  %418 = vst.msk [vmem:[#allocation2 + $0x18] sm:$0xf] %vm410_vm0, %v10561_v0 }
  0x42   : > { %420 = vst.msk [vmem:[#allocation2 + $0x20] sm:$0xf] %vm410_vm0, %v10561_v0  ;;  %421 = vst.msk [vmem:[#allocation2 + $0x24] sm:$0xf] %vm410_vm0, %v10561_v0 }
  0x43   : > { %422 = vst.msk [vmem:[#allocation2 + $0x28] sm:$0xf] %vm410_vm0, %v10561_v0  ;;  %424 = vst.msk [vmem:[#allocation2 + $0x30] sm:$0xf] %vm410_vm0, %v10561_v0 }
  0x44   : > { %425 = vst.msk [vmem:[#allocation2 + $0x34] sm:$0xf] %vm410_vm0, %v10561_v0  ;;  %426 = vst.msk [vmem:[#allocation2 + $0x38] sm:$0xf] %vm410_vm0, %v10561_v0 }
  0x45   : > { %428 = vst.msk [vmem:[#allocation2 + $0x40] sm:$0xf] %vm410_vm0, %v10561_v0  ;;  %429 = vst.msk [vmem:[#allocation2 + $0x44] sm:$0xf] %vm410_vm0, %v10561_v0 }
  0x46   : > { %430 = vst.msk [vmem:[#allocation2 + $0x48] sm:$0xf] %vm410_vm0, %v10561_v0  ;;  %432 = vst.msk [vmem:[#allocation2 + $0x50] sm:$0xf] %vm410_vm0, %v10561_v0 }
  0x47   : > { %433 = vst.msk [vmem:[#allocation2 + $0x54] sm:$0xf] %vm410_vm0, %v10561_v0  ;;  %434 = vst.msk [vmem:[#allocation2 + $0x58] sm:$0xf] %vm410_vm0, %v10561_v0 }
  0x48   : > { %436 = vst.msk [vmem:[#allocation2 + $0x60] sm:$0xf] %vm410_vm0, %v10561_v0  ;;  %437 = vst.msk [vmem:[#allocation2 + $0x64] sm:$0xf] %vm410_vm0, %v10561_v0 }
  0x49   : > { %438 = vst.msk [vmem:[#allocation2 + $0x68] sm:$0xf] %vm410_vm0, %v10561_v0  ;;  %440 = vst.msk [vmem:[#allocation2 + $0x70] sm:$0xf] %vm410_vm0, %v10561_v0 }
  0x4a   : > { %441 = vst.msk [vmem:[#allocation2 + $0x74] sm:$0xf] %vm410_vm0, %v10561_v0  ;;  %442 = vst.msk [vmem:[#allocation2 + $0x78] sm:$0xf] %vm410_vm0, %v10561_v0 }
  0x4b   : > { %444 = vst.msk [vmem:[#allocation2 + $0x80] sm:$0xf] %vm410_vm0, %v10561_v0  ;;  %445 = vst.msk [vmem:[#allocation2 + $0x84] sm:$0xf] %vm410_vm0, %v10561_v0 }
  0x4c   : > { %446 = vst.msk [vmem:[#allocation2 + $0x88] sm:$0xf] %vm410_vm0, %v10561_v0  ;;  %448 = vst.msk [vmem:[#allocation2 + $0x90] sm:$0xf] %vm410_vm0, %v10561_v0 }
  0x4d   : > { %449 = vst.msk [vmem:[#allocation2 + $0x94] sm:$0xf] %vm410_vm0, %v10561_v0  ;;  %450 = vst.msk [vmem:[#allocation2 + $0x98] sm:$0xf] %vm410_vm0, %v10561_v0 }
  0x4e   : > { %452 = vst.msk [vmem:[#allocation2 + $0xa0] sm:$0xf] %vm410_vm0, %v10561_v0  ;;  %453 = vst.msk [vmem:[#allocation2 + $0xa4] sm:$0xf] %vm410_vm0, %v10561_v0 }
  0x4f   : > { %454 = vst.msk [vmem:[#allocation2 + $0xa8] sm:$0xf] %vm410_vm0, %v10561_v0  ;;  %456 = vst.msk [vmem:[#allocation2 + $0xb0] sm:$0xf] %vm410_vm0, %v10561_v0 }
  0x50   : > { %457 = vst.msk [vmem:[#allocation2 + $0xb4] sm:$0xf] %vm410_vm0, %v10561_v0  ;;  %458 = vst.msk [vmem:[#allocation2 + $0xb8] sm:$0xf] %vm410_vm0, %v10561_v0 }
  0x51   : > { %460 = vst.msk [vmem:[#allocation2 + $0xc0] sm:$0xf] %vm410_vm0, %v10561_v0  ;;  %461 = vst.msk [vmem:[#allocation2 + $0xc4] sm:$0xf] %vm410_vm0, %v10561_v0 }
  0x52   : > { %462 = vst.msk [vmem:[#allocation2 + $0xc8] sm:$0xf] %vm410_vm0, %v10561_v0  ;;  %464 = vst.msk [vmem:[#allocation2 + $0xd0] sm:$0xf] %vm410_vm0, %v10561_v0 }
  0x53   : > { %465 = vst.msk [vmem:[#allocation2 + $0xd4] sm:$0xf] %vm410_vm0, %v10561_v0  ;;  %466 = vst.msk [vmem:[#allocation2 + $0xd8] sm:$0xf] %vm410_vm0, %v10561_v0 }
  0x54   : > { %468 = vst.msk [vmem:[#allocation2 + $0xe0] sm:$0xf] %vm410_vm0, %v10561_v0  ;;  %469 = vst.msk [vmem:[#allocation2 + $0xe4] sm:$0xf] %vm410_vm0, %v10561_v0 }
  0x55   : > { %470 = vst.msk [vmem:[#allocation2 + $0xe8] sm:$0xf] %vm410_vm0, %v10561_v0  ;;  %472 = vst.msk [vmem:[#allocation2 + $0xf0] sm:$0xf] %vm410_vm0, %v10561_v0 }
  0x56   : > { %473 = vst.msk [vmem:[#allocation2 + $0xf4] sm:$0xf] %vm410_vm0, %v10561_v0  ;;  %474 = vst.msk [vmem:[#allocation2 + $0xf8] sm:$0xf] %vm410_vm0, %v10561_v0 }
  0x57   : > { %476 = vst.msk [vmem:[#allocation2 + $0x100] sm:$0xf] %vm410_vm0, %v10561_v0  ;;  %477 = vst.msk [vmem:[#allocation2 + $0x104] sm:$0xf] %vm410_vm0, %v10561_v0 }
  0x58   : > { %478 = vst.msk [vmem:[#allocation2 + $0x108] sm:$0xf] %vm410_vm0, %v10561_v0  ;;  %480 = vst.msk [vmem:[#allocation2 + $0x110] sm:$0xf] %vm410_vm0, %v10561_v0 }
  0x59   : > { %481 = vst.msk [vmem:[#allocation2 + $0x114] sm:$0xf] %vm410_vm0, %v10561_v0  ;;  %482 = vst.msk [vmem:[#allocation2 + $0x118] sm:$0xf] %vm410_vm0, %v10561_v0 }
  0x5a   : > { %484 = vst.msk [vmem:[#allocation2 + $0x120] sm:$0xf] %vm410_vm0, %v10561_v0  ;;  %485 = vst.msk [vmem:[#allocation2 + $0x124] sm:$0xf] %vm410_vm0, %v10561_v0 }
  0x5b   : > { %486 = vst.msk [vmem:[#allocation2 + $0x128] sm:$0xf] %vm410_vm0, %v10561_v0  ;;  %488 = vst.msk [vmem:[#allocation2 + $0x130] sm:$0xf] %vm410_vm0, %v10561_v0 }
  0x5c   : > { %489 = vst.msk [vmem:[#allocation2 + $0x134] sm:$0xf] %vm410_vm0, %v10561_v0  ;;  %490 = vst.msk [vmem:[#allocation2 + $0x138] sm:$0xf] %vm410_vm0, %v10561_v0 }
  0x5d   : > { %492 = vst.msk [vmem:[#allocation2 + $0x140] sm:$0xf] %vm410_vm0, %v10561_v0  ;;  %493 = vst.msk [vmem:[#allocation2 + $0x144] sm:$0xf] %vm410_vm0, %v10561_v0 }
  0x5e   : > { %494 = vst.msk [vmem:[#allocation2 + $0x148] sm:$0xf] %vm410_vm0, %v10561_v0  ;;  %496 = vst.msk [vmem:[#allocation2 + $0x150] sm:$0xf] %vm410_vm0, %v10561_v0 }
  0x5f   : > { %497 = vst.msk [vmem:[#allocation2 + $0x154] sm:$0xf] %vm410_vm0, %v10561_v0  ;;  %498 = vst.msk [vmem:[#allocation2 + $0x158] sm:$0xf] %vm410_vm0, %v10561_v0 }
  0x60   : > { %500 = vst.msk [vmem:[#allocation2 + $0x160] sm:$0xf] %vm410_vm0, %v10561_v0  ;;  %501 = vst.msk [vmem:[#allocation2 + $0x164] sm:$0xf] %vm410_vm0, %v10561_v0 }
  0x61   : > { %502 = vst.msk [vmem:[#allocation2 + $0x168] sm:$0xf] %vm410_vm0, %v10561_v0  ;;  %504 = vst.msk [vmem:[#allocation2 + $0x170] sm:$0xf] %vm410_vm0, %v10561_v0 }
  0x62   : > { %505 = vst.msk [vmem:[#allocation2 + $0x174] sm:$0xf] %vm410_vm0, %v10561_v0  ;;  %506 = vst.msk [vmem:[#allocation2 + $0x178] sm:$0xf] %vm410_vm0, %v10561_v0 }
  0x63   : > { %508 = vst.msk [vmem:[#allocation2 + $0x180] sm:$0xf] %vm410_vm0, %v10561_v0  ;;  %509 = vst.msk [vmem:[#allocation2 + $0x184] sm:$0xf] %vm410_vm0, %v10561_v0 }
  0x64   : > { %510 = vst.msk [vmem:[#allocation2 + $0x188] sm:$0xf] %vm410_vm0, %v10561_v0  ;;  %512 = vst.msk [vmem:[#allocation2 + $0x190] sm:$0xf] %vm410_vm0, %v10561_v0 }
  0x65   : > { %513 = vst.msk [vmem:[#allocation2 + $0x194] sm:$0xf] %vm410_vm0, %v10561_v0  ;;  %514 = vst.msk [vmem:[#allocation2 + $0x198] sm:$0xf] %vm410_vm0, %v10561_v0 }
  0x66   : > { %516 = vst.msk [vmem:[#allocation2 + $0x1a0] sm:$0xf] %vm410_vm0, %v10561_v0  ;;  %517 = vst.msk [vmem:[#allocation2 + $0x1a4] sm:$0xf] %vm410_vm0, %v10561_v0 }
  0x67   : > { %518 = vst.msk [vmem:[#allocation2 + $0x1a8] sm:$0xf] %vm410_vm0, %v10561_v0  ;;  %520 = vst.msk [vmem:[#allocation2 + $0x1b0] sm:$0xf] %vm410_vm0, %v10561_v0 }
  0x68   : > { %521 = vst.msk [vmem:[#allocation2 + $0x1b4] sm:$0xf] %vm410_vm0, %v10561_v0  ;;  %522 = vst.msk [vmem:[#allocation2 + $0x1b8] sm:$0xf] %vm410_vm0, %v10561_v0 }
  0x69   : > { %415 = vst.msk [vmem:[#allocation2 + $0xc] sm:$0x3] %vm414_vm1, %v10561_v0  ;;  %419 = vst.msk [vmem:[#allocation2 + $0x1c] sm:$0x3] %vm414_vm1, %v10561_v0 }
  0x6a   : > { %423 = vst.msk [vmem:[#allocation2 + $0x2c] sm:$0x3] %vm414_vm1, %v10561_v0  ;;  %427 = vst.msk [vmem:[#allocation2 + $0x3c] sm:$0x3] %vm414_vm1, %v10561_v0 }
  0x6b   : > { %431 = vst.msk [vmem:[#allocation2 + $0x4c] sm:$0x3] %vm414_vm1, %v10561_v0  ;;  %435 = vst.msk [vmem:[#allocation2 + $0x5c] sm:$0x3] %vm414_vm1, %v10561_v0 }
  0x6c   : > { %439 = vst.msk [vmem:[#allocation2 + $0x6c] sm:$0x3] %vm414_vm1, %v10561_v0  ;;  %443 = vst.msk [vmem:[#allocation2 + $0x7c] sm:$0x3] %vm414_vm1, %v10561_v0 }
  0x6d   : > { %447 = vst.msk [vmem:[#allocation2 + $0x8c] sm:$0x3] %vm414_vm1, %v10561_v0  ;;  %451 = vst.msk [vmem:[#allocation2 + $0x9c] sm:$0x3] %vm414_vm1, %v10561_v0 }
  0x6e   : > { %455 = vst.msk [vmem:[#allocation2 + $0xac] sm:$0x3] %vm414_vm1, %v10561_v0  ;;  %459 = vst.msk [vmem:[#allocation2 + $0xbc] sm:$0x3] %vm414_vm1, %v10561_v0 }
  0x6f   : > { %463 = vst.msk [vmem:[#allocation2 + $0xcc] sm:$0x3] %vm414_vm1, %v10561_v0  ;;  %467 = vst.msk [vmem:[#allocation2 + $0xdc] sm:$0x3] %vm414_vm1, %v10561_v0 }
  0x70   : > { %471 = vst.msk [vmem:[#allocation2 + $0xec] sm:$0x3] %vm414_vm1, %v10561_v0  ;;  %475 = vst.msk [vmem:[#allocation2 + $0xfc] sm:$0x3] %vm414_vm1, %v10561_v0 }
  0x71   : > { %479 = vst.msk [vmem:[#allocation2 + $0x10c] sm:$0x3] %vm414_vm1, %v10561_v0  ;;  %483 = vst.msk [vmem:[#allocation2 + $0x11c] sm:$0x3] %vm414_vm1, %v10561_v0 }
  0x72   : > { %487 = vst.msk [vmem:[#allocation2 + $0x12c] sm:$0x3] %vm414_vm1, %v10561_v0  ;;  %491 = vst.msk [vmem:[#allocation2 + $0x13c] sm:$0x3] %vm414_vm1, %v10561_v0 }
  0x73   : > { %495 = vst.msk [vmem:[#allocation2 + $0x14c] sm:$0x3] %vm414_vm1, %v10561_v0  ;;  %499 = vst.msk [vmem:[#allocation2 + $0x15c] sm:$0x3] %vm414_vm1, %v10561_v0 }
  0x74   : > { %503 = vst.msk [vmem:[#allocation2 + $0x16c] sm:$0x3] %vm414_vm1, %v10561_v0  ;;  %507 = vst.msk [vmem:[#allocation2 + $0x17c] sm:$0x3] %vm414_vm1, %v10561_v0 }
  0x75   : > { %511 = vst.msk [vmem:[#allocation2 + $0x18c] sm:$0x3] %vm414_vm1, %v10561_v0  ;;  %515 = vst.msk [vmem:[#allocation2 + $0x19c] sm:$0x3] %vm414_vm1, %v10561_v0 }
  0x76   : > { %519 = vst.msk [vmem:[#allocation2 + $0x1ac] sm:$0x3] %vm414_vm1, %v10561_v0  ;;  %523 = vst.msk [vmem:[#allocation2 + $0x1bc] sm:$0x3] %vm414_vm1, %v10561_v0 }
  0x77 PF: > { %v1463_v1 = vld [vmem:[#allocation2 + $0x50] sm:$0x8]  ;;  %v1464_v2 = vld [vmem:[#allocation2 + $0x54] sm:$0xf]  ;;  %vm1559_vm2 = vcmask 1040384   ;;  %vm1560_vm3 = vcmask 1044484  }
  0x78   : > { %vm10969_vm4 = vmor %vm1559_vm2, %vm1560_vm3  ;;  %v9788_v4 = vrot.slane %v1463_v1, 11  ;;  %v1564_v5 = vrot.slane %v1464_v2, 7  ;;  %v1465_v6 = vld [vmem:[#allocation2 + $0x58] sm:$0x7]  ;;  %v524_v7 = vld [vmem:[%s10736_s16] sm:$0xff]  ;;  %vm652_vm5 = vcmask 1042432  }
  0x79   : > { %v1567_v8 = vrot.slane %v1465_v6, 7  ;;  %v525_v9 = vld [vmem:[%s10736_s16 + $0x8] sm:$0xff]  ;;  %v10141_v10 = vpack.c.bf16 %v524_v7, %v524_v7  ;;  %vm653_vm6 = vcmask 1046532   ;;  %v526_v11 = vld [vmem:[%s10736_s16 + $0x10] sm:$0xff]  ;;  %v527_v12 = vld [vmem:[%s10736_s16 + $0x18] sm:$0xff]  ;;  %vm784_vm7 = vcmask 125955  }
  0x7a   : > { %v1565_v13 = vsel %vm10969_vm4, %v9788_v4, %v1564_v5  ;;  %v1566_v14 = vrot.slane %v1564_v5, 4  ;;  %v10142_v15 = vpack.c.bf16 %v525_v9, %v525_v9  ;;  %v528_v16 = vld [vmem:[%s10736_s16 + $0x20] sm:$0xff]  ;;  %v529_v17 = vld [vmem:[%s10736_s16 + $0x28] sm:$0xff]  ;;  %s10562_s26 = smov 16   ;;  %vm786_vm8 = vcmask 125952   ;;  %v530_v21 = vld [vmem:[%s10736_s16 + $0x30] sm:$0xff] }
  0x7b   : > { %1674 = vrot.lane.b32.xlu0 %v1565_v13, %s10562_s26  ;;  %v655_v18 = vrot.slane %v10141_v10, 5  ;;  %v10143_v19 = vpack.c.bf16 %v526_v11, %v526_v11  ;;  %v10144_v20 = vpack.c.bf16 %v527_v12, %v527_v12  ;;  %v531_v22 = vld [vmem:[%s10736_s16 + $0x38] sm:$0xff]  ;;  %vm10988_vm9 = vmor %vm652_vm5, %vm653_vm6  ;;  %vm788_vm10 = vcmask 124928   ;;  %v532_v31 = vld [vmem:[%s10736_s16 + $0x40] sm:$0xff]  ;;  %s10563_s28 = smov 32   ;;  %s10564_s24 = smov 48  }
  0x7c   : > { %v1568_v23 = vsel %vm10969_vm4, %v1566_v14, %v1567_v8  ;;  %v657_v25 = vrot.slane %v10142_v15, 5  ;;  %v10145_v26 = vpack.c.bf16 %v528_v16, %v528_v16  ;;  %v10146_v30 = vpack.c.bf16 %v529_v17, %v529_v17  ;;  %v533_v36 = vld [vmem:[%s10736_s16 + $0x48] sm:$0xff]  ;;  %v534_v37 = vld [vmem:[%s10736_s16 + $0x50] sm:$0xff]  ;;  %v535_v46 = vld [vmem:[%s10736_s16 + $0x58] sm:$0xff]  ;;  %s10565_s25 = smov 64   ;;  %s10566_s12 = smov 80  }
  0x7d   : > { %v656_v27 = vrot.slane %v655_v18, 4  ;;  %785 = vst.msk [vmem:[#allocation2 + $0x60] sm:$0x8] %vm784_vm7, %v655_v18  ;;  %v660_v28 = vrot.slane %v10143_v19, 5  ;;  %v662_v29 = vrot.slane %v10144_v20, 5  ;;  %v10147_v34 = vpack.c.bf16 %v530_v21, %v530_v21  ;;  %v536_v47 = vld [vmem:[%s10736_s16 + $0x60] sm:$0xff] }
  0x7e   : > { %v659_v32 = vrot.slane %v657_v25, 4  ;;  %v665_v33 = vrot.slane %v10145_v26, 5  ;;  %v10148_v35 = vpack.c.bf16 %v531_v22, %v531_v22  ;;  %v667_v40 = vrot.slane %v10146_v30, 5  ;;  %v537_v56 = vld [vmem:[%s10736_s16 + $0x68] sm:$0xff]  ;;  %v11024_v9 = vld [vmem:[%s10736_s16 + $0x70] sm:$0xff]  ;;  %v11027_v10 = vld [vmem:[%s10736_s16 + $0x78] sm:$0xff] }
  0x7f   : > { %1676 = vrot.lane.b32.xlu0 %v1568_v23, %s10562_s26  ;;  %v658_v38 = vsel %vm10988_vm9, %v656_v27, %v657_v25  ;;  %v661_v39 = vrot.slane %v660_v28, 4  ;;  %790 = vst.msk [vmem:[#allocation2 + $0x70] sm:$0x8] %vm784_vm7, %v660_v28  ;;  %v664_v41 = vrot.slane %v662_v29, 4  ;;  %v670_v43 = vrot.slane %v10147_v34, 5  ;;  %v11034_v15 = vld [vmem:[%s10736_s16 + $0x80] sm:$0xff] }
  0x80   : > { %787 = vst.msk [vmem:[#allocation2 + $0x64] sm:$0xf] %vm786_vm8, %v658_v38  ;;  %v666_v42 = vrot.slane %v665_v33, 4  ;;  %v672_v44 = vrot.slane %v10148_v35, 5  ;;  %v10149_v45 = vpack.c.bf16 %v532_v31, %v532_v31  ;;  %v669_v49 = vrot.slane %v667_v40, 4  ;;  %v11039_v20 = vld [vmem:[%s10736_s16 + $0x88] sm:$0xff] }
  0x81   : > { %789 = vst.msk [vmem:[#allocation2 + $0x68] sm:$0x7] %vm788_vm10, %v659_v32  ;;  %v663_v48 = vsel %vm10988_vm9, %v661_v39, %v662_v29  ;;  %792 = vst.msk [vmem:[#allocation2 + $0x78] sm:$0x7] %vm788_vm10, %v664_v41  ;;  %v10150_v50 = vpack.c.bf16 %v533_v36, %v533_v36  ;;  %v10151_v51 = vpack.c.bf16 %v534_v37, %v534_v37  ;;  %v671_v53 = vrot.slane %v670_v43, 4  ;;  %v11047_v27 = vld [vmem:[%s10736_s16 + $0x90] sm:$0xff] }
  0x82   : > { %793 = vst.msk [vmem:[#allocation2 + $0x80] sm:$0x8] %vm784_vm7, %v665_v33  ;;  %v668_v52 = vsel %vm10988_vm9, %v666_v42, %v667_v40  ;;  %796 = vst.msk [vmem:[#allocation2 + $0x90] sm:$0x8] %vm784_vm7, %v670_v43  ;;  %v675_v54 = vrot.slane %v10149_v45, 5  ;;  %v674_v55 = vrot.slane %v672_v44, 4  ;;  %v10152_v58 = vpack.c.bf16 %v535_v46, %v535_v46 }
  0x83   : > { %791 = vst.msk [vmem:[#allocation2 + $0x74] sm:$0xf] %vm786_vm8, %v663_v48  ;;  %794 = vst.msk [vmem:[#allocation2 + $0x84] sm:$0xf] %vm786_vm8, %v668_v52  ;;  %v677_v57 = vrot.slane %v10150_v50, 5  ;;  %v680_v59 = vrot.slane %v10151_v51, 5  ;;  %v10153_v60 = vpack.c.bf16 %v536_v47, %v536_v47  ;;  %v673_v62 = vsel %vm10988_vm9, %v671_v53, %v672_v44 }
  0x84   : > { %795 = vst.msk [vmem:[#allocation2 + $0x88] sm:$0x7] %vm788_vm10, %v669_v49  ;;  %v1466_v61 = vld [vmem:[#allocation2 + $0x60] sm:$0x8]  ;;  %v676_v63 = vrot.slane %v675_v54, 4  ;;  %v682_v1 = vrot.slane %v10152_v58, 5  ;;  %v10154_v4 = vpack.c.bf16 %v537_v56, %v537_v56  ;;  %v10155_v26 = vpack.c.bf16 %v11024_v9, %v11024_v9 }
  0x85   : > { %799 = vst.msk [vmem:[#allocation2 + $0xa0] sm:$0x8] %vm784_vm7, %v675_v54  ;;  %v681_v0 = vrot.slane %v680_v59, 4  ;;  %802 = vst.msk [vmem:[#allocation2 + $0xb0] sm:$0x8] %vm784_vm7, %v680_v59  ;;  %v679_v2 = vrot.slane %v677_v57, 4  ;;  %v10156_v34 = vpack.c.bf16 %v11027_v10, %v11027_v10  ;;  %v10157_v38 = vpack.c.bf16 %v11034_v15, %v11034_v15 }
  0x86   : > { %798 = vst.msk [vmem:[#allocation2 + $0x98] sm:$0x7] %vm788_vm10, %v674_v55  ;;  %v9789_v5 = vrot.slane %v1466_v61, 11  ;;  %v1469_v6 = vld [vmem:[#allocation2 + $0x70] sm:$0x8]  ;;  %v678_v7 = vsel %vm10988_vm9, %v676_v63, %v677_v57  ;;  %v685_v8 = vrot.slane %v10153_v60, 5  ;;  %v10158_v39 = vpack.c.bf16 %v11039_v20, %v11039_v20 }
  0x87   : > { %797 = vst.msk [vmem:[#allocation2 + $0x94] sm:$0xf] %vm786_vm8, %v673_v62  ;;  %v1467_v11 = vld [vmem:[#allocation2 + $0x64] sm:$0xf]  ;;  %800 = vst.msk [vmem:[#allocation2 + $0xa4] sm:$0xf] %vm786_vm8, %v678_v7  ;;  %v683_v13 = vsel %vm10988_vm9, %v681_v0, %v682_v1  ;;  %v10159_v57 = vpack.c.bf16 %v11047_v27, %v11047_v27 }
  0x88   : > { %v1468_v12 = vld [vmem:[#allocation2 + $0x68] sm:$0x7]  ;;  %801 = vst.msk [vmem:[#allocation2 + $0xa8] sm:$0x7] %vm788_vm10, %v679_v2  ;;  %v684_v14 = vrot.slane %v682_v1, 4  ;;  %v1571_v16 = vrot.slane %v1467_v11, 7 }
  0x89   : > { %v9790_v17 = vrot.slane %v1469_v6, 11  ;;  %v1574_v18 = vrot.slane %v1468_v12, 7  ;;  %v1472_v19 = vld [vmem:[#allocation2 + $0x80] sm:$0x8]  ;;  %803 = vst.msk [vmem:[#allocation2 + $0xb4] sm:$0xf] %vm786_vm8, %v683_v13 }
  0x8a   : > { %805 = vst.msk [vmem:[#allocation2 + $0xc0] sm:$0x8] %vm784_vm7, %v685_v8  ;;  %v1470_v21 = vld [vmem:[#allocation2 + $0x74] sm:$0xf]  ;;  %v9791_v22 = vrot.slane %v1472_v19, 11  ;;  %v11041_v25 = vrot.slane %v10154_v4, 5  ;;  %v1572_v29 = vsel %vm10969_vm4, %v9789_v5, %v1571_v16 }
  0x8b   : > { %v1471_v23 = vld [vmem:[#allocation2 + $0x78] sm:$0x7]  ;;  %804 = vst.msk [vmem:[#allocation2 + $0xb8] sm:$0x7] %vm788_vm10, %v684_v14  ;;  %v1578_v30 = vrot.slane %v1470_v21, 7  ;;  %v1573_v31 = vrot.slane %v1571_v16, 4  ;;  %1678 = vrot.lane.b32.xlu1 %v1572_v29, %s10562_s26 }
  0x8c   : > { %v11050_v28 = vld [vmem:[%s10736_s16 + $0x98] sm:$0xff]  ;;  %v1473_v32 = vld [vmem:[#allocation2 + $0x84] sm:$0xf]  ;;  %v1475_v33 = vld [vmem:[#allocation2 + $0x90] sm:$0x8]  ;;  %v686_v37 = vrot.slane %v685_v8, 4 }
  0x8d   : > { %v1585_v35 = vrot.slane %v1473_v32, 7  ;;  %v1474_v36 = vld [vmem:[#allocation2 + $0x88] sm:$0x7]  ;;  %v544_v40 = vld [vmem:[%s10736_s16 + $0xa0] sm:$0xff]  ;;  %v1579_v42 = vsel %vm10969_vm4, %v9790_v17, %v1578_v30  ;;  %v1575_v43 = vsel %vm10969_vm4, %v1573_v31, %v1574_v18  ;;  %v1580_v44 = vrot.slane %v1578_v30, 4  ;;  %v546_v59 = vld [vmem:[%s10736_s16 + $0xb0] sm:$0xff] }
  0x8e   : > { %v11063_v41 = vld [vmem:[%s10736_s16 + $0xa8] sm:$0xff]  ;;  %v1581_v45 = vrot.slane %v1471_v23, 7  ;;  %v1476_v46 = vld [vmem:[#allocation2 + $0x94] sm:$0xf]  ;;  %v1478_v47 = vld [vmem:[#allocation2 + $0xa0] sm:$0x8]  ;;  %1682 = vrot.lane.b32.xlu0 %v1579_v42, %s10562_s26  ;;  %v688_v56 = vsel %vm10988_vm9, %v686_v37, %v11041_v25  ;;  %v10160_v58 = vpack.c.bf16 %v11050_v28, %v11050_v28  ;;  %v10161_v0 = vpack.c.bf16 %v544_v40, %v544_v40 }
  0x8f   : > { %v9792_v48 = vrot.slane %v1475_v33, 11  ;;  %v1592_v49 = vrot.slane %v1476_v46, 7  ;;  %v1587_v50 = vrot.slane %v1585_v35, 4  ;;  %v1588_v51 = vrot.slane %v1474_v36, 7  ;;  %v1477_v52 = vld [vmem:[#allocation2 + $0x98] sm:$0x7]  ;;  %1680 = vrot.lane.b32.xlu1 %v1575_v43, %s10562_s26 }
  0x90   : > { %v1586_v53 = vsel %vm10969_vm4, %v9791_v22, %v1585_v35  ;;  %v1479_v54 = vld [vmem:[#allocation2 + $0xa4] sm:$0xf]  ;;  %v11072_v55 = vld [vmem:[#allocation2 + $0xb0] sm:$0x8]  ;;  %v9793_v60 = vrot.slane %v1478_v47, 11  ;;  %v10162_v1 = vpack.c.bf16 %v11063_v41, %v11063_v41  ;;  %v1582_v2 = vsel %vm10969_vm4, %v1580_v44, %v1581_v45  ;;  %v547_v19 = vld [vmem:[%s10736_s16 + $0xb8] sm:$0xff] }
  0x91   : > { %v1599_v61 = vrot.slane %v1479_v54, 7  ;;  %v11083_v62 = vld [vmem:[#allocation2 + $0xb4] sm:$0xf]  ;;  %v11085_v63 = vld [vmem:[#allocation2 + $0xa8] sm:$0x7]  ;;  %v1594_v4 = vrot.slane %v1592_v49, 4  ;;  %v1593_v7 = vsel %vm10969_vm4, %v9792_v48, %v1592_v49  ;;  %v1589_v8 = vsel %vm10969_vm4, %v1587_v50, %v1588_v51 }
  0x92   : > { %806 = vst.msk [vmem:[#allocation2 + $0xc4] sm:$0xf] %vm786_vm8, %v688_v56  ;;  %v1595_v5 = vrot.slane %v1477_v52, 7  ;;  %v690_v6 = vrot.slane %v10155_v26, 5  ;;  %1686 = vrot.lane.b32.xlu0 %v1586_v53, %s10562_s26  ;;  %v9794_v9 = vrot.slane %v11072_v55, 11  ;;  %v10163_v10 = vpack.c.bf16 %v546_v59, %v546_v59  ;;  %v548_v35 = vld [vmem:[%s10736_s16 + $0xc0] sm:$0xff] }
  0x93   : > { %v1606_v11 = vrot.slane %v11083_v62, 7  ;;  %v1602_v12 = vrot.slane %v11085_v63, 7  ;;  %v692_v14 = vrot.slane %v10156_v34, 5  ;;  %1684 = vrot.lane.b32.xlu1 %v1582_v2, %s10562_s26  ;;  %v1600_v15 = vsel %vm10969_vm4, %v9793_v60, %v1599_v61  ;;  %v11111_v26 = vld [vmem:[#allocation2 + $0xc0] sm:$0x8]  ;;  %v549_v40 = vld [vmem:[%s10736_s16 + $0xc8] sm:$0xff] }
  0x94   : > { %v691_v13 = vrot.slane %v690_v6, 4  ;;  %808 = vst.msk [vmem:[#allocation2 + $0xd0] sm:$0x8] %vm784_vm7, %v690_v6  ;;  %v689_v16 = vrot.slane %v11041_v25, 4  ;;  %v695_v17 = vrot.slane %v10157_v38, 5  ;;  %v697_v18 = vrot.slane %v10158_v39, 5 }
  0x95   : > { %v1596_v20 = vsel %vm10969_vm4, %v1594_v4, %v1595_v5  ;;  %v694_v22 = vrot.slane %v692_v14, 4  ;;  %v700_v23 = vrot.slane %v10159_v57, 5  ;;  %v702_v27 = vrot.slane %v10160_v58, 5  ;;  %v1483_v41 = vld [vmem:[#allocation2 + $0xb8] sm:$0x7]  ;;  %v550_v55 = vld [vmem:[%s10736_s16 + $0xd0] sm:$0xff] }
  0x96   : > { %v693_v21 = vsel %vm10988_vm9, %v691_v13, %v692_v14  ;;  %1690 = vrot.lane.b32.xlu0 %v1593_v7, %s10562_s26  ;;  %807 = vst.msk [vmem:[#allocation2 + $0xc8] sm:$0x7] %vm788_vm10, %v689_v16  ;;  %v696_v25 = vrot.slane %v695_v17, 4  ;;  %v699_v28 = vrot.slane %v697_v18, 4  ;;  %v705_v29 = vrot.slane %v10161_v0, 5  ;;  %v11153_v2 = vld [vmem:[%s10736_s16 + $0xe0] sm:$0xff] }
  0x97   : > { %809 = vst.msk [vmem:[#allocation2 + $0xd4] sm:$0xf] %vm786_vm8, %v693_v21  ;;  %v701_v31 = vrot.slane %v700_v23, 4  ;;  %v707_v32 = vrot.slane %v10162_v1, 5  ;;  %v10164_v33 = vpack.c.bf16 %v547_v19, %v547_v19  ;;  %v710_v34 = vrot.slane %v10163_v10, 5  ;;  %1688 = vrot.lane.b32.xlu1 %v1589_v8, %s10562_s26  ;;  %v11150_v1 = vld [vmem:[%s10736_s16 + $0xd8] sm:$0xff] }
  0x98   : > { %811 = vst.msk [vmem:[#allocation2 + $0xe0] sm:$0x8] %vm784_vm7, %v695_v17  ;;  %814 = vst.msk [vmem:[#allocation2 + $0xf0] sm:$0x8] %vm784_vm7, %v700_v23  ;;  %v1601_v36 = vrot.slane %v1599_v61, 4  ;;  %v698_v37 = vsel %vm10988_vm9, %v696_v25, %v697_v18  ;;  %v706_v38 = vrot.slane %v705_v29, 4  ;;  %v10165_v49 = vpack.c.bf16 %v548_v35, %v548_v35 }
  0x99   : > { %v1485_v30 = vld [vmem:[#allocation2 + $0xc4] sm:$0xf]  ;;  %810 = vst.msk [vmem:[#allocation2 + $0xd8] sm:$0x7] %vm788_vm10, %v694_v22  ;;  %813 = vst.msk [vmem:[#allocation2 + $0xe8] sm:$0x7] %vm788_vm10, %v699_v28  ;;  %v703_v42 = vsel %vm10988_vm9, %v701_v31, %v702_v27  ;;  %v1607_v50 = vsel %vm10969_vm4, %v9794_v9, %v1606_v11  ;;  %v10166_v53 = vpack.c.bf16 %v549_v40, %v549_v40 }
  0x9a   : > { %817 = vst.msk [vmem:[#allocation2 + $0x100] sm:$0x8] %vm784_vm7, %v705_v29  ;;  %v704_v39 = vrot.slane %v702_v27, 4  ;;  %v711_v43 = vrot.slane %v710_v34, 4  ;;  %v712_v44 = vrot.slane %v10164_v33, 5  ;;  %v709_v45 = vrot.slane %v707_v32, 4  ;;  %1694 = vrot.lane.b32.xlu0 %v1600_v15, %s10562_s26 }
  0x9b   : > { %812 = vst.msk [vmem:[#allocation2 + $0xe4] sm:$0xf] %vm786_vm8, %v698_v37  ;;  %v9795_v46 = vrot.slane %v11111_v26, 11  ;;  %v1613_v47 = vrot.slane %v1485_v30, 7  ;;  %815 = vst.msk [vmem:[#allocation2 + $0xf4] sm:$0xf] %vm786_vm8, %v703_v42  ;;  %v708_v48 = vsel %vm10988_vm9, %v706_v38, %v707_v32  ;;  %1692 = vrot.lane.b32.xlu1 %v1596_v20, %s10562_s26  ;;  %v1603_v60 = vsel %vm10969_vm4, %v1601_v36, %v1602_v12 }
  0x9c   : > { %820 = vst.msk [vmem:[#allocation2 + $0x110] sm:$0x8] %vm784_vm7, %v710_v34  ;;  %v1487_v51 = vld [vmem:[#allocation2 + $0xd0] sm:$0x8]  ;;  %v713_v52 = vsel %vm10988_vm9, %v711_v43, %v712_v44  ;;  %v714_v54 = vrot.slane %v712_v44, 4  ;;  %v1608_v56 = vrot.slane %v1606_v11, 4  ;;  %v10167_v63 = vpack.c.bf16 %v550_v55, %v550_v55 }
  0x9d   : > { %816 = vst.msk [vmem:[#allocation2 + $0xf8] sm:$0x7] %vm788_vm10, %v704_v39  ;;  %819 = vst.msk [vmem:[#allocation2 + $0x108] sm:$0x7] %vm788_vm10, %v709_v45  ;;  %v1609_v57 = vrot.slane %v1483_v41, 7  ;;  %v1615_v58 = vrot.slane %v1613_v47, 4  ;;  %v1614_v9 = vsel %vm10969_vm4, %v9795_v46, %v1613_v47  ;;  %v10168_v29 = vpack.c.bf16 %v11150_v1, %v11150_v1 }
  0x9e   : > { %818 = vst.msk [vmem:[#allocation2 + $0x104] sm:$0xf] %vm786_vm8, %v708_v48  ;;  %821 = vst.msk [vmem:[#allocation2 + $0x114] sm:$0xf] %vm786_vm8, %v713_v52  ;;  %v715_v59 = vrot.slane %v10165_v49, 5  ;;  %1698 = vrot.lane.b32.xlu0 %v1607_v50, %s10562_s26  ;;  %v9796_v4 = vrot.slane %v1487_v51, 11  ;;  %v10169_v31 = vpack.c.bf16 %v11153_v2, %v11153_v2 }
  0x9f   : > { %v1488_v61 = vld [vmem:[#allocation2 + $0xd4] sm:$0xf]  ;;  %v1486_v62 = vld [vmem:[#allocation2 + $0xc8] sm:$0x7]  ;;  %v1490_v0 = vld [vmem:[#allocation2 + $0xe0] sm:$0x8]  ;;  %1696 = vrot.lane.b32.xlu1 %v1603_v60, %s10562_s26  ;;  %v1610_v19 = vsel %vm10969_vm4, %v1608_v56, %v1609_v57 }
  0xa0   : > { %822 = vst.msk [vmem:[#allocation2 + $0x118] sm:$0x7] %vm788_vm10, %v714_v54  ;;  %v1620_v5 = vrot.slane %v1488_v61, 7  ;;  %v1489_v6 = vld [vmem:[#allocation2 + $0xd8] sm:$0x7]  ;;  %v716_v7 = vrot.slane %v715_v59, 4 }
  0xa1   : > { %823 = vst.msk [vmem:[#allocation2 + $0x120] sm:$0x8] %vm784_vm7, %v715_v59  ;;  %v11158_v8 = vld [vmem:[%s10736_s16 + $0xe8] sm:$0xff]  ;;  %v1616_v10 = vrot.slane %v1486_v62, 7  ;;  %v1493_v11 = vld [vmem:[#allocation2 + $0xf0] sm:$0x8] }
  0xa2   : > { %v1492_v12 = vld [vmem:[#allocation2 + $0xe8] sm:$0x7]  ;;  %v11162_v13 = vrot.slane %v10166_v53, 5  ;;  %v1491_v14 = vld [vmem:[#allocation2 + $0xe4] sm:$0xf]  ;;  %v9797_v15 = vrot.slane %v1490_v0, 11  ;;  %1702 = vrot.lane.b32.xlu0 %v1614_v9, %s10562_s26  ;;  %v1621_v32 = vsel %vm10969_vm4, %v9796_v4, %v1620_v5  ;;  %v10170_v36 = vpack.c.bf16 %v11158_v8, %v11158_v8 }
  0xa3   : > { %v1622_v16 = vrot.slane %v1620_v5, 4  ;;  %v1623_v17 = vrot.slane %v1489_v6, 7  ;;  %v9798_v18 = vrot.slane %v1493_v11, 11  ;;  %v1627_v20 = vrot.slane %v1491_v14, 7  ;;  %v1494_v21 = vld [vmem:[#allocation2 + $0xf4] sm:$0xf]  ;;  %1700 = vrot.lane.b32.xlu1 %v1610_v19, %s10562_s26 }
  0xa4   : > { %v1630_v22 = vrot.slane %v1492_v12, 7  ;;  %v1496_v23 = vld [vmem:[#allocation2 + $0x100] sm:$0x8]  ;;  %v718_v26 = vsel %vm10988_vm9, %v716_v7, %v11162_v13  ;;  %v1634_v25 = vrot.slane %v1494_v21, 7  ;;  %v1495_v28 = vld [vmem:[#allocation2 + $0xf8] sm:$0x7]  ;;  %v1617_v33 = vsel %vm10969_vm4, %v1615_v58, %v1616_v10 }
  0xa5   : > { %v1497_v27 = vld [vmem:[#allocation2 + $0x104] sm:$0xf]  ;;  %824 = vst.msk [vmem:[#allocation2 + $0x124] sm:$0xf] %vm786_vm8, %v718_v26  ;;  %v720_v30 = vrot.slane %v10167_v63, 5  ;;  %v1629_v34 = vrot.slane %v1627_v20, 4  ;;  %v1628_v37 = vsel %vm10969_vm4, %v9797_v15, %v1627_v20  ;;  %v1624_v38 = vsel %vm10969_vm4, %v1622_v16, %v1623_v17 }
  0xa6   : > { %v1499_v35 = vld [vmem:[#allocation2 + $0x110] sm:$0x8]  ;;  %v9799_v39 = vrot.slane %v1496_v23, 11  ;;  %v1641_v40 = vrot.slane %v1497_v27, 7  ;;  %v1500_v41 = vld [vmem:[#allocation2 + $0x114] sm:$0xf]  ;;  %v1635_v43 = vsel %vm10969_vm4, %v9798_v18, %v1634_v25  ;;  %1706 = vrot.lane.b32.xlu0 %v1621_v32, %s10562_s26 }
  0xa7   : > { %v1498_v42 = vld [vmem:[#allocation2 + $0x108] sm:$0x7]  ;;  %826 = vst.msk [vmem:[#allocation2 + $0x130] sm:$0x8] %vm784_vm7, %v720_v30  ;;  %v1636_v44 = vrot.slane %v1634_v25, 4  ;;  %v1637_v45 = vrot.slane %v1495_v28, 7  ;;  %v11193_v48 = vsel %vm10969_vm4, %v1629_v34, %v1630_v22  ;;  %1704 = vrot.lane.b32.xlu1 %v1617_v33, %s10562_s26 }
  0xa8   : > { %v1648_v46 = vrot.slane %v1500_v41, 7  ;;  %v1501_v47 = vld [vmem:[#allocation2 + $0x118] sm:$0x7]  ;;  %v9800_v49 = vrot.slane %v1499_v35, 11  ;;  %v1643_v50 = vrot.slane %v1641_v40, 4  ;;  %v1644_v51 = vrot.slane %v1498_v42, 7 }
  0xa9   : > { %v1502_v52 = vld [vmem:[#allocation2 + $0x120] sm:$0x8]  ;;  %v11197_v54 = vld [vmem:[#allocation2 + $0x4] sm:$0xf]  ;;  %v1651_v56 = vrot.slane %v1501_v47, 7  ;;  %v721_v57 = vrot.slane %v720_v30, 4  ;;  %v11204_v62 = vsel %vm10969_vm4, %v9799_v39, %v1641_v40  ;;  %v11209_v6 = vsel %vm10969_vm4, %v1636_v44, %v1637_v45 }
  0xaa   : > { %v11195_v53 = vld [vmem:[#allocation2] sm:$0x8]  ;;  %v1650_v55 = vrot.slane %v1648_v46, 4  ;;  %v722_v58 = vrot.slane %v10168_v29, 5  ;;  %v1806_v59 = vld [vmem:[#allocation2 + $0x10] sm:$0x8]  ;;  %1710 = vrot.lane.b32.xlu0 %v1628_v37, %s10562_s26  ;;  %v11216_v12 = vsel %vm10969_vm4, %v9800_v49, %v1648_v46  ;;  %v11223_v17 = vsel %vm10969_vm4, %v1643_v50, %v1644_v51 }
  0xab   : > { %v1807_v60 = vld [vmem:[#allocation2 + $0x14] sm:$0xf]  ;;  %v11199_v61 = vld [vmem:[#allocation2 + $0x8] sm:$0x7]  ;;  %v719_v0 = vrot.slane %v11162_v13, 4  ;;  %v725_v1 = vrot.slane %v10169_v31, 5  ;;  %1708 = vrot.lane.b32.xlu1 %v1624_v38, %s10562_s26 }
  0xac   : > { %v727_v2 = vrot.slane %v10170_v36, 5  ;;  %v1809_v4 = vld [vmem:[#allocation2 + $0x20] sm:$0x8]  ;;  %v1810_v5 = vld [vmem:[#allocation2 + $0x24] sm:$0xf]  ;;  %v9801_v63 = vrot.slane %v1502_v52, 11  ;;  %v723_v8 = vsel %vm10988_vm9, %v721_v57, %v722_v58  ;;  %v11227_v18 = vsel %vm10969_vm4, %v1650_v55, %v1651_v56 }
  0xad   : > { %v1503_v7 = vld [vmem:[#allocation2 + $0x124] sm:$0xf]  ;;  %v724_v9 = vrot.slane %v722_v58, 4  ;;  %v1808_v10 = vld [vmem:[#allocation2 + $0x18] sm:$0x7]  ;;  %v726_v14 = vrot.slane %v725_v1, 4 }
  0xae   : > { %v1812_v11 = vld [vmem:[#allocation2 + $0x30] sm:$0x8]  ;;  %v1655_v13 = vrot.slane %v1503_v7, 7  ;;  %827 = vst.msk [vmem:[#allocation2 + $0x134] sm:$0xf] %vm786_vm8, %v723_v8  ;;  %v729_v15 = vrot.slane %v727_v2, 4  ;;  %1714 = vrot.lane.b32.xlu0 %v1635_v43, %s10562_s26 }
  0xaf   : > { %825 = vst.msk [vmem:[#allocation2 + $0x128] sm:$0x7] %vm788_vm10, %v719_v0  ;;  %v1813_v16 = vld [vmem:[#allocation2 + $0x34] sm:$0xf]  ;;  %828 = vst.msk [vmem:[#allocation2 + $0x138] sm:$0x7] %vm788_vm10, %v724_v9  ;;  %v728_v26 = vsel %vm10988_vm9, %v726_v14, %v727_v2  ;;  %1712 = vrot.lane.b32.xlu1 %v11193_v48, %s10562_s26 }
  0xb0   : > { %829 = vst.msk [vmem:[#allocation2 + $0x140] sm:$0x8] %vm784_vm7, %v725_v1  ;;  %v9804_v19 = vrot.slane %v11195_v53, 11  ;;  %v1901_v20 = vrot.slane %v11197_v54, 7  ;;  %v1811_v21 = vld [vmem:[#allocation2 + $0x28] sm:$0x7]  ;;  %v11239_v29 = vsel %vm10969_vm4, %v9801_v63, %v1655_v13 }
  0xb1   : > { %v1815_v22 = vld [vmem:[#allocation2 + $0x40] sm:$0x8]  ;;  %v1505_v23 = vld [vmem:[#allocation2 + $0x130] sm:$0x8]  ;;  %831 = vst.msk [vmem:[#allocation2 + $0x148] sm:$0x7] %vm788_vm10, %v729_v15 }
  0xb2   : > { %v9805_v25 = vrot.slane %v1806_v59, 11  ;;  %v1908_v27 = vrot.slane %v1807_v60, 7  ;;  %v1904_v28 = vrot.slane %v11199_v61, 7  ;;  %830 = vst.msk [vmem:[#allocation2 + $0x144] sm:$0xf] %vm786_vm8, %v728_v26  ;;  %v1903_v30 = vrot.slane %v1901_v20, 4  ;;  %1718 = vrot.lane.b32.xlu0 %v11204_v62, %s10562_s26 }
  0xb3   : > { %v9806_v31 = vrot.slane %v1809_v4, 11  ;;  %v1915_v32 = vrot.slane %v1810_v5, 7  ;;  %v1816_v33 = vld [vmem:[#allocation2 + $0x44] sm:$0xf]  ;;  %v1911_v35 = vrot.slane %v1808_v10, 7  ;;  %v9807_v36 = vrot.slane %v1812_v11, 11  ;;  %1716 = vrot.lane.b32.xlu1 %v11209_v6, %s10562_s26 }
  0xb4   : > { %v1910_v34 = vrot.slane %v1908_v27, 4  ;;  %v1922_v37 = vrot.slane %v1813_v16, 7  ;;  %v9802_v38 = vrot.slane %v1505_v23, 11  ;;  %v1657_v39 = vrot.slane %v1655_v13, 4  ;;  %v1814_v42 = vld [vmem:[#allocation2 + $0x38] sm:$0x7] }
  0xb5   : > { %v1917_v40 = vrot.slane %v1915_v32, 4  ;;  %v1918_v41 = vrot.slane %v1811_v21, 7  ;;  %v11247_v44 = vsel %vm10969_vm4, %v9804_v19, %v1901_v20  ;;  %v11251_v45 = vsel %vm10969_vm4, %v9805_v25, %v1908_v27  ;;  %v1818_v47 = vld [vmem:[#allocation2 + $0x50] sm:$0x8]  ;;  %v1819_v49 = vld [vmem:[#allocation2 + $0x54] sm:$0xf] }
  0xb6   : > { %v9808_v43 = vrot.slane %v1815_v22, 11  ;;  %v1929_v46 = vrot.slane %v1816_v33, 7  ;;  %v1506_v50 = vld [vmem:[#allocation2 + $0x134] sm:$0xf]  ;;  %v1504_v51 = vld [vmem:[#allocation2 + $0x128] sm:$0x7]  ;;  %v11255_v53 = vsel %vm10969_vm4, %v1903_v30, %v1904_v28  ;;  %v11259_v48 = vsel %vm10969_vm4, %v9806_v31, %v1915_v32  ;;  %1722 = vrot.lane.b32.xlu0 %v11216_v12, %s10562_s26 }
  0xb7   : > { %v1508_v52 = vld [vmem:[#allocation2 + $0x140] sm:$0x8]  ;;  %v11263_v54 = vsel %vm10969_vm4, %v1910_v34, %v1911_v35  ;;  %v11267_v55 = vsel %vm10969_vm4, %v9807_v36, %v1922_v37  ;;  %v1817_v56 = vld [vmem:[#allocation2 + $0x48] sm:$0x7]  ;;  %v1822_v58 = vld [vmem:[#allocation2 + $0x64] sm:$0xf]  ;;  %v11273_v1 = vsel %vm10969_vm4, %v1917_v40, %v1918_v41  ;;  %1720 = vrot.lane.b32.xlu1 %v11223_v17, %s10562_s26 }
  0xb8   : > { %v1821_v57 = vld [vmem:[#allocation2 + $0x60] sm:$0x8]  ;;  %v1662_v59 = vrot.slane %v1506_v50, 7  ;;  %v1658_v60 = vrot.slane %v1504_v51, 7  ;;  %v9803_v61 = vrot.slane %v1508_v52, 11  ;;  %v11277_v5 = vsel %vm10969_vm4, %v9808_v43, %v1929_v46  ;;  %s10567_s22 = smov 96  }
  0xb9   : > { %v1507_v0 = vld [vmem:[#allocation2 + $0x138] sm:$0x7]  ;;  %v1510_v4 = vld [vmem:[#allocation2 + $0x148] sm:$0x7]  ;;  %v1924_v7 = vrot.slane %v1922_v37, 4  ;;  %v1925_v63 = vrot.slane %v1814_v42, 7 }
  0xba   : > { %v1665_v2 = vrot.slane %v1507_v0, 7  ;;  %v1820_v8 = vld [vmem:[#allocation2 + $0x58] sm:$0x7]  ;;  %v1824_v9 = vld [vmem:[#allocation2 + $0x70] sm:$0x8]  ;;  %v1663_v62 = vsel %vm10969_vm4, %v9802_v38, %v1662_v59  ;;  %v11285_v10 = vsel %vm10969_vm4, %v1657_v39, %v1658_v60  ;;  %v1664_v13 = vrot.slane %v1662_v59, 4  ;;  %1726 = vrot.lane.b32.xlu0 %v11239_v29, %s10562_s26 }
  0xbb   : > { %v1509_v11 = vld [vmem:[#allocation2 + $0x144] sm:$0xf]  ;;  %v9809_v14 = vrot.slane %v1818_v47, 11  ;;  %v1825_v15 = vld [vmem:[#allocation2 + $0x74] sm:$0xf]  ;;  %v1672_v20 = vrot.slane %v1510_v4, 7  ;;  %v11291_v6 = vsel %vm10969_vm4, %v1924_v7, %v1925_v63  ;;  %1724 = vrot.lane.b32.xlu1 %v11227_v18, %s10562_s26 }
  0xbc   : > { %v1823_v16 = vld [vmem:[#allocation2 + $0x68] sm:$0x7]  ;;  %v1669_v19 = vrot.slane %v1509_v11, 7  ;;  %v1936_v21 = vrot.slane %v1819_v49, 7  ;;  %v1931_v22 = vrot.slane %v1929_v46, 4  ;;  %v1932_v27 = vrot.slane %v1817_v56, 7 }
  0xbd   : > { %v1827_v23 = vld [vmem:[#allocation2 + $0x80] sm:$0x8]  ;;  %v1828_v26 = vld [vmem:[#allocation2 + $0x84] sm:$0xf]  ;;  %v1826_v25 = vld [vmem:[#allocation2 + $0x78] sm:$0x7]  ;;  %v11299_v33 = vsel %vm10969_vm4, %v1664_v13, %v1665_v2 }
  0xbe   : > { %v9810_v28 = vrot.slane %v1821_v57, 11  ;;  %v1943_v30 = vrot.slane %v1822_v58, 7  ;;  %v1830_v31 = vld [vmem:[#allocation2 + $0x90] sm:$0x8]  ;;  %v11295_v32 = vsel %vm10969_vm4, %v9803_v61, %v1669_v19  ;;  %v1671_v34 = vrot.slane %v1669_v19, 4  ;;  %1730 = vrot.lane.b32.xlu0 %v1663_v62, %s10562_s26  ;;  %s10568_s13 = smov 112  }
  0xbf   : > { %v1938_v35 = vrot.slane %v1936_v21, 4  ;;  %v1831_v36 = vld [vmem:[#allocation2 + $0x94] sm:$0xf]  ;;  %v1829_v12 = vld [vmem:[#allocation2 + $0x88] sm:$0x7]  ;;  %v11305_v37 = vsel %vm10969_vm4, %v9809_v14, %v1936_v21  ;;  %v11309_v38 = vsel %vm10969_vm4, %v1931_v22, %v1932_v27  ;;  %v1939_v39 = vrot.slane %v1820_v8, 7  ;;  %1728 = vrot.lane.b32.xlu1 %v11285_v10, %s10562_s26 }
  0xc0   : > { %v9811_v40 = vrot.slane %v1824_v9, 11  ;;  %v1833_v41 = vld [vmem:[#allocation2 + $0xa0] sm:$0x8]  ;;  %v1834_v42 = vld [vmem:[#allocation2 + $0xa4] sm:$0xf]  ;;  %v11313_v46 = vsel %vm10969_vm4, %v9810_v28, %v1943_v30  ;;  %v1950_v47 = vrot.slane %v1825_v15, 7  ;;  %v11319_v51 = vsel %vm10969_vm4, %v1671_v34, %v1672_v20 }
  0xc1   : > { %v1832_v43 = vld [vmem:[#allocation2 + $0x98] sm:$0x7]  ;;  %v1945_v49 = vrot.slane %v1943_v30, 4  ;;  %v1946_v17 = vrot.slane %v1823_v16, 7  ;;  %v1836_v50 = vld [vmem:[#allocation2 + $0xb0] sm:$0x8]  ;;  %v11323_v59 = vsel %vm10969_vm4, %v1938_v35, %v1939_v39 }
  0xc2   : > { %v9812_v52 = vrot.slane %v1827_v23, 11  ;;  %v1957_v56 = vrot.slane %v1828_v26, 7  ;;  %v1953_v57 = vrot.slane %v1826_v25, 7  ;;  %v1837_v58 = vld [vmem:[#allocation2 + $0xb4] sm:$0xf]  ;;  %v11327_v60 = vsel %vm10969_vm4, %v9811_v40, %v1950_v47  ;;  %1734 = vrot.lane.b32.xlu0 %v11295_v32, %s10562_s26  ;;  %s10173_s15 = sshll.u32 %s10656_s21, 12 }
  0xc3   : > { %v1952_v61 = vrot.slane %v1950_v47, 4  ;;  %v9813_v0 = vrot.slane %v1830_v31, 11  ;;  %v1835_v2 = vld [vmem:[#allocation2 + $0xa8] sm:$0x7]  ;;  %v1839_v29 = vld [vmem:[#allocation2 + $0xc0] sm:$0x8]  ;;  %v11333_v4 = vsel %vm10969_vm4, %v1945_v49, %v1946_v17  ;;  %1732 = vrot.lane.b32.xlu1 %v11299_v33, %s10562_s26 }
  0xc4   : > { %v1964_v7 = vrot.slane %v1831_v36, 7  ;;  %v1959_v63 = vrot.slane %v1957_v56, 4  ;;  %v1960_v8 = vrot.slane %v1829_v12, 7  ;;  %v1840_v9 = vld [vmem:[#allocation2 + $0xc4] sm:$0xf]  ;;  %v11337_v11 = vsel %vm10969_vm4, %v9812_v52, %v1957_v56  ;;  %v8898_v3 = vld [vmem:[%s15084_s9 + $0x10] sm:$0xff] }
  0xc5   : > { %v9814_v13 = vrot.slane %v1833_v41, 11  ;;  %v1971_v14 = vrot.slane %v1834_v42, 7  ;;  %v1967_v15 = vrot.slane %v1832_v43, 7  ;;  %v1838_v16 = vld [vmem:[#allocation2 + $0xb8] sm:$0x7]  ;;  %v11342_v18 = vsel %vm10969_vm4, %v1952_v61, %v1953_v57  ;;  %s9673_s14 = sshll.u32 %s10742_s19, 4  ;;  %s15030_s14 = int_to_ptr.vmem [resolvable:$true] %s9673_s14 }
  0xc6   : > { %v11346_v19 = vsel %vm10969_vm4, %v9813_v0, %v1964_v7  ;;  %v1966_v20 = vrot.slane %v1964_v7, 4  ;;  %v9815_v21 = vrot.slane %v1836_v50, 11  ;;  %v836_v22 = vld [vmem:[#allocation2 + $0x50] sm:$0xc]  ;;  %v837_v23 = vld [vmem:[#allocation2 + $0x54] sm:$0xf]  ;;  %v11350_v26 = vsel %vm10969_vm4, %v1959_v63, %v1960_v8  ;;  %2011 = vrot.lane.b32.xlu0 %v11247_v44, %s10562_s26 }
  0xc7   : > { %v1978_v25 = vrot.slane %v1837_v58, 7  ;;  %v1973_v27 = vrot.slane %v1971_v14, 4  ;;  %v1974_v28 = vrot.slane %v1835_v2, 7  ;;  %v1842_v62 = vld [vmem:[#allocation2 + $0xd0] sm:$0x8]  ;;  %v11356_v30 = vsel %vm10969_vm4, %v9814_v13, %v1971_v14  ;;  %1736 = vrot.lane.b32.xlu1 %v11319_v51, %s10562_s26  ;;  %s9660_s21 = scalar_lea.sflag [#allocation7], %s10732_s30 }
  0xc8   : > { %v9816_v31 = vrot.slane %v1839_v29, 11  ;;  %v1985_v34 = vrot.slane %v1840_v9, 7  ;;  %v1981_v35 = vrot.slane %v1838_v16, 7  ;;  %v1843_v36 = vld [vmem:[#allocation2 + $0xd4] sm:$0xf]  ;;  %v11360_v12 = vsel %vm10969_vm4, %v1966_v20, %v1967_v15  ;;  %s10492_s23 = scalar_lea.vmem %s15030_s14, 4096 }
  0xc9   : > { %v11364_v39 = vsel %vm10969_vm4, %v9815_v21, %v1978_v25  ;;  %v11368_v40 = vsel %vm10969_vm4, %v1973_v27, %v1974_v28  ;;  %v1980_v10 = vrot.slane %v1978_v25, 4  ;;  %v1841_v41 = vld [vmem:[#allocation2 + $0xc8] sm:$0x7]  ;;  %v838_v42 = vld [vmem:[#allocation2 + $0x58] sm:$0x7]  ;;  %v888_v47 = vshrl.u32 %v836_v22, 16  ;;  %p10493_p12 = scmp.ne.s32.totalorder %s15030_s14, %s10492_s23 }
  0xca   : > { %v11374_v43 = vsel %vm10969_vm4, %v9816_v31, %v1985_v34  ;;  %vm884_vm11 = vsmask.f32 1280  ;;  %vm885_vm12 = vsmask.f32 5392  ;;  %v891_v17 = vshll.u32 %v836_v22, 16  ;;  %2015 = vrot.lane.b32.xlu0 %v11251_v45, %s10562_s26  ;;  %p15116_p13 = scmp.ne.s32.totalorder %s15098_s29, 0 }
  0xcb   : > { %v11378_v49 = vsel %vm10969_vm4, %v1980_v10, %v1981_v35  ;;  %v897_v50 = vshrl.u32 %v837_v23, 16  ;;  %v900_v52 = vshll.u32 %v837_v23, 16  ;;  %v839_v56 = vld [vmem:[#allocation2 + $0x60] sm:$0xc]  ;;  %v890_v57 = vrot.slane %v888_v47, 6  ;;  %vm11396_vm13 = vmor %vm884_vm11, %vm885_vm12  ;;  %2013 = vrot.lane.b32.xlu1 %v11255_v53, %s10562_s26 }
  0xcc   : > { %v9817_v32 = vrot.slane %v1842_v62, 11  ;;  %v1992_v58 = vrot.slane %v1843_v36, 7  ;;  %v1987_v61 = vrot.slane %v1985_v34, 4  ;;  %v893_v0 = vrot.slane %v891_v17, 7  ;;  %v840_v63 = vld [vmem:[#allocation2 + $0x64] sm:$0xf]  ;;  %p10494_p4 = pnand %p10493_p12, %p15116_p13 }
  0xcd   : > { %v899_v2 = vrot.slane %v897_v50, 6  ;;  %v902_v29 = vrot.slane %v900_v52, 7  ;;  %v1988_v7 = vrot.slane %v1841_v41, 7  ;;  %v907_v9 = vshrl.u32 %v838_v42, 16  ;;  %v1845_v21 = vld [vmem:[#allocation2 + $0xe0] sm:$0x8] }
  0xce   : > { %v11386_v8 = vsel %vm10969_vm4, %v9817_v32, %v1992_v58  ;;  %v910_v13 = vshll.u32 %v838_v42, 16  ;;  %v916_v14 = vshrl.u32 %v839_v56, 16  ;;  %v894_v33 = vor.u32 %v893_v0, %v890_v57  ;;  %v1846_v22 = vld [vmem:[#allocation2 + $0xe4] sm:$0xf]  ;;  %v1844_v62 = vld [vmem:[#allocation2 + $0xd8] sm:$0x7]  ;;  %2019 = vrot.lane.b32.xlu0 %v11259_v48, %s10562_s26  ;;  %p10495_p5 = pneg %p10494_p4 }
  0xcf   : > { %v903_v15 = vor.u32 %v902_v29, %v899_v2  ;;  %v11390_v16 = vsel %vm10969_vm4, %v1987_v61, %v1988_v7  ;;  %v919_v20 = vshll.u32 %v839_v56, 16  ;;  %v909_v23 = vrot.slane %v907_v9, 6  ;;  %v842_v10 = vld [vmem:[#allocation2 + $0x70] sm:$0xc]  ;;  %v843_v17 = vld [vmem:[#allocation2 + $0x74] sm:$0xf]  ;;  %2017 = vrot.lane.b32.xlu1 %v11263_v54, %s10562_s26 }
  0xd0   : > { %v912_v25 = vrot.slane %v910_v13, 7  ;;  %v918_v27 = vrot.slane %v916_v14, 6  ;;  %v925_v28 = vshrl.u32 %v840_v63, 16  ;;  %v895_v31 = vrot.slane %v894_v33, 4  ;;  %v841_v32 = vld [vmem:[#allocation2 + $0x68] sm:$0x7] }
  0xd1   : > { %v905_v34 = vrot.slane %v903_v15, 4  ;;  %v921_v35 = vrot.slane %v919_v20, 7  ;;  %v928_v36 = vshll.u32 %v840_v63, 16  ;;  %v9818_v42 = vrot.slane %v1845_v21, 11  ;;  %v1848_v29 = vld [vmem:[#allocation2 + $0xf0] sm:$0x8] }
  0xd2   : > { %v913_v51 = vor.u32 %v912_v25, %v909_v23  ;;  %v927_v41 = vrot.slane %v925_v28, 6  ;;  %v1999_v47 = vrot.slane %v1846_v22, 7  ;;  %v904_v50 = vsel %vm11396_vm13, %v895_v31, %v903_v15  ;;  %v11414_v13 = vld [vmem:[#allocation2 + $0xf4] sm:$0xf]  ;;  %v1847_v20 = vld [vmem:[#allocation2 + $0xe8] sm:$0x7]  ;;  %2023 = vrot.lane.b32.xlu0 %v11267_v55, %s10562_s26 }
  0xd3   : > { %v922_v52 = vor.u32 %v921_v35, %v918_v27  ;;  %v930_v56 = vrot.slane %v928_v36, 7  ;;  %v1994_v57 = vrot.slane %v1992_v58, 4  ;;  %1367 = vst.msk [vmem:[#allocation3] sm:$0xf] %vm786_vm8, %v904_v50  ;;  %v1995_v0 = vrot.slane %v1844_v62, 7  ;;  %2021 = vrot.lane.b32.xlu1 %v11273_v1, %s10562_s26 }
  0xd4   : > { %v914_v45 = vsel %vm11396_vm13, %v905_v34, %v913_v51  ;;  %v11411_v61 = vsel %vm10969_vm4, %v9818_v42, %v1999_v47  ;;  %v944_v2 = vshrl.u32 %v842_v10, 16  ;;  %v947_v63 = vshll.u32 %v842_v10, 16  ;;  %v845_v27 = vld [vmem:[#allocation2 + $0x80] sm:$0xc]  ;;  %v846_v34 = vld [vmem:[#allocation2 + $0x84] sm:$0xf] }
  0xd5   : > { %1368 = vst.msk [vmem:[#allocation3 + $0x8] sm:$0xf] %vm786_vm8, %v914_v45  ;;  %v923_v7 = vrot.slane %v922_v52, 4  ;;  %v931_v58 = vor.u32 %v930_v56, %v927_v41  ;;  %v953_v9 = vshrl.u32 %v843_v17, 16  ;;  %v11420_v53 = vsel %vm10969_vm4, %v1994_v57, %v1995_v0  ;;  %v2139_v45 = vld [vmem:[#allocation2 + $0x50] sm:$0x8] }
  0xd6   : > { %v946_v14 = vrot.slane %v944_v2, 6  ;;  %v956_v33 = vshll.u32 %v843_v17, 16  ;;  %v935_v15 = vshrl.u32 %v841_v32, 16  ;;  %v949_v22 = vrot.slane %v947_v63, 7  ;;  %2027 = vrot.lane.b32.xlu0 %v11277_v5, %s10562_s26 }
  0xd7   : > { %v932_v21 = vsel %vm11396_vm13, %v923_v7, %v931_v58  ;;  %v955_v23 = vrot.slane %v953_v9, 6  ;;  %v938_v25 = vshll.u32 %v841_v32, 16  ;;  %v933_v62 = vrot.slane %v931_v58, 4  ;;  %v844_v32 = vld [vmem:[#allocation2 + $0x78] sm:$0x7]  ;;  %2025 = vrot.lane.b32.xlu1 %v11291_v6, %s10562_s26 }
  0xd8   : > { %1369 = vst.msk [vmem:[#allocation3 + $0x10] sm:$0xf] %vm786_vm8, %v932_v21  ;;  %v958_v48 = vrot.slane %v956_v33, 7  ;;  %v937_v28 = vrot.slane %v935_v15, 6  ;;  %v9819_v31 = vrot.slane %v1848_v29, 11  ;;  %v950_v35 = vor.u32 %v949_v22, %v946_v14 }
  0xd9   : > { %v940_v36 = vrot.slane %v938_v25, 7  ;;  %v2006_v10 = vrot.slane %v11414_v13, 7  ;;  %v2001_v51 = vrot.slane %v1999_v47, 4  ;;  %v2002_v42 = vrot.slane %v1847_v20, 7  ;;  %v2140_v29 = vld [vmem:[#allocation2 + $0x54] sm:$0xf] }
  0xda   : > { %v959_v41 = vor.u32 %v958_v48, %v955_v23  ;;  %v972_v17 = vshrl.u32 %v845_v27, 16  ;;  %v975_v50 = vshll.u32 %v845_v27, 16  ;;  %v951_v54 = vrot.slane %v950_v35, 4  ;;  %v1850_v13 = vld [vmem:[#allocation2 + $0xf8] sm:$0x7]  ;;  %2031 = vrot.lane.b32.xlu0 %v11305_v37, %s10562_s26 }
  0xdb   : > { %v941_v52 = vor.u32 %v940_v36, %v937_v28  ;;  %v11432_v56 = vsel %vm10969_vm4, %v9819_v31, %v2006_v10  ;;  %v981_v57 = vshrl.u32 %v846_v34, 16  ;;  %v11438_v47 = vsel %vm10969_vm4, %v2001_v51, %v2002_v42  ;;  %v848_v20 = vld [vmem:[#allocation2 + $0x90] sm:$0xc]  ;;  %v849_v48 = vld [vmem:[#allocation2 + $0x94] sm:$0xf]  ;;  %2029 = vrot.lane.b32.xlu1 %v11309_v38, %s10562_s26 }
  0xdc   : > { %v974_v55 = vrot.slane %v972_v17, 6  ;;  %v977_v0 = vrot.slane %v975_v50, 7  ;;  %v984_v2 = vshll.u32 %v846_v34, 16  ;;  %v960_v7 = vsel %vm11396_vm13, %v951_v54, %v959_v41  ;;  %v847_v42 = vld [vmem:[#allocation2 + $0x88] sm:$0x7] }
  0xdd   : > { %v942_v58 = vsel %vm11396_vm13, %v933_v62, %v941_v52  ;;  %v983_v63 = vrot.slane %v981_v57, 6  ;;  %v961_v9 = vrot.slane %v959_v41, 4  ;;  %1371 = vst.msk [vmem:[#allocation3 + $0x20] sm:$0xf] %vm786_vm8, %v960_v7  ;;  %v963_v33 = vshrl.u32 %v844_v32, 16 }
  0xde   : > { %1370 = vst.msk [vmem:[#allocation3 + $0x18] sm:$0xf] %vm786_vm8, %v942_v58  ;;  %v978_v1 = vor.u32 %v977_v0, %v974_v55  ;;  %v986_v14 = vrot.slane %v984_v2, 7  ;;  %v966_v15 = vshll.u32 %v844_v32, 16  ;;  %vm2187_vm14 = vsmask.f32 256  ;;  %2035 = vrot.lane.b32.xlu0 %v11313_v46, %s10562_s26 }
  0xdf   : > { %vm2188_vm15 = vsmask.f32 4368  ;;  %v2191_v21 = vshrl.u32 %v2139_v45, 16  ;;  %v2196_v22 = vshrl.u32 %v2140_v29, 16  ;;  %v965_v5 = vrot.slane %v963_v33, 6  ;;  %2033 = vrot.lane.b32.xlu1 %v11323_v59, %s10562_s26 }
  0xe0   : > { %v979_v23 = vrot.slane %v978_v1, 4  ;;  %v11450_v25 = vor.u32 %v986_v14, %v983_v63  ;;  %v968_v27 = vrot.slane %v966_v15, 7  ;;  %v2199_v31 = vshll.u32 %v2140_v29, 16  ;;  %vm11463_vm0 = vmor %vm2187_vm14, %vm2188_vm15  ;;  %v2142_v17 = vld [vmem:[#allocation2 + $0x60] sm:$0x8] }
  0xe1   : > { %v11452_v28 = vrot.slane %v2191_v21, 11  ;;  %v11454_v62 = vrot.slane %v2196_v22, 7  ;;  %v2008_v34 = vrot.slane %v2006_v10, 4  ;;  %v2009_v51 = vrot.slane %v1850_v13, 7  ;;  %v2143_v52 = vld [vmem:[#allocation2 + $0x64] sm:$0xf] }
  0xe2   : > { %v988_v35 = vsel %vm11396_vm13, %v979_v23, %v11450_v25  ;;  %v969_v6 = vor.u32 %v968_v27, %v965_v5  ;;  %v1000_v41 = vshrl.u32 %v848_v20, 16  ;;  %v1003_v37 = vshll.u32 %v848_v20, 16  ;;  %v2141_v7 = vld [vmem:[#allocation2 + $0x58] sm:$0xf]  ;;  %v851_v1 = vld [vmem:[#allocation2 + $0xa0] sm:$0xc]  ;;  %2039 = vrot.lane.b32.xlu0 %v11327_v60, %s10562_s26 }
  0xe3   : > { %1373 = vst.msk [vmem:[#allocation3 + $0x30] sm:$0xf] %vm786_vm8, %v988_v35  ;;  %v11469_v10 = vor.u32 %v2199_v31, %v11454_v62  ;;  %v1009_v50 = vshrl.u32 %v849_v48, 16  ;;  %v1012_v54 = vshll.u32 %v849_v48, 16  ;;  %v11477_v32 = vsel %vm10969_vm4, %v2008_v34, %v2009_v51  ;;  %v852_v21 = vld [vmem:[#allocation2 + $0xa4] sm:$0xf]  ;;  %2037 = vrot.lane.b32.xlu1 %v11333_v4, %s10562_s26 }
  0xe4   : > { %v970_v57 = vsel %vm11396_vm13, %v961_v9, %v969_v6  ;;  %v1002_v45 = vrot.slane %v1000_v41, 6  ;;  %v989_v55 = vrot.slane %v11450_v25, 4  ;;  %v1005_v2 = vrot.slane %v1003_v37, 7  ;;  %v850_v59 = vld [vmem:[#allocation2 + $0x98] sm:$0x7] }
  0xe5   : > { %1372 = vst.msk [vmem:[#allocation3 + $0x28] sm:$0xf] %vm786_vm8, %v970_v57  ;;  %v2202_v0 = vsel %vm11463_vm0, %v11452_v28, %v11469_v10  ;;  %v1011_v29 = vrot.slane %v1009_v50, 6  ;;  %v1014_v38 = vrot.slane %v1012_v54, 7  ;;  %v991_v58 = vshrl.u32 %v847_v42, 16 }
  0xe6   : > { %v994_v63 = vshll.u32 %v847_v42, 16  ;;  %v2213_v9 = vshrl.u32 %v2142_v17, 16  ;;  %v2218_v13 = vshrl.u32 %v2143_v52, 16  ;;  %v1006_v14 = vor.u32 %v1005_v2, %v1002_v45  ;;  %v2145_v51 = vld [vmem:[#allocation2 + $0x70] sm:$0x8]  ;;  %2043 = vrot.lane.b32.xlu0 %v11337_v11, %s10562_s26 }
  0xe7   : > { %v11487_v33 = vor.u32 %v1014_v38, %v1011_v29  ;;  %v2221_v15 = vshll.u32 %v2143_v52, 16  ;;  %v2203_v20 = vrot.slane %v11454_v62, 4  ;;  %v993_v22 = vrot.slane %v991_v58, 6  ;;  %v2146_v50 = vld [vmem:[#allocation2 + $0x74] sm:$0xf]  ;;  %2041 = vrot.lane.b32.xlu1 %v11342_v18, %s10562_s26 }
  0xe8   : > { %v996_v23 = vrot.slane %v994_v63, 7  ;;  %v11492_v25 = vrot.slane %v2213_v9, 11  ;;  %v11494_v46 = vrot.slane %v2218_v13, 7  ;;  %v1007_v5 = vrot.slane %v1006_v14, 4  ;;  %v2144_v38 = vld [vmem:[#allocation2 + $0x68] sm:$0xf] }
  0xe9   : > { %v2205_v27 = vshrl.u32 %v2141_v7, 16  ;;  %v2208_v48 = vshll.u32 %v2141_v7, 16  ;;  %v1028_v31 = vshrl.u32 %v851_v1, 16  ;;  %v1031_v35 = vshll.u32 %v851_v1, 16  ;;  %v854_v9 = vld [vmem:[#allocation2 + $0xb0] sm:$0xc] }
  0xea   : > { %v997_v34 = vor.u32 %v996_v23, %v993_v22  ;;  %v11499_v62 = vor.u32 %v2221_v15, %v11494_v46  ;;  %v1037_v6 = vshrl.u32 %v852_v21, 16  ;;  %v1016_v41 = vsel %vm11396_vm13, %v1007_v5, %v11487_v33  ;;  %v855_v23 = vld [vmem:[#allocation2 + $0xb4] sm:$0xf]  ;;  %2047 = vrot.lane.b32.xlu0 %v11346_v19, %s10562_s26 }
  0xeb   : > { %v2207_v42 = vrot.slane %v2205_v27, 7  ;;  %v1030_v17 = vrot.slane %v1028_v31, 6  ;;  %v1040_v37 = vshll.u32 %v852_v21, 16  ;;  %vm1770_vm1 = vcmask 257152   ;;  %1375 = vst.msk [vmem:[#allocation3 + $0x40] sm:$0xf] %vm786_vm8, %v1016_v41  ;;  %2045 = vrot.lane.b32.xlu1 %v11350_v26, %s10562_s26 }
  0xec   : > { %v998_v60 = vsel %vm11396_vm13, %v989_v55, %v997_v34  ;;  %v2224_v54 = vsel %vm11463_vm0, %v11492_v25, %v11499_v62  ;;  %v1033_v52 = vrot.slane %v1031_v35, 7  ;;  %v1039_v57 = vrot.slane %v1037_v6, 6  ;;  %v853_v6 = vld [vmem:[#allocation2 + $0xa8] sm:$0x7] }
  0xed   : > { %1374 = vst.msk [vmem:[#allocation3 + $0x38] sm:$0xf] %vm786_vm8, %v998_v60  ;;  %v2210_v45 = vor.u32 %v2208_v48, %v2207_v42  ;;  %v1042_v2 = vrot.slane %v1040_v37, 7  ;;  %v1017_v29 = vrot.slane %v11487_v33, 4  ;;  %v1019_v4 = vshrl.u32 %v850_v59, 16  ;;  %v1675_v26 = vpop.permute.xlu0 %1674 }
  0xee   : > { %v1034_v7 = vor.u32 %v1033_v52, %v1030_v17  ;;  %v1022_v55 = vshll.u32 %v850_v59, 16  ;;  %v2235_v58 = vshrl.u32 %v2145_v51, 16  ;;  %v2240_v63 = vshrl.u32 %v2146_v50, 16  ;;  %v2148_v59 = vld [vmem:[#allocation2 + $0x80] sm:$0x8]  ;;  %2051 = vrot.lane.b32.xlu0 %v11356_v30, %s10562_s26 }
  0xef   : > { %v11519_v13 = vsel %vm11463_vm0, %v2203_v20, %v2210_v45  ;;  %v11521_v1 = vor.u32 %v1042_v2, %v1039_v57  ;;  %v1021_v14 = vrot.slane %v1019_v4, 6  ;;  %v2243_v15 = vshll.u32 %v2146_v50, 16  ;;  %v2149_v17 = vld [vmem:[#allocation2 + $0x84] sm:$0xf]  ;;  %v2147_v4 = vld [vmem:[#allocation2 + $0x78] sm:$0xf]  ;;  %2049 = vrot.lane.b32.xlu1 %v11360_v12, %s10562_s26 }
  0xf0   : > { %v1035_v33 = vrot.slane %v1034_v7, 4  ;;  %v1024_v21 = vrot.slane %v1022_v55, 7  ;;  %v11525_v22 = vrot.slane %v2235_v58, 11  ;;  %v11527_v11 = vrot.slane %v2240_v63, 7  ;;  %v857_v58 = vld [vmem:[#allocation2 + $0xc0] sm:$0xc] }
  0xf1   : > { %v2225_v5 = vrot.slane %v11494_v46, 4  ;;  %v2227_v27 = vshrl.u32 %v2144_v38, 16  ;;  %v2230_v48 = vshll.u32 %v2144_v38, 16  ;;  %v1056_v20 = vshrl.u32 %v854_v9, 16  ;;  %1771 = vst.msk [vmem:[#allocation3] sm:$0xf] %vm1770_vm1, %v1675_v26 }
  0xf2   : > { %v1044_v31 = vsel %vm11396_vm13, %v1035_v33, %v11521_v1  ;;  %v1025_v18 = vor.u32 %v1024_v21, %v1021_v14  ;;  %v11536_v34 = vor.u32 %v2243_v15, %v11527_v11  ;;  %v1059_v35 = vshll.u32 %v854_v9, 16  ;;  %2055 = vrot.lane.b32.xlu0 %v11364_v39, %s10562_s26  ;;  %v2150_v26 = vld [vmem:[#allocation2 + $0x88] sm:$0xf] }
  0xf3   : > { %1377 = vst.msk [vmem:[#allocation3 + $0x50] sm:$0xf] %vm786_vm8, %v1044_v31  ;;  %v2229_v46 = vrot.slane %v2227_v27, 7  ;;  %v1058_v51 = vrot.slane %v1056_v20, 6  ;;  %v1065_v41 = vshrl.u32 %v855_v23, 16  ;;  %v1068_v42 = vshll.u32 %v855_v23, 16  ;;  %v1677_v31 = vpop.permute.xlu0 %1676  ;;  %2053 = vrot.lane.b32.xlu1 %v11368_v40, %s10562_s26 }
  0xf4   : > { %v1026_v19 = vsel %vm11396_vm13, %v1017_v29, %v1025_v18  ;;  %v2246_v37 = vsel %vm11463_vm0, %v11525_v22, %v11536_v34  ;;  %v1061_v50 = vrot.slane %v1059_v35, 7  ;;  %v1045_v60 = vrot.slane %v11521_v1, 4  ;;  %v858_v23 = vld [vmem:[#allocation2 + $0xc4] sm:$0xf]  ;;  %1772 = vst.msk [vmem:[#allocation3 + $0x8] sm:$0xf] %vm1770_vm1, %v1677_v31 }
  0xf5   : > { %1376 = vst.msk [vmem:[#allocation3 + $0x48] sm:$0xf] %vm786_vm8, %v1026_v19  ;;  %v2232_v52 = vor.u32 %v2230_v48, %v2229_v46  ;;  %v1067_v57 = vrot.slane %v1065_v41, 6  ;;  %v1070_v45 = vrot.slane %v1068_v42, 7  ;;  %v1047_v2 = vshrl.u32 %v853_v6, 16 }
  0xf6   : > { %v1062_v29 = vor.u32 %v1061_v50, %v1058_v51  ;;  %v1050_v38 = vshll.u32 %v853_v6, 16  ;;  %v2257_v7 = vshrl.u32 %v2148_v59, 16  ;;  %v2262_v55 = vshrl.u32 %v2149_v17, 16  ;;  %v856_v59 = vld [vmem:[#allocation2 + $0xb8] sm:$0x7]  ;;  %2059 = vrot.lane.b32.xlu0 %v11374_v43, %s10562_s26 }
  0xf7   : > { %v11554_v63 = vsel %vm11463_vm0, %v2225_v5, %v2232_v52  ;;  %v11556_v9 = vor.u32 %v1070_v45, %v1067_v57  ;;  %v1049_v1 = vrot.slane %v1047_v2, 6  ;;  %v2265_v14 = vshll.u32 %v2149_v17, 16  ;;  %v2151_v46 = vld [vmem:[#allocation2 + $0x90] sm:$0x8]  ;;  %v2152_v42 = vld [vmem:[#allocation2 + $0x94] sm:$0xf]  ;;  %2057 = vrot.lane.b32.xlu1 %v11378_v49, %s10562_s26 }
  0xf8   : > { %v1063_v30 = vrot.slane %v1062_v29, 4  ;;  %v1052_v15 = vrot.slane %v1050_v38, 7  ;;  %v11560_v33 = vrot.slane %v2257_v7, 11  ;;  %v11562_v21 = vrot.slane %v2262_v55, 7  ;;  %v860_v7 = vld [vmem:[#allocation2 + $0xd0] sm:$0xc] }
  0xf9   : > { %v2247_v27 = vrot.slane %v11527_v11, 4  ;;  %v2249_v48 = vshrl.u32 %v2147_v4, 16  ;;  %v2252_v20 = vshll.u32 %v2147_v4, 16  ;;  %v1084_v5 = vshrl.u32 %v857_v58, 16 }
  0xfa   : > { %v1072_v12 = vsel %vm11396_vm13, %v1063_v30, %v11556_v9  ;;  %v1053_v18 = vor.u32 %v1052_v15, %v1049_v1  ;;  %v11571_v35 = vor.u32 %v2265_v14, %v11562_v21  ;;  %v1087_v6 = vshll.u32 %v857_v58, 16  ;;  %2063 = vrot.lane.b32.xlu0 %v11386_v8, %s10562_s26 }
  0xfb   : > { %1379 = vst.msk [vmem:[#allocation3 + $0x60] sm:$0xf] %vm786_vm8, %v1072_v12  ;;  %v2251_v11 = vrot.slane %v2249_v48, 7  ;;  %v1086_v51 = vrot.slane %v1084_v5, 6  ;;  %v1093_v41 = vshrl.u32 %v858_v23, 16  ;;  %v1096_v39 = vshll.u32 %v858_v23, 16  ;;  %2061 = vrot.lane.b32.xlu1 %v11390_v16, %s10562_s26 }
  0xfc   : > { %v1054_v17 = vsel %vm11396_vm13, %v1045_v60, %v1053_v18  ;;  %v2268_v19 = vsel %vm11463_vm0, %v11560_v33, %v11571_v35  ;;  %v1089_v50 = vrot.slane %v1087_v6, 7  ;;  %v1073_v52 = vrot.slane %v11556_v9, 4  ;;  %v861_v23 = vld [vmem:[#allocation2 + $0xd4] sm:$0xf]  ;;  %v859_v6 = vld [vmem:[#allocation2 + $0xc8] sm:$0x7] }
  0xfd   : > { %1378 = vst.msk [vmem:[#allocation3 + $0x58] sm:$0xf] %vm786_vm8, %v1054_v17  ;;  %v2254_v57 = vor.u32 %v2252_v20, %v2251_v11  ;;  %v1095_v45 = vrot.slane %v1093_v41, 6  ;;  %v1098_v2 = vrot.slane %v1096_v39, 7  ;;  %v1075_v4 = vshrl.u32 %v856_v59, 16 }
  0xfe   : > { %v1090_v40 = vor.u32 %v1089_v50, %v1086_v51  ;;  %v1078_v60 = vshll.u32 %v856_v59, 16  ;;  %v2279_v29 = vshrl.u32 %v2151_v46, 16  ;;  %v2284_v38 = vshrl.u32 %v2152_v42, 16  ;;  %v2154_v59 = vld [vmem:[#allocation2 + $0xa0] sm:$0x8]  ;;  %2067 = vrot.lane.b32.xlu0 %v11411_v61, %s10562_s26 }
  0xff   : > { %v11589_v55 = vsel %vm11463_vm0, %v2247_v27, %v2254_v57  ;;  %v11591_v58 = vor.u32 %v1098_v2, %v1095_v45  ;;  %v1077_v9 = vrot.slane %v1075_v4, 6  ;;  %v2287_v1 = vshll.u32 %v2152_v42, 16  ;;  %v2155_v41 = vld [vmem:[#allocation2 + $0xa4] sm:$0xf]  ;;  %v2153_v4 = vld [vmem:[#allocation2 + $0x98] sm:$0xf]  ;;  %2065 = vrot.lane.b32.xlu1 %v11420_v53, %s10562_s26 }
 0x100   : > { %v1091_v14 = vrot.slane %v1090_v40, 4  ;;  %v1080_v30 = vrot.slane %v1078_v60, 7  ;;  %v11595_v15 = vrot.slane %v2279_v29, 11  ;;  %v11597_v43 = vrot.slane %v2284_v38, 7  ;;  %v863_v29 = vld [vmem:[#allocation2 + $0xe0] sm:$0xc] }
 0x101   : > { %v2269_v48 = vrot.slane %v11562_v21, 4  ;;  %v2271_v20 = vshrl.u32 %v2150_v26, 16  ;;  %v2274_v5 = vshll.u32 %v2150_v26, 16  ;;  %v1112_v27 = vshrl.u32 %v860_v7, 16  ;;  %v1679_v26 = vpop.permute.xlu1 %1678  ;;  %v1409_v35 = vld [vmem:[#allocation2 + $0x50] sm:$0xf] }
 0x102   : > { %v1100_v31 = vsel %vm11396_vm13, %v1091_v14, %v11591_v58  ;;  %v1081_v49 = vor.u32 %v1080_v30, %v1077_v9  ;;  %v11606_v12 = vor.u32 %v2287_v1, %v11597_v43  ;;  %v1115_v18 = vshll.u32 %v860_v7, 16  ;;  %1773 = vst.msk [vmem:[#allocation3 + $0x10] sm:$0xf] %vm1770_vm1, %v1679_v26  ;;  %v1683_v1 = vpop.permute.xlu0 %1682  ;;  %2071 = vrot.lane.b32.xlu0 %v11432_v56, %s10562_s26  ;;  %v1401_v26 = vld [vmem:[#allocation2 + $0x10] sm:$0xf] }
 0x103   : > { %1381 = vst.msk [vmem:[#allocation3 + $0x70] sm:$0xf] %vm786_vm8, %v1100_v31  ;;  %v2273_v21 = vrot.slane %v2271_v20, 7  ;;  %v1114_v46 = vrot.slane %v1112_v27, 6  ;;  %v1121_v11 = vshrl.u32 %v861_v23, 16  ;;  %v1124_v51 = vshll.u32 %v861_v23, 16  ;;  %2069 = vrot.lane.b32.xlu1 %v11438_v47, %s10562_s26 }
 0x104   : > { %v1082_v8 = vsel %vm11396_vm13, %v1073_v52, %v1081_v49  ;;  %v2290_v39 = vsel %vm11463_vm0, %v11595_v15, %v11606_v12  ;;  %v1117_v42 = vrot.slane %v1115_v18, 7  ;;  %v1101_v17 = vrot.slane %v11591_v58, 4  ;;  %v864_v20 = vld [vmem:[#allocation2 + $0xe4] sm:$0xf]  ;;  %1775 = vst.msk [vmem:[#allocation3 + $0x20] sm:$0xf] %vm1770_vm1, %v1683_v1 }
 0x105   : > { %1380 = vst.msk [vmem:[#allocation3 + $0x68] sm:$0xf] %vm786_vm8, %v1082_v8  ;;  %v2276_v50 = vor.u32 %v2274_v5, %v2273_v21  ;;  %v1123_v57 = vrot.slane %v1121_v11, 6  ;;  %v1126_v45 = vrot.slane %v1124_v51, 7  ;;  %v1103_v2 = vshrl.u32 %v859_v6, 16  ;;  %v1681_v18 = vpop.permute.xlu1 %1680 }
 0x106   : > { %v1118_v16 = vor.u32 %v1117_v42, %v1114_v46  ;;  %v1106_v52 = vshll.u32 %v859_v6, 16  ;;  %v2301_v40 = vshrl.u32 %v2154_v59, 16  ;;  %v2306_v60 = vshrl.u32 %v2155_v41, 16  ;;  %v1399_v49 = vld [vmem:[#allocation2] sm:$0xf]  ;;  %v1687_v42 = vpop.permute.xlu0 %1686  ;;  %2542 = vrot.lane.b32.xlu0 %v2202_v0, %s10563_s28 }
 0x107   : > { %v11624_v38 = vsel %vm11463_vm0, %v2269_v48, %v2276_v50  ;;  %v11626_v7 = vor.u32 %v1126_v45, %v1123_v57  ;;  %v1105_v58 = vrot.slane %v1103_v2, 6  ;;  %v2309_v9 = vshll.u32 %v2155_v41, 16  ;;  %v862_v46 = vld [vmem:[#allocation2 + $0xd8] sm:$0x7]  ;;  %v2157_v11 = vld [vmem:[#allocation2 + $0xb0] sm:$0x8]  ;;  %2073 = vrot.lane.b32.xlu1 %v11477_v32, %s10562_s26 }
 0x108   : > { %v1119_v61 = vrot.slane %v1118_v16, 4  ;;  %v1108_v14 = vrot.slane %v1106_v52, 7  ;;  %v11630_v30 = vrot.slane %v2301_v40, 11  ;;  %v11632_v23 = vrot.slane %v2306_v60, 7  ;;  %1431 = vst.msk [vmem:[#allocation4] sm:$0xf] %vm786_vm8, %v1399_v49 }
 0x109   : > { %v2291_v48 = vrot.slane %v11597_v43, 4  ;;  %v2293_v5 = vshrl.u32 %v2153_v4, 16  ;;  %v2296_v27 = vshll.u32 %v2153_v4, 16  ;;  %v1140_v31 = vshrl.u32 %v863_v29, 16  ;;  %1774 = vst.msk [vmem:[#allocation3 + $0x18] sm:$0xf] %vm1770_vm1, %v1681_v18  ;;  %v1685_v60 = vpop.permute.xlu1 %1684 }
 0x10a   : > { %v1128_v53 = vsel %vm11396_vm13, %v1119_v61, %v11626_v7  ;;  %v1109_v6 = vor.u32 %v1108_v14, %v1105_v58  ;;  %v11642_v59 = vor.u32 %v2309_v9, %v11632_v23  ;;  %v1143_v21 = vshll.u32 %v863_v29, 16  ;;  %v2158_v8 = vld [vmem:[#allocation2 + $0xb4] sm:$0xf]  ;;  %v11656_v4 = vld [vmem:[#allocation2 + $0xa8] sm:$0xf]  ;;  %v1691_v28 = vpop.permute.xlu0 %1690  ;;  %2546 = vrot.lane.b32.xlu0 %v2224_v54, %s10563_s28 }
 0x10b   : > { %1383 = vst.msk [vmem:[#allocation3 + $0x80] sm:$0xf] %vm786_vm8, %v1128_v53  ;;  %v2295_v43 = vrot.slane %v2293_v5, 7  ;;  %v1142_v51 = vrot.slane %v1140_v31, 6  ;;  %v1149_v56 = vshrl.u32 %v864_v20, 16  ;;  %v1152_v41 = vshll.u32 %v864_v20, 16  ;;  %2544 = vrot.lane.b32.xlu1 %v11519_v13, %s10563_s28 }
 0x10c   : > { %v1110_v50 = vsel %vm11396_vm13, %v1101_v17, %v1109_v6  ;;  %v2312_v57 = vsel %vm11463_vm0, %v11630_v30, %v11642_v59  ;;  %v1145_v45 = vrot.slane %v1143_v21, 7  ;;  %v1129_v2 = vrot.slane %v11626_v7, 4  ;;  %1777 = vst.msk [vmem:[#allocation3 + $0x30] sm:$0xf] %vm1770_vm1, %v1687_v42  ;;  %v1400_v17 = vld [vmem:[#allocation2 + $0x4] sm:$0xf] }
 0x10d   : > { %1382 = vst.msk [vmem:[#allocation3 + $0x78] sm:$0xf] %vm786_vm8, %v1110_v50  ;;  %v2298_v47 = vor.u32 %v2296_v27, %v2295_v43  ;;  %v1151_v16 = vrot.slane %v1149_v56, 6  ;;  %v1154_v52 = vrot.slane %v1152_v41, 7  ;;  %v1131_v40 = vshrl.u32 %v862_v46, 16 }
 0x10e   : > { %1433 = vst.msk [vmem:[#allocation4 + $0x10] sm:$0xf] %vm786_vm8, %v1401_v26  ;;  %v1146_v29 = vor.u32 %v1145_v45, %v1142_v51  ;;  %v1134_v7 = vshll.u32 %v862_v46, 16  ;;  %v2323_v58 = vshrl.u32 %v2157_v11, 16  ;;  %v2328_v9 = vshrl.u32 %v2158_v8, 16  ;;  %v1689_v46 = vpop.permute.xlu1 %1688  ;;  %v1695_v50 = vpop.permute.xlu0 %1694  ;;  %2550 = vrot.lane.b32.xlu0 %v2246_v37, %s10563_s28 }
 0x10f   : > { %v866_v1 = vld [vmem:[#allocation2 + $0xf0] sm:$0xc]  ;;  %1432 = vst.msk [vmem:[#allocation4 + $0x8] sm:$0xf] %vm786_vm8, %v1400_v17  ;;  %v11671_v61 = vsel %vm11463_vm0, %v2291_v48, %v2298_v47  ;;  %v11673_v14 = vor.u32 %v1154_v52, %v1151_v16  ;;  %v1133_v20 = vrot.slane %v1131_v40, 6  ;;  %v2331_v5 = vshll.u32 %v2158_v8, 16  ;;  %2548 = vrot.lane.b32.xlu1 %v11554_v63, %s10563_s28 }
 0x110   : > { %1776 = vst.msk [vmem:[#allocation3 + $0x28] sm:$0xf] %vm1770_vm1, %v1685_v60  ;;  %v867_v27 = vld [vmem:[#allocation2 + $0xf4] sm:$0xf]  ;;  %v1147_v10 = vrot.slane %v1146_v29, 4  ;;  %v1136_v0 = vrot.slane %v1134_v7, 7 }
 0x111   : > { %v11677_v31 = vrot.slane %v2323_v58, 11  ;;  %v11679_v49 = vrot.slane %v2328_v9, 7  ;;  %v1403_v18 = vld [vmem:[#allocation2 + $0x20] sm:$0xf]  ;;  %1779 = vst.msk [vmem:[#allocation3 + $0x40] sm:$0xf] %vm1770_vm1, %v1691_v28 }
 0x112   : > { %v2313_v48 = vrot.slane %v11632_v23, 4  ;;  %v2315_v53 = vshrl.u32 %v11656_v4, 16  ;;  %v2318_v6 = vshll.u32 %v11656_v4, 16  ;;  %v1168_v21 = vshrl.u32 %v866_v1, 16  ;;  %1435 = vst.msk [vmem:[#allocation4 + $0x20] sm:$0xf] %vm786_vm8, %v1403_v18  ;;  %v1699_v22 = vpop.permute.xlu0 %1698  ;;  %2554 = vrot.lane.b32.xlu0 %v2268_v19, %s10563_s28 }
 0x113   : > { %v1402_v32 = vld [vmem:[#allocation2 + $0x14] sm:$0xf]  ;;  %v1156_v23 = vsel %vm11396_vm13, %v1147_v10, %v11673_v14  ;;  %v1137_v11 = vor.u32 %v1136_v0, %v1133_v20  ;;  %v11696_v43 = vor.u32 %v2331_v5, %v11679_v49  ;;  %v1171_v51 = vshll.u32 %v866_v1, 16  ;;  %v865_v56 = vld [vmem:[#allocation2 + $0xe8] sm:$0x7]  ;;  %2552 = vrot.lane.b32.xlu1 %v11589_v55, %s10563_s28 }
 0x114   : > { %v2160_v41 = vld [vmem:[#allocation2 + $0xc0] sm:$0x8]  ;;  %1434 = vst.msk [vmem:[#allocation4 + $0x18] sm:$0xf] %vm786_vm8, %v1402_v32  ;;  %1385 = vst.msk [vmem:[#allocation3 + $0x90] sm:$0xf] %vm786_vm8, %v1156_v23 }
 0x115   : > { %1778 = vst.msk [vmem:[#allocation3 + $0x38] sm:$0xf] %vm1770_vm1, %v1689_v46  ;;  %v2317_v8 = vrot.slane %v2315_v53, 7  ;;  %v1170_v25 = vrot.slane %v1168_v21, 6  ;;  %v1177_v62 = vshrl.u32 %v867_v27, 16  ;;  %v1180_v54 = vshll.u32 %v867_v27, 16 }
 0x116   : > { %v2161_v42 = vld [vmem:[#allocation2 + $0xc4] sm:$0xf]  ;;  %v1138_v45 = vsel %vm11396_vm13, %v1129_v2, %v1137_v11  ;;  %v2334_v4 = vsel %vm11463_vm0, %v11677_v31, %v11696_v43  ;;  %v1173_v26 = vrot.slane %v1171_v51, 7  ;;  %v1157_v47 = vrot.slane %v11673_v14, 4  ;;  %v1405_v16 = vld [vmem:[#allocation2 + $0x30] sm:$0xf]  ;;  %v1693_v2 = vpop.permute.xlu1 %1692  ;;  %v1703_v19 = vpop.permute.xlu0 %1702  ;;  %2558 = vrot.lane.b32.xlu0 %v2290_v39, %s10563_s28 }
 0x117   : > { %v1404_v52 = vld [vmem:[#allocation2 + $0x24] sm:$0xf]  ;;  %1781 = vst.msk [vmem:[#allocation3 + $0x50] sm:$0xf] %vm1770_vm1, %v1695_v50  ;;  %v2320_v40 = vor.u32 %v2318_v6, %v2317_v8  ;;  %v1179_v13 = vrot.slane %v1177_v62, 6  ;;  %v1182_v17 = vrot.slane %v1180_v54, 7  ;;  %2556 = vrot.lane.b32.xlu1 %v11624_v38, %s10563_s28 }
 0x118   : > { %1384 = vst.msk [vmem:[#allocation3 + $0x88] sm:$0xf] %vm786_vm8, %v1138_v45  ;;  %v1159_v60 = vshrl.u32 %v865_v56, 16  ;;  %v2159_v29 = vld [vmem:[#allocation2 + $0xb8] sm:$0xf]  ;;  %v1174_v7 = vor.u32 %v1173_v26, %v1170_v25  ;;  %v1162_v58 = vshll.u32 %v865_v56, 16 }
 0x119   : > { %1437 = vst.msk [vmem:[#allocation4 + $0x30] sm:$0xf] %vm786_vm8, %v1405_v16  ;;  %1436 = vst.msk [vmem:[#allocation4 + $0x28] sm:$0xf] %vm786_vm8, %v1404_v52  ;;  %v2345_v9 = vshrl.u32 %v2160_v41, 16  ;;  %v2350_v1 = vshrl.u32 %v2161_v42, 16  ;;  %v11723_v20 = vsel %vm11463_vm0, %v2313_v48, %v2320_v40  ;;  %v11725_v5 = vor.u32 %v1182_v17, %v1179_v13 }
 0x11a   : > { %v869_v14 = vld [vmem:[#allocation2 + $0x100] sm:$0xc]  ;;  %1780 = vst.msk [vmem:[#allocation3 + $0x48] sm:$0xf] %vm1770_vm1, %v1693_v2  ;;  %v1161_v27 = vrot.slane %v1159_v60, 6  ;;  %v2353_v28 = vshll.u32 %v2161_v42, 16  ;;  %v1697_v63 = vpop.permute.xlu1 %1696  ;;  %v1707_v15 = vpop.permute.xlu0 %1706  ;;  %2562 = vrot.lane.b32.xlu0 %v2312_v57, %s10563_s28 }
 0x11b   : > { %v870_v10 = vld [vmem:[#allocation2 + $0x104] sm:$0xf]  ;;  %v1407_v0 = vld [vmem:[#allocation2 + $0x40] sm:$0xf]  ;;  %v1175_v34 = vrot.slane %v1174_v7, 4  ;;  %v1164_v37 = vrot.slane %v1162_v58, 7  ;;  %2560 = vrot.lane.b32.xlu1 %v11671_v61, %s10563_s28 }
 0x11c   : > { %v11729_v18 = vrot.slane %v2345_v9, 11  ;;  %v11731_v53 = vrot.slane %v2350_v1, 7  ;;  %1439 = vst.msk [vmem:[#allocation4 + $0x40] sm:$0xf] %vm786_vm8, %v1407_v0  ;;  %v1406_v48 = vld [vmem:[#allocation2 + $0x34] sm:$0xf] }
 0x11d   : > { %1783 = vst.msk [vmem:[#allocation3 + $0x60] sm:$0xf] %vm1770_vm1, %v1699_v22  ;;  %v2335_v6 = vrot.slane %v11679_v49, 4  ;;  %v2337_v21 = vshrl.u32 %v2159_v29, 16  ;;  %v2340_v32 = vshll.u32 %v2159_v29, 16  ;;  %v1196_v46 = vshrl.u32 %v869_v14, 16 }
 0x11e   : > { %v868_v23 = vld [vmem:[#allocation2 + $0xf8] sm:$0x7]  ;;  %1438 = vst.msk [vmem:[#allocation4 + $0x38] sm:$0xf] %vm786_vm8, %v1406_v48  ;;  %v1184_v11 = vsel %vm11396_vm13, %v1175_v34, %v11725_v5  ;;  %v1165_v51 = vor.u32 %v1164_v37, %v1161_v27  ;;  %v11747_v49 = vor.u32 %v2353_v28, %v11731_v53  ;;  %v1199_v56 = vshll.u32 %v869_v14, 16  ;;  %v1701_v60 = vpop.permute.xlu1 %1700  ;;  %v1711_v57 = vpop.permute.xlu0 %1710  ;;  %2566 = vrot.lane.b32.xlu0 %v2334_v4, %s10563_s28 }
 0x11f   : > { %v2163_v41 = vld [vmem:[#allocation2 + $0xd0] sm:$0x8]  ;;  %v2164_v8 = vld [vmem:[#allocation2 + $0xd4] sm:$0xf]  ;;  %1782 = vst.msk [vmem:[#allocation3 + $0x58] sm:$0xf] %vm1770_vm1, %v1697_v63  ;;  %2564 = vrot.lane.b32.xlu1 %v11723_v20, %s10563_s28 }
 0x120   : > { %1387 = vst.msk [vmem:[#allocation3 + $0xa0] sm:$0xf] %vm786_vm8, %v1184_v11  ;;  %v2339_v25 = vrot.slane %v2337_v21, 7  ;;  %v1198_v62 = vrot.slane %v1196_v46, 6  ;;  %v1205_v54 = vshrl.u32 %v870_v10, 16  ;;  %v1208_v33 = vshll.u32 %v870_v10, 16 }
 0x121   : > { %v1166_v42 = vsel %vm11396_vm13, %v1157_v47, %v1165_v51  ;;  %v2356_v50 = vsel %vm11463_vm0, %v11729_v18, %v11747_v49  ;;  %v1201_v45 = vrot.slane %v1199_v56, 7  ;;  %v1185_v26 = vrot.slane %v11725_v5, 4  ;;  %v11760_v16 = vld [vmem:[#allocation2 + $0xc8] sm:$0xf]  ;;  %1441 = vst.msk [vmem:[#allocation4 + $0x50] sm:$0xf] %vm786_vm8, %v1409_v35 }
 0x122   : > { %v1408_v52 = vld [vmem:[#allocation2 + $0x44] sm:$0xf]  ;;  %1785 = vst.msk [vmem:[#allocation3 + $0x70] sm:$0xf] %vm1770_vm1, %v1703_v19  ;;  %v2342_v55 = vor.u32 %v2340_v32, %v2339_v25  ;;  %v1207_v40 = vrot.slane %v1205_v54, 6  ;;  %v1210_v47 = vrot.slane %v1208_v33, 7  ;;  %v1705_v32 = vpop.permute.xlu1 %1704  ;;  %v1715_v43 = vpop.permute.xlu0 %1714  ;;  %2570 = vrot.lane.b32.xlu0 %v2356_v50, %s10563_s28 }
 0x123   : > { %1386 = vst.msk [vmem:[#allocation3 + $0x98] sm:$0xf] %vm786_vm8, %v1166_v42  ;;  %v1187_v13 = vshrl.u32 %v868_v23, 16  ;;  %v872_v17 = vld [vmem:[#allocation2 + $0x110] sm:$0xc]  ;;  %v1202_v29 = vor.u32 %v1201_v45, %v1198_v62  ;;  %v1190_v2 = vshll.u32 %v868_v23, 16 }
 0x124   : > { %1440 = vst.msk [vmem:[#allocation4 + $0x48] sm:$0xf] %vm786_vm8, %v1408_v52  ;;  %v2367_v7 = vshrl.u32 %v2163_v41, 16  ;;  %v2372_v58 = vshrl.u32 %v2164_v8, 16  ;;  %v873_v9 = vld [vmem:[#allocation2 + $0x114] sm:$0xf]  ;;  %v11775_v1 = vsel %vm11463_vm0, %v2335_v6, %v2342_v55  ;;  %v11777_v14 = vor.u32 %v1210_v47, %v1207_v40 }
 0x125   : > { %1784 = vst.msk [vmem:[#allocation3 + $0x68] sm:$0xf] %vm1770_vm1, %v1701_v60  ;;  %v1189_v5 = vrot.slane %v1187_v13, 6  ;;  %v2375_v27 = vshll.u32 %v2164_v8, 16  ;;  %v1411_v28 = vld [vmem:[#allocation2 + $0x60] sm:$0xf]  ;;  %2568 = vrot.lane.b32.xlu1 %v11775_v1, %s10563_s28 }
 0x126   : > { %v1410_v10 = vld [vmem:[#allocation2 + $0x54] sm:$0xf]  ;;  %v1203_v12 = vrot.slane %v1202_v29, 4  ;;  %v1192_v39 = vrot.slane %v1190_v2, 7  ;;  %v11781_v0 = vrot.slane %v2367_v7, 11  ;;  %v11783_v22 = vrot.slane %v2372_v58, 7  ;;  %v1719_v49 = vpop.permute.xlu0 %1718 }
 0x127   : > { %v871_v34 = vld [vmem:[#allocation2 + $0x108] sm:$0x7]  ;;  %1443 = vst.msk [vmem:[#allocation4 + $0x60] sm:$0xf] %vm786_vm8, %v1411_v28  ;;  %1442 = vst.msk [vmem:[#allocation4 + $0x58] sm:$0xf] %vm786_vm8, %v1410_v10 }
 0x128   : > { %1787 = vst.msk [vmem:[#allocation3 + $0x80] sm:$0xf] %vm1770_vm1, %v1707_v15  ;;  %v2357_v37 = vrot.slane %v11731_v53, 4  ;;  %v2359_v48 = vshrl.u32 %v11760_v16, 16  ;;  %v2362_v38 = vshll.u32 %v11760_v16, 16  ;;  %v1224_v6 = vshrl.u32 %v872_v17, 16  ;;  %v1709_v16 = vpop.permute.xlu1 %1708 }
 0x129   : > { %v2166_v21 = vld [vmem:[#allocation2 + $0xe0] sm:$0x8]  ;;  %v1212_v46 = vsel %vm11396_vm13, %v1203_v12, %v11777_v14  ;;  %v1193_v23 = vor.u32 %v1192_v39, %v1189_v5  ;;  %v11801_v53 = vor.u32 %v2375_v27, %v11783_v22  ;;  %v1227_v63 = vshll.u32 %v872_v17, 16  ;;  %v2167_v11 = vld [vmem:[#allocation2 + $0xe4] sm:$0xf] }
 0x12a   : > { %v1413_v51 = vld [vmem:[#allocation2 + $0x70] sm:$0xf]  ;;  %1786 = vst.msk [vmem:[#allocation3 + $0x78] sm:$0xf] %vm1770_vm1, %v1705_v32  ;;  %v2361_v56 = vrot.slane %v2359_v48, 7  ;;  %v1226_v41 = vrot.slane %v1224_v6, 6 }
 0x12b   : > { %1389 = vst.msk [vmem:[#allocation3 + $0xb0] sm:$0xf] %vm786_vm8, %v1212_v46  ;;  %v1233_v8 = vshrl.u32 %v873_v9, 16  ;;  %v1236_v30 = vshll.u32 %v873_v9, 16  ;;  %1445 = vst.msk [vmem:[#allocation4 + $0x70] sm:$0xf] %vm786_vm8, %v1413_v51  ;;  %v1194_v25 = vsel %vm11396_vm13, %v1185_v26, %v1193_v23  ;;  %v2378_v62 = vsel %vm11463_vm0, %v11781_v0, %v11801_v53  ;;  %v1723_v0 = vpop.permute.xlu0 %1722 }
 0x12c   : > { %v1412_v59 = vld [vmem:[#allocation2 + $0x64] sm:$0xf]  ;;  %v1229_v54 = vrot.slane %v1227_v63, 7  ;;  %v1213_v33 = vrot.slane %v11777_v14, 4  ;;  %v11815_v35 = vld [vmem:[#allocation2 + $0xd8] sm:$0xf]  ;;  %v2364_v61 = vor.u32 %v2362_v38, %v2361_v56  ;;  %v1713_v12 = vpop.permute.xlu1 %1712  ;;  %2574 = vrot.lane.b32.xlu0 %v2378_v62, %s10563_s28 }
 0x12d   : > { %1444 = vst.msk [vmem:[#allocation4 + $0x68] sm:$0xf] %vm786_vm8, %v1412_v59  ;;  %1388 = vst.msk [vmem:[#allocation3 + $0xa8] sm:$0xf] %vm786_vm8, %v1194_v25  ;;  %v1235_v19 = vrot.slane %v1233_v8, 6  ;;  %v1238_v42 = vrot.slane %v1236_v30, 7 }
 0x12e   : > { %1789 = vst.msk [vmem:[#allocation3 + $0x90] sm:$0xf] %vm1770_vm1, %v1711_v57  ;;  %v1215_v45 = vshrl.u32 %v871_v34, 16  ;;  %v875_v26 = vld [vmem:[#allocation2 + $0x120] sm:$0xc]  ;;  %v1230_v52 = vor.u32 %v1229_v54, %v1226_v41  ;;  %v1218_v55 = vshll.u32 %v871_v34, 16  ;;  %v11829_v17 = vsel %vm11463_vm0, %v2357_v37, %v2364_v61 }
 0x12f   : > { %v2389_v40 = vshrl.u32 %v2166_v21, 16  ;;  %v2394_v47 = vshrl.u32 %v2167_v11, 16  ;;  %v1415_v13 = vld [vmem:[#allocation2 + $0x80] sm:$0xf]  ;;  %1788 = vst.msk [vmem:[#allocation3 + $0x88] sm:$0xf] %vm1770_vm1, %v1709_v16  ;;  %v11831_v60 = vor.u32 %v1238_v42, %v1235_v19  ;;  %2572 = vrot.lane.b32.xlu1 %v11829_v17, %s10563_s28 }
 0x130   : > { %v1217_v29 = vrot.slane %v1215_v45, 6  ;;  %v2397_v2 = vshll.u32 %v2167_v11, 16  ;;  %v876_v7 = vld [vmem:[#allocation2 + $0x124] sm:$0xf]  ;;  %1447 = vst.msk [vmem:[#allocation4 + $0x80] sm:$0xf] %vm786_vm8, %v1415_v13  ;;  %v1717_v57 = vpop.permute.xlu1 %1716 }
 0x131   : > { %v1414_v31 = vld [vmem:[#allocation2 + $0x74] sm:$0xf]  ;;  %v1231_v4 = vrot.slane %v1230_v52, 4  ;;  %v1220_v58 = vrot.slane %v1218_v55, 7  ;;  %v11836_v9 = vrot.slane %v2389_v40, 11  ;;  %v11838_v14 = vrot.slane %v2394_v47, 7 }
 0x132   : > { %v874_v5 = vld [vmem:[#allocation2 + $0x118] sm:$0x7]  ;;  %1446 = vst.msk [vmem:[#allocation4 + $0x78] sm:$0xf] %vm786_vm8, %v1414_v31  ;;  %v2379_v27 = vrot.slane %v11783_v22, 4  ;;  %v2381_v28 = vshrl.u32 %v11815_v35, 16 }
 0x133   : > { %1791 = vst.msk [vmem:[#allocation3 + $0xa0] sm:$0xf] %vm1770_vm1, %v1715_v43  ;;  %v2384_v10 = vshll.u32 %v11815_v35, 16  ;;  %v1252_v15 = vshrl.u32 %v875_v26, 16  ;;  %v2169_v20 = vld [vmem:[#allocation2 + $0xf0] sm:$0x8]  ;;  %v1240_v39 = vsel %vm11396_vm13, %v1231_v4, %v11831_v60  ;;  %v1221_v34 = vor.u32 %v1220_v58, %v1217_v29 }
 0x134   : > { %v2399_v22 = vor.u32 %v2397_v2, %v11838_v14  ;;  %v1255_v37 = vshll.u32 %v875_v26, 16  ;;  %v1417_v48 = vld [vmem:[#allocation2 + $0x90] sm:$0xf]  ;;  %v1416_v38 = vld [vmem:[#allocation2 + $0x84] sm:$0xf]  ;;  %v2383_v6 = vrot.slane %v2381_v28, 7 }
 0x135   : > { %1790 = vst.msk [vmem:[#allocation3 + $0x98] sm:$0xf] %vm1770_vm1, %v1713_v12  ;;  %v1254_v21 = vrot.slane %v1252_v15, 6  ;;  %v1261_v32 = vshrl.u32 %v876_v7, 16  ;;  %v1264_v46 = vshll.u32 %v876_v7, 16  ;;  %v1222_v50 = vsel %vm11396_vm13, %v1213_v33, %v1221_v34  ;;  %v1721_v7 = vpop.permute.xlu1 %1720  ;;  %v1727_v15 = vpop.permute.xlu0 %1726 }
 0x136   : > { %1391 = vst.msk [vmem:[#allocation3 + $0xc0] sm:$0xf] %vm786_vm8, %v1240_v39  ;;  %v2170_v18 = vld [vmem:[#allocation2 + $0xf4] sm:$0xf]  ;;  %1449 = vst.msk [vmem:[#allocation4 + $0x90] sm:$0xf] %vm786_vm8, %v1417_v48  ;;  %v2400_v23 = vsel %vm11463_vm0, %v11836_v9, %v2399_v22  ;;  %v2386_v41 = vor.u32 %v2384_v10, %v2383_v6 }
 0x137   : > { %1448 = vst.msk [vmem:[#allocation4 + $0x88] sm:$0xf] %vm786_vm8, %v1416_v38  ;;  %v1257_v63 = vrot.slane %v1255_v37, 7  ;;  %v1241_v11 = vrot.slane %v11831_v60, 4  ;;  %v11867_v51 = vld [vmem:[#allocation2 + $0xe8] sm:$0xf]  ;;  %2578 = vrot.lane.b32.xlu0 %v2400_v23, %s10563_s28 }
 0x138   : > { %v878_v56 = vld [vmem:[#allocation2 + $0x130] sm:$0xc]  ;;  %1793 = vst.msk [vmem:[#allocation3 + $0xb0] sm:$0xf] %vm1770_vm1, %v1719_v49  ;;  %v1263_v1 = vrot.slane %v1261_v32, 6  ;;  %v1266_v8 = vrot.slane %v1264_v46, 7  ;;  %v2387_v19 = vsel %vm11463_vm0, %v2379_v27, %v2386_v41 }
 0x139   : > { %1390 = vst.msk [vmem:[#allocation3 + $0xb8] sm:$0xf] %vm786_vm8, %v1222_v50  ;;  %v1243_v30 = vshrl.u32 %v874_v5, 16  ;;  %v1419_v59 = vld [vmem:[#allocation2 + $0xa0] sm:$0xf]  ;;  %v1258_v25 = vor.u32 %v1257_v63, %v1254_v21  ;;  %v1246_v54 = vshll.u32 %v874_v5, 16  ;;  %2576 = vrot.lane.b32.xlu1 %v2387_v19, %s10563_s28  ;;  %v1725_v46 = vpop.permute.xlu1 %1724 }
 0x13a   : > { %v2411_v33 = vshrl.u32 %v2169_v20, 16  ;;  %v2416_v35 = vshrl.u32 %v2170_v18, 16  ;;  %1451 = vst.msk [vmem:[#allocation4 + $0xa0] sm:$0xf] %vm786_vm8, %v1419_v59  ;;  %v1418_v61 = vld [vmem:[#allocation2 + $0x94] sm:$0xf]  ;;  %v11881_v42 = vor.u32 %v1266_v8, %v1263_v1 }
 0x13b   : > { %1792 = vst.msk [vmem:[#allocation3 + $0xa8] sm:$0xf] %vm1770_vm1, %v1717_v57  ;;  %v1245_v45 = vrot.slane %v1243_v30, 6  ;;  %v2419_v26 = vshll.u32 %v2170_v18, 16  ;;  %v879_v16 = vld [vmem:[#allocation2 + $0x134] sm:$0xf]  ;;  %v1731_v30 = vpop.permute.xlu0 %1730 }
 0x13c   : > { %1450 = vst.msk [vmem:[#allocation4 + $0x98] sm:$0xf] %vm786_vm8, %v1418_v61  ;;  %v1259_v53 = vrot.slane %v1258_v25, 4  ;;  %v1248_v62 = vrot.slane %v1246_v54, 7  ;;  %v9830_v52 = vrot.slane %v2411_v33, 11  ;;  %v11886_v55 = vrot.slane %v2416_v35, 7 }
 0x13d   : > { %v877_v40 = vld [vmem:[#allocation2 + $0x128] sm:$0x7]  ;;  %1795 = vst.msk [vmem:[#allocation3 + $0xc0] sm:$0xf] %vm1770_vm1, %v1723_v0  ;;  %v2401_v47 = vrot.slane %v11838_v14, 4  ;;  %v2403_v13 = vshrl.u32 %v11867_v51, 16 }
 0x13e   : > { %v2406_v60 = vshll.u32 %v11867_v51, 16  ;;  %v1280_v29 = vshrl.u32 %v878_v56, 16  ;;  %v1421_v2 = vld [vmem:[#allocation2 + $0xb0] sm:$0xf]  ;;  %v1268_v17 = vsel %vm11396_vm13, %v1259_v53, %v11881_v42  ;;  %v1249_v31 = vor.u32 %v1248_v62, %v1245_v45  ;;  %v2172_v58 = vld [vmem:[#allocation2 + $0x100] sm:$0x8] }
 0x13f   : > { %v2421_v43 = vor.u32 %v2419_v26, %v11886_v55  ;;  %v1283_v4 = vshll.u32 %v878_v56, 16  ;;  %1453 = vst.msk [vmem:[#allocation4 + $0xb0] sm:$0xf] %vm786_vm8, %v1421_v2  ;;  %v1420_v9 = vld [vmem:[#allocation2 + $0xa4] sm:$0xf]  ;;  %v2405_v14 = vrot.slane %v2403_v13, 7 }
 0x140   : > { %1794 = vst.msk [vmem:[#allocation3 + $0xb8] sm:$0xf] %vm1770_vm1, %v1721_v7  ;;  %v1282_v5 = vrot.slane %v1280_v29, 6  ;;  %v1289_v27 = vshrl.u32 %v879_v16, 16  ;;  %v1292_v28 = vshll.u32 %v879_v16, 16  ;;  %v1250_v20 = vsel %vm11396_vm13, %v1241_v11, %v1249_v31  ;;  %v1729_v16 = vpop.permute.xlu1 %1728 }
 0x141   : > { %1393 = vst.msk [vmem:[#allocation3 + $0xd0] sm:$0xf] %vm786_vm8, %v1268_v17  ;;  %v2173_v10 = vld [vmem:[#allocation2 + $0x104] sm:$0xf]  ;;  %1452 = vst.msk [vmem:[#allocation4 + $0xa8] sm:$0xf] %vm786_vm8, %v1420_v9  ;;  %v2422_v12 = vsel %vm11463_vm0, %v9830_v52, %v2421_v43  ;;  %v2408_v48 = vor.u32 %v2406_v60, %v2405_v14  ;;  %v1735_v17 = vpop.permute.xlu0 %1734 }
 0x142   : > { %v1285_v39 = vrot.slane %v1283_v4, 7  ;;  %v1269_v34 = vrot.slane %v11881_v42, 4  ;;  %v11907_v22 = vld [vmem:[#allocation2 + $0xf8] sm:$0xf]  ;;  %v1423_v37 = vld [vmem:[#allocation2 + $0xc0] sm:$0xf]  ;;  %2582 = vrot.lane.b32.xlu0 %v2422_v12, %s10563_s28 }
 0x143   : > { %1797 = vst.msk [vmem:[#allocation3 + $0xd0] sm:$0xf] %vm1770_vm1, %v1727_v15  ;;  %v1291_v38 = vrot.slane %v1289_v27, 6  ;;  %v1294_v6 = vrot.slane %v1292_v28, 7  ;;  %v1271_v21 = vshrl.u32 %v877_v40, 16  ;;  %v1274_v49 = vshll.u32 %v877_v40, 16 }
 0x144   : > { %1392 = vst.msk [vmem:[#allocation3 + $0xc8] sm:$0xf] %vm786_vm8, %v1250_v20  ;;  %1455 = vst.msk [vmem:[#allocation4 + $0xc0] sm:$0xf] %vm786_vm8, %v1423_v37  ;;  %v1422_v32 = vld [vmem:[#allocation2 + $0xb4] sm:$0xf]  ;;  %v1286_v18 = vor.u32 %v1285_v39, %v1282_v5  ;;  %v2409_v11 = vsel %vm11463_vm0, %v2401_v47, %v2408_v48  ;;  %v1733_v20 = vpop.permute.xlu1 %1732 }
 0x145   : > { %v2433_v50 = vshrl.u32 %v2172_v58, 16  ;;  %v2438_v23 = vshrl.u32 %v2173_v10, 16  ;;  %v881_v63 = vld [vmem:[#allocation2 + $0x140] sm:$0xc]  ;;  %1454 = vst.msk [vmem:[#allocation4 + $0xb8] sm:$0xf] %vm786_vm8, %v1422_v32  ;;  %v11917_v51 = vor.u32 %v1294_v6, %v1291_v38  ;;  %2580 = vrot.lane.b32.xlu1 %v2409_v11, %s10563_s28 }
 0x146   : > { %1796 = vst.msk [vmem:[#allocation3 + $0xc8] sm:$0xf] %vm1770_vm1, %v1725_v46  ;;  %v1273_v56 = vrot.slane %v1271_v21, 6  ;;  %v2441_v41 = vshll.u32 %v2173_v10, 16  ;;  %v882_v1 = vld [vmem:[#allocation2 + $0x144] sm:$0xf] }
 0x147   : > { %v1287_v8 = vrot.slane %v1286_v18, 4  ;;  %v1276_v59 = vrot.slane %v1274_v49, 7  ;;  %v9831_v57 = vrot.slane %v2433_v50, 11  ;;  %v11920_v25 = vrot.slane %v2438_v23, 7  ;;  %v1425_v54 = vld [vmem:[#allocation2 + $0xd0] sm:$0xf]  ;;  %v2012_v50 = vpop.permute.xlu0 %2011 }
 0x148   : > { %v2423_v33 = vrot.slane %v11886_v55, 4  ;;  %v2425_v35 = vshrl.u32 %v11907_v22, 16  ;;  %v2428_v61 = vshll.u32 %v11907_v22, 16  ;;  %v1308_v19 = vshrl.u32 %v881_v63, 16  ;;  %1457 = vst.msk [vmem:[#allocation4 + $0xd0] sm:$0xf] %vm786_vm8, %v1425_v54 }
 0x149   : > { %v1424_v42 = vld [vmem:[#allocation2 + $0xc4] sm:$0xf]  ;;  %v1296_v45 = vsel %vm11396_vm13, %v1287_v8, %v11917_v51  ;;  %v1277_v26 = vor.u32 %v1276_v59, %v1273_v56  ;;  %v2443_v0 = vor.u32 %v2441_v41, %v11920_v25  ;;  %v1311_v53 = vshll.u32 %v881_v63, 16  ;;  %v880_v62 = vld [vmem:[#allocation2 + $0x138] sm:$0x7]  ;;  %v1737_v59 = vpop.permute.xlu1 %1736 }
 0x14a   : > { %v2175_v52 = vld [vmem:[#allocation2 + $0x110] sm:$0x8]  ;;  %1456 = vst.msk [vmem:[#allocation4 + $0xc8] sm:$0xf] %vm786_vm8, %v1424_v42  ;;  %1395 = vst.msk [vmem:[#allocation3 + $0xe0] sm:$0xf] %vm786_vm8, %v1296_v45 }
 0x14b   : > { %v2427_v55 = vrot.slane %v2425_v35, 7  ;;  %v1310_v40 = vrot.slane %v1308_v19, 6  ;;  %v1317_v47 = vshrl.u32 %v882_v1, 16  ;;  %v1320_v13 = vshll.u32 %v882_v1, 16  ;;  %v2176_v60 = vld [vmem:[#allocation2 + $0x114] sm:$0xf] }
 0x14c   : > { %1799 = vst.msk [vmem:[#allocation3 + $0xe0] sm:$0xf] %vm1770_vm1, %v1731_v30  ;;  %v1278_v29 = vsel %vm11396_vm13, %v1269_v34, %v1277_v26  ;;  %v2444_v2 = vsel %vm11463_vm0, %v9831_v57, %v2443_v0  ;;  %v1313_v7 = vrot.slane %v1311_v53, 7  ;;  %v1297_v31 = vrot.slane %v11917_v51, 4  ;;  %v11938_v43 = vld [vmem:[#allocation2 + $0x108] sm:$0xf]  ;;  %v2016_v0 = vpop.permute.xlu0 %2015 }
 0x14d   : > { %v1427_v4 = vld [vmem:[#allocation2 + $0xe0] sm:$0xf]  ;;  %v1426_v58 = vld [vmem:[#allocation2 + $0xd4] sm:$0xf]  ;;  %1394 = vst.msk [vmem:[#allocation3 + $0xd8] sm:$0xf] %vm786_vm8, %v1278_v29  ;;  %2586 = vrot.lane.b32.xlu0 %v2444_v2, %s10563_s28  ;;  %v2430_v9 = vor.u32 %v2428_v61, %v2427_v55 }
 0x14e   : > { %v1319_v14 = vrot.slane %v1317_v47, 6  ;;  %v1322_v5 = vrot.slane %v1320_v13, 7  ;;  %v1299_v27 = vshrl.u32 %v880_v62, 16  ;;  %v883_v28 = vld [vmem:[#allocation2 + $0x148] sm:$0x7]  ;;  %v1314_v10 = vor.u32 %v1313_v7, %v1310_v40 }
 0x14f   : > { %1459 = vst.msk [vmem:[#allocation4 + $0xe0] sm:$0xf] %vm786_vm8, %v1427_v4  ;;  %1458 = vst.msk [vmem:[#allocation4 + $0xd8] sm:$0xf] %vm786_vm8, %v1426_v58  ;;  %v1302_v15 = vshll.u32 %v880_v62, 16  ;;  %v2455_v12 = vshrl.u32 %v2175_v52, 16  ;;  %v2431_v22 = vsel %vm11463_vm0, %v2423_v33, %v2430_v9 }
 0x150   : > { %1798 = vst.msk [vmem:[#allocation3 + $0xd8] sm:$0xf] %vm1770_vm1, %v1729_v16  ;;  %v2460_v39 = vshrl.u32 %v2176_v60, 16  ;;  %v2178_v34 = vld [vmem:[#allocation2 + $0x120] sm:$0x8]  ;;  %v11947_v37 = vor.u32 %v1322_v5, %v1319_v14  ;;  %v1301_v48 = vrot.slane %v1299_v27, 6  ;;  %2584 = vrot.lane.b32.xlu1 %v2431_v22, %s10563_s28 }
 0x151   : > { %v2463_v38 = vshll.u32 %v2176_v60, 16  ;;  %v2179_v6 = vld [vmem:[#allocation2 + $0x124] sm:$0xf]  ;;  %v1429_v21 = vld [vmem:[#allocation2 + $0xf0] sm:$0xf]  ;;  %v1315_v32 = vrot.slane %v1314_v10, 4  ;;  %v2014_v60 = vpop.permute.xlu1 %2013 }
 0x152   : > { %v1304_v46 = vrot.slane %v1302_v15, 7  ;;  %v9832_v18 = vrot.slane %v2455_v12, 11  ;;  %v11950_v49 = vrot.slane %v2460_v39, 7  ;;  %1461 = vst.msk [vmem:[#allocation4 + $0xf0] sm:$0xf] %vm786_vm8, %v1429_v21  ;;  %v2445_v63 = vrot.slane %v11920_v25, 4 }
 0x153   : > { %v1428_v23 = vld [vmem:[#allocation2 + $0xe4] sm:$0xf]  ;;  %v2447_v11 = vshrl.u32 %v11938_v43, 16  ;;  %v2450_v51 = vshll.u32 %v11938_v43, 16  ;;  %2107 = vst.msk [vmem:[#allocation4] sm:$0xf] %vm1770_vm1, %v2012_v50  ;;  %v1324_v41 = vsel %vm11396_vm13, %v1315_v32, %v11947_v37 }
 0x154   : > { %v1325_v56 = vrot.slane %v11947_v37, 4  ;;  %1460 = vst.msk [vmem:[#allocation4 + $0xe8] sm:$0xf] %vm786_vm8, %v1428_v23  ;;  %v1305_v1 = vor.u32 %v1304_v46, %v1301_v48  ;;  %v2465_v8 = vor.u32 %v2463_v38, %v11950_v49  ;;  %v1327_v30 = vshrl.u32 %v883_v28, 16  ;;  %v2177_v57 = vld [vmem:[#allocation2 + $0x118] sm:$0xf] }
 0x155   : > { %v2181_v25 = vld [vmem:[#allocation2 + $0x130] sm:$0x8]  ;;  %1397 = vst.msk [vmem:[#allocation3 + $0xf0] sm:$0xf] %vm786_vm8, %v1324_v41  ;;  %v2449_v54 = vrot.slane %v2447_v11, 7  ;;  %v1330_v33 = vshll.u32 %v883_v28, 16  ;;  %v2020_v28 = vpop.permute.xlu0 %2019  ;;  %v2018_v37 = vpop.permute.xlu1 %2017 }
 0x156   : > { %v2477_v35 = vshrl.u32 %v2178_v34, 16  ;;  %v2482_v61 = vshrl.u32 %v2179_v6, 16  ;;  %v1430_v19 = vld [vmem:[#allocation2 + $0xf4] sm:$0xf]  ;;  %1801 = vst.msk [vmem:[#allocation3 + $0xf0] sm:$0xf] %vm1770_vm1, %v1735_v17  ;;  %v1306_v42 = vsel %vm11396_vm13, %v1297_v31, %v1305_v1  ;;  %v2466_v45 = vsel %vm11463_vm0, %v9832_v18, %v2465_v8 }
 0x157   : > { %v1329_v26 = vrot.slane %v1327_v30, 6  ;;  %v2485_v16 = vshll.u32 %v2179_v6, 16  ;;  %v2182_v53 = vld [vmem:[#allocation2 + $0x134] sm:$0xf]  ;;  %1462 = vst.msk [vmem:[#allocation4 + $0xf8] sm:$0xf] %vm786_vm8, %v1430_v19  ;;  %2590 = vrot.lane.b32.xlu0 %v2466_v45, %s10563_s28  ;;  %v2452_v62 = vor.u32 %v2450_v51, %v2449_v54 }
 0x158   : > { %1396 = vst.msk [vmem:[#allocation3 + $0xe8] sm:$0xf] %vm786_vm8, %v1306_v42  ;;  %v1332_v52 = vrot.slane %v1330_v33, 7  ;;  %v9833_v55 = vrot.slane %v2477_v35, 11  ;;  %v2484_v40 = vrot.slane %v2482_v61, 7  ;;  %v2469_v47 = vshrl.u32 %v2177_v57, 16 }
 0x159   : > { %2109 = vst.msk [vmem:[#allocation4 + $0x10] sm:$0xf] %vm1770_vm1, %v2016_v0  ;;  %1800 = vst.msk [vmem:[#allocation3 + $0xe8] sm:$0xf] %vm1770_vm1, %v1733_v20  ;;  %v2472_v13 = vshll.u32 %v2177_v57, 16  ;;  %v2499_v29 = vshrl.u32 %v2181_v25, 16  ;;  %v2453_v7 = vsel %vm11463_vm0, %v2445_v63, %v2452_v62  ;;  %v2024_v51 = vpop.permute.xlu0 %2023  ;;  %v2022_v25 = vpop.permute.xlu1 %2021 }
 0x15a   : > { %v2180_v2 = vld [vmem:[#allocation2 + $0x128] sm:$0xf]  ;;  %v1333_v17 = vor.u32 %v1332_v52, %v1329_v26  ;;  %v2487_v31 = vor.u32 %v2485_v16, %v2484_v40  ;;  %2108 = vst.msk [vmem:[#allocation4 + $0x8] sm:$0xf] %vm1770_vm1, %v2014_v60  ;;  %v2504_v43 = vshrl.u32 %v2182_v53, 16  ;;  %2588 = vrot.lane.b32.xlu1 %v2453_v7, %s10563_s28  ;;  %v2467_v9 = vrot.slane %v11950_v49, 4 }
 0x15b   : > { %v2184_v4 = vld [vmem:[#allocation2 + $0x140] sm:$0x8]  ;;  %v2185_v58 = vld [vmem:[#allocation2 + $0x144] sm:$0xf]  ;;  %v2471_v14 = vrot.slane %v2469_v47, 7  ;;  %v9834_v5 = vrot.slane %v2499_v29, 11 }
 0x15c   : > { %v2507_v27 = vshll.u32 %v2182_v53, 16  ;;  %v1334_v10 = vsel %vm11396_vm13, %v1325_v56, %v1333_v17  ;;  %v2488_v15 = vsel %vm11463_vm0, %v9833_v55, %v2487_v31  ;;  %v2506_v20 = vrot.slane %v2504_v43, 7  ;;  %2111 = vst.msk [vmem:[#allocation4 + $0x20] sm:$0xf] %vm1770_vm1, %v2020_v28  ;;  %v2183_v39 = vld [vmem:[#allocation2 + $0x138] sm:$0xf] }
 0x15d   : > { %v2491_v12 = vshrl.u32 %v2180_v2, 16  ;;  %1398 = vst.msk [vmem:[#allocation3 + $0xf8] sm:$0xf] %vm786_vm8, %v1334_v10  ;;  %2594 = vrot.lane.b32.xlu0 %v2488_v15, %s10563_s28  ;;  %v2474_v34 = vor.u32 %v2472_v13, %v2471_v14  ;;  %v2494_v22 = vshll.u32 %v2180_v2, 16  ;;  %v2521_v48 = vshrl.u32 %v2184_v4, 16  ;;  %v2028_v16 = vpop.permute.xlu0 %2027 }
 0x15e   : > { %v2526_v38 = vshrl.u32 %v2185_v58, 16  ;;  %v2671_v6 = vld [vmem:[#allocation2 + $0x4] sm:$0xc]  ;;  %1802 = vst.msk [vmem:[#allocation3 + $0xf8] sm:$0xf] %vm1770_vm1, %v1737_v59  ;;  %v2509_v21 = vor.u32 %v2507_v27, %v2506_v20  ;;  %v2489_v32 = vrot.slane %v2484_v40, 4  ;;  %v2026_v40 = vpop.permute.xlu1 %2025 }
 0x15f   : > { %v2493_v46 = vrot.slane %v2491_v12, 7  ;;  %2110 = vst.msk [vmem:[#allocation4 + $0x18] sm:$0xf] %vm1770_vm1, %v2018_v37  ;;  %v2529_v18 = vshll.u32 %v2185_v58, 16  ;;  %v2672_v49 = vld [vmem:[#allocation2 + $0x8] sm:$0xf]  ;;  %v2475_v50 = vsel %vm11463_vm0, %v2467_v9, %v2474_v34 }
 0x160   : > { %v9835_v23 = vrot.slane %v2521_v48, 11  ;;  %v2528_v63 = vrot.slane %v2526_v38, 7  ;;  %v2513_v11 = vshrl.u32 %v2183_v39, 16  ;;  %v2186_v56 = vld [vmem:[#allocation2 + $0x148] sm:$0xf]  ;;  %2592 = vrot.lane.b32.xlu1 %v2475_v50, %s10563_s28  ;;  %v2510_v41 = vsel %vm11463_vm0, %v9834_v5, %v2509_v21 }
 0x161   : > { %v2496_v1 = vor.u32 %v2494_v22, %v2493_v46  ;;  %v2516_v8 = vshll.u32 %v2183_v39, 16  ;;  %2113 = vst.msk [vmem:[#allocation4 + $0x30] sm:$0xf] %vm1770_vm1, %v2024_v51  ;;  %vm2767_vm2 = vcmask 1041408   ;;  %2598 = vrot.lane.b32.xlu0 %v2510_v41, %s10563_s28  ;;  %v2511_v59 = vrot.slane %v2506_v20, 4  ;;  %v2032_v7 = vpop.permute.xlu0 %2031 }
 0x162   : > { %v2531_v30 = vor.u32 %v2529_v18, %v2528_v63  ;;  %v2515_v57 = vrot.slane %v2513_v11, 7  ;;  %vm2768_vm3 = vcmask 1045508   ;;  %2112 = vst.msk [vmem:[#allocation4 + $0x28] sm:$0xf] %vm1770_vm1, %v2022_v25  ;;  %v9836_v33 = vrot.slane %v2671_v6, 10  ;;  %v2030_v9 = vpop.permute.xlu1 %2029 }
 0x163   : > { %v2497_v54 = vsel %vm11463_vm0, %v2489_v32, %v2496_v1  ;;  %v2772_v35 = vrot.slane %v2672_v49, 6  ;;  %v2535_v61 = vshrl.u32 %v2186_v56, 16  ;;  %vm12000_vm5 = vmor %vm2767_vm2, %vm2768_vm3  ;;  %v2538_v26 = vshll.u32 %v2186_v56, 16  ;;  %v2674_v0 = vld [vmem:[#allocation2 + $0x14] sm:$0xc] }
 0x164   : > { %v2532_v19 = vsel %vm11463_vm0, %v9835_v23, %v2531_v30  ;;  %v2518_v42 = vor.u32 %v2516_v8, %v2515_v57  ;;  %v2675_v53 = vld [vmem:[#allocation2 + $0x18] sm:$0xf]  ;;  %2596 = vrot.lane.b32.xlu1 %v2497_v54, %s10563_s28  ;;  %2115 = vst.msk [vmem:[#allocation4 + $0x40] sm:$0xf] %vm1770_vm1, %v2028_v16  ;;  %v2533_v55 = vrot.slane %v2528_v63, 4  ;;  %v9837_v60 = vrot.slane %v2674_v0, 10 }
 0x165   : > { %v2537_v62 = vrot.slane %v2535_v61, 7  ;;  %2602 = vrot.lane.b32.xlu0 %v2532_v19, %s10563_s28  ;;  %v2773_v47 = vsel %vm12000_vm5, %v9836_v33, %v2772_v35  ;;  %2114 = vst.msk [vmem:[#allocation4 + $0x38] sm:$0xf] %vm1770_vm1, %v2026_v40  ;;  %v2779_v29 = vrot.slane %v2675_v53, 6  ;;  %v2673_v2 = vld [vmem:[#allocation2 + $0xc] sm:$0x3]  ;;  %v2036_v10 = vpop.permute.xlu0 %2035 }
 0x166   : > { %v2519_v52 = vsel %vm11463_vm0, %v2511_v59, %v2518_v42  ;;  %v2677_v17 = vld [vmem:[#allocation2 + $0x24] sm:$0xc]  ;;  %v2678_v31 = vld [vmem:[#allocation2 + $0x28] sm:$0xf]  ;;  %2117 = vst.msk [vmem:[#allocation4 + $0x50] sm:$0xf] %vm1770_vm1, %v2032_v7  ;;  %v2034_v22 = vpop.permute.xlu1 %2033 }
 0x167   : > { %v2540_v13 = vor.u32 %v2538_v26, %v2537_v62  ;;  %v2774_v4 = vrot.slane %v2772_v35, 4  ;;  %v2775_v58 = vrot.slane %v2673_v2, 6  ;;  %v2780_v14 = vsel %vm12000_vm5, %v9837_v60, %v2779_v29  ;;  %2116 = vst.msk [vmem:[#allocation4 + $0x48] sm:$0xf] %vm1770_vm1, %v2030_v9  ;;  %v2676_v28 = vld [vmem:[#allocation2 + $0x1c] sm:$0x3] }
 0x168   : > { %2600 = vrot.lane.b32.xlu1 %v2519_v52, %s10563_s28  ;;  %v9838_v5 = vrot.slane %v2677_v17, 10  ;;  %v2786_v27 = vrot.slane %v2678_v31, 6  ;;  %v2680_v15 = vld [vmem:[#allocation2 + $0x34] sm:$0xc]  ;;  %v2681_v20 = vld [vmem:[#allocation2 + $0x38] sm:$0xf] }
 0x169   : > { %2882 = vrot.lane.b32.xlu0 %v2773_v47, %s10563_s28  ;;  %v2541_v43 = vsel %vm11463_vm0, %v2533_v55, %v2540_v13  ;;  %2119 = vst.msk [vmem:[#allocation4 + $0x60] sm:$0xf] %vm1770_vm1, %v2036_v10  ;;  %v2776_v12 = vsel %vm12000_vm5, %v2774_v4, %v2775_v58  ;;  %v2781_v39 = vrot.slane %v2779_v29, 4  ;;  %v2782_v34 = vrot.slane %v2676_v28, 6  ;;  %2118 = vst.msk [vmem:[#allocation4 + $0x58] sm:$0xf] %vm1770_vm1, %v2034_v22  ;;  %v2040_v21 = vpop.permute.xlu0 %2039 }
 0x16a   : > { %v2787_v37 = vsel %vm12000_vm5, %v9838_v5, %v2786_v27  ;;  %v9839_v48 = vrot.slane %v2680_v15, 10  ;;  %v2793_v38 = vrot.slane %v2681_v20, 6  ;;  %v2679_v6 = vld [vmem:[#allocation2 + $0x2c] sm:$0x3]  ;;  %v2683_v32 = vld [vmem:[#allocation2 + $0x44] sm:$0xc]  ;;  %v2038_v23 = vpop.permute.xlu1 %2037 }
 0x16b   : > { %v2684_v46 = vld [vmem:[#allocation2 + $0x48] sm:$0xf]  ;;  %2121 = vst.msk [vmem:[#allocation4 + $0x70] sm:$0xf] %vm1770_vm1, %v2040_v21  ;;  %v2783_v18 = vsel %vm12000_vm5, %v2781_v39, %v2782_v34  ;;  %v2788_v49 = vrot.slane %v2786_v27, 4  ;;  %v2789_v50 = vrot.slane %v2679_v6, 6 }
 0x16c   : > { %2604 = vrot.lane.b32.xlu1 %v2541_v43, %s10563_s28  ;;  %v2794_v63 = vsel %vm12000_vm5, %v9839_v48, %v2793_v38  ;;  %2120 = vst.msk [vmem:[#allocation4 + $0x68] sm:$0xf] %vm1770_vm1, %v2038_v23  ;;  %v9840_v11 = vrot.slane %v2683_v32, 10  ;;  %v2800_v51 = vrot.slane %v2684_v46, 6  ;;  %v2682_v56 = vld [vmem:[#allocation2 + $0x3c] sm:$0x3] }
 0x16d   : > { %2886 = vrot.lane.b32.xlu0 %v2780_v14, %s10563_s28  ;;  %v2044_v41 = vpop.permute.xlu0 %2043  ;;  %v2686_v1 = vld [vmem:[#allocation2 + $0x54] sm:$0xc]  ;;  %v2687_v8 = vld [vmem:[#allocation2 + $0x58] sm:$0xf]  ;;  %v2790_v30 = vsel %vm12000_vm5, %v2788_v49, %v2789_v50  ;;  %v2795_v59 = vrot.slane %v2793_v38, 4  ;;  %v2796_v57 = vrot.slane %v2682_v56, 6 }
 0x16e   : > { %2123 = vst.msk [vmem:[#allocation4 + $0x80] sm:$0xf] %vm1770_vm1, %v2044_v41  ;;  %v2042_v25 = vpop.permute.xlu1 %2041  ;;  %v2685_v54 = vld [vmem:[#allocation2 + $0x4c] sm:$0x3]  ;;  %v2801_v33 = vsel %vm12000_vm5, %v9840_v11, %v2800_v51  ;;  %v9841_v35 = vrot.slane %v2686_v1, 10  ;;  %v2807_v61 = vrot.slane %v2687_v8, 6 }
 0x16f   : > { %2122 = vst.msk [vmem:[#allocation4 + $0x78] sm:$0xf] %vm1770_vm1, %v2042_v25  ;;  %v2689_v19 = vld [vmem:[#allocation2 + $0x64] sm:$0xc]  ;;  %v2690_v42 = vld [vmem:[#allocation2 + $0x68] sm:$0xf]  ;;  %v2797_v62 = vsel %vm12000_vm5, %v2795_v59, %v2796_v57 }
 0x170   : > { %2884 = vrot.lane.b32.xlu1 %v2776_v12, %s10563_s28  ;;  %v3011_v16 = vld [vmem:[#allocation2 + $0x64] sm:$0xf]  ;;  %v2802_v0 = vrot.slane %v2800_v51, 4  ;;  %v2803_v53 = vrot.slane %v2685_v54, 6  ;;  %v9842_v55 = vrot.slane %v2689_v19, 10  ;;  %v2814_v40 = vrot.slane %v2690_v42, 6 }
 0x171   : > { %2890 = vrot.lane.b32.xlu0 %v2787_v37, %s10563_s28  ;;  %v2048_v26 = vpop.permute.xlu0 %2047  ;;  %v2688_v47 = vld [vmem:[#allocation2 + $0x5c] sm:$0x3]  ;;  %v3010_v13 = vld [vmem:[#allocation2 + $0x60] sm:$0xc]  ;;  %v2808_v60 = vsel %vm12000_vm5, %v9841_v35, %v2807_v61  ;;  %v2692_v29 = vld [vmem:[#allocation2 + $0x74] sm:$0xc] }
 0x172   : > { %2125 = vst.msk [vmem:[#allocation4 + $0x90] sm:$0xf] %vm1770_vm1, %v2048_v26  ;;  %v2046_v52 = vpop.permute.xlu1 %2045  ;;  %v2693_v2 = vld [vmem:[#allocation2 + $0x78] sm:$0xf]  ;;  %v3068_v7 = vshrl.u32 %v3011_v16, 16  ;;  %v3071_v17 = vshll.u32 %v3011_v16, 16  ;;  %v2804_v4 = vsel %vm12000_vm5, %v2802_v0, %v2803_v53  ;;  %v2815_v5 = vsel %vm12000_vm5, %v9842_v55, %v2814_v40 }
 0x173   : > { %2124 = vst.msk [vmem:[#allocation4 + $0x88] sm:$0xf] %vm1770_vm1, %v2046_v52  ;;  %v3012_v43 = vld [vmem:[#allocation2 + $0x68] sm:$0x7]  ;;  %v2809_v58 = vrot.slane %v2807_v61, 4  ;;  %v3059_v9 = vshrl.u32 %v3010_v13, 16 }
 0x174   : > { %2888 = vrot.lane.b32.xlu1 %v2783_v18, %s10563_s28  ;;  %v3062_v14 = vshll.u32 %v3010_v13, 16  ;;  %v2810_v27 = vrot.slane %v2688_v47, 6  ;;  %v9843_v10 = vrot.slane %v2692_v29, 10  ;;  %v2821_v15 = vrot.slane %v2693_v2, 6  ;;  %v2691_v20 = vld [vmem:[#allocation2 + $0x6c] sm:$0x3] }
 0x175   : > { %2894 = vrot.lane.b32.xlu0 %v2794_v63, %s10563_s28  ;;  %v2052_v31 = vpop.permute.xlu0 %2051  ;;  %v2695_v12 = vld [vmem:[#allocation2 + $0x84] sm:$0xc]  ;;  %v3070_v39 = vrot.slane %v3068_v7, 6  ;;  %v3073_v34 = vrot.slane %v3071_v17, 7  ;;  %v3078_v22 = vshrl.u32 %v3012_v43, 16  ;;  %v3081_v37 = vshll.u32 %v3012_v43, 16 }
 0x176   : > { %2127 = vst.msk [vmem:[#allocation4 + $0xa0] sm:$0xf] %vm1770_vm1, %v2052_v31  ;;  %v2050_v28 = vpop.permute.xlu1 %2049  ;;  %v12060_v38 = vld [vmem:[#allocation2 + $0x88] sm:$0xf]  ;;  %v2694_v6 = vld [vmem:[#allocation2 + $0x7c] sm:$0x3]  ;;  %v2811_v49 = vsel %vm12000_vm5, %v2809_v58, %v2810_v27  ;;  %v2822_v50 = vsel %vm12000_vm5, %v9843_v10, %v2821_v15 }
 0x177   : > { %2126 = vst.msk [vmem:[#allocation4 + $0x98] sm:$0xf] %vm1770_vm1, %v2050_v28  ;;  %v2816_v21 = vrot.slane %v2814_v40, 4  ;;  %v3061_v32 = vrot.slane %v3059_v9, 6  ;;  %v3064_v46 = vrot.slane %v3062_v14, 7  ;;  %v2817_v23 = vrot.slane %v2691_v20, 6 }
 0x178   : > { %2892 = vrot.lane.b32.xlu1 %v2790_v30, %s10563_s28  ;;  %v12064_v18 = vld [vmem:[#allocation2 + $0x64] sm:$0xf]  ;;  %v9844_v11 = vrot.slane %v2695_v12, 10  ;;  %v4502_v51 = vld [vmem:[#allocation2 + $0x68] sm:$0xf]  ;;  %v2828_v41 = vrot.slane %v12060_v38, 6  ;;  %v12073_v1 = vor.u32 %v3073_v34, %v3070_v39 }
 0x179   : > { %2898 = vrot.lane.b32.xlu0 %v2801_v33, %s10563_s28  ;;  %v2056_v48 = vpop.permute.xlu0 %2055  ;;  %v5367_v56 = vld [vmem:[#allocation2 + $0x74] sm:$0xf]  ;;  %v3080_v8 = vrot.slane %v3078_v22, 6  ;;  %v3083_v30 = vrot.slane %v3081_v37, 7  ;;  %v2823_v59 = vrot.slane %v2821_v15, 4  ;;  %v2824_v57 = vrot.slane %v2694_v6, 6 }
 0x17a   : > { %2129 = vst.msk [vmem:[#allocation4 + $0xb0] sm:$0xf] %vm1770_vm1, %v2056_v48  ;;  %v2054_v63 = vpop.permute.xlu1 %2053  ;;  %v12075_v54 = vld [vmem:[#allocation2 + $0x64] sm:$0xf]  ;;  %v4554_v33 = vshrl.u32 %v12064_v18, 16  ;;  %v3065_v35 = vor.u32 %v3064_v46, %v3061_v32  ;;  %v4563_v61 = vshrl.u32 %v4502_v51, 16  ;;  %v2818_v42 = vsel %vm12000_vm5, %v2816_v21, %v2817_v23 }
 0x17b   : > { %2128 = vst.msk [vmem:[#allocation4 + $0xa8] sm:$0xf] %vm1770_vm1, %v2054_v63  ;;  %v5424_v19 = vshrl.u32 %v5367_v56, 16  ;;  %v5368_v16 = vld [vmem:[#allocation2 + $0x78] sm:$0x7]  ;;  %v5427_v0 = vshll.u32 %v5367_v56, 16  ;;  %v2829_v53 = vsel %vm12000_vm5, %v9844_v11, %v2828_v41  ;;  %v3084_v52 = vor.u32 %v3083_v30, %v3080_v8 }
 0x17c   : > { %2896 = vrot.lane.b32.xlu1 %v2797_v62, %s10563_s28  ;;  %v3076_v62 = vrot.slane %v12073_v1, 4  ;;  %v3925_v55 = vrot.slane %v12075_v54, 7  ;;  %v5366_v40 = vld [vmem:[#allocation2 + $0x70] sm:$0xc]  ;;  %v2825_v47 = vsel %vm12000_vm5, %v2823_v59, %v2824_v57  ;;  %v3827_v29 = vld [vmem:[#allocation2 + $0x60] sm:$0x8] }
 0x17d   : > { %2902 = vrot.lane.b32.xlu0 %v2808_v60, %s10563_s28  ;;  %v2060_v25 = vpop.permute.xlu0 %2059  ;;  %v3829_v60 = vld [vmem:[#allocation2 + $0x68] sm:$0x7]  ;;  %v4556_v2 = vrot.slane %v4554_v33, 7  ;;  %v4566_v7 = vshll.u32 %v4502_v51, 16  ;;  %v3066_v17 = vrot.slane %v3065_v35, 4  ;;  %v4565_v31 = vrot.slane %v4563_v61, 7 }
 0x17e   : > { %2131 = vst.msk [vmem:[#allocation4 + $0xc0] sm:$0xf] %vm1770_vm1, %v2060_v25  ;;  %v2058_v26 = vpop.permute.xlu1 %2057  ;;  %v4500_v43 = vld [vmem:[#allocation2 + $0x60] sm:$0x8]  ;;  %v5434_v58 = vshrl.u32 %v5368_v16, 16  ;;  %v5429_v14 = vrot.slane %v5427_v0, 7  ;;  %v3085_v10 = vsel %vm11396_vm13, %v3076_v62, %v3084_v52 }
 0x17f   : > { %2130 = vst.msk [vmem:[#allocation4 + $0xb8] sm:$0xf] %vm1770_vm1, %v2058_v26  ;;  %v5415_v27 = vshrl.u32 %v5366_v40, 16  ;;  %v5418_v28 = vshll.u32 %v5366_v40, 16  ;;  %v3927_v15 = vrot.slane %v3925_v55, 4  ;;  %v3928_v20 = vrot.slane %v3829_v60, 7 }
 0x180   : > { %2900 = vrot.lane.b32.xlu1 %v2804_v4, %s10563_s28  ;;  %v5426_v4 = vrot.slane %v5424_v19, 6  ;;  %v3014_v12 = vld [vmem:[#allocation2 + $0x74] sm:$0xf]  ;;  %v9852_v39 = vrot.slane %v3827_v29, 11  ;;  %v4549_v22 = vshrl.u32 %v4500_v43, 16  ;;  %v4557_v37 = vshll.u32 %v12064_v18, 16 }
 0x181   : > { %2906 = vrot.lane.b32.xlu0 %v2815_v5, %s10563_s28  ;;  %v2064_v13 = vpop.permute.xlu0 %2063  ;;  %v5437_v5 = vshll.u32 %v5368_v16, 16  ;;  %v3075_v48 = vsel %vm11396_vm13, %v3066_v17, %v12073_v1  ;;  %v4561_v6 = vrot.slane %v4556_v2, 4  ;;  %v4568_v21 = vor.u32 %v4566_v7, %v4565_v31  ;;  %v3013_v63 = vld [vmem:[#allocation2 + $0x70] sm:$0xc]  ;;  %v12110_v51 = vld [vmem:[#allocation2 + $0x74] sm:$0xf] }
 0x182   : > { %2133 = vst.msk [vmem:[#allocation4 + $0xd0] sm:$0xf] %vm1770_vm1, %v2064_v13  ;;  %v2062_v9 = vpop.permute.xlu1 %2061  ;;  %v5436_v32 = vrot.slane %v5434_v58, 6  ;;  %v5417_v23 = vrot.slane %v5415_v27, 6  ;;  %v5420_v18 = vrot.slane %v5418_v28, 7  ;;  %v3929_v11 = vsel %vm10969_vm4, %v3927_v15, %v3928_v20  ;;  %v8817_v38 = vld [vmem:[%s15078_s3] sm:$0xff] }
 0x183   : > { %2132 = vst.msk [vmem:[#allocation4 + $0xc8] sm:$0xf] %vm1770_vm1, %v2062_v9  ;;  %v3096_v56 = vshrl.u32 %v3014_v12, 16  ;;  %v3099_v1 = vshll.u32 %v3014_v12, 16  ;;  %v3926_v8 = vsel %vm10969_vm4, %v9852_v39, %v3925_v55  ;;  %v9884_v30 = vrot.slane %v4549_v22, 11 }
 0x184   : > { %2904 = vrot.lane.b32.xlu1 %v2811_v49, %s10563_s28  ;;  %v12105_v49 = vor.u32 %v5429_v14, %v5426_v4  ;;  %v4559_v59 = vor.u32 %v4557_v37, %v4556_v2  ;;  %v3015_v25 = vld [vmem:[#allocation2 + $0x78] sm:$0x7]  ;;  %v4569_v54 = vsel %vm11463_vm0, %v4561_v6, %v4568_v21  ;;  %vm2638_vm6 = vcmask 388352   ;;  %v12122_v13 = vld [vmem:[#allocation2 + $0x74] sm:$0xf] }
 0x185   : > { %2910 = vrot.lane.b32.xlu0 %v2822_v50, %s10563_s28  ;;  %v2068_v34 = vpop.permute.xlu0 %2067  ;;  %v5439_v50 = vrot.slane %v5437_v5, 7  ;;  %v3087_v33 = vshrl.u32 %v3013_v63, 16  ;;  %v3090_v35 = vshll.u32 %v3013_v63, 16  ;;  %v5421_v26 = vor.u32 %v5420_v18, %v5417_v23  ;;  %v6186_v0 = vld [vmem:[#allocation2 + $0x78] sm:$0x7] }
 0x186   : > { %2135 = vst.msk [vmem:[#allocation4 + $0xe0] sm:$0xf] %vm1770_vm1, %v2068_v34  ;;  %v2066_v46 = vpop.permute.xlu1 %2065  ;;  %v5432_v19 = vrot.slane %v12105_v49, 4  ;;  %v6282_v16 = vrot.slane %v12110_v51, 7  ;;  %v3101_v62 = vrot.slane %v3099_v1, 7  ;;  %v3106_v52 = vshrl.u32 %v3015_v25, 16 }
 0x187   : > { %2134 = vst.msk [vmem:[#allocation4 + $0xd8] sm:$0xf] %vm1770_vm1, %v2066_v46  ;;  %v3109_v55 = vshll.u32 %v3015_v25, 16  ;;  %v3089_v60 = vrot.slane %v3087_v33, 6  ;;  %v3092_v29 = vrot.slane %v3090_v35, 7  ;;  %v4560_v7 = vsel %vm11463_vm0, %v9884_v30, %v4559_v59 }
 0x188   : > { %2908 = vrot.lane.b32.xlu1 %v2818_v42, %s10563_s28  ;;  %v5440_v42 = vor.u32 %v5439_v50, %v5436_v32  ;;  %v12126_v2 = vld [vmem:[#allocation2 + $0x78] sm:$0xf]  ;;  %v5422_v17 = vrot.slane %v5421_v26, 4  ;;  %v6284_v43 = vrot.slane %v6282_v16, 4  ;;  %v6285_v4 = vrot.slane %v6186_v0, 7 }
 0x189   : > { %2914 = vrot.lane.b32.xlu0 %v2829_v53, %s10563_s28  ;;  %v2072_v57 = vpop.permute.xlu0 %2071  ;;  %v3098_v53 = vrot.slane %v3096_v56, 6  ;;  %v5370_v58 = vld [vmem:[#allocation2 + $0x84] sm:$0xf]  ;;  %v3108_v5 = vrot.slane %v3106_v52, 6  ;;  %v3111_v27 = vrot.slane %v3109_v55, 7  ;;  %v4576_v20 = vshrl.u32 %v12122_v13, 16 }
 0x18a   : > { %2137 = vst.msk [vmem:[#allocation4 + $0xf0] sm:$0xf] %vm1770_vm1, %v2072_v57  ;;  %v2070_v61 = vpop.permute.xlu1 %2069  ;;  %v5441_v9 = vsel %vm11396_vm13, %v5432_v19, %v5440_v42  ;;  %v12136_v15 = vld [vmem:[#allocation2 + $0x74] sm:$0xf]  ;;  %v3093_v12 = vor.u32 %v3092_v29, %v3089_v60  ;;  %v4585_v39 = vshrl.u32 %v12126_v2, 16  ;;  %v5452_v34 = vshrl.u32 %v5370_v58, 16 }
 0x18b   : > { %2136 = vst.msk [vmem:[#allocation4 + $0xe8] sm:$0xf] %vm1770_vm1, %v2070_v61  ;;  %v12134_v14 = vor.u32 %v3101_v62, %v3098_v53  ;;  %v5431_v22 = vsel %vm11396_vm13, %v5422_v17, %v12105_v49  ;;  %v5371_v6 = vld [vmem:[#allocation2 + $0x88] sm:$0x7]  ;;  %v5455_v21 = vshll.u32 %v5370_v58, 16  ;;  %v6286_v32 = vsel %vm10969_vm4, %v6284_v43, %v6285_v4 }
 0x18c   : > { %2912 = vrot.lane.b32.xlu1 %v2825_v47, %s10563_s28  ;;  %v6184_v47 = vld [vmem:[#allocation2 + $0x70] sm:$0x8]  ;;  %v3112_v50 = vor.u32 %v3111_v27, %v3108_v5  ;;  %v3932_v23 = vrot.slane %v12136_v15, 7  ;;  %v5369_v18 = vld [vmem:[#allocation2 + $0x80] sm:$0xc]  ;;  %v4578_v51 = vrot.slane %v4576_v20, 7 }
 0x18d   : > { %3508 = vrot.lane.b32.xlu0 %v3085_v10, %s10564_s24  ;;  %v2543_v40 = vpop.permute.xlu0 %2542  ;;  %v9916_v28 = vrot.slane %v6184_v47, 11  ;;  %v3104_v46 = vrot.slane %v12134_v14, 4  ;;  %v3830_v49 = vld [vmem:[#allocation2 + $0x70] sm:$0x8]  ;;  %v4588_v56 = vshll.u32 %v12126_v2, 16  ;;  %v3094_v1 = vrot.slane %v3093_v12, 4 }
 0x18e   : > { %2639 = vst.msk [vmem:[#allocation3] sm:$0xf] %vm2638_vm6, %v2543_v40  ;;  %v2074_v31 = vpop.permute.xlu1 %2073  ;;  %v4503_v30 = vld [vmem:[#allocation2 + $0x70] sm:$0x8]  ;;  %v5454_v59 = vrot.slane %v5452_v34, 6  ;;  %v5462_v57 = vshrl.u32 %v5371_v6, 16 }
 0x18f   : > { %2138 = vst.msk [vmem:[#allocation4 + $0xf8] sm:$0xf] %vm1770_vm1, %v2074_v31  ;;  %v6283_v63 = vsel %vm10969_vm4, %v9916_v28, %v6282_v16  ;;  %v5465_v33 = vshll.u32 %v5371_v6, 16  ;;  %v5443_v35 = vshrl.u32 %v5369_v18, 16  ;;  %v5446_v61 = vshll.u32 %v5369_v18, 16 }
 0x190   : > { %3506 = vrot.lane.b32.xlu1 %v3075_v48, %s10564_s24  ;;  %v3832_v48 = vld [vmem:[#allocation2 + $0x78] sm:$0x7]  ;;  %v3113_v19 = vsel %vm11396_vm13, %v3104_v46, %v3112_v50  ;;  %v3934_v42 = vrot.slane %v3932_v23, 4  ;;  %v3017_v16 = vld [vmem:[#allocation2 + $0x84] sm:$0xf]  ;;  %v9853_v0 = vrot.slane %v3830_v49, 11  ;;  %v3103_v55 = vsel %vm11396_vm13, %v3094_v1, %v12134_v14 }
 0x191   : > { %4037 = vrot.lane.b32.xlu0 %v3929_v11, %s10565_s25  ;;  %v2547_v10 = vpop.permute.xlu0 %2546  ;;  %v3935_v26 = vrot.slane %v3832_v48, 7  ;;  %v4571_v62 = vshrl.u32 %v4503_v30, 16  ;;  %v4579_v52 = vshll.u32 %v12122_v13, 16  ;;  %v4583_v40 = vrot.slane %v4578_v51, 4  ;;  %v3016_v29 = vld [vmem:[#allocation2 + $0x80] sm:$0xc] }
 0x192   : > { %2641 = vst.msk [vmem:[#allocation3 + $0x10] sm:$0xf] %vm2638_vm6, %v2547_v10  ;;  %v2545_v37 = vpop.permute.xlu1 %2544  ;;  %v5464_v60 = vrot.slane %v5462_v57, 6  ;;  %v5467_v17 = vrot.slane %v5465_v33, 7  ;;  %v5445_v31 = vrot.slane %v5443_v35, 6  ;;  %v5448_v13 = vrot.slane %v5446_v61, 7 }
 0x193   : > { %2640 = vst.msk [vmem:[#allocation3 + $0x8] sm:$0xf] %vm2638_vm6, %v2545_v37  ;;  %v3936_v43 = vsel %vm10969_vm4, %v3934_v42, %v3935_v26  ;;  %v12172_v4 = vld [vmem:[#allocation2 + $0x84] sm:$0xf]  ;;  %v3124_v58 = vshrl.u32 %v3017_v16, 16  ;;  %v3933_v14 = vsel %vm10969_vm4, %v9853_v0, %v3932_v23  ;;  %v9885_v5 = vrot.slane %v4571_v62, 11 }
 0x194   : > { %4035 = vrot.lane.b32.xlu1 %v3926_v8, %s10565_s25  ;;  %v4587_v8 = vrot.slane %v4585_v39, 7  ;;  %v3018_v28 = vld [vmem:[#allocation2 + $0x88] sm:$0x7]  ;;  %v4581_v15 = vor.u32 %v4579_v52, %v4578_v51  ;;  %v3115_v20 = vshrl.u32 %v3016_v29, 16  ;;  %v3118_v12 = vshll.u32 %v3016_v29, 16 }
 0x195   : > { %4902 = vrot.lane.b32.xlu0 %v4569_v54, %s10566_s12  ;;  %v2551_v11 = vpop.permute.xlu0 %2550  ;;  %v5457_v54 = vrot.slane %v5455_v21, 7  ;;  %v5449_v37 = vor.u32 %v5448_v13, %v5445_v31  ;;  %v6189_v48 = vld [vmem:[#allocation2 + $0x88] sm:$0x7]  ;;  %v6289_v6 = vrot.slane %v12172_v4, 7  ;;  %v3126_v21 = vrot.slane %v3124_v58, 6 }
 0x196   : > { %2643 = vst.msk [vmem:[#allocation3 + $0x20] sm:$0xf] %vm2638_vm6, %v2551_v11  ;;  %v2549_v25 = vpop.permute.xlu1 %2548  ;;  %v4590_v47 = vor.u32 %v4588_v56, %v4587_v8  ;;  %v3134_v46 = vshrl.u32 %v3018_v28, 16  ;;  %v3137_v50 = vshll.u32 %v3018_v28, 16  ;;  %v6187_v18 = vld [vmem:[#allocation2 + $0x80] sm:$0x8]  ;;  %v4582_v8 = vsel %vm11463_vm0, %v9885_v5, %v4581_v15 }
 0x197   : > { %2642 = vst.msk [vmem:[#allocation3 + $0x18] sm:$0xf] %vm2638_vm6, %v2549_v25  ;;  %v12186_v11 = vld [vmem:[#allocation2 + $0x88] sm:$0xf]  ;;  %v6292_v49 = vrot.slane %v6189_v48, 7  ;;  %v3117_v51 = vrot.slane %v3115_v20, 6 }
 0x198   : > { %4900 = vrot.lane.b32.xlu1 %v4560_v7, %s10566_s12  ;;  %v12167_v7 = vor.u32 %v5457_v54, %v5454_v59  ;;  %v4591_v10 = vsel %vm11463_vm0, %v4583_v40, %v4590_v47  ;;  %v3120_v56 = vrot.slane %v3118_v12, 7  ;;  %v5373_v1 = vld [vmem:[#allocation2 + $0x94] sm:$0xf]  ;;  %v5450_v30 = vrot.slane %v5449_v37, 4  ;;  %v12198_v42 = vld [vmem:[#allocation2 + $0x84] sm:$0xf] }
 0x199   : > { %5864 = vrot.lane.b32.xlu0 %v5441_v9, %s10567_s22  ;;  %v2555_v53 = vpop.permute.xlu0 %2554  ;;  %v3127_v9 = vshll.u32 %v3017_v16, 16  ;;  %v6291_v57 = vrot.slane %v6289_v6, 4  ;;  %v3136_v33 = vrot.slane %v3134_v46, 6  ;;  %v3139_v35 = vrot.slane %v3137_v50, 7  ;;  %v4506_v5 = vld [vmem:[#allocation2 + $0x80] sm:$0x8] }
 0x19a   : > { %2645 = vst.msk [vmem:[#allocation3 + $0x30] sm:$0xf] %vm2638_vm6, %v2555_v53  ;;  %v2553_v2 = vpop.permute.xlu1 %2552  ;;  %v5460_v34 = vrot.slane %v12167_v7, 4  ;;  %v9917_v61 = vrot.slane %v6187_v18, 11  ;;  %v3121_v16 = vor.u32 %v3120_v56, %v3117_v51  ;;  %v4607_v0 = vshrl.u32 %v12186_v11, 16 }
 0x19b   : > { %2644 = vst.msk [vmem:[#allocation3 + $0x28] sm:$0xf] %vm2638_vm6, %v2553_v2  ;;  %v5480_v53 = vshrl.u32 %v5373_v1, 16  ;;  %v5459_v62 = vsel %vm11396_vm13, %v5450_v30, %v12167_v7  ;;  %v5483_v40 = vshll.u32 %v5373_v1, 16  ;;  %v6293_v47 = vsel %vm10969_vm4, %v6291_v57, %v6292_v49  ;;  %v3833_v7 = vld [vmem:[#allocation2 + $0x80] sm:$0x8] }
 0x19c   : > { %5862 = vrot.lane.b32.xlu1 %v5431_v22, %s10567_s22  ;;  %v5468_v22 = vor.u32 %v5467_v17, %v5464_v60  ;;  %v3140_v29 = vor.u32 %v3139_v35, %v3136_v33  ;;  %v3939_v2 = vrot.slane %v12198_v42, 7  ;;  %v5372_v17 = vld [vmem:[#allocation2 + $0x90] sm:$0xc]  ;;  %v6290_v31 = vsel %vm10969_vm4, %v9917_v61, %v6289_v6  ;;  %v3020_v46 = vld [vmem:[#allocation2 + $0x94] sm:$0xf] }
 0x19d   : > { %6394 = vrot.lane.b32.xlu0 %v6286_v32, %s10568_s13  ;;  %v2559_v27 = vpop.permute.xlu0 %2558  ;;  %v3129_v32 = vrot.slane %v3127_v9, 7  ;;  %v4610_v58 = vshll.u32 %v12186_v11, 16  ;;  %v3122_v9 = vrot.slane %v3121_v16, 4  ;;  %v5485_v15 = vrot.slane %v5483_v40, 7  ;;  %v3021_v61 = vld [vmem:[#allocation2 + $0x98] sm:$0x7] }
 0x19e   : > { %2647 = vst.msk [vmem:[#allocation3 + $0x40] sm:$0xf] %vm2638_vm6, %v2559_v27  ;;  %v2557_v39 = vpop.permute.xlu1 %2556  ;;  %v5469_v25 = vsel %vm11396_vm13, %v5460_v34, %v5468_v22  ;;  %v5482_v27 = vrot.slane %v5480_v53, 6  ;;  %v5471_v12 = vshrl.u32 %v5372_v17, 16  ;;  %v3941_v22 = vrot.slane %v3939_v2, 4 }
 0x19f   : > { %2646 = vst.msk [vmem:[#allocation3 + $0x38] sm:$0xf] %vm2638_vm6, %v2557_v39  ;;  %v12196_v54 = vor.u32 %v3129_v32, %v3126_v21  ;;  %v5474_v39 = vshll.u32 %v5372_v17, 16  ;;  %v9854_v48 = vrot.slane %v3833_v7, 11  ;;  %v4593_v21 = vshrl.u32 %v4506_v5, 16 }
 0x1a0   : > { %6392 = vrot.lane.b32.xlu1 %v6283_v63, %s10568_s13  ;;  %v12184_v63 = vld [vmem:[#allocation2 + $0x84] sm:$0xf]  ;;  %v12229_v51 = vor.u32 %v5485_v15, %v5482_v27  ;;  %v5473_v1 = vrot.slane %v5471_v12, 6  ;;  %v3152_v57 = vshrl.u32 %v3020_v46, 16  ;;  %v6192_v40 = vld [vmem:[#allocation2 + $0x98] sm:$0x7] }
 0x1a1   : > { %3512 = vrot.lane.b32.xlu0 %v3113_v19, %s10564_s24  ;;  %v2563_v23 = vpop.permute.xlu0 %2562  ;;  %v4598_v26 = vshrl.u32 %v12184_v63, 16  ;;  %v3132_v60 = vrot.slane %v12196_v54, 4  ;;  %v4601_v32 = vshll.u32 %v12184_v63, 16  ;;  %v3131_v50 = vsel %vm11396_vm13, %v3122_v9, %v12196_v54  ;;  %v12251_v5 = vld [vmem:[#allocation2 + $0x94] sm:$0xf] }
 0x1a2   : > { %2649 = vst.msk [vmem:[#allocation3 + $0x50] sm:$0xf] %vm2638_vm6, %v2563_v23  ;;  %v2561_v59 = vpop.permute.xlu1 %2560  ;;  %v5476_v63 = vrot.slane %v5474_v39, 7  ;;  %v3940_v54 = vsel %vm10969_vm4, %v9854_v48, %v3939_v2  ;;  %v9886_v33 = vrot.slane %v4593_v21, 11  ;;  %v5488_v53 = vrot.slane %v12229_v51, 4 }
 0x1a3   : > { %2648 = vst.msk [vmem:[#allocation3 + $0x48] sm:$0xf] %vm2638_vm6, %v2561_v59  ;;  %v4600_v4 = vrot.slane %v4598_v26, 7  ;;  %v3141_v34 = vsel %vm11396_vm13, %v3132_v60, %v3140_v29  ;;  %v12234_v59 = vld [vmem:[#allocation2 + $0x94] sm:$0xf]  ;;  %v3162_v29 = vshrl.u32 %v3021_v61, 16 }
 0x1a4   : > { %3510 = vrot.lane.b32.xlu1 %v3103_v55, %s10564_s24  ;;  %v5374_v55 = vld [vmem:[#allocation2 + $0x98] sm:$0x7]  ;;  %v3165_v2 = vshll.u32 %v3021_v61, 16  ;;  %v12258_v39 = vld [vmem:[#allocation2 + $0x94] sm:$0xf]  ;;  %vm3602_vm11 = vcmask 519552  }
 0x1a5   : > { %4041 = vrot.lane.b32.xlu0 %v3936_v43, %s10565_s25  ;;  %v2567_v19 = vpop.permute.xlu0 %2566  ;;  %v3835_v43 = vld [vmem:[#allocation2 + $0x88] sm:$0x7]  ;;  %v5490_v28 = vshrl.u32 %v5374_v55, 16  ;;  %v5493_v20 = vshll.u32 %v5374_v55, 16  ;;  %v4605_v23 = vrot.slane %v4600_v4, 4  ;;  %v4603_v42 = vor.u32 %v4601_v32, %v4600_v4 }
 0x1a6   : > { %2651 = vst.msk [vmem:[#allocation3 + $0x60] sm:$0xf] %vm2638_vm6, %v2567_v19  ;;  %v2565_v52 = vpop.permute.xlu1 %2564  ;;  %v3942_v37 = vrot.slane %v3835_v43, 7  ;;  %v6296_v55 = vrot.slane %v12234_v59, 7  ;;  %v3167_v15 = vrot.slane %v3165_v2, 7  ;;  %vm4131_vm12 = vcmask 650752  }
 0x1a7   : > { %2650 = vst.msk [vmem:[#allocation3 + $0x58] sm:$0xf] %vm2638_vm6, %v2565_v52  ;;  %v5492_v11 = vrot.slane %v5490_v28, 6  ;;  %v5495_v56 = vrot.slane %v5493_v20, 7  ;;  %v5477_v52 = vor.u32 %v5476_v63, %v5473_v1  ;;  %v4604_v7 = vsel %vm11463_vm0, %v9886_v33, %v4603_v42  ;;  %v5376_v20 = vld [vmem:[#allocation2 + $0xa4] sm:$0xf] }
 0x1a8   : > { %4039 = vrot.lane.b32.xlu1 %v3933_v14, %s10565_s25  ;;  %v4609_v14 = vrot.slane %v4607_v0, 7  ;;  %v3943_v30 = vsel %vm10969_vm4, %v3941_v22, %v3942_v37  ;;  %v6298_v9 = vrot.slane %v6296_v55, 4  ;;  %v3946_v37 = vrot.slane %v12251_v5, 7  ;;  %v5375_v48 = vld [vmem:[#allocation2 + $0xa0] sm:$0xc]  ;;  %v10369_v63 = vld [vmem:[%s15076_s1 + $0x38] sm:$0xff]  }
 0x1a9   : > { %4906 = vrot.lane.b32.xlu0 %v4591_v10, %s10566_s12  ;;  %v2571_v13 = vpop.permute.xlu0 %2570  ;;  %v5478_v4 = vrot.slane %v5477_v52, 4  ;;  %v3838_v32 = vld [vmem:[#allocation2 + $0x98] sm:$0x7]  ;;  %v5377_v1 = vld [vmem:[#allocation2 + $0xa8] sm:$0x7]  ;;  %v5502_v59 = vshll.u32 %v5375_v48, 16 }
 0x1aa   : > { %2653 = vst.msk [vmem:[#allocation3 + $0x70] sm:$0xf] %vm2638_vm6, %v2571_v13  ;;  %v2569_v10 = vpop.permute.xlu1 %2568  ;;  %v4612_v18 = vor.u32 %v4610_v58, %v4609_v14  ;;  %v6299_v14 = vrot.slane %v6192_v40, 7  ;;  %v4509_v33 = vld [vmem:[#allocation2 + $0x90] sm:$0x8]  ;;  %v5518_v42 = vshrl.u32 %v5377_v1, 16 }
 0x1ab   : > { %2652 = vst.msk [vmem:[#allocation3 + $0x68] sm:$0xf] %vm2638_vm6, %v2569_v10  ;;  %v3164_v10 = vrot.slane %v3162_v29, 6  ;;  %v10370_v40 = vld [vmem:[%s15076_s1 + $0x30] sm:$0xff]   ;;  %v5504_v2 = vrot.slane %v5502_v59, 7  ;;  %vm4996_vm14 = vcmask 781952  }
 0x1ac   : > { %4904 = vrot.lane.b32.xlu1 %v4582_v8, %s10566_s12  ;;  %v3019_v8 = vld [vmem:[#allocation2 + $0x90] sm:$0xc]  ;;  %v4613_v19 = vsel %vm11463_vm0, %v4605_v23, %v4612_v18  ;;  %v6300_v21 = vsel %vm10969_vm4, %v6298_v9, %v6299_v14  ;;  %v5520_v9 = vrot.slane %v5518_v42, 6  ;;  %v5379_v5 = vld [vmem:[#allocation2 + $0xb4] sm:$0xf]  ;;  %vm5958_vm15 = vcmask 913152  }
 0x1ad   : > { %5868 = vrot.lane.b32.xlu0 %v5469_v25, %s10567_s22  ;;  %v2575_v6 = vpop.permute.xlu0 %2574  ;;  %v3155_v25 = vshll.u32 %v3020_v46, 16  ;;  %v3143_v26 = vshrl.u32 %v3019_v8, 16  ;;  %v3146_v16 = vshll.u32 %v3019_v8, 16  ;;  %v5508_v46 = vshrl.u32 %v5376_v20, 16  ;;  %v12279_v8 = vld [vmem:[#allocation2 + $0x90] sm:$0x8] }
 0x1ae   : > { %2655 = vst.msk [vmem:[#allocation3 + $0x80] sm:$0xf] %vm2638_vm6, %v2575_v6  ;;  %v2573_v49 = vpop.permute.xlu1 %2572  ;;  %v5487_v6 = vsel %vm11396_vm13, %v5478_v4, %v12229_v51  ;;  %v12347_v42 = vld [vmem:[#allocation2 + $0xa8] sm:$0xf]  ;;  %vm6488_vm1 = vcmask 1044352   ;;  %vm7898_vm2 = vcmask 130048  }
 0x1af   : > { %2654 = vst.msk [vmem:[#allocation3 + $0x78] sm:$0xf] %vm2638_vm6, %v2573_v49  ;;  %v3157_v60 = vrot.slane %v3155_v25, 7  ;;  %v3145_v13 = vrot.slane %v3143_v26, 6  ;;  %v3148_v43 = vrot.slane %v3146_v16, 7  ;;  %v4620_v49 = vshrl.u32 %v12258_v39, 16 }
 0x1b0   : > { %5866 = vrot.lane.b32.xlu1 %v5459_v62, %s10567_s22  ;;  %v5496_v62 = vor.u32 %v5495_v56, %v5492_v11  ;;  %v3168_v11 = vor.u32 %v3167_v15, %v3164_v10  ;;  %v3948_v25 = vrot.slane %v3946_v37, 4  ;;  %v5510_v61 = vrot.slane %v5508_v46, 6  ;;  %v3023_v16 = vld [vmem:[#allocation2 + $0xa4] sm:$0xf] }
 0x1b1   : > { %6398 = vrot.lane.b32.xlu0 %v6293_v47, %s10568_s13  ;;  %v2579_v35 = vpop.permute.xlu0 %2578  ;;  %v3154_v47 = vrot.slane %v3152_v57, 6  ;;  %v3149_v22 = vor.u32 %v3148_v43, %v3145_v13  ;;  %v5521_v26 = vshll.u32 %v5377_v1, 16  ;;  %v9855_v13 = vrot.slane %v12279_v8, 11  ;;  %v12333_v8 = vld [vmem:[#allocation2 + $0xa4] sm:$0xf] }
 0x1b2   : > { %2657 = vst.msk [vmem:[#allocation3 + $0x90] sm:$0xf] %vm2638_vm6, %v2579_v35  ;;  %v2577_v0 = vpop.permute.xlu1 %2576  ;;  %v5497_v27 = vsel %vm11396_vm13, %v5488_v53, %v5496_v62  ;;  %v4622_v62 = vrot.slane %v4620_v49, 7  ;;  %v3180_v43 = vshrl.u32 %v3023_v16, 16 }
 0x1b3   : > { %2656 = vst.msk [vmem:[#allocation3 + $0x88] sm:$0xf] %vm2638_vm6, %v2577_v0  ;;  %v12256_v28 = vor.u32 %v3157_v60, %v3154_v47  ;;  %v3150_v57 = vrot.slane %v3149_v22, 4  ;;  %v10569_v0 = vmov 0   ;;  %v4615_v47 = vshrl.u32 %v4509_v33, 16  ;;  %v10371_v22 = vld [vmem:[%s15076_s1 + $0x28] sm:$0xff]  }
 0x1b4   : > { %6396 = vrot.lane.b32.xlu1 %v6290_v31, %s10568_s13  ;;  %v6190_v31 = vld [vmem:[#allocation2 + $0x90] sm:$0x8]  ;;  %7947 = vmatprep.subr.bf16.mxu0 %v10569_v0  ;;  %v4623_v60 = vshll.u32 %v12258_v39, 16  ;;  %v5523_v14 = vrot.slane %v5521_v26, 7  ;;  %v4627_v15 = vrot.slane %v4622_v62, 4  ;;  %v3947_v49 = vsel %vm10969_vm4, %v9855_v13, %v3946_v37  ;;  %v10372_v37 = vld [vmem:[%s15076_s1 + $0x20] sm:$0xff]  }
 0x1b5   : > { %3516 = vrot.lane.b32.xlu0 %v3141_v34, %s10564_s24  ;;  %v2583_v17 = vpop.permute.xlu0 %2582  ;;  %v9918_v12 = vrot.slane %v6190_v31, 11  ;;  %v12260_v34 = vld [vmem:[#allocation2 + $0x98] sm:$0xf]  ;;  %v3160_v18 = vrot.slane %v12256_v28, 4  ;;  %7948 = vmatpush1.bf16.msra.mxu0 %v10369_v63  ;;  %v3159_v4 = vsel %vm11396_vm13, %v3150_v57, %v12256_v28  ;;  %v12312_v28 = vrot.slane %v4615_v47, 11 }
 0x1b6   : > { %2659 = vst.msk [vmem:[#allocation3 + $0xa0] sm:$0xf] %vm2638_vm6, %v2583_v17  ;;  %v4629_v56 = vshrl.u32 %v12260_v34, 16  ;;  %8457 = vmatprep.subr.bf16.mxu1 %v10569_v0  ;;  %v3022_v17 = vld [vmem:[#allocation2 + $0xa0] sm:$0xc]  ;;  %7949 = vmatprep.subr.bf16.mxu0 %v10569_v0  ;;  %v5524_v1 = vor.u32 %v5523_v14, %v5520_v9 }
 0x1b7   : > { %v2581_v58 = vpop.permute.xlu1 %2580  ;;  %v6297_v51 = vsel %vm10969_vm4, %v9918_v12, %v6296_v55  ;;  %v3169_v53 = vsel %vm11396_vm13, %v3160_v18, %v3168_v11  ;;  %v4632_v55 = vshll.u32 %v12260_v34, 16  ;;  %v3024_v12 = vld [vmem:[#allocation2 + $0xa8] sm:$0x7]  ;;  %v3171_v39 = vshrl.u32 %v3022_v17, 16  ;;  %v12323_v18 = vld [vmem:[#allocation2 + $0xa4] sm:$0xf] }
 0x1b8   : > { %3514 = vrot.lane.b32.xlu1 %v3131_v50, %s10564_s24  ;;  %2658 = vst.msk [vmem:[#allocation3 + $0x98] sm:$0xf] %vm2638_vm6, %v2581_v58  ;;  %v5511_v50 = vshll.u32 %v5376_v20, 16  ;;  %v4631_v52 = vrot.slane %v4629_v56, 7  ;;  %v3174_v34 = vshll.u32 %v3022_v17, 16  ;;  %v3190_v63 = vshrl.u32 %v3024_v12, 16 }
 0x1b9   : > { %4045 = vrot.lane.b32.xlu0 %v3943_v30, %s10565_s25  ;;  %v5499_v30 = vshrl.u32 %v5375_v48, 16  ;;  %7950 = vmatpush1.bf16.msra.mxu0 %v10370_v40  ;;  %v12314_v48 = vor.u32 %v4623_v60, %v4622_v62  ;;  %v3193_v59 = vshll.u32 %v3024_v12, 16  ;;  %v3173_v57 = vrot.slane %v3171_v39, 6  ;;  %v12361_v47 = vld [vmem:[#allocation2 + $0xa0] sm:$0x8] }
 0x1ba   : > { %v4634_v20 = vor.u32 %v4632_v55, %v4631_v52  ;;  %7951 = vmatprep.subr.bf16.mxu0 %v10569_v0  ;;  %v4642_v62 = vshrl.u32 %v12333_v8, 16  ;;  %v5378_v52 = vld [vmem:[#allocation2 + $0xb0] sm:$0xc]  ;;  %v3192_v40 = vrot.slane %v3190_v63, 6  ;;  %v5536_v60 = vshrl.u32 %v5379_v5, 16 }
 0x1bb   : > { %v5501_v29 = vrot.slane %v5499_v30, 6  ;;  %v4626_v33 = vsel %vm11463_vm0, %v12312_v28, %v12314_v48  ;;  %v3195_v17 = vrot.slane %v3193_v59, 7  ;;  %v5530_v12 = vshll.u32 %v5378_v52, 16  ;;  %v3026_v39 = vld [vmem:[#allocation2 + $0xb4] sm:$0xf] }
 0x1bc   : > { %4043 = vrot.lane.b32.xlu1 %v3940_v54, %s10565_s25  ;;  %v3949_v54 = vrot.slane %v3838_v32, 7  ;;  %v12318_v32 = vld [vmem:[#allocation2 + $0xa0] sm:$0x8]  ;;  %v4635_v30 = vsel %vm11463_vm0, %v4627_v15, %v4634_v20  ;;  %v5527_v20 = vshrl.u32 %v5378_v52, 16  ;;  %v4637_v28 = vshrl.u32 %v12361_v47, 16  ;;  %v10374_v48 = vld [vmem:[%s15076_s1 + $0x10] sm:$0xff]  }
 0x1bd   : > { %4910 = vrot.lane.b32.xlu0 %v4613_v19, %s10566_s12  ;;  %v5513_v19 = vrot.slane %v5511_v50, 7  ;;  %v3182_v50 = vrot.slane %v3180_v43, 6  ;;  %7952 = vmatpush1.bf16.msra.mxu0 %v10371_v22  ;;  %v4651_v43 = vshrl.u32 %v12347_v42, 16  ;;  %v12374_v15 = vld [vmem:[#allocation2 + $0xa0] sm:$0x8]  ;;  %v12380_v22 = vrot.slane %v4642_v62, 7 }
 0x1be   : > { %v3950_v31 = vsel %vm10969_vm4, %v3948_v25, %v3949_v54  ;;  %v3176_v25 = vrot.slane %v3174_v34, 7  ;;  %7953 = vmatprep.subr.bf16.mxu0 %v10569_v0  ;;  %v5532_v59 = vrot.slane %v5530_v12, 7 }
 0x1bf   : > { %v2587_v23 = vpop.permute.xlu0 %2586  ;;  %v12304_v58 = vor.u32 %v5513_v19, %v5510_v61  ;;  %v3953_v19 = vrot.slane %v12323_v18, 7  ;;  %v4653_v63 = vrot.slane %v4651_v43, 7 }
 0x1c0   : > { %4908 = vrot.lane.b32.xlu1 %v4604_v7, %s10566_s12  ;;  %2661 = vst.msk [vmem:[#allocation3 + $0xb0] sm:$0xf] %vm2638_vm6, %v2587_v23  ;;  %v3183_v7 = vshll.u32 %v3023_v16, 16  ;;  %v9919_v16 = vrot.slane %v12318_v32, 11 }
 0x1c1   : > { %5872 = vrot.lane.b32.xlu0 %v5497_v27, %s10567_s22  ;;  %v12306_v27 = vld [vmem:[#allocation2 + $0xa4] sm:$0xf]  ;;  %v5516_v56 = vrot.slane %v12304_v58, 4  ;;  %7954 = vmatpush1.bf16.msra.mxu0 %v10372_v37  ;;  %v6196_v37 = vld [vmem:[#allocation2 + $0xb0] sm:$0x8] }
 0x1c2   : > { %v2585_v35 = vpop.permute.xlu1 %2584  ;;  %v6303_v46 = vrot.slane %v12306_v27, 7  ;;  %v3185_v23 = vrot.slane %v3183_v7, 7  ;;  %v5380_v7 = vld [vmem:[#allocation2 + $0xb8] sm:$0x7]  ;;  %7955 = vmatprep.subr.bf16.mxu0 %v10569_v0 }
 0x1c3   : > { %2660 = vst.msk [vmem:[#allocation3 + $0xa8] sm:$0xf] %vm2638_vm6, %v2585_v35  ;;  %v5525_v55 = vsel %vm11396_vm13, %v5516_v56, %v5524_v1  ;;  %v5546_v32 = vshrl.u32 %v5380_v7, 16  ;;  %v3196_v56 = vor.u32 %v3195_v17, %v3192_v40  ;;  %v3025_v17 = vld [vmem:[#allocation2 + $0xb0] sm:$0xc] }
 0x1c4   : > { %5870 = vrot.lane.b32.xlu1 %v5487_v6, %s10567_s22  ;;  %v5505_v6 = vor.u32 %v5504_v2, %v5501_v29  ;;  %v6305_v26 = vrot.slane %v6303_v46, 4  ;;  %v5539_v29 = vshll.u32 %v5379_v5, 16  ;;  %v9856_v5 = vrot.slane %v12374_v15, 11 }
 0x1c5   : > { %6402 = vrot.lane.b32.xlu0 %v6300_v21, %s10568_s13  ;;  %v12316_v21 = vld [vmem:[#allocation2 + $0xa8] sm:$0x7]  ;;  %v3199_v12 = vshrl.u32 %v3025_v17, 16 }
 0x1c6   : > { %v5506_v35 = vrot.slane %v5505_v6, 4  ;;  %v6306_v61 = vrot.slane %v12316_v21, 7  ;;  %v5538_v6 = vrot.slane %v5536_v60, 6  ;;  %v5541_v21 = vrot.slane %v5539_v29, 7 }
 0x1c7   : > { %v12418_v60 = vrot.slane %v4637_v28, 11 }
 0x1c8   : > { %6400 = vrot.lane.b32.xlu1 %v6297_v51, %s10568_s13  ;;  %v12331_v51 = vld [vmem:[#allocation2 + $0xa8] sm:$0x7]  ;;  %v5515_v14 = vsel %vm11396_vm13, %v5506_v35, %v12304_v58  ;;  %v4654_v58 = vshll.u32 %v12347_v42, 16  ;;  %v4645_v35 = vshll.u32 %v12333_v8, 16  ;;  %v5548_v42 = vrot.slane %v5546_v32, 6 }
 0x1c9   : > { %3520 = vrot.lane.b32.xlu0 %v3169_v53, %s10564_s24  ;;  %v2591_v10 = vpop.permute.xlu0 %2590  ;;  %v12355_v53 = vor.u32 %v3185_v23, %v3182_v50  ;;  %v3956_v13 = vrot.slane %v12331_v51, 7  ;;  %v5549_v50 = vshll.u32 %v5380_v7, 16  ;;  %v12388_v23 = vld [vmem:[#allocation2 + $0xb4] sm:$0xf]  ;;  %v10375_v8 = vld [vmem:[%s15076_s1 + $0x8] sm:$0xff]  }
 0x1ca   : > { %2663 = vst.msk [vmem:[#allocation3 + $0xc0] sm:$0xf] %vm2638_vm6, %v2591_v10  ;;  %v3955_v10 = vrot.slane %v3953_v19, 4  ;;  %v6310_v52 = vrot.slane %v12388_v23, 7  ;;  %v4656_v47 = vor.u32 %v4654_v58, %v4653_v63  ;;  %v6857_v23 = vld [vmem:[#allocation2 + $0x70] sm:$0x8] }
 0x1cb   : > { %v3188_v34 = vrot.slane %v12355_v53, 4  ;;  %v12466_v63 = vld [vmem:[#allocation2 + $0xb4] sm:$0xf] }
 0x1cc   : > { %3518 = vrot.lane.b32.xlu1 %v3159_v4, %s10564_s24  ;;  %v2589_v11 = vpop.permute.xlu1 %2588  ;;  %v10373_v4 = vld [vmem:[%s15076_s1 + $0x18] sm:$0xff]   ;;  %v6312_v15 = vrot.slane %v6310_v52, 4 }
 0x1cd   : > { %4049 = vrot.lane.b32.xlu0 %v3950_v31, %s10565_s25  ;;  %2662 = vst.msk [vmem:[#allocation3 + $0xb8] sm:$0xf] %vm2638_vm6, %v2589_v11  ;;  %v3177_v31 = vor.u32 %v3176_v25, %v3173_v57  ;;  %7956 = vmatpush1.bf16.msra.mxu0 %v10373_v4  ;;  %v3027_v57 = vld [vmem:[#allocation2 + $0xb8] sm:$0x7]  ;;  %v6304_v25 = vsel %vm10969_vm4, %v9919_v16, %v6303_v46  ;;  %v4649_v16 = vrot.slane %v12380_v22, 4 }
 0x1ce   : > { %7957 = vmatprep.subr.bf16.mxu0 %v10569_v0  ;;  %v3197_v27 = vsel %vm11396_vm13, %v3188_v34, %v3196_v56  ;;  %v3957_v46 = vsel %vm10969_vm4, %v3955_v10, %v3956_v13  ;;  %v3218_v43 = vshrl.u32 %v3027_v57, 16  ;;  %v3221_v7 = vshll.u32 %v3027_v57, 16  ;;  %v10376_v34 = vld [vmem:[%s15076_s1] sm:$0xff]  }
 0x1cf   : > { %v2595_v54 = vpop.permute.xlu0 %2594  ;;  %v3178_v1 = vrot.slane %v3177_v31, 4 }
 0x1d0   : > { %4047 = vrot.lane.b32.xlu1 %v3947_v49, %s10565_s25  ;;  %2665 = vst.msk [vmem:[#allocation3 + $0xd0] sm:$0xf] %vm2638_vm6, %v2595_v54  ;;  %v6307_v49 = vsel %vm10969_vm4, %v6305_v26, %v6306_v61  ;;  %v3208_v54 = vshrl.u32 %v3026_v39, 16  ;;  %v12403_v61 = vor.u32 %v5541_v21, %v5538_v6  ;;  %v5551_v26 = vrot.slane %v5549_v50, 7 }
 0x1d1   : > { %4914 = vrot.lane.b32.xlu0 %v4635_v30, %s10566_s12  ;;  %v5529_v30 = vrot.slane %v5527_v20, 6  ;;  %7958 = vmatpush1.bf16.msra.mxu0 %v10374_v48  ;;  %v3187_v40 = vsel %vm11396_vm13, %v3178_v1, %v12355_v53  ;;  %v12425_v53 = vor.u32 %v4645_v35, %v12380_v22  ;;  %v12434_v22 = vld [vmem:[#allocation2 + $0xb4] sm:$0xf]  ;;  %v12436_v48 = vld [vmem:[#allocation2 + $0xb8] sm:$0x7]  ;;  %v3954_v6 = vsel %vm10969_vm4, %v9856_v5, %v3953_v19 }
 0x1d2   : > { %v2593_v2 = vpop.permute.xlu1 %2592  ;;  %7959 = vmatprep.subr.bf16.mxu0 %v10569_v0  ;;  %v3210_v31 = vrot.slane %v3208_v54, 6  ;;  %v5544_v4 = vrot.slane %v12403_v61, 4  ;;  %v12447_v32 = vrot.slane %v3218_v43, 6  ;;  %v12449_v50 = vrot.slane %v3221_v7, 7  ;;  %v12464_v1 = vld [vmem:[#allocation2 + $0xb0] sm:$0x8] }
 0x1d3   : > { %2664 = vst.msk [vmem:[#allocation3 + $0xc8] sm:$0xf] %vm2638_vm6, %v2593_v2  ;;  %v2599_v9 = vpop.permute.xlu0 %2598  ;;  %v5533_v29 = vor.u32 %v5532_v59, %v5529_v30  ;;  %v6198_v2 = vld [vmem:[#allocation2 + $0xb8] sm:$0x7]  ;;  %v4648_v18 = vsel %vm11463_vm0, %v12418_v60, %v12425_v53  ;;  %v3201_v59 = vrot.slane %v3199_v12, 6  ;;  %v10377_v54 = vld [vmem:[%s15076_s1 + $0x40] sm:$0xff]  }
 0x1d4   : > { %4912 = vrot.lane.b32.xlu1 %v4626_v33, %s10566_s12  ;;  %2667 = vst.msk [vmem:[#allocation3 + $0xe0] sm:$0xf] %vm2638_vm6, %v2599_v9  ;;  %v3211_v33 = vshll.u32 %v3026_v39, 16  ;;  %v5552_v9 = vor.u32 %v5551_v26, %v5548_v42  ;;  %v6313_v20 = vrot.slane %v6198_v2, 7  ;;  %v3202_v39 = vshll.u32 %v3025_v17, 16 }
 0x1d5   : > { %5876 = vrot.lane.b32.xlu0 %v5525_v55, %s10567_s22  ;;  %7960 = vmatpush1.bf16.msra.mxu0 %v10375_v8  ;;  %v12432_v28 = vrot.slane %v5533_v29, 4  ;;  %v12473_v5 = vld [vmem:[#allocation2 + $0xb8] sm:$0xf]  ;;  %v3963_v42 = vrot.slane %v12436_v48, 7  ;;  %v4515_v26 = vld [vmem:[#allocation2 + $0xb0] sm:$0x8]  ;;  %v3224_v8 = vor.u32 %v12449_v50, %v12447_v32 }
 0x1d6   : > { %v2597_v11 = vpop.permute.xlu1 %2596  ;;  %v3213_v13 = vrot.slane %v3211_v33, 7  ;;  %7961 = vmatprep.subr.bf16.mxu0 %v10569_v0  ;;  %v5553_v19 = vsel %vm11396_vm13, %v5544_v4, %v5552_v9  ;;  %v12470_v30 = vsel %vm10969_vm4, %v6312_v15, %v6313_v20  ;;  %v3204_v57 = vrot.slane %v3202_v39, 7  ;;  %v12500_v12 = vld [vmem:[#allocation2 + $0xc4] sm:$0xf] }
 0x1d7   : > { %2666 = vst.msk [vmem:[#allocation3 + $0xd8] sm:$0xf] %vm2638_vm6, %v2597_v11  ;;  %v2603_v51 = vpop.permute.xlu0 %2602  ;;  %v6858_v11 = vld [vmem:[#allocation2 + $0x74] sm:$0xf]  ;;  %v5543_v35 = vsel %vm11396_vm13, %v12432_v28, %v12403_v61  ;;  %v9857_v61 = vrot.slane %v12464_v1, 11  ;;  %v4673_v4 = vshrl.u32 %v12473_v5, 16 }
 0x1d8   : > { %5874 = vrot.lane.b32.xlu1 %v5515_v14, %s10567_s22  ;;  %2669 = vst.msk [vmem:[#allocation3 + $0xf0] sm:$0xf] %vm2638_vm6, %v2603_v51  ;;  %v9920_v14 = vrot.slane %v6196_v37, 11  ;;  %v12445_v21 = vor.u32 %v3213_v13, %v3210_v31  ;;  %v5382_v37 = vld [vmem:[#allocation2 + $0xc4] sm:$0xf]  ;;  %v3205_v31 = vor.u32 %v3204_v57, %v3201_v59  ;;  %v4664_v13 = vshrl.u32 %v12466_v63, 16 }
 0x1d9   : > { %6406 = vrot.lane.b32.xlu0 %v6307_v49, %s10568_s13  ;;  %v4657_v49 = vsel %vm11463_vm0, %v4649_v16, %v4656_v47  ;;  %7962 = vmatpush1.bf16.msra.mxu0 %v10376_v34  ;;  %v6911_v16 = vshrl.u32 %v6858_v11, 16  ;;  %v5564_v47 = vshrl.u32 %v5382_v37, 16  ;;  %v5567_v60 = vshll.u32 %v5382_v37, 16  ;;  %v3029_v32 = vld [vmem:[#allocation2 + $0xc4] sm:$0xf] }
 0x1da   : > { %v2601_v62 = vpop.permute.xlu1 %2600  ;;  %v12462_v56 = vsel %vm10969_vm4, %v9920_v14, %v6310_v52  ;;  %7977 = vmatprep.subr.bf16.mxu0 %v10569_v0  ;;  %v3216_v52 = vrot.slane %v12445_v21, 4  ;;  %v4659_v15 = vshrl.u32 %v4515_v26, 16  ;;  %v4675_v59 = vrot.slane %v4673_v4, 7  ;;  %v3030_v26 = vld [vmem:[#allocation2 + $0xc8] sm:$0x7] }
 0x1db   : > { %2668 = vst.msk [vmem:[#allocation3 + $0xe8] sm:$0xf] %vm2638_vm6, %v2601_v62  ;;  %v2883_v55 = vpop.permute.xlu0 %2882  ;;  %v12484_v62 = vld [vmem:[#allocation2 + $0xc8] sm:$0x7]  ;;  %v6913_v2 = vrot.slane %v6911_v16, 7  ;;  %v5569_v28 = vrot.slane %v5567_v60, 7 }
 0x1dc   : > { %6404 = vrot.lane.b32.xlu1 %v6304_v25, %s10568_s13  ;;  %2978 = vst.msk [vmem:[#allocation4] sm:$0xf] %vm2638_vm6, %v2883_v55  ;;  %v3960_v25 = vrot.slane %v12434_v22, 7  ;;  %v5381_v55 = vld [vmem:[#allocation2 + $0xc0] sm:$0xc]  ;;  %v5574_v20 = vshrl.u32 %v12484_v62, 16 }
 0x1dd   : > { %3524 = vrot.lane.b32.xlu0 %v3197_v27, %s10564_s24  ;;  %v6859_v27 = vld [vmem:[#allocation2 + $0x78] sm:$0xf]  ;;  %7978 = vmatpush2.bf16.msra.mxu0 %v10377_v54  ;;  %v5555_v9 = vshrl.u32 %v5381_v55, 16  ;;  %v5558_v14 = vshll.u32 %v5381_v55, 16  ;;  %v6918_v39 = vrot.slane %v6913_v2, 4  ;;  %v4676_v57 = vshll.u32 %v12473_v5, 16 }
 0x1de   : > { %v2605_v10 = vpop.permute.xlu1 %2604  ;;  %v6920_v43 = vshrl.u32 %v6859_v27, 16  ;;  %v6923_v7 = vshll.u32 %v6859_v27, 16  ;;  %v12519_v27 = vrot.slane %v4659_v15, 11  ;;  %v6199_v16 = vld [vmem:[#allocation2 + $0xc0] sm:$0x8]  ;;  %v6317_v60 = vrot.slane %v12500_v12, 7 }
 0x1df   : > { %2670 = vst.msk [vmem:[#allocation3 + $0xf8] sm:$0xf] %vm2638_vm6, %v2605_v10  ;;  %v2887_v58 = vpop.permute.xlu0 %2886  ;;  %v5557_v37 = vrot.slane %v5555_v9, 6  ;;  %v5560_v54 = vrot.slane %v5558_v14, 7  ;;  %v3028_v55 = vld [vmem:[#allocation2 + $0xc0] sm:$0xc]  ;;  %v3961_v48 = vsel %vm10969_vm4, %v9857_v61, %v3960_v25 }
 0x1e0   : > { %3522 = vrot.lane.b32.xlu1 %v3187_v40, %s10564_s24  ;;  %2980 = vst.msk [vmem:[#allocation4 + $0x10] sm:$0xf] %vm2638_vm6, %v2887_v58  ;;  %v6914_v40 = vshll.u32 %v6858_v11, 16  ;;  %v6922_v34 = vrot.slane %v6920_v43, 7  ;;  %v5566_v58 = vrot.slane %v5564_v47, 6  ;;  %v3206_v11 = vrot.slane %v3205_v31, 4 }
 0x1e1   : > { %4053 = vrot.lane.b32.xlu0 %v3957_v46, %s10565_s25  ;;  %v6906_v46 = vshrl.u32 %v6857_v23, 16  ;;  %v5561_v31 = vor.u32 %v5560_v54, %v5557_v37  ;;  %v3230_v43 = vshll.u32 %v3028_v55, 16  ;;  %v3249_v4 = vshll.u32 %v3030_v26, 16 }
 0x1e2   : > { %v2885_v51 = vpop.permute.xlu1 %2884  ;;  %v6916_v10 = vor.u32 %v6914_v40, %v6913_v2  ;;  %v12526_v40 = vor.u32 %v5569_v28, %v5566_v58  ;;  %v3239_v2 = vshll.u32 %v3029_v32, 16  ;;  %v9921_v15 = vrot.slane %v6199_v16, 11  ;;  %v6860_v58 = vld [vmem:[#allocation2 + $0x80] sm:$0x8] }
 0x1e3   : > { %2979 = vst.msk [vmem:[#allocation4 + $0x8] sm:$0xf] %vm2638_vm6, %v2885_v51  ;;  %v2891_v33 = vpop.permute.xlu0 %2890  ;;  %v9948_v29 = vrot.slane %v6906_v46, 11  ;;  %v6925_v51 = vor.u32 %v6923_v7, %v6922_v34  ;;  %v4667_v46 = vshll.u32 %v12466_v63, 16  ;;  %v3215_v63 = vsel %vm11396_vm13, %v3206_v11, %v12445_v21  ;;  %v12548_v34 = vld [vmem:[#allocation2 + $0xc4] sm:$0xf] }
 0x1e4   : > { %4051 = vrot.lane.b32.xlu1 %v3954_v6, %s10565_s25  ;;  %2982 = vst.msk [vmem:[#allocation4 + $0x20] sm:$0xf] %vm2638_vm6, %v2891_v33  ;;  %v5577_v6 = vshll.u32 %v12484_v62, 16  ;;  %v12513_v33 = vld [vmem:[#allocation2 + $0xc8] sm:$0x7]  ;;  %v3225_v62 = vsel %vm11396_vm13, %v3216_v52, %v3224_v8  ;;  %v5572_v9 = vrot.slane %v12526_v40, 4  ;;  %v12584_v61 = vsel %vm10969_vm4, %v9921_v15, %v6317_v60 }
 0x1e5   : > { %4918 = vrot.lane.b32.xlu0 %v4657_v49, %s10566_s12  ;;  %v6917_v50 = vsel %vm11463_vm0, %v9948_v29, %v6916_v10  ;;  %v3962_v49 = vrot.slane %v3960_v25, 4  ;;  %v6926_v5 = vsel %vm11463_vm0, %v6918_v39, %v6925_v51  ;;  %v3236_v29 = vshrl.u32 %v3029_v32, 16  ;;  %v12569_v51 = vld [vmem:[#allocation2 + $0xc4] sm:$0xf] }
 0x1e6   : > { %v2889_v17 = vpop.permute.xlu1 %2888  ;;  %7289 = vst.msk [vmem:[#allocation3 + $0x4] sm:$0xf] %vm786_vm8, %v6917_v50  ;;  %v5579_v47 = vrot.slane %v5577_v6, 7  ;;  %7290 = vst.msk [vmem:[#allocation3 + $0xc] sm:$0xf] %vm786_vm8, %v6926_v5  ;;  %v6320_v21 = vrot.slane %v12513_v33, 7 }
 0x1e7   : > { %2981 = vst.msk [vmem:[#allocation4 + $0x18] sm:$0xf] %vm2638_vm6, %v2889_v17  ;;  %v2895_v53 = vpop.permute.xlu0 %2894  ;;  %v4678_v17 = vor.u32 %v4676_v57, %v4675_v59  ;;  %v6319_v10 = vrot.slane %v6317_v60, 4  ;;  %v3238_v12 = vrot.slane %v3236_v29, 6  ;;  %v3241_v39 = vrot.slane %v3239_v2, 7 }
 0x1e8   : > { %4916 = vrot.lane.b32.xlu1 %v4648_v18, %s10566_s12  ;;  %2984 = vst.msk [vmem:[#allocation4 + $0x30] sm:$0xf] %vm2638_vm6, %v2895_v53  ;;  %v12508_v18 = vrot.slane %v4664_v13, 7  ;;  %v3227_v13 = vshrl.u32 %v3028_v55, 16  ;;  %v3246_v53 = vshrl.u32 %v3030_v26, 16  ;;  %v12551_v6 = vrot.slane %v5561_v31, 4 }
 0x1e9   : > { %5880 = vrot.lane.b32.xlu0 %v5553_v19, %s10567_s22  ;;  %v3232_v50 = vrot.slane %v3230_v43, 7  ;;  %v12580_v25 = vsel %vm10969_vm4, %v6319_v10, %v6320_v21  ;;  %v12586_v59 = vld [vmem:[#allocation2 + $0xc8] sm:$0xf]  ;;  %v12588_v37 = vor.u32 %v3241_v39, %v3238_v12  ;;  %v3967_v54 = vrot.slane %v12548_v34, 7  ;;  %v12597_v5 = vld [vmem:[#allocation2 + $0xd4] sm:$0xf] }
 0x1ea   : > { %v2893_v23 = vpop.permute.xlu1 %2892  ;;  %v4671_v8 = vrot.slane %v12508_v18, 4  ;;  %v12539_v7 = vor.u32 %v4667_v46, %v12508_v18  ;;  %v3229_v32 = vrot.slane %v3227_v13, 6  ;;  %v12563_v11 = vrot.slane %v3246_v53, 6  ;;  %v12567_v18 = vld [vmem:[#allocation2 + $0xc8] sm:$0x7] }
 0x1eb   : > { %2983 = vst.msk [vmem:[#allocation4 + $0x28] sm:$0xf] %vm2638_vm6, %v2893_v23  ;;  %v2899_v19 = vpop.permute.xlu0 %2898  ;;  %v6861_v23 = vld [vmem:[#allocation2 + $0x84] sm:$0xf]  ;;  %v6862_v33 = vld [vmem:[#allocation2 + $0x88] sm:$0xf]  ;;  %v5571_v46 = vsel %vm11396_vm13, %v12551_v6, %v12526_v40 }
 0x1ec   : > { %5878 = vrot.lane.b32.xlu1 %v5543_v35, %s10567_s22  ;;  %2986 = vst.msk [vmem:[#allocation4 + $0x40] sm:$0xf] %vm2638_vm6, %v2899_v19  ;;  %v5576_v35 = vrot.slane %v5574_v20, 6  ;;  %v4670_v22 = vsel %vm11463_vm0, %v12519_v27, %v12539_v7  ;;  %v3845_v19 = vld [vmem:[#allocation2 + $0xc0] sm:$0x8]  ;;  %v6928_v26 = vshrl.u32 %v6860_v58, 16  ;;  %v3233_v16 = vor.u32 %v3232_v50, %v3229_v32 }
 0x1ed   : > { %6410 = vrot.lane.b32.xlu0 %v12470_v30, %s10568_s13  ;;  %v4686_v55 = vshrl.u32 %v12569_v51, 16  ;;  %v4695_v60 = vshrl.u32 %v12586_v59, 16  ;;  %v3970_v29 = vrot.slane %v12567_v18, 7  ;;  %v9858_v2 = vrot.slane %v3845_v19, 11  ;;  %v12634_v32 = vld [vmem:[#allocation2 + $0xd8] sm:$0x7] }
 0x1ee   : > { %v2897_v52 = vpop.permute.xlu1 %2896  ;;  %v5580_v14 = vor.u32 %v5579_v47, %v5576_v35  ;;  %v6936_v35 = vshll.u32 %v6861_v23, 16  ;;  %v9949_v40 = vrot.slane %v6928_v26, 11  ;;  %v6942_v31 = vshrl.u32 %v6862_v33, 16  ;;  %v6865_v26 = vld [vmem:[#allocation2 + $0x98] sm:$0xf] }
 0x1ef   : > { %2985 = vst.msk [vmem:[#allocation4 + $0x38] sm:$0xf] %vm2638_vm6, %v2897_v52  ;;  %v2903_v30 = vpop.permute.xlu0 %2902  ;;  %v12604_v52 = vld [vmem:[#allocation2 + $0xd8] sm:$0x7]  ;;  %v6945_v13 = vshll.u32 %v6862_v33, 16  ;;  %v3244_v7 = vrot.slane %v12588_v37, 4  ;;  %v12630_v58 = vsel %vm10969_vm4, %v9858_v2, %v3967_v54 }
 0x1f0   : > { %6408 = vrot.lane.b32.xlu1 %v12462_v56, %s10568_s13  ;;  %2988 = vst.msk [vmem:[#allocation4 + $0x50] sm:$0xf] %vm2638_vm6, %v2903_v30  ;;  %v3964_v56 = vsel %vm10969_vm4, %v3962_v49, %v3963_v42  ;;  %v4679_v42 = vsel %vm11463_vm0, %v4671_v8, %v4678_v17  ;;  %v12565_v49 = vrot.slane %v3249_v4, 7  ;;  %v5581_v1 = vsel %vm11396_vm13, %v5572_v9, %v5580_v14  ;;  %v12610_v30 = vld [vmem:[#allocation2 + $0xc0] sm:$0x8] }
 0x1f1   : > { %3528 = vrot.lane.b32.xlu0 %v3225_v62, %s10564_s24  ;;  %v6933_v62 = vshrl.u32 %v6861_v23, 16  ;;  %v12612_v17 = vld [vmem:[#allocation2 + $0xd4] sm:$0xf]  ;;  %v3969_v21 = vrot.slane %v3967_v54, 4  ;;  %v4698_v53 = vshll.u32 %v12586_v59, 16  ;;  %v12617_v14 = vrot.slane %v3233_v16, 4 }
 0x1f2   : > { %v2901_v20 = vpop.permute.xlu1 %2900  ;;  %v3252_v47 = vor.u32 %v12565_v49, %v12563_v11  ;;  %v12619_v10 = vrot.slane %v4686_v55, 7  ;;  %v5592_v12 = vshrl.u32 %v12597_v5, 16  ;;  %v5595_v39 = vshll.u32 %v12597_v5, 16  ;;  %v6863_v23 = vld [vmem:[#allocation2 + $0x90] sm:$0x8] }
 0x1f3   : > { %2987 = vst.msk [vmem:[#allocation4 + $0x48] sm:$0xf] %vm2638_vm6, %v2901_v20  ;;  %v2907_v28 = vpop.permute.xlu0 %2906  ;;  %v6935_v8 = vrot.slane %v6933_v62, 7  ;;  %v6944_v20 = vrot.slane %v6942_v31, 7  ;;  %v4681_v11 = vshrl.u32 %v12610_v30, 16  ;;  %v3264_v18 = vshrl.u32 %v12612_v17, 16 }
 0x1f4   : > { %3526 = vrot.lane.b32.xlu1 %v3215_v63, %s10564_s24  ;;  %2990 = vst.msk [vmem:[#allocation4 + $0x60] sm:$0xf] %vm2638_vm6, %v2907_v28  ;;  %v12606_v63 = vld [vmem:[#allocation2 + $0xd0] sm:$0xc]  ;;  %v5602_v28 = vshrl.u32 %v12604_v52, 16  ;;  %v3971_v19 = vsel %vm10969_vm4, %v3969_v21, %v3970_v29  ;;  %v4689_v59 = vshll.u32 %v12569_v51, 16  ;;  %v3243_v62 = vsel %vm11396_vm13, %v12617_v14, %v12588_v37 }
 0x1f5   : > { %4057 = vrot.lane.b32.xlu0 %v3964_v56, %s10565_s25  ;;  %v6938_v4 = vor.u32 %v6936_v35, %v6935_v8  ;;  %v6940_v15 = vrot.slane %v6935_v8, 4  ;;  %v4697_v56 = vrot.slane %v4695_v60, 7  ;;  %v5583_v6 = vshrl.u32 %v12606_v63, 16  ;;  %v3031_v54 = vld [vmem:[#allocation2 + $0xd0] sm:$0xc] }
 0x1f6   : > { %v2905_v57 = vpop.permute.xlu1 %2904  ;;  %v6947_v50 = vor.u32 %v6945_v13, %v6944_v20  ;;  %v5586_v49 = vshll.u32 %v12606_v63, 16  ;;  %v5594_v16 = vrot.slane %v5592_v12, 6  ;;  %v5597_v55 = vrot.slane %v5595_v39, 7  ;;  %v12664_v2 = vld [vmem:[#allocation2 + $0xd4] sm:$0xf] }
 0x1f7   : > { %2989 = vst.msk [vmem:[#allocation4 + $0x58] sm:$0xf] %vm2638_vm6, %v2905_v57  ;;  %v2911_v27 = vpop.permute.xlu0 %2910  ;;  %v6939_v34 = vsel %vm11463_vm0, %v9949_v40, %v6938_v4  ;;  %v3267_v57 = vshll.u32 %v12612_v17, 16  ;;  %v4700_v5 = vor.u32 %v4698_v53, %v4697_v56  ;;  %v12659_v35 = vrot.slane %v5602_v28, 6  ;;  %v6204_v56 = vld [vmem:[#allocation2 + $0xd8] sm:$0x7] }
 0x1f8   : > { %4055 = vrot.lane.b32.xlu1 %v3961_v48, %s10565_s25  ;;  %2992 = vst.msk [vmem:[#allocation4 + $0x70] sm:$0xf] %vm2638_vm6, %v2911_v27  ;;  %v6948_v33 = vsel %vm11463_vm0, %v6940_v15, %v6947_v50  ;;  %v4693_v27 = vrot.slane %v12619_v10, 4  ;;  %v5588_v63 = vrot.slane %v5586_v49, 7  ;;  %v3266_v40 = vrot.slane %v3264_v18, 6 }
 0x1f9   : > { %4922 = vrot.lane.b32.xlu0 %v4679_v42, %s10566_s12  ;;  %7291 = vst.msk [vmem:[#allocation3 + $0x14] sm:$0xf] %vm786_vm8, %v6939_v34  ;;  %v3253_v42 = vsel %vm11396_vm13, %v3244_v7, %v3252_v47  ;;  %7292 = vst.msk [vmem:[#allocation3 + $0x1c] sm:$0xf] %vm786_vm8, %v6948_v33  ;;  %v5585_v47 = vrot.slane %v5583_v6, 6  ;;  %v3274_v37 = vshrl.u32 %v12634_v32, 16 }
 0x1fa   : > { %v2909_v43 = vpop.permute.xlu1 %2908  ;;  %v6950_v8 = vshrl.u32 %v6863_v23, 16  ;;  %v3269_v17 = vrot.slane %v3267_v57, 7  ;;  %v3258_v7 = vshll.u32 %v3031_v54, 16  ;;  %v6964_v21 = vshrl.u32 %v6865_v26, 16  ;;  %v6202_v28 = vld [vmem:[#allocation2 + $0xd0] sm:$0x8] }
 0x1fb   : > { %2991 = vst.msk [vmem:[#allocation4 + $0x68] sm:$0xf] %vm2638_vm6, %v2909_v43  ;;  %v2915_v9 = vpop.permute.xlu0 %2914  ;;  %v3255_v43 = vshrl.u32 %v3031_v54, 16  ;;  %v6967_v14 = vshll.u32 %v6865_v26, 16  ;;  %v5589_v20 = vor.u32 %v5588_v63, %v5585_v47  ;;  %v6324_v12 = vrot.slane %v12664_v2, 7 }
 0x1fc   : > { %4920 = vrot.lane.b32.xlu1 %v4670_v22, %s10566_s12  ;;  %2994 = vst.msk [vmem:[#allocation4 + $0x80] sm:$0xf] %vm2638_vm6, %v2915_v9  ;;  %v6864_v22 = vld [vmem:[#allocation2 + $0x94] sm:$0xf]  ;;  %v9950_v4 = vrot.slane %v6950_v8, 11  ;;  %v3276_v39 = vrot.slane %v3274_v37, 6  ;;  %v12675_v6 = vor.u32 %v3269_v17, %v3266_v40 }
 0x1fd   : > { %5884 = vrot.lane.b32.xlu0 %v5581_v1, %s10567_s22  ;;  %v6955_v31 = vshrl.u32 %v6864_v22, 16  ;;  %v6958_v13 = vshll.u32 %v6864_v22, 16  ;;  %v3260_v49 = vrot.slane %v3258_v7, 7  ;;  %v4701_v22 = vsel %vm11463_vm0, %v4693_v27, %v4700_v5  ;;  %v5388_v5 = vld [vmem:[#allocation2 + $0xe4] sm:$0xf] }
 0x1fe   : > { %v2913_v48 = vpop.permute.xlu1 %2912  ;;  %v6327_v57 = vrot.slane %v6204_v56, 7  ;;  %v9922_v26 = vrot.slane %v6202_v28, 11  ;;  %v12706_v47 = vld [vmem:[#allocation2 + $0xd8] sm:$0x7]  ;;  %v6866_v37 = vld [vmem:[#allocation2 + $0xa0] sm:$0x8] }
 0x1ff   : > { %2993 = vst.msk [vmem:[#allocation4 + $0x78] sm:$0xf] %vm2638_vm6, %v2913_v48  ;;  %v3509_v1 = vpop.permute.xlu0 %3508  ;;  %v6957_v9 = vrot.slane %v6955_v31, 7  ;;  %v9890_v48 = vrot.slane %v4681_v11, 11  ;;  %v12717_v2 = vld [vmem:[#allocation2 + $0xd0] sm:$0x8] }
 0x200   : > { %5882 = vrot.lane.b32.xlu1 %v5571_v46, %s10567_s22  ;;  %3604 = vst.msk [vmem:[#allocation3 + $0x8] sm:$0xf] %vm3602_vm11, %v3509_v1  ;;  %v5605_v46 = vshll.u32 %v12604_v52, 16  ;;  %v12670_v52 = vor.u32 %v5597_v55, %v5594_v16  ;;  %v4691_v1 = vor.u32 %v4689_v59, %v12619_v10  ;;  %v5590_v10 = vrot.slane %v5589_v20, 4  ;;  %v6867_v31 = vld [vmem:[#allocation2 + $0xa4] sm:$0xf] }
 0x201   : > { %6414 = vrot.lane.b32.xlu0 %v12580_v25, %s10568_s13  ;;  %v3277_v25 = vshll.u32 %v12634_v32, 16  ;;  %v6960_v50 = vor.u32 %v6958_v13, %v6957_v9  ;;  %v6962_v23 = vrot.slane %v6957_v9, 4  ;;  %v6326_v59 = vrot.slane %v6324_v12, 4 }
 0x202   : > { %v3507_v60 = vpop.permute.xlu1 %3506  ;;  %v5607_v53 = vrot.slane %v5605_v46, 7  ;;  %v5600_v30 = vrot.slane %v12670_v52, 4  ;;  %v3272_v16 = vrot.slane %v12675_v6, 4  ;;  %v12704_v46 = vld [vmem:[#allocation2 + $0xd4] sm:$0xf]  ;;  %v5620_v17 = vshrl.u32 %v5388_v5, 16 }
 0x203   : > { %3603 = vst.msk [vmem:[#allocation3] sm:$0xf] %vm3602_vm11, %v3507_v60  ;;  %v4038_v29 = vpop.permute.xlu0 %4037  ;;  %v3279_v32 = vrot.slane %v3277_v25, 7  ;;  %v6961_v54 = vsel %vm11463_vm0, %v9950_v4, %v6960_v50  ;;  %v4692_v60 = vsel %vm11463_vm0, %v9890_v48, %v4691_v1  ;;  %v5623_v25 = vshll.u32 %v5388_v5, 16  ;;  %v5389_v4 = vld [vmem:[#allocation2 + $0xe8] sm:$0x7] }
 0x204   : > { %6412 = vrot.lane.b32.xlu1 %v12584_v61, %s10568_s13  ;;  %4133 = vst.msk [vmem:[#allocation3 + $0x8] sm:$0xf] %vm4131_vm12, %v4038_v29  ;;  %v6966_v61 = vrot.slane %v6964_v21, 7  ;;  %v5608_v11 = vor.u32 %v5607_v53, %v12659_v35  ;;  %v6325_v29 = vsel %vm10969_vm4, %v9922_v26, %v6324_v12  ;;  %v6328_v7 = vsel %vm10969_vm4, %v6326_v59, %v6327_v57 }
 0x205   : > { %3532 = vrot.lane.b32.xlu0 %v3253_v42, %s10564_s24  ;;  %v3257_v42 = vrot.slane %v3255_v43, 6  ;;  %7293 = vst.msk [vmem:[#allocation3 + $0x24] sm:$0xf] %vm786_vm8, %v6961_v54  ;;  %v3280_v55 = vor.u32 %v3279_v32, %v3276_v39  ;;  %v5599_v43 = vsel %vm11396_vm13, %v5590_v10, %v12670_v52  ;;  %v3974_v53 = vrot.slane %v12704_v46, 7  ;;  %v6868_v52 = vld [vmem:[#allocation2 + $0xa8] sm:$0xf] }
 0x206   : > { %v4036_v15 = vpop.permute.xlu1 %4035  ;;  %v6969_v18 = vor.u32 %v6967_v14, %v6966_v61  ;;  %v3977_v14 = vrot.slane %v12706_v47, 7  ;;  %v6972_v20 = vshrl.u32 %v6866_v37, 16  ;;  %v4703_v39 = vshrl.u32 %v12717_v2, 16  ;;  %v5387_v61 = vld [vmem:[#allocation2 + $0xe0] sm:$0xc] }
 0x207   : > { %4132 = vst.msk [vmem:[#allocation3] sm:$0xf] %vm4131_vm12, %v4036_v15  ;;  %v4903_v34 = vpop.permute.xlu0 %4902  ;;  %v3261_v35 = vor.u32 %v3260_v49, %v3257_v42  ;;  %v3281_v21 = vsel %vm11396_vm13, %v3272_v16, %v3280_v55  ;;  %v3848_v32 = vld [vmem:[#allocation2 + $0xd0] sm:$0x8]  ;;  %v5622_v50 = vrot.slane %v5620_v17, 6  ;;  %v5630_v48 = vshrl.u32 %v5389_v4, 16 }
 0x208   : > { %3530 = vrot.lane.b32.xlu1 %v3243_v62, %s10564_s24  ;;  %4998 = vst.msk [vmem:[#allocation3 + $0x8] sm:$0xf] %vm4996_vm14, %v4903_v34  ;;  %v12691_v62 = vld [vmem:[#allocation2 + $0xd4] sm:$0xf]  ;;  %v6970_v27 = vsel %vm11463_vm0, %v6962_v23, %v6969_v18  ;;  %v6977_v34 = vshrl.u32 %v6867_v31, 16  ;;  %v5625_v23 = vrot.slane %v5623_v25, 7 }
 0x209   : > { %4061 = vrot.lane.b32.xlu0 %v3971_v19, %s10565_s25  ;;  %v12693_v19 = vld [vmem:[#allocation2 + $0xd8] sm:$0xf]  ;;  %7294 = vst.msk [vmem:[#allocation3 + $0x2c] sm:$0xf] %vm786_vm8, %v6970_v27  ;;  %v4708_v63 = vshrl.u32 %v12691_v62, 16  ;;  %v12730_v9 = vrot.slane %v3261_v35, 4 }
 0x20a   : > { %v4901_v33 = vpop.permute.xlu1 %4900  ;;  %v4717_v40 = vshrl.u32 %v12693_v19, 16  ;;  %v4720_v15 = vshll.u32 %v12693_v19, 16  ;;  %v5633_v42 = vshll.u32 %v5389_v4, 16  ;;  %v9951_v18 = vrot.slane %v6972_v20, 11  ;;  %v3035_v35 = vld [vmem:[#allocation2 + $0xe4] sm:$0xf] }
 0x20b   : > { %4997 = vst.msk [vmem:[#allocation3] sm:$0xf] %vm4996_vm14, %v4901_v33  ;;  %v5865_v51 = vpop.permute.xlu0 %5864  ;;  %v12735_v56 = vrot.slane %v4708_v63, 7  ;;  %v6980_v1 = vshll.u32 %v6867_v31, 16  ;;  %v6986_v57 = vshrl.u32 %v6868_v52, 16  ;;  %v4711_v54 = vshll.u32 %v12691_v62, 16 }
 0x20c   : > { %4059 = vrot.lane.b32.xlu1 %v12630_v58, %s10565_s25  ;;  %5960 = vst.msk [vmem:[#allocation3 + $0x8] sm:$0xf] %vm5958_vm15, %v5865_v51  ;;  %v5609_v58 = vsel %vm11396_vm13, %v5600_v30, %v5608_v11  ;;  %v4719_v12 = vrot.slane %v4717_v40, 7  ;;  %v5611_v33 = vshrl.u32 %v5387_v61, 16  ;;  %v5614_v30 = vshll.u32 %v5387_v61, 16 }
 0x20d   : > { %4926 = vrot.lane.b32.xlu0 %v4701_v22, %s10566_s12  ;;  %v6979_v22 = vrot.slane %v6977_v34, 7  ;;  %v6989_v11 = vshll.u32 %v6868_v52, 16  ;;  %v9859_v26 = vrot.slane %v3848_v32, 11  ;;  %v6988_v51 = vrot.slane %v6986_v57, 7  ;;  %v12749_v40 = vld [vmem:[#allocation2 + $0xe4] sm:$0xf] }
 0x20e   : > { %v5863_v8 = vpop.permute.xlu1 %5862  ;;  %v3976_v59 = vrot.slane %v3974_v53, 4  ;;  %v4715_v16 = vrot.slane %v12735_v56, 4  ;;  %v4722_v55 = vor.u32 %v4720_v15, %v4719_v12  ;;  %v5632_v5 = vrot.slane %v5630_v48, 6  ;;  %v12751_v37 = vld [vmem:[#allocation2 + $0xe8] sm:$0x7] }
 0x20f   : > { %5959 = vst.msk [vmem:[#allocation3] sm:$0xf] %vm5958_vm15, %v5863_v8  ;;  %v6395_v13 = vpop.permute.xlu0 %6394  ;;  %v6982_v19 = vor.u32 %v6980_v1, %v6979_v22  ;;  %v6984_v27 = vrot.slane %v6979_v22, 4  ;;  %v5635_v63 = vrot.slane %v5633_v42, 7  ;;  %v12757_v2 = vrot.slane %v4703_v39, 11 }
 0x210   : > { %4924 = vrot.lane.b32.xlu1 %v4692_v60, %s10566_s12  ;;  %6490 = vst.msk [vmem:[#allocation3 + $0x8] sm:$0xf] %vm6488_vm1, %v6395_v13  ;;  %v12747_v60 = vor.u32 %v5625_v23, %v5622_v50  ;;  %v12760_v17 = vor.u32 %v4711_v54, %v12735_v56  ;;  %v5613_v25 = vrot.slane %v5611_v33, 6  ;;  %v5616_v31 = vrot.slane %v5614_v30, 7  ;;  %v3036_v13 = vld [vmem:[#allocation2 + $0xe8] sm:$0x7] }
 0x211   : > { %5888 = vrot.lane.b32.xlu0 %v5609_v58, %s10567_s22  ;;  %v6983_v8 = vsel %vm11463_vm0, %v9951_v18, %v6982_v19  ;;  %v6991_v58 = vor.u32 %v6989_v11, %v6988_v51  ;;  %v6869_v15 = vld [vmem:[#allocation2 + $0xb0] sm:$0x8]  ;;  %v10380_v56 = vld [vmem:[#allocation3 + $0x4] ss:$8 sps:$4 sm:$0xff]   ;;  %v3295_v12 = vshll.u32 %v3035_v35, 16  ;;  %v5636_v61 = vor.u32 %v5635_v63, %v5632_v5 }
 0x212   : > { %v6393_v28 = vpop.permute.xlu1 %6392  ;;  %7295 = vst.msk [vmem:[#allocation3 + $0x34] sm:$0xf] %vm786_vm8, %v6983_v8  ;;  %v5628_v39 = vrot.slane %v12747_v60, 4  ;;  %v6331_v34 = vrot.slane %v12749_v40, 7  ;;  %v6870_v47 = vld [vmem:[#allocation2 + $0xb4] sm:$0xf]  ;;  %10022 = vmatprep.mubr.msk.bf16.mxu0 %vm7898_vm2, %v10380_v56  ;;  %v4714_v46 = vsel %vm11463_vm0, %v12757_v2, %v12760_v17 }
 0x213   : > { %6489 = vst.msk [vmem:[#allocation3] sm:$0xf] %vm6488_vm1, %v6393_v28  ;;  %v3513_v49 = vpop.permute.xlu0 %3512  ;;  %v6992_v4 = vsel %vm11463_vm0, %v6984_v27, %v6991_v58  ;;  %v6334_v28 = vrot.slane %v12751_v37, 7  ;;  %v6871_v32 = vld [vmem:[#allocation2 + $0xb8] sm:$0xf]  ;;  %v3302_v50 = vshrl.u32 %v3036_v13, 16 }
 0x214   : > { %5886 = vrot.lane.b32.xlu1 %v5599_v43, %s10567_s22  ;;  %3606 = vst.msk [vmem:[#allocation3 + $0x18] sm:$0xf] %vm3602_vm11, %v3513_v49  ;;  %v3271_v43 = vsel %vm11396_vm13, %v12730_v9, %v12675_v6  ;;  %v3975_v9 = vsel %vm10969_vm4, %v9859_v26, %v3974_v53  ;;  %v5617_v53 = vor.u32 %v5616_v31, %v5613_v25  ;;  %v6994_v42 = vshrl.u32 %v6869_v15, 16  ;;  %v12824_v56 = vld [vmem:[#allocation2 + $0xe4] sm:$0xf] }
 0x215   : > { %6418 = vrot.lane.b32.xlu0 %v6328_v7, %s10568_s13  ;;  %v3034_v7 = vld [vmem:[#allocation2 + $0xe0] sm:$0xc]  ;;  %7296 = vst.msk [vmem:[#allocation3 + $0x3c] sm:$0xf] %vm786_vm8, %v6992_v4  ;;  %v3297_v22 = vrot.slane %v3295_v12, 7  ;;  %v3305_v1 = vshll.u32 %v3036_v13, 16  ;;  %v5637_v33 = vsel %vm11396_vm13, %v5628_v39, %v5636_v61 }
 0x216   : > { %v3511_v10 = vpop.permute.xlu1 %3510  ;;  %v3283_v23 = vshrl.u32 %v3034_v7, 16  ;;  %v3286_v48 = vshll.u32 %v3034_v7, 16  ;;  %v6999_v57 = vshrl.u32 %v6870_v47, 16  ;;  %v6333_v30 = vrot.slane %v6331_v34, 4  ;;  %v6872_v39 = vld [vmem:[#allocation2 + $0xc0] sm:$0x8] }
 0x217   : > { %3605 = vst.msk [vmem:[#allocation3 + $0x10] sm:$0xf] %vm3602_vm11, %v3511_v10  ;;  %v4042_v62 = vpop.permute.xlu0 %4041  ;;  %v7002_v11 = vshll.u32 %v6870_v47, 16  ;;  %v7008_v26 = vshrl.u32 %v6871_v32, 16  ;;  %v5618_v19 = vrot.slane %v5617_v53, 4  ;;  %v9952_v27 = vrot.slane %v6994_v42, 11 }
 0x218   : > { %6416 = vrot.lane.b32.xlu1 %v6325_v29, %s10568_s13  ;;  %4135 = vst.msk [vmem:[#allocation3 + $0x18] sm:$0xf] %vm4131_vm12, %v4042_v62  ;;  %v3292_v29 = vshrl.u32 %v3035_v35, 16  ;;  %v7001_v51 = vrot.slane %v6999_v57, 7  ;;  %v7011_v10 = vshll.u32 %v6871_v32, 16  ;;  %v3307_v37 = vrot.slane %v3305_v1, 7 }
 0x219   : > { %3536 = vrot.lane.b32.xlu0 %v3281_v21, %s10564_s24  ;;  %v3978_v21 = vsel %vm10969_vm4, %v3976_v59, %v3977_v14  ;;  %v4723_v14 = vsel %vm11463_vm0, %v4715_v16, %v4722_v55  ;;  %v3304_v59 = vrot.slane %v3302_v50, 6  ;;  %v3285_v16 = vrot.slane %v3283_v23, 6  ;;  %v6205_v62 = vld [vmem:[#allocation2 + $0xe0] sm:$0x8]  ;;  %v6873_v61 = vld [vmem:[#allocation2 + $0xc4] sm:$0xf] }
 0x21a   : > { %v4040_v52 = vpop.permute.xlu1 %4039  ;;  %v10378_v20 = vld [vmem:[#allocation3] ss:$8 sps:$4 sm:$0xff]   ;;  %v3294_v18 = vrot.slane %v3292_v29, 6  ;;  %v3288_v55 = vrot.slane %v3286_v48, 7  ;;  %v7010_v5 = vrot.slane %v7008_v26, 7  ;;  %v7004_v8 = vor.u32 %v7002_v11, %v7001_v51 }
 0x21b   : > { %4134 = vst.msk [vmem:[#allocation3 + $0x10] sm:$0xf] %vm4131_vm12, %v4040_v52  ;;  %v4907_v6 = vpop.permute.xlu0 %4906  ;;  %7980 = vmatmul.mubr.bf16.vlgmr.msra.gmra.mxu0 %v10378_v20  ;;  %v7006_v58 = vrot.slane %v7001_v51, 4  ;;  %v5627_v31 = vsel %vm11396_vm13, %v5618_v19, %v12747_v60  ;;  %v9923_v13 = vrot.slane %v6205_v62, 11  ;;  %v6335_v4 = vsel %vm10969_vm4, %v6333_v30, %v6334_v28  ;;  %v12818_v20 = vld [vmem:[#allocation2 + $0xe4] sm:$0xf] }
 0x21c   : > { %3534 = vrot.lane.b32.xlu1 %v3271_v43, %s10564_s24  ;;  %5000 = vst.msk [vmem:[#allocation3 + $0x18] sm:$0xf] %vm4996_vm14, %v4907_v6  ;;  %v12801_v63 = vor.u32 %v3297_v22, %v3294_v18  ;;  %v7013_v17 = vor.u32 %v7011_v10, %v7010_v5  ;;  %v7005_v25 = vsel %vm11463_vm0, %v9952_v27, %v7004_v8  ;;  %v12836_v53 = vld [vmem:[#allocation2 + $0x64] sm:$0xf]  ;;  %v3851_v32 = vld [vmem:[#allocation2 + $0xe0] sm:$0x8] }
 0x21d   : > { %4065 = vrot.lane.b32.xlu0 %v3978_v21, %s10565_s25  ;;  %v3289_v43 = vor.u32 %v3288_v55, %v3285_v16  ;;  %7297 = vst.msk [vmem:[#allocation3 + $0x44] sm:$0xf] %vm786_vm8, %v7005_v25  ;;  %v3308_v52 = vor.u32 %v3307_v37, %v3304_v59  ;;  %v12826_v21 = vld [vmem:[#allocation2 + $0xe8] sm:$0xf]  ;;  %v6332_v12 = vsel %vm10969_vm4, %v9923_v13, %v6331_v34  ;;  %v4730_v40 = vshrl.u32 %v12824_v56, 16  ;;  %v10395_v22 = vld [vmem:[%s15077_s2 + $0x38] sm:$0xff]  }
 0x21e   : > { %v4905_v49 = vpop.permute.xlu1 %4904  ;;  %v7014_v29 = vsel %vm11463_vm0, %v7006_v58, %v7013_v17  ;;  %v3300_v15 = vrot.slane %v12801_v63, 4  ;;  %v3636_v50 = vld [vmem:[#allocation2 + $0x64] sm:$0xf]  ;;  %v12842_v23 = vld [vmem:[#allocation2 + $0x68] sm:$0x7]  ;;  %v4739_v48 = vshrl.u32 %v12826_v21, 16  ;;  %8458 = vmatpush1.bf16.msra.mxu1 %v10395_v22 }
 0x21f   : > { %4999 = vst.msk [vmem:[#allocation3 + $0x10] sm:$0xf] %vm4996_vm14, %v4905_v49  ;;  %v5869_v54 = vpop.permute.xlu0 %5868  ;;  %v3290_v6 = vrot.slane %v3289_v43, 4  ;;  %v12845_v42 = vld [vmem:[#allocation2 + $0xf4] sm:$0xf]  ;;  %v7016_v49 = vshrl.u32 %v6872_v39, 16  ;;  %8459 = vmatprep.subr.bf16.mxu1 %v10569_v0 }
 0x220   : > { %4063 = vrot.lane.b32.xlu1 %v3975_v9, %s10565_s25  ;;  %5962 = vst.msk [vmem:[#allocation3 + $0x18] sm:$0xf] %vm5958_vm15, %v5869_v54  ;;  %v3981_v9 = vrot.slane %v12818_v20, 7  ;;  %v7021_v18 = vshrl.u32 %v6873_v61, 16  ;;  %v6874_v30 = vld [vmem:[#allocation2 + $0xc8] sm:$0xf] }
 0x221   : > { %4930 = vrot.lane.b32.xlu0 %v4723_v14, %s10566_s12  ;;  %7298 = vst.msk [vmem:[#allocation3 + $0x4c] sm:$0xf] %vm786_vm8, %v7014_v29  ;;  %v3309_v14 = vsel %vm11396_vm13, %v3300_v15, %v3308_v52  ;;  %v3299_v1 = vsel %vm11396_vm13, %v3290_v6, %v12801_v63  ;;  %v10381_v19 = vld [vmem:[#allocation3 + $0x14] ss:$8 sps:$4 sm:$0xff]   ;;  %v12857_v27 = vld [vmem:[#allocation2 + $0x60] sm:$0x8] }
 0x222   : > { %v5867_v35 = vpop.permute.xlu1 %5866  ;;  %v3983_v57 = vrot.slane %v3981_v9, 4  ;;  %v9953_v51 = vrot.slane %v7016_v49, 11  ;;  %v12859_v10 = vrot.slane %v7021_v18, 7  ;;  %v7024_v59 = vshll.u32 %v6873_v61, 16  ;;  %v3635_v5 = vld [vmem:[#allocation2 + $0x60] sm:$0xf]  ;;  %10023 = vmatprep.mubr.msk.bf16.mxu0 %vm7898_vm2, %v10381_v19 }
 0x223   : > { %5961 = vst.msk [vmem:[#allocation3 + $0x10] sm:$0xf] %vm5958_vm15, %v5867_v35  ;;  %v6399_v2 = vpop.permute.xlu0 %6398  ;;  %v9860_v35 = vrot.slane %v3851_v32, 11  ;;  %v12862_v62 = vrot.slane %v4730_v40, 7  ;;  %v4742_v63 = vshll.u32 %v12826_v21, 16  ;;  %v4741_v8 = vrot.slane %v4739_v48, 7 }
 0x224   : > { %4928 = vrot.lane.b32.xlu1 %v4714_v46, %s10566_s12  ;;  %6492 = vst.msk [vmem:[#allocation3 + $0x18] sm:$0xf] %vm6488_vm1, %v6399_v2  ;;  %v3853_v46 = vld [vmem:[#allocation2 + $0xe8] sm:$0x7]  ;;  %v4524_v37 = vld [vmem:[#allocation2 + $0xe0] sm:$0x8]  ;;  %v7026_v2 = vor.u32 %v7024_v59, %v12859_v10 }
 0x225   : > { %5892 = vrot.lane.b32.xlu0 %v5637_v33, %s10567_s22  ;;  %v3984_v54 = vrot.slane %v3853_v46, 7  ;;  %v4262_v33 = vrot.slane %v12836_v53, 7  ;;  %v12869_v58 = vld [vmem:[#allocation2 + $0x68] sm:$0xf]  ;;  %v7030_v17 = vshrl.u32 %v6874_v30, 16  ;;  %v7033_v25 = vshll.u32 %v6874_v30, 16 }
 0x226   : > { %v6397_v7 = vpop.permute.xlu1 %6396  ;;  %v4265_v29 = vrot.slane %v12842_v23, 7  ;;  %v5651_v52 = vshll.u32 %v12845_v42, 16  ;;  %v7027_v21 = vsel %vm11463_vm0, %v9953_v51, %v7026_v2  ;;  %v3982_v61 = vsel %vm10969_vm4, %v9860_v35, %v3981_v9  ;;  %v12898_v20 = vld [vmem:[#allocation2 + $0x6c] sm:$0x3]  ;;  %v10398_v59 = vld [vmem:[%s15077_s2 + $0x20] sm:$0xff]  }
 0x227   : > { %6491 = vst.msk [vmem:[#allocation3 + $0x10] sm:$0xf] %vm6488_vm1, %v6397_v7  ;;  %v3517_v60 = vpop.permute.xlu0 %3516  ;;  %v3985_v13 = vsel %vm10969_vm4, %v3983_v57, %v3984_v54  ;;  %v4264_v43 = vrot.slane %v4262_v33, 4  ;;  %v5392_v7 = vld [vmem:[#allocation2 + $0xf8] sm:$0x7]  ;;  %v7032_v6 = vrot.slane %v7030_v17, 7  ;;  %v4744_v32 = vor.u32 %v4742_v63, %v4741_v8 }
 0x228   : > { %5890 = vrot.lane.b32.xlu1 %v5627_v31, %s10567_s22  ;;  %3608 = vst.msk [vmem:[#allocation3 + $0x28] sm:$0xf] %vm3602_vm11, %v3517_v60  ;;  %v10396_v31 = vld [vmem:[%s15077_s2 + $0x30] sm:$0xff]   ;;  %v4733_v46 = vshll.u32 %v12824_v56, 16  ;;  %v5127_v9 = vrot.slane %v12869_v58, 6  ;;  %v10397_v56 = vld [vmem:[%s15077_s2 + $0x28] sm:$0xff]  }
 0x229   : > { %6422 = vrot.lane.b32.xlu0 %v6335_v4, %s10568_s13  ;;  %v5648_v4 = vshrl.u32 %v12845_v42, 16  ;;  %v5390_v60 = vld [vmem:[#allocation2 + $0xf0] sm:$0xc]  ;;  %8460 = vmatpush1.bf16.msra.mxu1 %v10396_v31  ;;  %7299 = vst.msk [vmem:[#allocation3 + $0x54] sm:$0xf] %vm786_vm8, %v7027_v21  ;;  %v7035_v40 = vor.u32 %v7033_v25, %v7032_v6  ;;  %v5653_v22 = vrot.slane %v5651_v52, 7 }
 0x22a   : > { %v3515_v47 = vpop.permute.xlu1 %3514  ;;  %8461 = vmatprep.subr.bf16.mxu1 %v10569_v0  ;;  %v5639_v23 = vshrl.u32 %v5390_v60, 16  ;;  %v5642_v48 = vshll.u32 %v5390_v60, 16  ;;  %v6875_v42 = vld [vmem:[#allocation2 + $0xd0] sm:$0x8]  ;;  %v6876_v54 = vld [vmem:[#allocation2 + $0xd4] sm:$0xf]  ;;  %v4735_v53 = vor.u32 %v4733_v46, %v12862_v62 }
 0x22b   : > { %3607 = vst.msk [vmem:[#allocation3 + $0x20] sm:$0xf] %vm3602_vm11, %v3515_v47  ;;  %v4046_v28 = vpop.permute.xlu0 %4045  ;;  %v7596_v34 = vld [vmem:[#allocation3 + $0x18] sm:$0xff]  ;;  %v9868_v47 = vrot.slane %v12857_v27, 11  ;;  %v5650_v18 = vrot.slane %v5648_v4, 6  ;;  %v5130_v19 = vrot.slane %v12898_v20, 6 }
 0x22c   : > { %6420 = vrot.lane.b32.xlu1 %v6332_v12, %s10568_s13  ;;  %4137 = vst.msk [vmem:[#allocation3 + $0x28] sm:$0xf] %vm4131_vm12, %v4046_v28  ;;  %v7028_v12 = vrot.slane %v12859_v10, 4  ;;  %v4737_v28 = vrot.slane %v12862_v62, 4  ;;  %v6877_v27 = vld [vmem:[#allocation2 + $0xd8] sm:$0xf] }
 0x22d   : > { %3540 = vrot.lane.b32.xlu0 %v3309_v14, %s10564_s24  ;;  %v4725_v14 = vshrl.u32 %v4524_v37, 16  ;;  %8462 = vmatpush1.bf16.msra.mxu1 %v10397_v56  ;;  %v7038_v10 = vshrl.u32 %v6875_v42, 16  ;;  %v5644_v35 = vrot.slane %v5642_v48, 7  ;;  %v7043_v63 = vshrl.u32 %v6876_v54, 16  ;;  %v10399_v4 = vld [vmem:[%s15077_s2 + $0x18] sm:$0xff]  }
 0x22e   : > { %v4044_v11 = vpop.permute.xlu1 %4043  ;;  %v7595_v26 = vld [vmem:[#allocation3 + $0x10] sm:$0xff]  ;;  %v7036_v57 = vsel %vm11463_vm0, %v7028_v12, %v7035_v40  ;;  %8463 = vmatprep.subr.bf16.mxu1 %v10569_v0  ;;  %v4745_v51 = vsel %vm11463_vm0, %v4737_v28, %v4744_v32  ;;  %v12928_v8 = vor.u32 %v5653_v22, %v5650_v18  ;;  %v7046_v62 = vshll.u32 %v6876_v54, 16  ;;  %v6210_v40 = vld [vmem:[#allocation2 + $0xf8] sm:$0x7]  ;;  %v12963_v42 = vld [vmem:[#allocation2 + $0xc4] sm:$0xf] }
 0x22f   : > { %4136 = vst.msk [vmem:[#allocation3 + $0x20] sm:$0xf] %vm4131_vm12, %v4044_v11  ;;  %v4911_v16 = vpop.permute.xlu0 %4910  ;;  %v9983_v55 = vcombine.low %v7595_v26, %v7596_v34  ;;  %v4266_v34 = vsel %vm10969_vm4, %v4264_v43, %v4265_v29  ;;  %v4263_v11 = vsel %vm10969_vm4, %v9868_v47, %v4262_v33  ;;  %v9892_v26 = vrot.slane %v4725_v14, 11  ;;  %v12940_v60 = vld [vmem:[#allocation2 + $0xf4] sm:$0xf] }
 0x230   : > { %3538 = vrot.lane.b32.xlu1 %v3299_v1, %s10564_s24  ;;  %5002 = vst.msk [vmem:[#allocation3 + $0x28] sm:$0xf] %vm4996_vm14, %v4911_v16  ;;  %v5661_v1 = vshll.u32 %v5392_v7, 16  ;;  %v5129_v33 = vrot.slane %v5127_v9, 4  ;;  %v5029_v16 = vld [vmem:[#allocation2 + $0x64] sm:$0xc] }
 0x231   : > { %7988 = vmatmul.mubr.bf16.gmra.mxu0 %v9983_v55  ;;  %3701 = vrot.lane.b32.xlu0 %v3636_v50, %s10564_s24  ;;  %v5658_v50 = vshrl.u32 %v5392_v7, 16  ;;  %7300 = vst.msk [vmem:[#allocation3 + $0x5c] sm:$0xf] %vm786_vm8, %v7036_v57  ;;  %v7052_v17 = vshrl.u32 %v6877_v27, 16  ;;  %v9954_v31 = vrot.slane %v7038_v10, 11  ;;  %v9900_v43 = vrot.slane %v5029_v16, 10 }
 0x232   : > { %v4909_v15 = vpop.permute.xlu1 %4908  ;;  %v5663_v2 = vrot.slane %v5661_v1, 7  ;;  %8464 = vmatpush1.bf16.msra.mxu1 %v10398_v59  ;;  %v7055_v7 = vshll.u32 %v6877_v27, 16  ;;  %v3038_v14 = vld [vmem:[#allocation2 + $0xf4] sm:$0xf]  ;;  %v6338_v56 = vrot.slane %v12940_v60, 7  ;;  %v10401_v59 = vld [vmem:[%s15077_s2 + $0x8] sm:$0xff]  }
 0x233   : > { %5001 = vst.msk [vmem:[#allocation3 + $0x20] sm:$0xf] %vm4996_vm14, %v4909_v15  ;;  %v5873_v39 = vpop.permute.xlu0 %5872  ;;  %v5660_v55 = vrot.slane %v5658_v50, 6  ;;  %8465 = vmatprep.subr.bf16.mxu1 %v10569_v0  ;;  %v7054_v29 = vrot.slane %v7052_v17, 7  ;;  %v4736_v15 = vsel %vm11463_vm0, %v9892_v26, %v4735_v53  ;;  %v10400_v50 = vld [vmem:[%s15077_s2 + $0x10] sm:$0xff]   ;;  %v6341_v53 = vrot.slane %v6210_v40, 7 }
 0x234   : > { %3699 = vrot.lane.b32.xlu1 %v3635_v5, %s10564_s24  ;;  %5964 = vst.msk [vmem:[#allocation3 + $0x28] sm:$0xf] %vm5958_vm15, %v5873_v39  ;;  %v5641_v5 = vrot.slane %v5639_v23, 6  ;;  %v5131_v39 = vsel %vm12000_vm5, %v5129_v33, %v5130_v19  ;;  %v5128_v23 = vsel %vm12000_vm5, %v9900_v43, %v5127_v9  ;;  %v3037_v18 = vld [vmem:[#allocation2 + $0xf0] sm:$0xc]  ;;  %v6619_v33 = vrot.slane %v12963_v42, 7 }
 0x235   : > { %4069 = vrot.lane.b32.xlu0 %v3985_v13, %s10565_s25  ;;  %v7045_v13 = vrot.slane %v7043_v63, 7  ;;  %v5664_v47 = vor.u32 %v5663_v2, %v5660_v55  ;;  %v7057_v46 = vor.u32 %v7055_v7, %v7054_v29  ;;  %v10383_v57 = vld [vmem:[#allocation3 + $0x24] ss:$8 sps:$4 sm:$0xff]   ;;  %v6208_v26 = vld [vmem:[#allocation2 + $0xf0] sm:$0x8]  ;;  %v3311_v10 = vshrl.u32 %v3037_v18, 16 }
 0x236   : > { %v5871_v49 = vpop.permute.xlu1 %5870  ;;  %v5645_v52 = vor.u32 %v5644_v35, %v5641_v5  ;;  %8466 = vmatpush1.bf16.msra.mxu1 %v10399_v4  ;;  %v12969_v19 = vld [vmem:[#allocation2 + $0xc8] sm:$0x7]  ;;  %10024 = vmatprep.mubr.msk.bf16.mxu0 %vm7898_vm2, %v10383_v57  ;;  %v5993_v27 = vld [vmem:[#allocation2 + $0xc4] sm:$0xf]  ;;  %v3314_v35 = vshll.u32 %v3037_v18, 16  ;;  %v6621_v7 = vrot.slane %v6619_v33, 4 }
 0x237   : > { %5963 = vst.msk [vmem:[#allocation3 + $0x20] sm:$0xf] %vm5958_vm15, %v5871_v49  ;;  %v6403_v30 = vpop.permute.xlu0 %6402  ;;  %v7048_v21 = vor.u32 %v7046_v62, %v7045_v13  ;;  %v7050_v12 = vrot.slane %v7045_v13, 4  ;;  %8467 = vmatprep.subr.bf16.mxu1 %v10569_v0  ;;  %v3320_v49 = vshrl.u32 %v3038_v14, 16  ;;  %v6878_v63 = vld [vmem:[#allocation2 + $0xe0] sm:$0x8] }
 0x238   : > { %4067 = vrot.lane.b32.xlu1 %v3982_v61, %s10565_s25  ;;  %6494 = vst.msk [vmem:[#allocation3 + $0x28] sm:$0xf] %vm6488_vm1, %v6403_v30  ;;  %v5656_v61 = vrot.slane %v12928_v8, 4  ;;  %v5646_v48 = vrot.slane %v5645_v52, 4  ;;  %v3039_v30 = vld [vmem:[#allocation2 + $0xf8] sm:$0x7] }
 0x239   : > { %4374 = vrot.lane.b32.xlu0 %v4266_v34, %s10565_s25  ;;  %v7049_v32 = vsel %vm11463_vm0, %v9954_v31, %v7048_v21  ;;  %v7058_v34 = vsel %vm11463_vm0, %v7050_v12, %v7057_v46  ;;  %v3322_v55 = vrot.slane %v3320_v49, 6  ;;  %v3330_v5 = vshrl.u32 %v3039_v30, 16  ;;  %v6879_v17 = vld [vmem:[#allocation2 + $0xe4] sm:$0xf]  ;;  %v6521_v21 = vld [vmem:[#allocation2 + $0xc0] sm:$0x8] }
 0x23a   : > { %v6401_v37 = vpop.permute.xlu1 %6400  ;;  %7301 = vst.msk [vmem:[#allocation3 + $0x64] sm:$0xf] %vm786_vm8, %v7049_v32  ;;  %7302 = vst.msk [vmem:[#allocation3 + $0x6c] sm:$0xf] %vm786_vm8, %v7058_v34  ;;  %v5665_v54 = vsel %vm11396_vm13, %v5656_v61, %v5664_v47  ;;  %8468 = vmatpush1.bf16.msra.mxu1 %v10400_v50  ;;  %v5655_v16 = vsel %vm11396_vm13, %v5646_v48, %v12928_v8  ;;  %v3333_v62 = vshll.u32 %v3039_v30, 16  ;;  %v9924_v13 = vrot.slane %v6208_v26, 11 }
 0x23b   : > { %6493 = vst.msk [vmem:[#allocation3 + $0x20] sm:$0xf] %vm6488_vm1, %v6401_v37  ;;  %v3521_v25 = vpop.permute.xlu0 %3520  ;;  %8469 = vmatprep.subr.bf16.mxu1 %v10569_v0  ;;  %v6622_v43 = vrot.slane %v12969_v19, 7  ;;  %v5992_v8 = vld [vmem:[#allocation2 + $0xc0] sm:$0xf]  ;;  %v3313_v4 = vrot.slane %v3311_v10, 6 }
 0x23c   : > { %4372 = vrot.lane.b32.xlu1 %v4263_v11, %s10565_s25  ;;  %3610 = vst.msk [vmem:[#allocation3 + $0x38] sm:$0xf] %vm3602_vm11, %v3521_v25  ;;  %v3323_v11 = vshll.u32 %v3038_v14, 16  ;;  %v6880_v25 = vld [vmem:[#allocation2 + $0xe8] sm:$0xf]  ;;  %v10402_v52 = vld [vmem:[%s15077_s2] sm:$0xff]  }
 0x23d   : > { %4934 = vrot.lane.b32.xlu0 %v4745_v51, %s10566_s12  ;;  %v6340_v51 = vrot.slane %v6338_v56, 4  ;;  %v3316_v12 = vrot.slane %v3314_v35, 7  ;;  %v7074_v61 = vshrl.u32 %v6880_v25, 16  ;;  %v3332_v46 = vrot.slane %v3330_v5, 6  ;;  %v10405_v49 = vld [vmem:[%s15077_s2 + $0x40] sm:$0xff]  }
 0x23e   : > { %v3519_v6 = vpop.permute.xlu1 %3518  ;;  %v3325_v2 = vrot.slane %v3323_v11, 7  ;;  %8470 = vmatpush1.bf16.msra.mxu1 %v10401_v59  ;;  %v7077_v32 = vshll.u32 %v6880_v25, 16  ;;  %v9932_v48 = vrot.slane %v6521_v21, 11  ;;  %v3855_v11 = vld [vmem:[#allocation2 + $0xf4] sm:$0xf] }
 0x23f   : > { %3609 = vst.msk [vmem:[#allocation3 + $0x30] sm:$0xf] %vm3602_vm11, %v3519_v6  ;;  %v4050_v28 = vpop.permute.xlu0 %4049  ;;  %v7598_v20 = vld [vmem:[#allocation3 + $0x28] sm:$0xff]  ;;  %8471 = vmatprep.subr.bf16.mxu1 %v10569_v0  ;;  %v6342_v29 = vsel %vm10969_vm4, %v6340_v51, %v6341_v53  ;;  %v7065_v6 = vshrl.u32 %v6879_v17, 16  ;;  %v7076_v50 = vrot.slane %v7074_v61, 7  ;;  %v3317_v18 = vor.u32 %v3316_v12, %v3313_v4 }
 0x240   : > { %4932 = vrot.lane.b32.xlu1 %v4736_v15, %s10566_s12  ;;  %4139 = vst.msk [vmem:[#allocation3 + $0x38] sm:$0xf] %vm4131_vm12, %v4050_v28  ;;  %v7060_v15 = vshrl.u32 %v6878_v63, 16  ;;  %v12998_v14 = vor.u32 %v3325_v2, %v3322_v55  ;;  %v3335_v28 = vrot.slane %v3333_v62, 7  ;;  %v13024_v19 = vld [vmem:[#allocation2 + $0xf4] sm:$0xf]  ;;  %v6620_v51 = vsel %vm10969_vm4, %v9932_v48, %v6619_v33 }
 0x241   : > { %5239 = vrot.lane.b32.xlu0 %v5131_v39, %s10566_s12  ;;  %v7068_v39 = vshll.u32 %v6879_v17, 16  ;;  %v7067_v34 = vrot.slane %v7065_v6, 7  ;;  %v3318_v53 = vrot.slane %v3317_v18, 4  ;;  %v3988_v10 = vrot.slane %v3855_v11, 7  ;;  %v3856_v55 = vld [vmem:[#allocation2 + $0xf8] sm:$0x7] }
 0x242   : > { %v4048_v22 = vpop.permute.xlu1 %4047  ;;  %v7597_v1 = vld [vmem:[#allocation3 + $0x20] sm:$0xff]  ;;  %8472 = vmatpush1.bf16.msra.mxu1 %v10402_v52  ;;  %v9955_v40 = vrot.slane %v7060_v15, 11  ;;  %v3328_v60 = vrot.slane %v12998_v14, 4  ;;  %v3336_v30 = vor.u32 %v3335_v28, %v3332_v46  ;;  %v3854_v5 = vld [vmem:[#allocation2 + $0xf0] sm:$0x8]  ;;  %v4752_v42 = vshrl.u32 %v13024_v19, 16 }
 0x243   : > { %4138 = vst.msk [vmem:[#allocation3 + $0x30] sm:$0xf] %vm4131_vm12, %v4048_v22  ;;  %v4915_v58 = vpop.permute.xlu0 %4914  ;;  %v9985_v9 = vcombine.low %v7597_v1, %v7598_v20  ;;  %8487 = vmatprep.subr.bf16.mxu1 %v10569_v0  ;;  %v7070_v22 = vor.u32 %v7068_v39, %v7067_v34  ;;  %v7072_v1 = vrot.slane %v7067_v34, 4  ;;  %v7079_v0 = vor.u32 %v7077_v32, %v7076_v50  ;;  %v4167_v2 = vld [vmem:[#allocation2 + $0x70] sm:$0x8] }
 0x244   : > { %5237 = vrot.lane.b32.xlu1 %v5128_v23, %s10566_s12  ;;  %5004 = vst.msk [vmem:[#allocation3 + $0x38] sm:$0xf] %vm4996_vm14, %v4915_v58  ;;  %v6339_v23 = vsel %vm10969_vm4, %v9924_v13, %v6338_v56  ;;  %v13016_v58 = vld [vmem:[#allocation2 + $0x74] sm:$0xf]  ;;  %v3327_v25 = vsel %vm11396_vm13, %v3318_v53, %v12998_v14  ;;  %v3991_v13 = vrot.slane %v3856_v55, 7  ;;  %v9869_v21 = vrot.slane %v4167_v2, 11 }
 0x245   : > { %7996 = vmatmul.mubr.bf16.gmra.mxu0 %v9985_v9  ;;  %5896 = vrot.lane.b32.xlu0 %v5665_v54, %s10567_s22  ;;  %v6623_v54 = vsel %vm10969_vm4, %v6621_v7, %v6622_v43  ;;  %v7071_v9 = vsel %vm11463_vm0, %v9955_v40, %v7070_v22  ;;  %v7080_v26 = vsel %vm11463_vm0, %v7072_v1, %v7079_v0  ;;  %v4269_v35 = vrot.slane %v13016_v58, 7  ;;  %v3638_v17 = vld [vmem:[#allocation2 + $0x74] sm:$0xf]  ;;  %v4527_v14 = vld [vmem:[#allocation2 + $0xf0] sm:$0x8] }
 0x246   : > { %v4913_v37 = vpop.permute.xlu1 %4912  ;;  %8488 = vmatpush2.bf16.msra.mxu1 %v10405_v49  ;;  %7303 = vst.msk [vmem:[#allocation3 + $0x74] sm:$0xf] %vm786_vm8, %v7071_v9  ;;  %7304 = vst.msk [vmem:[#allocation3 + $0x7c] sm:$0xf] %vm786_vm8, %v7080_v26  ;;  %v9861_v43 = vrot.slane %v3854_v5, 11  ;;  %v13048_v39 = vrot.slane %v4752_v42, 7 }
 0x247   : > { %5003 = vst.msk [vmem:[#allocation3 + $0x30] sm:$0xf] %vm4996_vm14, %v4913_v37  ;;  %v5877_v31 = vpop.permute.xlu0 %5876  ;;  %v4169_v37 = vld [vmem:[#allocation2 + $0x78] sm:$0x7]  ;;  %v10385_v4 = vld [vmem:[#allocation3 + $0x34] ss:$8 sps:$4 sm:$0xff]   ;;  %v4270_v18 = vsel %vm10969_vm4, %v9869_v21, %v4269_v35 }
 0x248   : > { %5894 = vrot.lane.b32.xlu1 %v5655_v16, %s10567_s22  ;;  %5966 = vst.msk [vmem:[#allocation3 + $0x38] sm:$0xf] %vm5958_vm15, %v5877_v31  ;;  %v3337_v16 = vsel %vm11396_vm13, %v3328_v60, %v3336_v30  ;;  %v3990_v31 = vrot.slane %v3988_v10, 4  ;;  %v4271_v15 = vrot.slane %v4269_v35, 4  ;;  %v4272_v52 = vrot.slane %v4169_v37, 7  ;;  %10025 = vmatprep.mubr.msk.bf16.mxu0 %vm7898_vm2, %v10385_v4 }
 0x249   : > { %6058 = vrot.lane.b32.xlu0 %v5993_v27, %s10567_s22  ;;  %v13026_v27 = vld [vmem:[#allocation2 + $0xf8] sm:$0xf]  ;;  %v3637_v46 = vld [vmem:[#allocation2 + $0x70] sm:$0xf]  ;;  %v5395_v32 = vld [vmem:[#allocation2 + $0x108] sm:$0x7]  ;;  %v3989_v40 = vsel %vm10969_vm4, %v9861_v43, %v3988_v10 }
 0x24a   : > { %v5875_v47 = vpop.permute.xlu1 %5874  ;;  %v4761_v62 = vshrl.u32 %v13026_v27, 16  ;;  %v13054_v28 = vld [vmem:[#allocation2 + $0x78] sm:$0xf]  ;;  %v6881_v50 = vld [vmem:[#allocation2 + $0xf0] sm:$0x8]  ;;  %v4273_v49 = vsel %vm10969_vm4, %v4271_v15, %v4272_v52  ;;  %v4747_v22 = vshrl.u32 %v4527_v14, 16 }
 0x24b   : > { %5965 = vst.msk [vmem:[#allocation3 + $0x30] sm:$0xf] %vm5958_vm15, %v5875_v47  ;;  %v6407_v20 = vpop.permute.xlu0 %6406  ;;  %v4764_v47 = vshll.u32 %v13026_v27, 16  ;;  %v5393_v0 = vld [vmem:[#allocation2 + $0x100] sm:$0xc]  ;;  %v4755_v30 = vshll.u32 %v13024_v19, 16 }
 0x24c   : > { %6056 = vrot.lane.b32.xlu1 %v5992_v8, %s10567_s22  ;;  %6496 = vst.msk [vmem:[#allocation3 + $0x38] sm:$0xf] %vm6488_vm1, %v6407_v20  ;;  %v5394_v8 = vld [vmem:[#allocation2 + $0x104] sm:$0xf]  ;;  %v4763_v61 = vrot.slane %v4761_v62, 7  ;;  %v3992_v20 = vsel %vm10969_vm4, %v3990_v31, %v3991_v13  ;;  %v5134_v11 = vrot.slane %v13054_v28, 6 }
 0x24d   : > { %6426 = vrot.lane.b32.xlu0 %v6342_v29, %s10568_s13  ;;  %v5676_v34 = vshrl.u32 %v5394_v8, 16  ;;  %v5679_v1 = vshll.u32 %v5394_v8, 16  ;;  %v5034_v58 = vld [vmem:[#allocation2 + $0x7c] sm:$0x3]  ;;  %v5686_v9 = vshrl.u32 %v5395_v32, 16  ;;  %v5689_v26 = vshll.u32 %v5395_v32, 16 }
 0x24e   : > { %v6405_v57 = vpop.permute.xlu1 %6404  ;;  %v4766_v60 = vor.u32 %v4764_v47, %v4763_v61  ;;  %v7082_v27 = vshrl.u32 %v6881_v50, 16  ;;  %v5667_v10 = vshrl.u32 %v5393_v0, 16  ;;  %v9893_v2 = vrot.slane %v4747_v22, 11  ;;  %v7321_v8 = vld [vmem:[#allocation2 + $0xc4] sm:$0xc] }
 0x24f   : > { %6495 = vst.msk [vmem:[#allocation3 + $0x30] sm:$0xf] %vm6488_vm1, %v6405_v57  ;;  %v3525_v56 = vpop.permute.xlu0 %3524  ;;  %v5678_v53 = vrot.slane %v5676_v34, 6  ;;  %v5681_v19 = vrot.slane %v5679_v1, 7  ;;  %v5136_v42 = vrot.slane %v5134_v11, 4  ;;  %v5137_v62 = vrot.slane %v5034_v58, 6 }
 0x250   : > { %6424 = vrot.lane.b32.xlu1 %v6339_v23, %s10568_s13  ;;  %3612 = vst.msk [vmem:[#allocation3 + $0x48] sm:$0xf] %vm3602_vm11, %v3525_v56  ;;  %v6882_v23 = vld [vmem:[#allocation2 + $0xf4] sm:$0xf]  ;;  %v6883_v56 = vld [vmem:[#allocation2 + $0xf8] sm:$0xf] }
 0x251   : > { %6731 = vrot.lane.b32.xlu0 %v6623_v54, %s10568_s13  ;;  %v4759_v54 = vrot.slane %v13048_v39, 4  ;;  %v9956_v5 = vrot.slane %v7082_v27, 11  ;;  %v5688_v4 = vrot.slane %v5686_v9, 6  ;;  %v5669_v15 = vrot.slane %v5667_v10, 6  ;;  %v7323_v21 = vld [vmem:[#allocation2 + $0xcc] sm:$0x3] }
 0x252   : > { %v3523_v59 = vpop.permute.xlu1 %3522  ;;  %v5691_v61 = vrot.slane %v5689_v26, 7  ;;  %v7422_v34 = vrot.slane %v7323_v21, 6  ;;  %v5138_v22 = vsel %vm12000_vm5, %v5136_v42, %v5137_v62  ;;  %v6213_v58 = vld [vmem:[#allocation2 + $0x108] sm:$0x7] }
 0x253   : > { %3611 = vst.msk [vmem:[#allocation3 + $0x40] sm:$0xf] %vm3602_vm11, %v3523_v59  ;;  %v4054_v63 = vpop.permute.xlu0 %4053  ;;  %v7600_v33 = vld [vmem:[#allocation3 + $0x38] sm:$0xff]  ;;  %v5670_v59 = vshll.u32 %v5393_v0, 16 }
 0x254   : > { %6729 = vrot.lane.b32.xlu1 %v6620_v51, %s10568_s13  ;;  %4141 = vst.msk [vmem:[#allocation3 + $0x48] sm:$0xf] %vm4131_vm12, %v4054_v63  ;;  %v7087_v51 = vshrl.u32 %v6882_v23, 16  ;;  %v7096_v63 = vshrl.u32 %v6883_v56, 16  ;;  %v5692_v0 = vor.u32 %v5691_v61, %v5688_v4 }
 0x255   : > { %3544 = vrot.lane.b32.xlu0 %v3337_v16, %s10564_s24  ;;  %v7090_v16 = vshll.u32 %v6882_v23, 16  ;;  %v5672_v52 = vrot.slane %v5670_v59, 7 }
 0x256   : > { %v4052_v29 = vpop.permute.xlu1 %4051  ;;  %v7599_v7 = vld [vmem:[#allocation3 + $0x30] sm:$0xff]  ;;  %v7089_v35 = vrot.slane %v7087_v51, 7  ;;  %v7098_v43 = vrot.slane %v7096_v63, 7  ;;  %v3042_v63 = vld [vmem:[#allocation2 + $0x108] sm:$0x7] }
 0x257   : > { %4140 = vst.msk [vmem:[#allocation3 + $0x40] sm:$0xf] %vm4131_vm12, %v4052_v29  ;;  %v4919_v12 = vpop.permute.xlu0 %4918  ;;  %v9987_v6 = vcombine.low %v7599_v7, %v7600_v33  ;;  %v5032_v33 = vld [vmem:[#allocation2 + $0x74] sm:$0xc]  ;;  %v7322_v29 = vld [vmem:[#allocation2 + $0xc8] sm:$0xf]  ;;  %v4767_v7 = vsel %vm11463_vm0, %v4759_v54, %v4766_v60  ;;  %v5673_v23 = vor.u32 %v5672_v52, %v5669_v15 }
 0x258   : > { %3542 = vrot.lane.b32.xlu1 %v3327_v25, %s10564_s24  ;;  %5006 = vst.msk [vmem:[#allocation3 + $0x48] sm:$0xf] %vm4996_vm14, %v4919_v12  ;;  %v4757_v25 = vor.u32 %v4755_v30, %v13048_v39  ;;  %v7092_v31 = vor.u32 %v7090_v16, %v7089_v35  ;;  %v7094_v13 = vrot.slane %v7089_v35, 4  ;;  %v7419_v32 = vrot.slane %v7322_v29, 6  ;;  %v3041_v60 = vld [vmem:[#allocation2 + $0x104] sm:$0xf] }
 0x259   : > { %8004 = vmatmul.mubr.bf16.gmra.mxu0 %v9987_v6  ;;  %3705 = vrot.lane.b32.xlu0 %v3638_v17, %s10564_s24  ;;  %v7099_v17 = vshll.u32 %v6883_v56, 16  ;;  %v13081_v6 = vor.u32 %v5681_v19, %v5678_v53  ;;  %v5674_v26 = vrot.slane %v5673_v23, 4  ;;  %v13115_v51 = vld [vmem:[#allocation2 + $0xd4] sm:$0xf]  ;;  %v3040_v53 = vld [vmem:[#allocation2 + $0x100] sm:$0xc] }
 0x25a   : > { %v4917_v48 = vpop.permute.xlu1 %4916  ;;  %v7093_v39 = vsel %vm11463_vm0, %v9956_v5, %v7092_v31  ;;  %v4758_v50 = vsel %vm11463_vm0, %v9893_v2, %v4757_v25  ;;  %v10387_v16 = vld [vmem:[#allocation3 + $0x44] ss:$8 sps:$4 sm:$0xff]   ;;  %v3348_v19 = vshrl.u32 %v3041_v60, 16  ;;  %v3351_v5 = vshll.u32 %v3041_v60, 16  ;;  %v5994_v15 = vld [vmem:[#allocation2 + $0xd0] sm:$0xf] }
 0x25b   : > { %5005 = vst.msk [vmem:[#allocation3 + $0x40] sm:$0xf] %vm4996_vm14, %v4917_v48  ;;  %v5881_v57 = vpop.permute.xlu0 %5880  ;;  %v7101_v47 = vor.u32 %v7099_v17, %v7098_v43  ;;  %v5684_v1 = vrot.slane %v13081_v6, 4  ;;  %10026 = vmatprep.mubr.msk.bf16.mxu0 %vm7898_vm2, %v10387_v16  ;;  %v6626_v2 = vrot.slane %v13115_v51, 7  ;;  %v5683_v42 = vsel %vm11396_vm13, %v5674_v26, %v13081_v6  ;;  %v6524_v6 = vld [vmem:[#allocation2 + $0xd0] sm:$0x8] }
 0x25c   : > { %3703 = vrot.lane.b32.xlu1 %v3637_v46, %s10564_s24  ;;  %5968 = vst.msk [vmem:[#allocation3 + $0x48] sm:$0xf] %vm5958_vm15, %v5881_v57  ;;  %v9964_v46 = vrot.slane %v7321_v8, 10  ;;  %v13100_v57 = vld [vmem:[#allocation2 + $0x104] sm:$0xf]  ;;  %v3339_v17 = vshrl.u32 %v3040_v53, 16 }
 0x25d   : > { %4073 = vrot.lane.b32.xlu0 %v3992_v20, %s10565_s25  ;;  %7305 = vst.msk [vmem:[#allocation3 + $0x84] sm:$0xf] %vm786_vm8, %v7093_v39  ;;  %v9901_v20 = vrot.slane %v5032_v33, 10  ;;  %v6345_v27 = vrot.slane %v13100_v57, 7  ;;  %v6211_v33 = vld [vmem:[#allocation2 + $0x100] sm:$0x8] }
 0x25e   : > { %v5879_v55 = vpop.permute.xlu1 %5878  ;;  %v7420_v48 = vsel %vm12000_vm5, %v9964_v46, %v7419_v32  ;;  %v3342_v25 = vshll.u32 %v3040_v53, 16  ;;  %v3350_v43 = vrot.slane %v3348_v19, 6  ;;  %v3353_v8 = vrot.slane %v3351_v5, 7  ;;  %v13145_v60 = vld [vmem:[#allocation2 + $0x104] sm:$0xf] }
 0x25f   : > { %5967 = vst.msk [vmem:[#allocation3 + $0x40] sm:$0xf] %vm5958_vm15, %v5879_v55  ;;  %v6411_v37 = vpop.permute.xlu0 %6410  ;;  %v5135_v9 = vsel %vm12000_vm5, %v9901_v20, %v5134_v11  ;;  %v5693_v55 = vsel %vm11396_vm13, %v5684_v1, %v5692_v0  ;;  %v5995_v11 = vld [vmem:[#allocation2 + $0xd4] sm:$0xf]  ;;  %v6347_v62 = vrot.slane %v6345_v27, 4  ;;  %v3358_v29 = vshrl.u32 %v3042_v63, 16 }
 0x260   : > { %4071 = vrot.lane.b32.xlu1 %v3989_v40, %s10565_s25  ;;  %6498 = vst.msk [vmem:[#allocation3 + $0x48] sm:$0xf] %vm6488_vm1, %v6411_v37  ;;  %v7102_v40 = vsel %vm11463_vm0, %v7094_v13, %v7101_v47  ;;  %v6348_v37 = vrot.slane %v6213_v58, 7  ;;  %v6526_v13 = vld [vmem:[#allocation2 + $0xd8] sm:$0x7]  ;;  %v9925_v52 = vrot.slane %v6211_v33, 11  ;;  %v13134_v46 = vor.u32 %v3353_v8, %v3350_v43 }
 0x261   : > { %4378 = vrot.lane.b32.xlu0 %v4273_v49, %s10565_s25  ;;  %7306 = vst.msk [vmem:[#allocation3 + $0x8c] sm:$0xf] %vm786_vm8, %v7102_v40  ;;  %v7421_v49 = vrot.slane %v7419_v32, 4  ;;  %7561 = vst.msk [vmem:[#allocation4 + $0x4] sm:$0xf] %vm786_vm8, %v7420_v48  ;;  %v6628_v21 = vrot.slane %v6626_v2, 4 }
 0x262   : > { %v6409_v12 = vpop.permute.xlu1 %6408  ;;  %v3341_v61 = vrot.slane %v3339_v17, 6  ;;  %v3344_v39 = vrot.slane %v3342_v25, 7  ;;  %v3360_v32 = vrot.slane %v3358_v29, 6  ;;  %v6884_v40 = vld [vmem:[#allocation2 + $0x100] sm:$0x8]  ;;  %v9933_v23 = vrot.slane %v6524_v6, 11 }
 0x263   : > { %6497 = vst.msk [vmem:[#allocation3 + $0x40] sm:$0xf] %vm6488_vm1, %v6409_v12  ;;  %v3529_v14 = vpop.permute.xlu0 %3528  ;;  %v7423_v30 = vsel %vm12000_vm5, %v7421_v49, %v7422_v34  ;;  %v6629_v12 = vrot.slane %v6526_v13, 7  ;;  %v6886_v48 = vld [vmem:[#allocation2 + $0x108] sm:$0xf]  ;;  %v6346_v49 = vsel %vm10969_vm4, %v9925_v52, %v6345_v27  ;;  %v7104_v1 = vshrl.u32 %v6884_v40, 16 }
 0x264   : > { %4376 = vrot.lane.b32.xlu1 %v4270_v18, %s10565_s25  ;;  %3614 = vst.msk [vmem:[#allocation3 + $0x58] sm:$0xf] %vm3602_vm11, %v3529_v14  ;;  %v6349_v14 = vsel %vm10969_vm4, %v6347_v62, %v6348_v37  ;;  %v3356_v57 = vrot.slane %v13134_v46, 4  ;;  %v7118_v26 = vshrl.u32 %v6886_v48, 16  ;;  %v13152_v27 = vld [vmem:[#allocation2 + $0x84] sm:$0xf] }
 0x265   : > { %4938 = vrot.lane.b32.xlu0 %v4767_v7, %s10566_s12  ;;  %7562 = vst.msk [vmem:[#allocation4 + $0xc] sm:$0xf] %vm786_vm8, %v7423_v30  ;;  %v3361_v7 = vshll.u32 %v3042_v63, 16  ;;  %v9957_v51 = vrot.slane %v7104_v1, 11  ;;  %v7324_v5 = vld [vmem:[#allocation2 + $0xd4] sm:$0xc] }
 0x266   : > { %v3527_v18 = vpop.permute.xlu1 %3526  ;;  %v7120_v19 = vrot.slane %v7118_v26, 7  ;;  %v7325_v37 = vld [vmem:[#allocation2 + $0xd8] sm:$0xf]  ;;  %v13161_v62 = vld [vmem:[#allocation2 + $0x104] sm:$0xf]  ;;  %v4276_v43 = vrot.slane %v13152_v27, 7 }
 0x267   : > { %3613 = vst.msk [vmem:[#allocation3 + $0x50] sm:$0xf] %vm3602_vm11, %v3527_v18  ;;  %v4058_v54 = vpop.permute.xlu0 %4057  ;;  %v7602_v56 = vld [vmem:[#allocation3 + $0x48] sm:$0xff]  ;;  %v3363_v20 = vrot.slane %v3361_v7, 7  ;;  %v6630_v18 = vsel %vm10969_vm4, %v6628_v21, %v6629_v12  ;;  %v7326_v17 = vld [vmem:[#allocation2 + $0xdc] sm:$0x3] }
 0x268   : > { %4936 = vrot.lane.b32.xlu1 %v4758_v50, %s10566_s12  ;;  %4143 = vst.msk [vmem:[#allocation3 + $0x58] sm:$0xf] %vm4131_vm12, %v4058_v54  ;;  %v6885_v50 = vld [vmem:[#allocation2 + $0x104] sm:$0xf]  ;;  %v13163_v33 = vld [vmem:[#allocation2 + $0x108] sm:$0xf] }
 0x269   : > { %5243 = vrot.lane.b32.xlu0 %v5138_v22, %s10566_s12  ;;  %v3345_v22 = vor.u32 %v3344_v39, %v3341_v61  ;;  %v3364_v54 = vor.u32 %v3363_v20, %v3360_v32  ;;  %v7109_v30 = vshrl.u32 %v6885_v50, 16  ;;  %v3857_v13 = vld [vmem:[#allocation2 + $0x100] sm:$0x8]  ;;  %v9965_v29 = vrot.slane %v7324_v5, 10  ;;  %v4172_v52 = vld [vmem:[#allocation2 + $0x88] sm:$0x7] }
 0x26a   : > { %v4056_v10 = vpop.permute.xlu1 %4055  ;;  %v7601_v59 = vld [vmem:[#allocation3 + $0x40] sm:$0xff]  ;;  %v7426_v12 = vrot.slane %v7325_v37, 6  ;;  %v10389_v39 = vld [vmem:[#allocation3 + $0x54] ss:$8 sps:$4 sm:$0xff]  }
 0x26b   : > { %4142 = vst.msk [vmem:[#allocation3 + $0x50] sm:$0xf] %vm4131_vm12, %v4056_v10  ;;  %v4923_v28 = vpop.permute.xlu0 %4922  ;;  %v9989_v35 = vcombine.low %v7601_v59, %v7602_v56  ;;  %v7112_v56 = vshll.u32 %v6885_v50, 16  ;;  %v7111_v53 = vrot.slane %v7109_v30, 7  ;;  %v7121_v10 = vshll.u32 %v6886_v48, 16 }
 0x26c   : > { %5241 = vrot.lane.b32.xlu1 %v5135_v9, %s10566_s12  ;;  %5008 = vst.msk [vmem:[#allocation3 + $0x58] sm:$0xf] %vm4996_vm14, %v4923_v28  ;;  %v13148_v9 = vld [vmem:[#allocation2 + $0x108] sm:$0x7]  ;;  %v6627_v59 = vsel %vm10969_vm4, %v9933_v23, %v6626_v2  ;;  %v3346_v16 = vrot.slane %v3345_v22, 4  ;;  %v7427_v23 = vsel %vm12000_vm5, %v9965_v29, %v7426_v12  ;;  %v7428_v48 = vrot.slane %v7426_v12, 4 }
 0x26d   : > { %8012 = vmatmul.mubr.bf16.gmra.mxu0 %v9989_v35  ;;  %5900 = vrot.lane.b32.xlu0 %v5693_v55, %s10567_s22  ;;  %v3995_v55 = vrot.slane %v13145_v60, 7  ;;  %v3365_v35 = vsel %vm11396_vm13, %v3356_v57, %v3364_v54  ;;  %v7114_v63 = vor.u32 %v7112_v56, %v7111_v53  ;;  %v7123_v2 = vor.u32 %v7121_v10, %v7120_v19  ;;  %v3639_v40 = vld [vmem:[#allocation2 + $0x80] sm:$0xf]  ;;  %v5397_v50 = vld [vmem:[#allocation2 + $0x114] sm:$0xf] }
 0x26e   : > { %v4921_v31 = vpop.permute.xlu1 %4920  ;;  %v3355_v7 = vsel %vm11396_vm13, %v3346_v16, %v13134_v46  ;;  %v7429_v46 = vrot.slane %v7326_v17, 6  ;;  %10027 = vmatprep.mubr.msk.bf16.mxu0 %vm7898_vm2, %v10389_v39  ;;  %v4170_v22 = vld [vmem:[#allocation2 + $0x80] sm:$0x8]  ;;  %7563 = vst.msk [vmem:[#allocation4 + $0x14] sm:$0xf] %vm786_vm8, %v7427_v23  ;;  %v4786_v57 = vshll.u32 %v13163_v33, 16 }
 0x26f   : > { %5007 = vst.msk [vmem:[#allocation3 + $0x50] sm:$0xf] %vm4996_vm14, %v4921_v31  ;;  %v5885_v4 = vpop.permute.xlu0 %5884  ;;  %v3998_v31 = vrot.slane %v13148_v9, 7  ;;  %v7115_v8 = vsel %vm11463_vm0, %v9957_v51, %v7114_v63  ;;  %v4530_v1 = vld [vmem:[#allocation2 + $0x100] sm:$0x8]  ;;  %v5707_v10 = vshll.u32 %v5397_v50, 16 }
 0x270   : > { %5898 = vrot.lane.b32.xlu1 %v5683_v42, %s10567_s22  ;;  %5970 = vst.msk [vmem:[#allocation3 + $0x58] sm:$0xf] %vm5958_vm15, %v5885_v4  ;;  %v3640_v4 = vld [vmem:[#allocation2 + $0x84] sm:$0xf]  ;;  %v13196_v54 = vld [vmem:[#allocation2 + $0x88] sm:$0xf]  ;;  %v7430_v56 = vsel %vm12000_vm5, %v7428_v48, %v7429_v46 }
 0x271   : > { %6062 = vrot.lane.b32.xlu0 %v5995_v11, %s10567_s22  ;;  %v7116_v11 = vrot.slane %v7111_v53, 4  ;;  %7307 = vst.msk [vmem:[#allocation3 + $0x94] sm:$0xf] %vm786_vm8, %v7115_v8  ;;  %v5396_v30 = vld [vmem:[#allocation2 + $0x110] sm:$0xc]  ;;  %v5704_v53 = vshrl.u32 %v5397_v50, 16 }
 0x272   : > { %v5883_v47 = vpop.permute.xlu1 %5882  ;;  %v5398_v51 = vld [vmem:[#allocation2 + $0x118] sm:$0x7]  ;;  %7564 = vst.msk [vmem:[#allocation4 + $0x1c] sm:$0xf] %vm786_vm8, %v7430_v56  ;;  %v9870_v19 = vrot.slane %v4170_v22, 11  ;;  %v5141_v63 = vrot.slane %v13196_v54, 6 }
 0x273   : > { %5969 = vst.msk [vmem:[#allocation3 + $0x50] sm:$0xf] %vm5958_vm15, %v5883_v47  ;;  %v6415_v34 = vpop.permute.xlu0 %6414  ;;  %v7124_v21 = vsel %vm11463_vm0, %v7116_v11, %v7123_v2  ;;  %v4774_v47 = vshrl.u32 %v13161_v62, 16  ;;  %v5037_v11 = vld [vmem:[#allocation2 + $0x8c] sm:$0x3]  ;;  %v5714_v60 = vshrl.u32 %v5398_v51, 16 }
 0x274   : > { %6060 = vrot.lane.b32.xlu1 %v5994_v15, %s10567_s22  ;;  %6500 = vst.msk [vmem:[#allocation3 + $0x58] sm:$0xf] %vm6488_vm1, %v6415_v34  ;;  %v3997_v15 = vrot.slane %v3995_v55, 4  ;;  %v9862_v34 = vrot.slane %v3857_v13, 11  ;;  %v5717_v37 = vshll.u32 %v5398_v51, 16 }
 0x275   : > { %6430 = vrot.lane.b32.xlu0 %v6349_v14, %s10568_s13  ;;  %v4783_v14 = vshrl.u32 %v13163_v33, 16  ;;  %7308 = vst.msk [vmem:[#allocation3 + $0x9c] sm:$0xf] %vm786_vm8, %v7124_v21  ;;  %v4776_v9 = vrot.slane %v4774_v47, 7  ;;  %v6888_v47 = vld [vmem:[#allocation2 + $0x114] sm:$0xf] }
 0x276   : > { %v6413_v0 = vpop.permute.xlu1 %6412  ;;  %v3996_v16 = vsel %vm10969_vm4, %v9862_v34, %v3995_v55  ;;  %v5698_v55 = vshll.u32 %v5396_v30, 16  ;;  %v5719_v21 = vrot.slane %v5717_v37, 7  ;;  %v13235_v23 = vld [vmem:[#allocation2 + $0x114] sm:$0xf]  ;;  %v6887_v48 = vld [vmem:[#allocation2 + $0x110] sm:$0x8] }
 0x277   : > { %6499 = vst.msk [vmem:[#allocation3 + $0x50] sm:$0xf] %vm6488_vm1, %v6413_v0  ;;  %v3533_v58 = vpop.permute.xlu0 %3532  ;;  %v3999_v0 = vsel %vm10969_vm4, %v3997_v15, %v3998_v31  ;;  %v4785_v26 = vrot.slane %v4783_v14, 7  ;;  %v4781_v2 = vrot.slane %v4776_v9, 4  ;;  %v5709_v31 = vrot.slane %v5707_v10, 7 }
 0x278   : > { %6428 = vrot.lane.b32.xlu1 %v6346_v49, %s10568_s13  ;;  %3616 = vst.msk [vmem:[#allocation3 + $0x68] sm:$0xf] %vm3602_vm11, %v3533_v58  ;;  %v4278_v49 = vrot.slane %v4276_v43, 4  ;;  %v5035_v15 = vld [vmem:[#allocation2 + $0x84] sm:$0xc]  ;;  %v5700_v27 = vrot.slane %v5698_v55, 7 }
 0x279   : > { %6735 = vrot.lane.b32.xlu0 %v6630_v18, %s10568_s13  ;;  %v4279_v18 = vrot.slane %v4172_v52, 7  ;;  %v4788_v17 = vor.u32 %v4786_v57, %v4785_v26  ;;  %v5716_v52 = vrot.slane %v5714_v60, 6  ;;  %v9902_v46 = vrot.slane %v5035_v15, 10  ;;  %v13239_v56 = vld [vmem:[#allocation2 + $0x118] sm:$0x7] }
 0x27a   : > { %v3531_v28 = vpop.permute.xlu1 %3530  ;;  %v7134_v57 = vshll.u32 %v6888_v47, 16  ;;  %v13244_v10 = vld [vmem:[#allocation2 + $0xe4] sm:$0xf] }
 0x27b   : > { %3615 = vst.msk [vmem:[#allocation3 + $0x60] sm:$0xf] %vm3602_vm11, %v3531_v28  ;;  %v4062_v42 = vpop.permute.xlu0 %4061  ;;  %v7604_v25 = vld [vmem:[#allocation3 + $0x58] sm:$0xff]  ;;  %v4280_v5 = vsel %vm10969_vm4, %v4278_v49, %v4279_v18  ;;  %v4769_v28 = vshrl.u32 %v4530_v1, 16  ;;  %v5720_v34 = vor.u32 %v5719_v21, %v5716_v52  ;;  %v7126_v1 = vshrl.u32 %v6887_v48, 16 }
 0x27c   : > { %6733 = vrot.lane.b32.xlu1 %v6627_v59, %s10568_s13  ;;  %4145 = vst.msk [vmem:[#allocation3 + $0x68] sm:$0xf] %vm4131_vm12, %v4062_v42  ;;  %v5695_v42 = vshrl.u32 %v5396_v30, 16  ;;  %v10391_v55 = vld [vmem:[#allocation3 + $0x64] ss:$8 sps:$4 sm:$0xff]  }
 0x27d   : > { %3548 = vrot.lane.b32.xlu0 %v3365_v35, %s10564_s24  ;;  %v4777_v35 = vshll.u32 %v13161_v62, 16  ;;  %v4277_v62 = vsel %vm10969_vm4, %v9870_v19, %v4276_v43  ;;  %v9894_v8 = vrot.slane %v4769_v28, 11  ;;  %v4789_v43 = vsel %vm11463_vm0, %v4781_v2, %v4788_v17  ;;  %v7327_v15 = vld [vmem:[#allocation2 + $0xe4] sm:$0xc]  ;;  %v6214_v21 = vld [vmem:[#allocation2 + $0x110] sm:$0x8] }
 0x27e   : > { %v4060_v6 = vpop.permute.xlu1 %4059  ;;  %v7603_v61 = vld [vmem:[#allocation3 + $0x50] sm:$0xff]  ;;  %v5697_v12 = vrot.slane %v5695_v42, 6 }
 0x27f   : > { %4144 = vst.msk [vmem:[#allocation3 + $0x60] sm:$0xf] %vm4131_vm12, %v4060_v6  ;;  %v4927_v32 = vpop.permute.xlu0 %4926  ;;  %v9991_v20 = vcombine.low %v7603_v61, %v7604_v25  ;;  %v5706_v25 = vrot.slane %v5704_v53, 6  ;;  %v4779_v29 = vor.u32 %v4777_v35, %v4776_v9  ;;  %v6352_v53 = vrot.slane %v13235_v23, 7  ;;  %v3045_v35 = vld [vmem:[#allocation2 + $0x118] sm:$0x7] }
 0x280   : > { %3546 = vrot.lane.b32.xlu1 %v3355_v7, %s10564_s24  ;;  %5010 = vst.msk [vmem:[#allocation3 + $0x68] sm:$0xf] %vm4996_vm14, %v4927_v32  ;;  %v5143_v7 = vrot.slane %v5141_v63, 4  ;;  %v6889_v32 = vld [vmem:[#allocation2 + $0x118] sm:$0xf]  ;;  %v5701_v50 = vor.u32 %v5700_v27, %v5697_v12 }
 0x281   : > { %8020 = vmatmul.mubr.bf16.gmra.mxu0 %v9991_v20  ;;  %3709 = vrot.lane.b32.xlu0 %v3640_v4, %s10564_s24  ;;  %v5144_v4 = vrot.slane %v5037_v11, 6  ;;  %v13225_v61 = vor.u32 %v5709_v31, %v5706_v25  ;;  %v4780_v14 = vsel %vm11463_vm0, %v9894_v8, %v4779_v29  ;;  %v7131_v20 = vshrl.u32 %v6888_v47, 16  ;;  %v3043_v11 = vld [vmem:[#allocation2 + $0x110] sm:$0xc] }
 0x282   : > { %v4925_v58 = vpop.permute.xlu1 %4924  ;;  %v7140_v49 = vshrl.u32 %v6889_v32, 16  ;;  %v7143_v26 = vshll.u32 %v6889_v32, 16  ;;  %v5702_v28 = vrot.slane %v5701_v50, 4  ;;  %10028 = vmatprep.mubr.msk.bf16.mxu0 %vm7898_vm2, %v10391_v55  ;;  %v6354_v8 = vrot.slane %v6352_v53, 4 }
 0x283   : > { %5009 = vst.msk [vmem:[#allocation3 + $0x60] sm:$0xf] %vm4996_vm14, %v4925_v58  ;;  %v5889_v59 = vpop.permute.xlu0 %5888  ;;  %v5712_v22 = vrot.slane %v13225_v61, 4  ;;  %v3044_v58 = vld [vmem:[#allocation2 + $0x114] sm:$0xf]  ;;  %v6355_v29 = vrot.slane %v13239_v56, 7 }
 0x284   : > { %3707 = vrot.lane.b32.xlu1 %v3639_v40, %s10564_s24  ;;  %5972 = vst.msk [vmem:[#allocation3 + $0x68] sm:$0xf] %vm5958_vm15, %v5889_v59  ;;  %v5145_v40 = vsel %vm12000_vm5, %v5143_v7, %v5144_v4  ;;  %v7142_v9 = vrot.slane %v7140_v49, 7  ;;  %v9958_v59 = vrot.slane %v7126_v1, 11  ;;  %v3376_v2 = vshrl.u32 %v3044_v58, 16 }
 0x285   : > { %4077 = vrot.lane.b32.xlu0 %v3999_v0, %s10565_s25  ;;  %v7133_v0 = vrot.slane %v7131_v20, 7  ;;  %v3379_v17 = vshll.u32 %v3044_v58, 16  ;;  %v6633_v7 = vrot.slane %v13244_v10, 7  ;;  %v3386_v4 = vshrl.u32 %v3045_v35, 16  ;;  %v6527_v49 = vld [vmem:[#allocation2 + $0xe0] sm:$0x8] }
 0x286   : > { %v5887_v33 = vpop.permute.xlu1 %5886  ;;  %v7145_v60 = vor.u32 %v7143_v26, %v7142_v9  ;;  %v5711_v52 = vsel %vm11396_vm13, %v5702_v28, %v13225_v61  ;;  %v3367_v12 = vshrl.u32 %v3043_v11, 16  ;;  %v3370_v27 = vshll.u32 %v3043_v11, 16  ;;  %v7329_v58 = vld [vmem:[#allocation2 + $0xec] sm:$0x3] }
 0x287   : > { %5971 = vst.msk [vmem:[#allocation3 + $0x60] sm:$0xf] %vm5958_vm15, %v5887_v33  ;;  %v6419_v13 = vpop.permute.xlu0 %6418  ;;  %v7138_v19 = vrot.slane %v7133_v0, 4  ;;  %v5721_v33 = vsel %vm11396_vm13, %v5712_v22, %v5720_v34  ;;  %v3378_v47 = vrot.slane %v3376_v2, 6  ;;  %v9926_v34 = vrot.slane %v6214_v21, 11  ;;  %v555_v2 = vld [vmem:[%s10736_s16 + $0xf8] sm:$0xff] }
 0x288   : > { %4075 = vrot.lane.b32.xlu1 %v3996_v16, %s10565_s25  ;;  %6502 = vst.msk [vmem:[#allocation3 + $0x68] sm:$0xf] %vm6488_vm1, %v6419_v13  ;;  %v7136_v16 = vor.u32 %v7134_v57, %v7133_v0  ;;  %v7328_v13 = vld [vmem:[#allocation2 + $0xe8] sm:$0xf]  ;;  %v6356_v50 = vsel %vm10969_vm4, %v6354_v8, %v6355_v29  ;;  %v3372_v22 = vrot.slane %v3370_v27, 7  ;;  %v6635_v0 = vrot.slane %v6633_v7, 4 }
 0x289   : > { %4382 = vrot.lane.b32.xlu0 %v4280_v5, %s10565_s25  ;;  %v5142_v5 = vsel %vm12000_vm5, %v9902_v46, %v5141_v63  ;;  %v7146_v63 = vsel %vm11463_vm0, %v7138_v19, %v7145_v60  ;;  %v3389_v46 = vshll.u32 %v3045_v35, 16  ;;  %v7433_v32 = vrot.slane %v7328_v13, 6  ;;  %v13294_v60 = vld [vmem:[#allocation2 + $0x114] sm:$0xf]  ;;  %v3862_v29 = vld [vmem:[#allocation2 + $0x118] sm:$0x7] }
 0x28a   : > { %v6417_v6 = vpop.permute.xlu1 %6416  ;;  %v7137_v25 = vsel %vm11463_vm0, %v9958_v59, %v7136_v16  ;;  %7310 = vst.msk [vmem:[#allocation3 + $0xac] sm:$0xf] %vm786_vm8, %v7146_v63  ;;  %v9934_v10 = vrot.slane %v6527_v49, 11  ;;  %v7436_v16 = vrot.slane %v7329_v58, 6  ;;  %v13313_v63 = vld [vmem:[#allocation2 + $0x118] sm:$0xf]  ;;  %v10172_v13 = vpack.c.bf16 %v555_v2, %v555_v2 }
 0x28b   : > { %6501 = vst.msk [vmem:[#allocation3 + $0x60] sm:$0xf] %vm6488_vm1, %v6417_v6  ;;  %v3537_v39 = vpop.permute.xlu0 %3536  ;;  %v9966_v6 = vrot.slane %v7327_v15, 10  ;;  %v3391_v56 = vrot.slane %v3389_v46, 7  ;;  %v7435_v26 = vrot.slane %v7433_v32, 4 }
 0x28c   : > { %4380 = vrot.lane.b32.xlu1 %v4277_v62, %s10565_s25  ;;  %3618 = vst.msk [vmem:[#allocation3 + $0x78] sm:$0xf] %vm3602_vm11, %v3537_v39  ;;  %v5997_v62 = vld [vmem:[#allocation2 + $0xe4] sm:$0xf]  ;;  %v6529_v39 = vld [vmem:[#allocation2 + $0xe8] sm:$0x7] }
 0x28d   : > { %4942 = vrot.lane.b32.xlu0 %v4789_v43, %s10566_s12  ;;  %7309 = vst.msk [vmem:[#allocation3 + $0xa4] sm:$0xf] %vm786_vm8, %v7137_v25  ;;  %v7434_v61 = vsel %vm12000_vm5, %v9966_v6, %v7433_v32  ;;  %v6636_v48 = vrot.slane %v6529_v39, 7  ;;  %v7437_v23 = vsel %vm12000_vm5, %v7435_v26, %v7436_v16  ;;  %v732_v21 = vrot.slane %v10172_v13, 5  ;;  %v3642_v27 = vld [vmem:[#allocation2 + $0x94] sm:$0xf] }
 0x28e   : > { %v3535_v18 = vpop.permute.xlu1 %3534  ;;  %7565 = vst.msk [vmem:[#allocation4 + $0x24] sm:$0xf] %vm786_vm8, %v7434_v61  ;;  %7566 = vst.msk [vmem:[#allocation4 + $0x2c] sm:$0xf] %vm786_vm8, %v7437_v23  ;;  %v4175_v6 = vld [vmem:[#allocation2 + $0x98] sm:$0x7] }
 0x28f   : > { %3617 = vst.msk [vmem:[#allocation3 + $0x70] sm:$0xf] %vm3602_vm11, %v3535_v18  ;;  %v4066_v30 = vpop.permute.xlu0 %4065  ;;  %v7606_v51 = vld [vmem:[#allocation3 + $0x68] sm:$0xff]  ;;  %v3369_v18 = vrot.slane %v3367_v12, 6  ;;  %v4805_v39 = vshrl.u32 %v13313_v63, 16  ;;  %v4286_v24 = vrot.slane %v4175_v6, 7 }
 0x290   : > { %4940 = vrot.lane.b32.xlu1 %v4780_v14, %s10566_s12  ;;  %4147 = vst.msk [vmem:[#allocation3 + $0x78] sm:$0xf] %vm4131_vm12, %v4066_v30  ;;  %v3381_v14 = vrot.slane %v3379_v17, 7  ;;  %v3388_v30 = vrot.slane %v3386_v4, 6  ;;  %v3860_v4 = vld [vmem:[#allocation2 + $0x110] sm:$0x8] }
 0x291   : > { %5247 = vrot.lane.b32.xlu0 %v5145_v40, %s10566_s12  ;;  %v5996_v40 = vld [vmem:[#allocation2 + $0xe0] sm:$0xf]  ;;  %v3373_v59 = vor.u32 %v3372_v22, %v3369_v18  ;;  %v10393_v46 = vld [vmem:[#allocation3 + $0x74] ss:$8 sps:$4 sm:$0xff]   ;;  %v5400_v49 = vld [vmem:[#allocation2 + $0x124] sm:$0xf] }
 0x292   : > { %v4064_v37 = vpop.permute.xlu1 %4063  ;;  %v7605_v42 = vld [vmem:[#allocation3 + $0x60] sm:$0xff]  ;;  %v13280_v57 = vor.u32 %v3381_v14, %v3378_v47  ;;  %v3392_v35 = vor.u32 %v3391_v56, %v3388_v30  ;;  %v4173_v22 = vld [vmem:[#allocation2 + $0x90] sm:$0x8]  ;;  %v4808_v30 = vshll.u32 %v13313_v63, 16  ;;  %v13337_v56 = vld [vmem:[#allocation2 + $0x98] sm:$0xf] }
 0x293   : > { %4146 = vst.msk [vmem:[#allocation3 + $0x70] sm:$0xf] %vm4131_vm12, %v4064_v37  ;;  %v4931_v54 = vpop.permute.xlu0 %4930  ;;  %v9993_v31 = vcombine.low %v7605_v42, %v7606_v51  ;;  %v6353_v51 = vsel %vm10969_vm4, %v9926_v34, %v6352_v53  ;;  %v554_v53 = vld [vmem:[%s10736_s16 + $0xf0] sm:$0xff]  ;;  %v6634_v42 = vsel %vm10969_vm4, %v9934_v10, %v6633_v7  ;;  %v3374_v55 = vrot.slane %v3373_v59, 4  ;;  %v5399_v10 = vld [vmem:[#allocation2 + $0x120] sm:$0xc] }
 0x294   : > { %5245 = vrot.lane.b32.xlu1 %v5142_v5, %s10566_s12  ;;  %5012 = vst.msk [vmem:[#allocation3 + $0x78] sm:$0xf] %vm4996_vm14, %v4931_v54  ;;  %v6637_v5 = vsel %vm10969_vm4, %v6635_v0, %v6636_v48  ;;  %v3384_v28 = vrot.slane %v13280_v57, 4  ;;  %v10171_v37 = vpack.c.bf16 %v554_v53, %v554_v53  ;;  %v4002_v54 = vrot.slane %v13294_v60, 7 }
 0x295   : > { %8028 = vmatmul.mubr.bf16.gmra.mxu0 %v9993_v31  ;;  %5904 = vrot.lane.b32.xlu0 %v5721_v33, %s10567_s22  ;;  %v13305_v33 = vld [vmem:[#allocation2 + $0x94] sm:$0xf]  ;;  %v3383_v12 = vsel %vm11396_vm13, %v3374_v55, %v13280_v57  ;;  %v9863_v48 = vrot.slane %v3860_v4, 11  ;;  %v4807_v57 = vrot.slane %v4805_v39, 7  ;;  %v5732_v26 = vshrl.u32 %v5400_v49, 16 }
 0x296   : > { %v4929_v43 = vpop.permute.xlu1 %4928  ;;  %v3393_v25 = vsel %vm11396_vm13, %v3384_v28, %v3392_v35  ;;  %v13311_v31 = vld [vmem:[#allocation2 + $0x114] sm:$0xf]  ;;  %v4283_v15 = vrot.slane %v13305_v33, 7  ;;  %v4004_v32 = vrot.slane %v4002_v54, 4  ;;  %10029 = vmatprep.mubr.msk.bf16.mxu0 %vm7898_vm2, %v10393_v46  ;;  %v734_v59 = vrot.slane %v732_v21, 4 }
 0x297   : > { %5011 = vst.msk [vmem:[#allocation3 + $0x70] sm:$0xf] %vm4996_vm14, %v4929_v43  ;;  %v5893_v20 = vpop.permute.xlu0 %5892  ;;  %v4796_v43 = vshrl.u32 %v13311_v31, 16  ;;  %v5401_v28 = vld [vmem:[#allocation2 + $0x128] sm:$0x7]  ;;  %v4799_v60 = vshll.u32 %v13311_v31, 16 }
 0x298   : > { %5902 = vrot.lane.b32.xlu1 %v5711_v52, %s10567_s22  ;;  %5974 = vst.msk [vmem:[#allocation3 + $0x78] sm:$0xf] %vm5958_vm15, %v5893_v20  ;;  %v4005_v20 = vrot.slane %v3862_v29, 7  ;;  %v4285_v18 = vrot.slane %v4283_v15, 4  ;;  %v5148_v23 = vrot.slane %v13337_v56, 6  ;;  %v5723_v55 = vshrl.u32 %v5399_v10, 16 }
 0x299   : > { %6066 = vrot.lane.b32.xlu0 %v5997_v62, %s10567_s22  ;;  %v730_v62 = vrot.slane %v10171_v37, 5  ;;  %v4798_v0 = vrot.slane %v4796_v43, 7  ;;  %834 = vst.msk [vmem:[#allocation2 + $0x158] sm:$0x7] %vm788_vm10, %v734_v59  ;;  %v4810_v37 = vor.u32 %v4808_v30, %v4807_v57  ;;  %v5726_v2 = vshll.u32 %v5399_v10, 16 }
 0x29a   : > { %v5891_v1 = vpop.permute.xlu1 %5890  ;;  %v4287_v35 = vsel %vm10969_vm4, %v4285_v18, %v4286_v24  ;;  %v5742_v63 = vshrl.u32 %v5401_v28, 16  ;;  %v5745_v13 = vshll.u32 %v5401_v28, 16  ;;  %v5150_v4 = vrot.slane %v5148_v23, 4 }
 0x29b   : > { %5973 = vst.msk [vmem:[#allocation3 + $0x70] sm:$0xf] %vm5958_vm15, %v5891_v1  ;;  %v6423_v9 = vpop.permute.xlu0 %6422  ;;  %v731_v52 = vrot.slane %v730_v62, 4  ;;  %v4533_v1 = vld [vmem:[#allocation2 + $0x110] sm:$0x8]  ;;  %v4803_v53 = vrot.slane %v4798_v0, 4 }
 0x29c   : > { %6064 = vrot.lane.b32.xlu1 %v5996_v40, %s10567_s22  ;;  %6504 = vst.msk [vmem:[#allocation3 + $0x78] sm:$0xf] %vm6488_vm1, %v6423_v9  ;;  %v4006_v9 = vsel %vm10969_vm4, %v4004_v32, %v4005_v20  ;;  %v5744_v39 = vrot.slane %v5742_v63, 6  ;;  %v5747_v33 = vrot.slane %v5745_v13, 7 }
 0x29d   : > { %6434 = vrot.lane.b32.xlu0 %v6356_v50, %s10568_s13  ;;  %832 = vst.msk [vmem:[#allocation2 + $0x150] sm:$0x8] %vm784_vm7, %v730_v62  ;;  %v733_v40 = vsel %vm10988_vm9, %v731_v52, %v732_v21  ;;  %v3641_v50 = vld [vmem:[#allocation2 + $0x90] sm:$0xf]  ;;  %v5038_v52 = vld [vmem:[#allocation2 + $0x94] sm:$0xc]  ;;  %v4811_v6 = vsel %vm11463_vm0, %v4803_v53, %v4810_v37 }
 0x29e   : > { %v6421_v19 = vpop.permute.xlu1 %6420  ;;  %833 = vst.msk [vmem:[#allocation2 + $0x154] sm:$0xf] %vm786_vm8, %v733_v40  ;;  %v5725_v21 = vrot.slane %v5723_v55, 6  ;;  %v9903_v46 = vrot.slane %v5038_v52, 10  ;;  %v13370_v40 = vld [vmem:[#allocation2 + $0x124] sm:$0xf]  ;;  %v5748_v24 = vor.u32 %v5747_v33, %v5744_v39 }
 0x29f   : > { %6503 = vst.msk [vmem:[#allocation3 + $0x70] sm:$0xf] %vm6488_vm1, %v6421_v19  ;;  %v3541_v11 = vpop.permute.xlu0 %3540  ;;  %v4003_v19 = vsel %vm10969_vm4, %v9863_v48, %v4002_v54 }
 0x2a0   : > { %6432 = vrot.lane.b32.xlu1 %v6353_v51, %s10568_s13  ;;  %3620 = vst.msk [vmem:[#allocation3 + $0x88] sm:$0xf] %vm3602_vm11, %v3541_v11  ;;  %v5735_v51 = vshll.u32 %v5400_v49, 16  ;;  %v4791_v11 = vshrl.u32 %v4533_v1, 16  ;;  %v3047_v1 = vld [vmem:[#allocation2 + $0x124] sm:$0xf] }
 0x2a1   : > { %6739 = vrot.lane.b32.xlu0 %v6637_v5, %s10568_s13  ;;  %v9871_v5 = vrot.slane %v4173_v22, 11  ;;  %v3407_v53 = vshll.u32 %v3047_v1, 16 }
 0x2a2   : > { %v3539_v17 = vpop.permute.xlu1 %3538  ;;  %v5737_v54 = vrot.slane %v5735_v51, 7  ;;  %v13381_v51 = vld [vmem:[#allocation2 + $0xf4] sm:$0xf] }
 0x2a3   : > { %3619 = vst.msk [vmem:[#allocation3 + $0x80] sm:$0xf] %vm3602_vm11, %v3539_v17  ;;  %v3702_v8 = vpop.permute.xlu0 %3701  ;;  %v7608_v7 = vld [vmem:[#allocation3 + $0x78] sm:$0xff]  ;;  %v4284_v31 = vsel %vm10969_vm4, %v9871_v5, %v4283_v15  ;;  %v6640_v63 = vrot.slane %v13381_v51, 7 }
 0x2a4   : > { %6737 = vrot.lane.b32.xlu1 %v6634_v42, %s10568_s13  ;;  %3796 = vst.msk [vmem:[#allocation4 + $0x8] sm:$0xf] %vm3602_vm11, %v3702_v8  ;;  %v5040_v42 = vld [vmem:[#allocation2 + $0x9c] sm:$0x3]  ;;  %v9895_v8 = vrot.slane %v4791_v11, 11 }
 0x2a5   : > { %3552 = vrot.lane.b32.xlu0 %v3393_v25, %s10564_s24  ;;  %v5734_v25 = vrot.slane %v5732_v26, 6  ;;  %v5151_v29 = vrot.slane %v5040_v42, 6  ;;  %v6359_v26 = vrot.slane %v13370_v40, 7 }
 0x2a6   : > { %v3700_v47 = vpop.permute.xlu1 %3699  ;;  %v7607_v14 = vld [vmem:[#allocation3 + $0x70] sm:$0xff] }
 0x2a7   : > { %3795 = vst.msk [vmem:[#allocation4] sm:$0xf] %vm3602_vm11, %v3700_v47  ;;  %v4070_v34 = vpop.permute.xlu0 %4069  ;;  %v9995_v61 = vcombine.low %v7607_v14, %v7608_v7  ;;  %v4801_v7 = vor.u32 %v4799_v60, %v4798_v0  ;;  %v13362_v43 = vor.u32 %v5737_v54, %v5734_v25  ;;  %v6891_v47 = vld [vmem:[#allocation2 + $0x124] sm:$0xf]  ;;  %v6892_v14 = vld [vmem:[#allocation2 + $0x128] sm:$0xf]  ;;  %v5152_v49 = vsel %vm12000_vm5, %v5150_v4, %v5151_v29 }
 0x2a8   : > { %3550 = vrot.lane.b32.xlu1 %v3383_v12, %s10564_s24  ;;  %4149 = vst.msk [vmem:[#allocation3 + $0x88] sm:$0xf] %vm4131_vm12, %v4070_v34  ;;  %v5728_v12 = vrot.slane %v5726_v2, 7  ;;  %v6890_v34 = vld [vmem:[#allocation2 + $0x120] sm:$0x8]  ;;  %v7156_v30 = vshll.u32 %v6891_v47, 16 }
 0x2a9   : > { %8036 = vmatmul.mubr.bf16.gmra.mxu0 %v9995_v61  ;;  %3713 = vrot.lane.b32.xlu0 %v3642_v27, %s10564_s24  ;;  %v4802_v32 = vsel %vm11463_vm0, %v9895_v8, %v4801_v7  ;;  %v7153_v61 = vshrl.u32 %v6891_v47, 16  ;;  %v5740_v18 = vrot.slane %v13362_v43, 4  ;;  %v7148_v0 = vshrl.u32 %v6890_v34, 16  ;;  %v5999_v25 = vld [vmem:[#allocation2 + $0xf4] sm:$0xf] }
 0x2aa   : > { %v4068_v58 = vpop.permute.xlu1 %4067  ;;  %v5729_v20 = vor.u32 %v5728_v12, %v5725_v21  ;;  %v7165_v10 = vshll.u32 %v6892_v14, 16  ;;  %v3404_v60 = vshrl.u32 %v3047_v1, 16  ;;  %v6361_v54 = vrot.slane %v6359_v26, 4  ;;  %v6217_v29 = vld [vmem:[#allocation2 + $0x120] sm:$0x8] }
 0x2ab   : > { %4148 = vst.msk [vmem:[#allocation3 + $0x80] sm:$0xf] %vm4131_vm12, %v4068_v58  ;;  %v4375_v16 = vpop.permute.xlu0 %4374  ;;  %v7155_v57 = vrot.slane %v7153_v61, 7  ;;  %v5149_v58 = vsel %vm12000_vm5, %v9903_v46, %v5148_v23  ;;  %v5749_v11 = vsel %vm11396_vm13, %v5740_v18, %v5748_v24  ;;  %v3046_v23 = vld [vmem:[#allocation2 + $0x120] sm:$0xc]  ;;  %v6642_v46 = vrot.slane %v6640_v63, 4 }
 0x2ac   : > { %3711 = vrot.lane.b32.xlu1 %v3641_v50, %s10564_s24  ;;  %4469 = vst.msk [vmem:[#allocation4 + $0x8] sm:$0xf] %vm4131_vm12, %v4375_v16  ;;  %v7162_v50 = vshrl.u32 %v6892_v14, 16  ;;  %v5730_v59 = vrot.slane %v5729_v20, 4  ;;  %v3048_v16 = vld [vmem:[#allocation2 + $0x128] sm:$0x7] }
 0x2ad   : > { %4081 = vrot.lane.b32.xlu0 %v4006_v9, %s10565_s25  ;;  %v6219_v9 = vld [vmem:[#allocation2 + $0x128] sm:$0x7]  ;;  %v7158_v5 = vor.u32 %v7156_v30, %v7155_v57  ;;  %v7160_v28 = vrot.slane %v7155_v57, 4  ;;  %v3414_v13 = vshrl.u32 %v3048_v16, 16  ;;  %v3395_v7 = vshrl.u32 %v3046_v23, 16 }
 0x2ae   : > { %v4373_v17 = vpop.permute.xlu1 %4372  ;;  %v7164_v56 = vrot.slane %v7162_v50, 7  ;;  %v6362_v55 = vrot.slane %v6219_v9, 7  ;;  %v5739_v8 = vsel %vm11396_vm13, %v5730_v59, %v13362_v43  ;;  %v3398_v4 = vshll.u32 %v3046_v23, 16  ;;  %v6532_v12 = vld [vmem:[#allocation2 + $0xf8] sm:$0x7] }
 0x2af   : > { %4468 = vst.msk [vmem:[#allocation4] sm:$0xf] %vm4131_vm12, %v4373_v17  ;;  %v4935_v62 = vpop.permute.xlu0 %4934  ;;  %v7331_v17 = vld [vmem:[#allocation2 + $0xf8] sm:$0xf]  ;;  %v3417_v39 = vshll.u32 %v3048_v16, 16  ;;  %v9927_v43 = vrot.slane %v6217_v29, 11 }
 0x2b0   : > { %4079 = vrot.lane.b32.xlu1 %v4003_v19, %s10565_s25  ;;  %5014 = vst.msk [vmem:[#allocation3 + $0x88] sm:$0xf] %vm4996_vm14, %v4935_v62  ;;  %v9959_v19 = vrot.slane %v7148_v0, 11  ;;  %v7167_v37 = vor.u32 %v7165_v10, %v7164_v56  ;;  %v7440_v33 = vrot.slane %v7331_v17, 6  ;;  %v5998_v14 = vld [vmem:[#allocation2 + $0xf0] sm:$0xf]  ;;  %v6363_v50 = vsel %vm10969_vm4, %v6361_v54, %v6362_v55 }
 0x2b1   : > { %4386 = vrot.lane.b32.xlu0 %v4287_v35, %s10565_s25  ;;  %v3397_v20 = vrot.slane %v3395_v7, 6  ;;  %v3400_v34 = vrot.slane %v3398_v4, 7  ;;  %v3416_v18 = vrot.slane %v3414_v13, 6  ;;  %v3419_v24 = vrot.slane %v3417_v39, 7  ;;  %v13424_v16 = vld [vmem:[#allocation2 + $0x124] sm:$0xf] }
 0x2b2   : > { %v4933_v27 = vpop.permute.xlu1 %4932  ;;  %v7159_v2 = vsel %vm11463_vm0, %v9959_v19, %v7158_v5  ;;  %v7168_v62 = vsel %vm11463_vm0, %v7160_v28, %v7167_v37  ;;  %v7442_v0 = vrot.slane %v7440_v33, 4  ;;  %v6360_v57 = vsel %vm10969_vm4, %v9927_v43, %v6359_v26  ;;  %v10403_v37 = vld [vmem:[#allocation3 + $0x84] ss:$8 sps:$4 sm:$0xff]   ;;  %v3863_v13 = vld [vmem:[#allocation2 + $0x120] sm:$0x8] }
 0x2b3   : > { %5013 = vst.msk [vmem:[#allocation3 + $0x80] sm:$0xf] %vm4996_vm14, %v4933_v27  ;;  %v5240_v15 = vpop.permute.xlu0 %5239  ;;  %v3406_v27 = vrot.slane %v3404_v60, 6  ;;  %v3401_v56 = vor.u32 %v3400_v34, %v3397_v20  ;;  %v3420_v59 = vor.u32 %v3419_v24, %v3416_v18  ;;  %v13436_v60 = vld [vmem:[#allocation2 + $0xa4] sm:$0xf]  ;;  %10030 = vmatprep.mubr.msk.bf16.mxu0 %vm7898_vm2, %v10403_v37 }
 0x2b4   : > { %4384 = vrot.lane.b32.xlu1 %v4284_v31, %s10565_s25  ;;  %5334 = vst.msk [vmem:[#allocation4 + $0x8] sm:$0xf] %vm4996_vm14, %v5240_v15  ;;  %v7330_v31 = vld [vmem:[#allocation2 + $0xf4] sm:$0xc]  ;;  %v13440_v55 = vld [vmem:[#allocation2 + $0x124] sm:$0xf] }
 0x2b5   : > { %4946 = vrot.lane.b32.xlu0 %v4811_v6, %s10566_s12  ;;  %7311 = vst.msk [vmem:[#allocation3 + $0xb4] sm:$0xf] %vm786_vm8, %v7159_v2  ;;  %7312 = vst.msk [vmem:[#allocation3 + $0xbc] sm:$0xf] %vm786_vm8, %v7168_v62  ;;  %v9967_v52 = vrot.slane %v7330_v31, 10  ;;  %v3409_v6 = vrot.slane %v3407_v53, 7 }
 0x2b6   : > { %v5238_v48 = vpop.permute.xlu1 %5237  ;;  %v3402_v28 = vrot.slane %v3401_v56, 4  ;;  %v3644_v54 = vld [vmem:[#allocation2 + $0xa4] sm:$0xf]  ;;  %v4178_v62 = vld [vmem:[#allocation2 + $0xa8] sm:$0x7]  ;;  %v4290_v29 = vrot.slane %v13436_v60, 7 }
 0x2b7   : > { %5333 = vst.msk [vmem:[#allocation4] sm:$0xf] %vm4996_vm14, %v5238_v48  ;;  %v5897_v22 = vpop.permute.xlu0 %5896  ;;  %v7441_v47 = vsel %vm12000_vm5, %v9967_v52, %v7440_v33  ;;  %v6530_v48 = vld [vmem:[#allocation2 + $0xf0] sm:$0x8]  ;;  %v4818_v7 = vshrl.u32 %v13440_v55, 16  ;;  %v9864_v33 = vrot.slane %v3863_v13, 11 }
 0x2b8   : > { %4944 = vrot.lane.b32.xlu1 %v4802_v32, %s10566_s12  ;;  %5976 = vst.msk [vmem:[#allocation3 + $0x88] sm:$0xf] %vm5958_vm15, %v5897_v22  ;;  %v6643_v32 = vrot.slane %v6532_v12, 7  ;;  %v7332_v22 = vld [vmem:[#allocation2 + $0xfc] sm:$0x3]  ;;  %v9935_v30 = vrot.slane %v6530_v48, 11 }
 0x2b9   : > { %5251 = vrot.lane.b32.xlu0 %v5152_v49, %s10566_s12  ;;  %7567 = vst.msk [vmem:[#allocation4 + $0x34] sm:$0xf] %vm786_vm8, %v7441_v47  ;;  %v13411_v49 = vor.u32 %v3409_v6, %v3406_v27  ;;  %v5403_v4 = vld [vmem:[#allocation2 + $0x134] sm:$0xf]  ;;  %v10408_v12 = vld [vmem:[#allocation4 + $0x4] ss:$8 sps:$4 sm:$0xff]  }
 0x2ba   : > { %v5895_v35 = vpop.permute.xlu1 %5894  ;;  %v6644_v51 = vsel %vm10969_vm4, %v6642_v46, %v6643_v32  ;;  %v6641_v5 = vsel %vm10969_vm4, %v9935_v30, %v6640_v63  ;;  %v3643_v39 = vld [vmem:[#allocation2 + $0xa0] sm:$0xf]  ;;  %10080 = vmatprep.mubr.msk.bf16.mxu1 %vm7898_vm2, %v10408_v12  ;;  %v5763_v46 = vshll.u32 %v5403_v4, 16  ;;  %v4292_v20 = vrot.slane %v4290_v29, 4  ;;  %v5042_v24 = vld [vmem:[#allocation2 + $0xa8] sm:$0xf] }
 0x2bb   : > { %5975 = vst.msk [vmem:[#allocation3 + $0x80] sm:$0xf] %vm5958_vm15, %v5895_v35  ;;  %v6059_v42 = vpop.permute.xlu0 %6058  ;;  %v3412_v10 = vrot.slane %v13411_v49, 4  ;;  %v3865_v35 = vld [vmem:[#allocation2 + $0x128] sm:$0x7]  ;;  %v3411_v31 = vsel %vm11396_vm13, %v3402_v28, %v13411_v49  ;;  %v4293_v34 = vrot.slane %v4178_v62, 7 }
 0x2bc   : > { %5249 = vrot.lane.b32.xlu1 %v5149_v58, %s10566_s12  ;;  %6153 = vst.msk [vmem:[#allocation4 + $0x8] sm:$0xf] %vm5958_vm15, %v6059_v42  ;;  %v7443_v58 = vrot.slane %v7332_v22, 6  ;;  %v4012_v63 = vrot.slane %v3865_v35, 7  ;;  %v4176_v43 = vld [vmem:[#allocation2 + $0xa0] sm:$0x8] }
 0x2bd   : > { %5908 = vrot.lane.b32.xlu0 %v5749_v11, %s10567_s22  ;;  %v4009_v11 = vrot.slane %v13424_v16, 7  ;;  %v3421_v42 = vsel %vm11396_vm13, %v3412_v10, %v3420_v59  ;;  %v4536_v47 = vld [vmem:[#allocation2 + $0x120] sm:$0x8]  ;;  %v4820_v49 = vrot.slane %v4818_v7, 7  ;;  %v9872_v30 = vrot.slane %v4176_v43, 11 }
 0x2be   : > { %v6057_v21 = vpop.permute.xlu1 %6056  ;;  %v7444_v40 = vsel %vm12000_vm5, %v7442_v0, %v7443_v58  ;;  %v5765_v58 = vrot.slane %v5763_v46, 7  ;;  %v4294_v10 = vsel %vm10969_vm4, %v4292_v20, %v4293_v34  ;;  %v4813_v59 = vshrl.u32 %v4536_v47, 16  ;;  %v5043_v35 = vld [vmem:[#allocation2 + $0xac] sm:$0x3]  ;;  %v13480_v13 = vld [vmem:[#allocation2 + $0x134] sm:$0xf] }
 0x2bf   : > { %6152 = vst.msk [vmem:[#allocation4] sm:$0xf] %vm5958_vm15, %v6057_v21  ;;  %v6427_v15 = vpop.permute.xlu0 %6426  ;;  %v4821_v16 = vshll.u32 %v13440_v55, 16  ;;  %v6893_v46 = vld [vmem:[#allocation2 + $0x130] sm:$0x8] }
 0x2c0   : > { %5906 = vrot.lane.b32.xlu1 %v5739_v8, %s10567_s22  ;;  %6506 = vst.msk [vmem:[#allocation3 + $0x88] sm:$0xf] %vm6488_vm1, %v6427_v15  ;;  %v4011_v8 = vrot.slane %v4009_v11, 4  ;;  %v5402_v15 = vld [vmem:[#allocation2 + $0x130] sm:$0xc] }
 0x2c1   : > { %6070 = vrot.lane.b32.xlu0 %v5999_v25, %s10567_s22  ;;  %7568 = vst.msk [vmem:[#allocation4 + $0x3c] sm:$0xf] %vm786_vm8, %v7444_v40  ;;  %v13443_v25 = vld [vmem:[#allocation2 + $0x128] sm:$0xf]  ;;  %v5751_v22 = vshrl.u32 %v5402_v15, 16 }
 0x2c2   : > { %v6425_v61 = vpop.permute.xlu1 %6424  ;;  %v4827_v27 = vshrl.u32 %v13443_v25, 16  ;;  %v4013_v32 = vsel %vm10969_vm4, %v4011_v8, %v4012_v63  ;;  %v5041_v40 = vld [vmem:[#allocation2 + $0xa4] sm:$0xc]  ;;  %v5158_v63 = vrot.slane %v5043_v35, 6 }
 0x2c3   : > { %6505 = vst.msk [vmem:[#allocation3 + $0x80] sm:$0xf] %vm6488_vm1, %v6425_v61  ;;  %v6732_v1 = vpop.permute.xlu0 %6731  ;;  %v4830_v61 = vshll.u32 %v13443_v25, 16  ;;  %v9904_v37 = vrot.slane %v5041_v40, 10  ;;  %v4823_v25 = vor.u32 %v4821_v16, %v4820_v49 }
 0x2c4   : > { %6068 = vrot.lane.b32.xlu1 %v5998_v14, %s10567_s22  ;;  %6826 = vst.msk [vmem:[#allocation4 + $0x8] sm:$0xf] %vm6488_vm1, %v6732_v1  ;;  %v5760_v14 = vshrl.u32 %v5403_v4, 16  ;;  %v4829_v18 = vrot.slane %v4827_v27, 7  ;;  %v5754_v1 = vshll.u32 %v5402_v15, 16 }
 0x2c5   : > { %6438 = vrot.lane.b32.xlu0 %v6363_v50, %s10568_s13  ;;  %v5404_v50 = vld [vmem:[#allocation2 + $0x138] sm:$0x7] }
 0x2c6   : > { %v6730_v9 = vpop.permute.xlu1 %6729  ;;  %v5762_v56 = vrot.slane %v5760_v14, 6  ;;  %v4832_v28 = vor.u32 %v4830_v61, %v4829_v18  ;;  %v5756_v60 = vrot.slane %v5754_v1, 7  ;;  %v13490_v4 = vld [vmem:[#allocation2 + $0x138] sm:$0x7]  ;;  %v3050_v14 = vld [vmem:[#allocation2 + $0x134] sm:$0xf] }
 0x2c7   : > { %6825 = vst.msk [vmem:[#allocation4] sm:$0xf] %vm6488_vm1, %v6730_v9  ;;  %v3545_v19 = vpop.permute.xlu0 %3544  ;;  %v7610_v26 = vld [vmem:[#allocation3 + $0x88] sm:$0xff]  ;;  %v5770_v9 = vshrl.u32 %v5404_v50, 16 }
 0x2c8   : > { %6436 = vrot.lane.b32.xlu1 %v6360_v57, %s10568_s13  ;;  %3622 = vst.msk [vmem:[#allocation3 + $0x98] sm:$0xf] %vm3602_vm11, %v3545_v19  ;;  %v4010_v57 = vsel %vm10969_vm4, %v9864_v33, %v4009_v11  ;;  %v5155_v19 = vrot.slane %v5042_v24, 6  ;;  %v5753_v11 = vrot.slane %v5751_v22, 6  ;;  %v13498_v33 = vld [vmem:[#allocation2 + $0x104] sm:$0xf] }
 0x2c9   : > { %6743 = vrot.lane.b32.xlu0 %v6644_v51, %s10568_s13  ;;  %v5773_v51 = vshll.u32 %v5404_v50, 16  ;;  %v5772_v55 = vrot.slane %v5770_v9, 6  ;;  %v6647_v22 = vrot.slane %v13498_v33, 7  ;;  %v3432_v9 = vshrl.u32 %v3050_v14, 16 }
 0x2ca   : > { %v3543_v53 = vpop.permute.xlu1 %3542  ;;  %v7609_v23 = vld [vmem:[#allocation3 + $0x80] sm:$0xff]  ;;  %v5156_v12 = vsel %vm12000_vm5, %v9904_v37, %v5155_v19 }
 0x2cb   : > { %3621 = vst.msk [vmem:[#allocation3 + $0x90] sm:$0xf] %vm3602_vm11, %v3543_v53  ;;  %v3706_v2 = vpop.permute.xlu0 %3705  ;;  %v9997_v17 = vcombine.low %v7609_v23, %v7610_v26  ;;  %v4291_v23 = vsel %vm10969_vm4, %v9872_v30, %v4290_v29  ;;  %v5757_v29 = vor.u32 %v5756_v60, %v5753_v11  ;;  %v3049_v60 = vld [vmem:[#allocation2 + $0x130] sm:$0xc] }
 0x2cc   : > { %6741 = vrot.lane.b32.xlu1 %v6641_v5, %s10568_s13  ;;  %3798 = vst.msk [vmem:[#allocation4 + $0x18] sm:$0xf] %vm3602_vm11, %v3706_v2  ;;  %v4825_v5 = vrot.slane %v4820_v49, 4  ;;  %v5775_v2 = vrot.slane %v5773_v51, 7  ;;  %v7170_v49 = vshrl.u32 %v6893_v46, 16 }
 0x2cd   : > { %8044 = vmatmul.mubr.bf16.gmra.mxu0 %v9997_v17  ;;  %3556 = vrot.lane.b32.xlu0 %v3421_v42, %s10564_s24  ;;  %v13477_v42 = vor.u32 %v5765_v58, %v5762_v56  ;;  %v9896_v17 = vrot.slane %v4813_v59, 11  ;;  %v13506_v50 = vrot.slane %v5757_v29, 4  ;;  %v13519_v58 = vld [vmem:[#allocation2 + $0x138] sm:$0x7]  ;;  %v3435_v59 = vshll.u32 %v3050_v14, 16 }
 0x2ce   : > { %v3704_v52 = vpop.permute.xlu1 %3703  ;;  %v10406_v21 = vld [vmem:[#allocation4] ss:$8 sps:$4 sm:$0xff]   ;;  %v4833_v8 = vsel %vm11463_vm0, %v4825_v5, %v4832_v28  ;;  %v9960_v51 = vrot.slane %v7170_v49, 11  ;;  %v3426_v29 = vshll.u32 %v3049_v60, 16 }
 0x2cf   : > { %3797 = vst.msk [vmem:[#allocation4 + $0x10] sm:$0xf] %vm3602_vm11, %v3704_v52  ;;  %v4074_v6 = vpop.permute.xlu0 %4073  ;;  %8490 = vmatmul.mubr.bf16.vlgmr.msra.gmra.mxu1 %v10406_v21  ;;  %v6894_v52 = vld [vmem:[#allocation2 + $0x134] sm:$0xf]  ;;  %v6895_v21 = vld [vmem:[#allocation2 + $0x138] sm:$0xf]  ;;  %v4824_v43 = vsel %vm11463_vm0, %v9896_v17, %v4823_v25  ;;  %v5767_v11 = vsel %vm11396_vm13, %v13506_v50, %v13477_v42 }
 0x2d0   : > { %3554 = vrot.lane.b32.xlu1 %v3411_v31, %s10564_s24  ;;  %4151 = vst.msk [vmem:[#allocation3 + $0x98] sm:$0xf] %vm4131_vm12, %v4074_v6  ;;  %v13485_v31 = vld [vmem:[%s15079_s4] ss:$0 sm:$0xff]  ;;  %v5768_v27 = vrot.slane %v13477_v42, 4  ;;  %v5776_v6 = vor.u32 %v5775_v2, %v5772_v55  ;;  %v7184_v20 = vshrl.u32 %v6895_v21, 16 }
 0x2d1   : > { %3717 = vrot.lane.b32.xlu0 %v3644_v54, %s10564_s24  ;;  %v5157_v54 = vrot.slane %v5155_v19, 4  ;;  %v7187_v40 = vshll.u32 %v6895_v21, 16  ;;  %v6220_v55 = vld [vmem:[#allocation2 + $0x130] sm:$0x8]  ;;  %v3442_v2 = vshrl.u32 %v13519_v58, 16 }
 0x2d2   : > { %v4072_v48 = vpop.permute.xlu1 %4071  ;;  %v5777_v30 = vsel %vm11396_vm13, %v5768_v27, %v5776_v6  ;;  %v6001_v42 = vld [vmem:[#allocation2 + $0x104] sm:$0xf]  ;;  %v6000_v49 = vld [vmem:[#allocation2 + $0x100] sm:$0xf] }
 0x2d3   : > { %4150 = vst.msk [vmem:[#allocation3 + $0x90] sm:$0xf] %vm4131_vm12, %v4072_v48  ;;  %v4379_v0 = vpop.permute.xlu0 %4378  ;;  %v5159_v47 = vsel %vm12000_vm5, %v5157_v54, %v5158_v63  ;;  %v6369_v48 = vrot.slane %v13490_v4, 7  ;;  %v3434_v63 = vrot.slane %v3432_v9, 6 }
 0x2d4   : > { %3715 = vrot.lane.b32.xlu1 %v3643_v39, %s10564_s24  ;;  %4471 = vst.msk [vmem:[#allocation4 + $0x18] sm:$0xf] %vm4131_vm12, %v4379_v0  ;;  %v6366_v39 = vrot.slane %v13480_v13, 7  ;;  %v7178_v0 = vshll.u32 %v6894_v52, 16 }
 0x2d5   : > { %4085 = vrot.lane.b32.xlu0 %v4013_v32, %s10565_s25  ;;  %v7175_v32 = vshrl.u32 %v6894_v52, 16  ;;  %v7333_v52 = vld [vmem:[#allocation2 + $0x104] sm:$0xc] }
 0x2d6   : > { %v4377_v26 = vpop.permute.xlu1 %4376  ;;  %v13517_v56 = vrot.slane %v6366_v39, 4  ;;  %v9968_v14 = vrot.slane %v7333_v52, 10 }
 0x2d7   : > { %4470 = vst.msk [vmem:[#allocation4 + $0x10] sm:$0xf] %vm4131_vm12, %v4377_v26  ;;  %v4939_v53 = vpop.permute.xlu0 %4938  ;;  %v7177_v1 = vrot.slane %v7175_v32, 7  ;;  %v7334_v26 = vld [vmem:[#allocation2 + $0x108] sm:$0xf] }
 0x2d8   : > { %4083 = vrot.lane.b32.xlu1 %v4010_v57, %s10565_s25  ;;  %5016 = vst.msk [vmem:[#allocation3 + $0x98] sm:$0xf] %vm4996_vm14, %v4939_v53  ;;  %v7186_v57 = vrot.slane %v7184_v20, 7  ;;  %v7447_v53 = vrot.slane %v7334_v26, 6 }
 0x2d9   : > { %4390 = vrot.lane.b32.xlu0 %v4294_v10, %s10565_s25  ;;  %v7180_v16 = vor.u32 %v7178_v0, %v7177_v1  ;;  %v7182_v19 = vrot.slane %v7177_v1, 4  ;;  %v3428_v1 = vrot.slane %v3426_v29, 7 }
 0x2da   : > { %v4937_v62 = vpop.permute.xlu1 %4936  ;;  %v7189_v25 = vor.u32 %v7187_v40, %v7186_v57  ;;  %v7449_v21 = vrot.slane %v7447_v53, 4  ;;  %v7448_v50 = vsel %vm12000_vm5, %v9968_v14, %v7447_v53 }
 0x2db   : > { %5015 = vst.msk [vmem:[#allocation3 + $0x90] sm:$0xf] %vm4996_vm14, %v4937_v62  ;;  %v5244_v7 = vpop.permute.xlu0 %5243  ;;  %v7981_v15 = vpop.f32.mrf.mxu0  ;;  %v7181_v17 = vsel %vm11463_vm0, %v9960_v51, %v7180_v16  ;;  %v3445_v62 = vshll.u32 %v13519_v58, 16  ;;  %v6533_v58 = vld [vmem:[#allocation2 + $0x100] sm:$0x8]  ;;  %v3444_v51 = vrot.slane %v3442_v2, 6 }
 0x2dc   : > { %4388 = vrot.lane.b32.xlu1 %v4291_v23, %s10565_s25  ;;  %5336 = vst.msk [vmem:[#allocation4 + $0x18] sm:$0xf] %vm4996_vm14, %v5244_v7  ;;  %v7982_v34 = vadd.f32 %v13485_v31, %v7981_v15  ;;  %v7190_v7 = vsel %vm11463_vm0, %v7182_v19, %v7189_v25  ;;  %v6535_v15 = vld [vmem:[#allocation2 + $0x108] sm:$0x7]  ;;  %v13573_v16 = vld [vmem:[#allocation2 + $0x134] sm:$0xf] }
 0x2dd   : > { %4950 = vrot.lane.b32.xlu0 %v4833_v8, %s10566_s12  ;;  %v7983_v18 = vpop.f32.mrf.mxu0  ;;  %7313 = vst.msk [vmem:[#allocation3 + $0xc4] sm:$0xf] %vm786_vm8, %v7181_v17  ;;  %v3423_v8 = vshrl.u32 %v3049_v60, 16  ;;  %7314 = vst.msk [vmem:[#allocation3 + $0xcc] sm:$0xf] %vm786_vm8, %v7190_v7 }
 0x2de   : > { %v5242_v61 = vpop.permute.xlu1 %5241  ;;  %v8140_v5 = vmul.f32 0.01, %v7982_v34  ;;  %vm8108_vm7 = vcmp.ge.f32.partialorder %v7982_v34, 0.0  ;;  %v6650_v18 = vrot.slane %v6535_v15, 7  ;;  %7569 = vst.msk [vmem:[#allocation4 + $0x44] sm:$0xf] %vm786_vm8, %v7448_v50 }
 0x2df   : > { %5335 = vst.msk [vmem:[#allocation4 + $0x10] sm:$0xf] %vm4996_vm14, %v5242_v61  ;;  %v5901_v24 = vpop.permute.xlu0 %5900  ;;  %v7984_v10 = vpop.f32.mrf.mxu0  ;;  %v6649_v61 = vrot.slane %v6647_v22, 4  ;;  %v3646_v7 = vld [vmem:[#allocation2 + $0xb4] sm:$0xf] }
 0x2e0   : > { %4948 = vrot.lane.b32.xlu1 %v4824_v43, %s10566_s12  ;;  %5978 = vst.msk [vmem:[#allocation3 + $0x98] sm:$0xf] %vm5958_vm15, %v5901_v24  ;;  %v7985_v28 = vadd.f32 %v13485_v31, %v7984_v10  ;;  %v13539_v27 = vsel %vm8108_vm7, %v7982_v34, %v8140_v5  ;;  %v3437_v43 = vrot.slane %v3435_v59, 7  ;;  %v9928_v34 = vrot.slane %v6220_v55, 11  ;;  %v13593_v55 = vld [vmem:[#allocation2 + $0x134] sm:$0xf] }
 0x2e1   : > { %5255 = vrot.lane.b32.xlu0 %v5159_v47, %s10566_s12  ;;  %v7986_v23 = vpop.f32.mrf.mxu0  ;;  %v7335_v47 = vld [vmem:[#allocation2 + $0x10c] sm:$0x3]  ;;  %v3425_v24 = vrot.slane %v3423_v8, 6  ;;  %v3447_v10 = vrot.slane %v3445_v62, 7  ;;  %v6651_v40 = vsel %vm10969_vm4, %v6649_v61, %v6650_v18  ;;  %v5406_v8 = vld [vmem:[#allocation2 + $0x144] sm:$0xf] }
 0x2e2   : > { %v5899_v35 = vpop.permute.xlu1 %5898  ;;  %vm8109_vm9 = vcmp.ge.f32.partialorder %v7985_v28, 0.0  ;;  %v8141_v54 = vmul.f32 0.01, %v7985_v28  ;;  %v7450_v20 = vrot.slane %v7335_v47, 6  ;;  %v13562_v9 = vor.u32 %v3437_v43, %v3434_v63  ;;  %v13598_v63 = vld [vmem:[#allocation2 + $0x138] sm:$0xf] }
 0x2e3   : > { %5977 = vst.msk [vmem:[#allocation3 + $0x90] sm:$0xf] %vm5958_vm15, %v5899_v35  ;;  %v6063_v37 = vpop.permute.xlu0 %6062  ;;  %v6367_v4 = vsel %vm10969_vm4, %v9928_v34, %v6366_v39  ;;  %v3448_v5 = vor.u32 %v3447_v10, %v3444_v51  ;;  %v13581_v39 = vld [vmem:[#allocation2 + $0x138] sm:$0x7]  ;;  %v4016_v35 = vrot.slane %v13573_v16, 7  ;;  %v5791_v10 = vshll.u32 %v5406_v8, 16 }
 0x2e4   : > { %5253 = vrot.lane.b32.xlu1 %v5156_v12, %s10566_s12  ;;  %6155 = vst.msk [vmem:[#allocation4 + $0x18] sm:$0xf] %vm5958_vm15, %v6063_v37  ;;  %v13541_v12 = vsel %vm8109_vm9, %v7985_v28, %v8141_v54  ;;  %v7451_v0 = vsel %vm12000_vm5, %v7449_v21, %v7450_v20  ;;  %v3440_v26 = vrot.slane %v13562_v9, 4  ;;  %v13591_v37 = vld [vmem:[#allocation2 + $0xb4] sm:$0xf]  ;;  %v4019_v21 = vrot.slane %v13581_v39, 7 }
 0x2e5   : > { %5912 = vrot.lane.b32.xlu0 %v5777_v30, %s10567_s22  ;;  %v8974_v46 = vpack.c.bf16 %v13541_v12, %v13539_v27  ;;  %v6370_v30 = vsel %vm10969_vm4, %v13517_v56, %v6369_v48  ;;  %7570 = vst.msk [vmem:[#allocation4 + $0x4c] sm:$0xf] %vm786_vm8, %v7451_v0  ;;  %v9936_v48 = vrot.slane %v6533_v58, 11  ;;  %v3429_v56 = vor.u32 %v3428_v1, %v3425_v24  ;;  %v10409_v54 = vld [vmem:[#allocation3 + $0x94] ss:$8 sps:$4 sm:$0xff]  }
 0x2e6   : > { %v6061_v6 = vpop.permute.xlu1 %6060  ;;  %10031 = vmatprep.mubr.msk.bf16.mxu0 %vm7898_vm2, %v10409_v54  ;;  %v4018_v52 = vrot.slane %v4016_v35, 4  ;;  %v13608_v15 = vld [vmem:[#allocation2 + $0xb8] sm:$0x7]  ;;  %v4297_v14 = vrot.slane %v13591_v37, 7  ;;  %v4849_v20 = vshrl.u32 %v13598_v63, 16  ;;  %v5788_v1 = vshrl.u32 %v5406_v8, 16 }
 0x2e7   : > { %6154 = vst.msk [vmem:[#allocation4 + $0x10] sm:$0xf] %vm5958_vm15, %v6061_v6  ;;  %v6431_v32 = vpop.permute.xlu0 %6430  ;;  %v6648_v53 = vsel %vm10969_vm4, %v9936_v48, %v6647_v22  ;;  %v3430_v23 = vrot.slane %v3429_v56, 4  ;;  %v5405_v34 = vld [vmem:[#allocation2 + $0x140] sm:$0xc]  ;;  %v5793_v54 = vrot.slane %v5791_v10, 7 }
 0x2e8   : > { %5910 = vrot.lane.b32.xlu1 %v5767_v11, %s10567_s22  ;;  %6508 = vst.msk [vmem:[#allocation3 + $0x98] sm:$0xf] %vm6488_vm1, %v6431_v32  ;;  %v13584_v11 = vld [vmem:[#allocation2 + $0x130] sm:$0x8]  ;;  %v4840_v32 = vshrl.u32 %v13593_v55, 16  ;;  %v5782_v48 = vshll.u32 %v5405_v34, 16  ;;  %v4020_v56 = vsel %vm10969_vm4, %v4018_v52, %v4019_v21 }
 0x2e9   : > { %6074 = vrot.lane.b32.xlu0 %v6001_v42, %s10567_s22  ;;  %v3449_v42 = vsel %vm11396_vm13, %v3440_v26, %v3448_v5  ;;  %v9865_v6 = vrot.slane %v13584_v11, 11  ;;  %v3439_v47 = vsel %vm11396_vm13, %v3430_v23, %v13562_v9  ;;  %v10411_v24 = vld [vmem:[#allocation4 + $0x14] ss:$8 sps:$4 sm:$0xff]   ;;  %v3645_v58 = vld [vmem:[#allocation2 + $0xb0] sm:$0xf]  ;;  %v4300_v9 = vrot.slane %v13608_v15, 7 }
 0x2ea   : > { %v6429_v57 = vpop.permute.xlu1 %6428  ;;  %v5407_v51 = vld [vmem:[#allocation2 + $0x148] sm:$0x7]  ;;  %10081 = vmatprep.mubr.msk.bf16.mxu1 %vm7898_vm2, %v10411_v24  ;;  %v4842_v26 = vrot.slane %v4840_v32, 7  ;;  %v4852_v5 = vshll.u32 %v13598_v63, 16  ;;  %v4851_v11 = vrot.slane %v4849_v20, 7  ;;  %v5790_v23 = vrot.slane %v5788_v1, 6 }
 0x2eb   : > { %6507 = vst.msk [vmem:[#allocation3 + $0x90] sm:$0xf] %vm6488_vm1, %v6429_v57  ;;  %v6736_v59 = vpop.permute.xlu0 %6735  ;;  %v5801_v63 = vshll.u32 %v5407_v51, 16  ;;  %v13660_v24 = vld [vmem:[#allocation2 + $0x144] sm:$0xf] }
 0x2ec   : > { %6072 = vrot.lane.b32.xlu1 %v6000_v49, %s10567_s22  ;;  %6828 = vst.msk [vmem:[#allocation4 + $0x18] sm:$0xf] %vm6488_vm1, %v6736_v59  ;;  %v4847_v15 = vrot.slane %v4842_v26, 4  ;;  %v13651_v20 = vor.u32 %v5793_v54, %v5790_v23  ;;  %v6373_v10 = vrot.slane %v13660_v24, 7 }
 0x2ed   : > { %6442 = vrot.lane.b32.xlu0 %v6370_v30, %s10568_s13 }
 0x2ee   : > { %v6734_v19 = vpop.permute.xlu1 %6733 }
 0x2ef   : > { %6827 = vst.msk [vmem:[#allocation4 + $0x10] sm:$0xf] %vm6488_vm1, %v6734_v19  ;;  %v3549_v28 = vpop.permute.xlu0 %3548  ;;  %v7612_v13 = vld [vmem:[#allocation3 + $0x98] sm:$0xff]  ;;  %v4299_v19 = vrot.slane %v4297_v14, 4 }
 0x2f0   : > { %6440 = vrot.lane.b32.xlu1 %v6367_v4, %s10568_s13  ;;  %3624 = vst.msk [vmem:[#allocation3 + $0xa8] sm:$0xf] %vm3602_vm11, %v3549_v28  ;;  %v5779_v4 = vshrl.u32 %v5405_v34, 16  ;;  %v5803_v34 = vrot.slane %v5801_v63, 7  ;;  %v13682_v63 = vld [vmem:[#allocation2 + $0x148] sm:$0x7] }
 0x2f1   : > { %v7989_v60 = vpop.f32.mrf.mxu0  ;;  %6747 = vrot.lane.b32.xlu0 %v6651_v40, %s10568_s13  ;;  %v4179_v40 = vld [vmem:[#allocation2 + $0xb0] sm:$0x8]  ;;  %v4301_v21 = vsel %vm10969_vm4, %v4299_v19, %v4300_v9  ;;  %v6898_v9 = vld [vmem:[#allocation2 + $0x148] sm:$0xf] }
 0x2f2   : > { %v3547_v2 = vpop.permute.xlu1 %3546  ;;  %v7990_v17 = vadd.f32 %v13485_v31, %v7989_v60  ;;  %v7611_v25 = vld [vmem:[#allocation3 + $0x90] sm:$0xff] }
 0x2f3   : > { %3623 = vst.msk [vmem:[#allocation3 + $0xa0] sm:$0xf] %vm3602_vm11, %v3547_v2  ;;  %v7991_v33 = vpop.f32.mrf.mxu0  ;;  %v3710_v62 = vpop.permute.xlu0 %3709  ;;  %v9999_v22 = vcombine.low %v7611_v25, %v7612_v13  ;;  %v7646_v29 = vld [vmem:[#allocation4 + $0x18] sm:$0xff]  ;;  %v4539_v60 = vld [vmem:[#allocation2 + $0x130] sm:$0x8] }
 0x2f4   : > { %6745 = vrot.lane.b32.xlu1 %v6648_v53, %s10568_s13  ;;  %3800 = vst.msk [vmem:[#allocation4 + $0x28] sm:$0xf] %vm3602_vm11, %v3710_v62  ;;  %v8142_v61 = vmul.f32 0.01, %v7990_v17  ;;  %vm8110_vm10 = vcmp.ge.f32.partialorder %v7990_v17, 0.0  ;;  %v5781_v33 = vrot.slane %v5779_v4, 6 }
 0x2f5   : > { %v7992_v43 = vpop.f32.mrf.mxu0  ;;  %8052 = vmatmul.mubr.bf16.gmra.mxu0 %v9999_v22  ;;  %3560 = vrot.lane.b32.xlu0 %v3449_v42, %s10564_s24  ;;  %v13634_v53 = vld [vmem:[#allocation2 + $0xb8] sm:$0xf]  ;;  %v5798_v42 = vshrl.u32 %v5407_v51, 16  ;;  %v5784_v62 = vrot.slane %v5782_v48, 7  ;;  %v4017_v22 = vsel %vm10969_vm4, %v9865_v6, %v4016_v35  ;;  %v4835_v8 = vshrl.u32 %v4539_v60, 16 }
 0x2f6   : > { %v3708_v50 = vpop.permute.xlu1 %3707  ;;  %v7993_v49 = vadd.f32 %v13485_v31, %v7992_v43  ;;  %v7645_v18 = vld [vmem:[#allocation4 + $0x10] sm:$0xff]  ;;  %v13630_v28 = vsel %vm8110_vm10, %v7990_v17, %v8142_v61  ;;  %v9873_v17 = vrot.slane %v4179_v40, 11  ;;  %v4854_v43 = vor.u32 %v4852_v5, %v4851_v11  ;;  %v6896_v40 = vld [vmem:[#allocation2 + $0x140] sm:$0x8] }
 0x2f7   : > { %3799 = vst.msk [vmem:[#allocation4 + $0x20] sm:$0xf] %vm3602_vm11, %v3708_v50  ;;  %v7994_v0 = vpop.f32.mrf.mxu0  ;;  %v4078_v57 = vpop.permute.xlu0 %4077  ;;  %v10041_v30 = vcombine.low %v7645_v18, %v7646_v29  ;;  %v4843_v29 = vshll.u32 %v13593_v55, 16  ;;  %v5800_v16 = vrot.slane %v5798_v42, 6  ;;  %v5044_v55 = vld [vmem:[#allocation2 + $0xb4] sm:$0xc]  ;;  %v5785_v6 = vor.u32 %v5784_v62, %v5781_v33 }
 0x2f8   : > { %vm8111_vm3 = vcmp.ge.f32.partialorder %v7993_v49, 0.0  ;;  %v8143_v59 = vmul.f32 0.01, %v7993_v49  ;;  %3558 = vrot.lane.b32.xlu1 %v3439_v47, %s10564_s24  ;;  %4153 = vst.msk [vmem:[#allocation3 + $0xa8] sm:$0xf] %vm4131_vm12, %v4078_v57  ;;  %v4298_v35 = vsel %vm10969_vm4, %v9873_v17, %v4297_v14  ;;  %v9897_v61 = vrot.slane %v4835_v8, 11 }
 0x2f9   : > { %8498 = vmatmul.mubr.bf16.gmra.mxu1 %v10041_v30  ;;  %3721 = vrot.lane.b32.xlu0 %v3646_v7, %s10564_s24  ;;  %v5162_v7 = vrot.slane %v13634_v53, 6  ;;  %v5046_v47 = vld [vmem:[#allocation2 + $0xbc] sm:$0x3]  ;;  %v4845_v50 = vor.u32 %v4843_v29, %v4842_v26  ;;  %v4855_v0 = vsel %vm11463_vm0, %v4847_v15, %v4854_v43  ;;  %v9905_v57 = vrot.slane %v5044_v55, 10  ;;  %v13692_v8 = vld [vmem:[#allocation2 + $0x114] sm:$0xf] }
 0x2fa   : > { %v13632_v13 = vsel %vm8111_vm3, %v7993_v49, %v8143_v59  ;;  %v4076_v39 = vpop.permute.xlu1 %4075  ;;  %v5165_v18 = vrot.slane %v5046_v47, 6  ;;  %v5796_v14 = vrot.slane %v13651_v20, 4  ;;  %v5804_v30 = vor.u32 %v5803_v34, %v5800_v16  ;;  %v3052_v29 = vld [vmem:[#allocation2 + $0x140] sm:$0xc]  ;;  %v7337_v16 = vld [vmem:[#allocation2 + $0x118] sm:$0xf] }
 0x2fb   : > { %v8975_v2 = vpack.c.bf16 %v13632_v13, %v13630_v28  ;;  %4152 = vst.msk [vmem:[#allocation3 + $0xa0] sm:$0xf] %vm4131_vm12, %v4076_v39  ;;  %v4383_v25 = vpop.permute.xlu0 %4382  ;;  %v5164_v49 = vrot.slane %v5162_v7, 4  ;;  %v13668_v51 = vrot.slane %v5785_v6, 4  ;;  %v7206_v4 = vshrl.u32 %v6898_v9, 16 }
 0x2fc   : > { %3719 = vrot.lane.b32.xlu1 %v3645_v58, %s10564_s24  ;;  %4473 = vst.msk [vmem:[#allocation4 + $0x28] sm:$0xf] %vm4131_vm12, %v4383_v25  ;;  %v6897_v58 = vld [vmem:[#allocation2 + $0x144] sm:$0xf]  ;;  %v7192_v11 = vshrl.u32 %v6896_v40, 16  ;;  %v5163_v54 = vsel %vm12000_vm5, %v9905_v57, %v5162_v7  ;;  %v5805_v42 = vsel %vm11396_vm13, %v5796_v14, %v5804_v30  ;;  %v7209_v33 = vshll.u32 %v6898_v9, 16 }
 0x2fd   : > { %4089 = vrot.lane.b32.xlu0 %v4020_v56, %s10565_s25  ;;  %v7197_v59 = vshrl.u32 %v6897_v58, 16  ;;  %v4846_v56 = vsel %vm11463_vm0, %v9897_v61, %v4845_v50  ;;  %v5166_v19 = vsel %vm12000_vm5, %v5164_v49, %v5165_v18  ;;  %v3053_v39 = vld [vmem:[#allocation2 + $0x144] sm:$0xf]  ;;  %v7200_v53 = vshll.u32 %v6897_v58, 16  ;;  %v3054_v55 = vld [vmem:[#allocation2 + $0x148] sm:$0x7] }
 0x2fe   : > { %v4381_v52 = vpop.permute.xlu1 %4380  ;;  %v7208_v17 = vrot.slane %v7206_v4, 7  ;;  %v5795_v62 = vsel %vm11396_vm13, %v13668_v51, %v13651_v20  ;;  %v9961_v7 = vrot.slane %v7192_v11, 11  ;;  %v3460_v15 = vshrl.u32 %v3053_v39, 16  ;;  %v6003_v57 = vld [vmem:[#allocation2 + $0x114] sm:$0xf] }
 0x2ff   : > { %4472 = vst.msk [vmem:[#allocation4 + $0x20] sm:$0xf] %vm4131_vm12, %v4381_v52  ;;  %v4943_v32 = vpop.permute.xlu0 %4942  ;;  %v7199_v60 = vrot.slane %v7197_v59, 7  ;;  %v3463_v43 = vshll.u32 %v3053_v39, 16  ;;  %v7454_v61 = vrot.slane %v7337_v16, 6  ;;  %v6376_v18 = vrot.slane %v13682_v63, 7 }
 0x300   : > { %4087 = vrot.lane.b32.xlu1 %v4017_v22, %s10565_s25  ;;  %5018 = vst.msk [vmem:[#allocation3 + $0xa8] sm:$0xf] %vm4996_vm14, %v4943_v32  ;;  %v6375_v22 = vrot.slane %v6373_v10, 4  ;;  %v7211_v32 = vor.u32 %v7209_v33, %v7208_v17  ;;  %v3451_v14 = vshrl.u32 %v3052_v29, 16  ;;  %v3454_v30 = vshll.u32 %v3052_v29, 16 }
 0x301   : > { %4394 = vrot.lane.b32.xlu0 %v4301_v21, %s10565_s25  ;;  %v7202_v52 = vor.u32 %v7200_v53, %v7199_v60  ;;  %v7204_v47 = vrot.slane %v7199_v60, 4  ;;  %v3462_v58 = vrot.slane %v3460_v15, 6  ;;  %v3470_v9 = vshrl.u32 %v3054_v55, 16  ;;  %v7336_v59 = vld [vmem:[#allocation2 + $0x114] sm:$0xc] }
 0x302   : > { %v4941_v1 = vpop.permute.xlu1 %4940  ;;  %v3473_v51 = vshll.u32 %v3054_v55, 16  ;;  %v7456_v4 = vrot.slane %v7454_v61, 4  ;;  %v6223_v40 = vld [vmem:[#allocation2 + $0x140] sm:$0x8]  ;;  %v7338_v39 = vld [vmem:[#allocation2 + $0x11c] sm:$0x3]  ;;  %v6377_v17 = vsel %vm10969_vm4, %v6375_v22, %v6376_v18 }
 0x303   : > { %5017 = vst.msk [vmem:[#allocation3 + $0xa0] sm:$0xf] %vm4996_vm14, %v4941_v1  ;;  %v5248_v37 = vpop.permute.xlu0 %5247  ;;  %v7203_v6 = vsel %vm11463_vm0, %v9961_v7, %v7202_v52  ;;  %v6654_v1 = vrot.slane %v13692_v8, 7  ;;  %v9969_v11 = vrot.slane %v7336_v59, 10  ;;  %v6002_v63 = vld [vmem:[#allocation2 + $0x110] sm:$0xf] }
 0x304   : > { %4392 = vrot.lane.b32.xlu1 %v4298_v35, %s10565_s25  ;;  %5338 = vst.msk [vmem:[#allocation4 + $0x28] sm:$0xf] %vm4996_vm14, %v5248_v37  ;;  %v9929_v33 = vrot.slane %v6223_v40, 11  ;;  %v13748_v18 = vld [vmem:[#allocation2 + $0xc4] sm:$0xf] }
 0x305   : > { %v7997_v48 = vpop.f32.mrf.mxu0  ;;  %4954 = vrot.lane.b32.xlu0 %v4855_v0, %s10566_s12  ;;  %v7212_v0 = vsel %vm11463_vm0, %v7204_v47, %v7211_v32  ;;  %7315 = vst.msk [vmem:[#allocation3 + $0xd4] sm:$0xf] %vm786_vm8, %v7203_v6  ;;  %v6656_v29 = vrot.slane %v6654_v1, 4  ;;  %v3475_v47 = vrot.slane %v3473_v51, 7  ;;  %v10413_v59 = vld [vmem:[#allocation3 + $0xa4] ss:$8 sps:$4 sm:$0xff]  }
 0x306   : > { %v5246_v26 = vpop.permute.xlu1 %5245  ;;  %v7998_v5 = vadd.f32 %v13485_v31, %v7997_v48  ;;  %7316 = vst.msk [vmem:[#allocation3 + $0xdc] sm:$0xf] %vm786_vm8, %v7212_v0  ;;  %v6374_v16 = vsel %vm10969_vm4, %v9929_v33, %v6373_v10  ;;  %10032 = vmatprep.mubr.msk.bf16.mxu0 %vm7898_vm2, %v10413_v59 }
 0x307   : > { %5337 = vst.msk [vmem:[#allocation4 + $0x20] sm:$0xf] %vm4996_vm14, %v5246_v26  ;;  %v7999_v23 = vpop.f32.mrf.mxu0  ;;  %v5905_v25 = vpop.permute.xlu0 %5904  ;;  %v3465_v26 = vrot.slane %v3463_v43, 7  ;;  %v3472_v43 = vrot.slane %v3470_v9, 6 }
 0x308   : > { %4952 = vrot.lane.b32.xlu1 %v4846_v56, %s10566_s12  ;;  %5980 = vst.msk [vmem:[#allocation3 + $0xa8] sm:$0xf] %vm5958_vm15, %v5905_v25  ;;  %v8144_v34 = vmul.f32 0.01, %v7998_v5  ;;  %vm8112_vm7 = vcmp.ge.f32.partialorder %v7998_v5, 0.0  ;;  %v7457_v25 = vrot.slane %v7338_v39, 6 }
 0x309   : > { %v8000_v21 = vpop.f32.mrf.mxu0  ;;  %5259 = vrot.lane.b32.xlu0 %v5166_v19, %s10566_s12  ;;  %v6538_v23 = vld [vmem:[#allocation2 + $0x118] sm:$0x7]  ;;  %v13728_v15 = vor.u32 %v3465_v26, %v3462_v58  ;;  %v4304_v26 = vrot.slane %v13748_v18, 7  ;;  %v5409_v39 = vld [vmem:[#allocation2 + $0x154] sm:$0xf] }
 0x30a   : > { %v5903_v35 = vpop.permute.xlu1 %5902  ;;  %v8001_v20 = vadd.f32 %v13485_v31, %v8000_v21  ;;  %v13709_v48 = vsel %vm8112_vm7, %v7998_v5, %v8144_v34  ;;  %v3453_v5 = vrot.slane %v3451_v14, 6  ;;  %v6657_v52 = vrot.slane %v6538_v23, 7  ;;  %v6536_v21 = vld [vmem:[#allocation2 + $0x110] sm:$0x8]  ;;  %v13755_v14 = vld [vmem:[#allocation2 + $0x140] sm:$0x8] }
 0x30b   : > { %5979 = vst.msk [vmem:[#allocation3 + $0xa0] sm:$0xf] %vm5958_vm15, %v5903_v35  ;;  %v8002_v50 = vpop.f32.mrf.mxu0  ;;  %v6067_v49 = vpop.permute.xlu0 %6066  ;;  %v9937_v34 = vrot.slane %v6536_v21, 11  ;;  %v13739_v35 = vld [vmem:[#allocation2 + $0x144] sm:$0xf]  ;;  %v3468_v6 = vrot.slane %v13728_v15, 4 }
 0x30c   : > { %vm8113_vm9 = vcmp.ge.f32.partialorder %v8001_v20, 0.0  ;;  %v8145_v37 = vmul.f32 0.01, %v8001_v20  ;;  %5257 = vrot.lane.b32.xlu1 %v5163_v54, %s10566_s12  ;;  %6157 = vst.msk [vmem:[#allocation4 + $0x28] sm:$0xf] %vm5958_vm15, %v6067_v49  ;;  %v3456_v54 = vrot.slane %v3454_v30, 7  ;;  %v6658_v55 = vsel %vm10969_vm4, %v6656_v29, %v6657_v52 }
 0x30d   : > { %5916 = vrot.lane.b32.xlu0 %v5805_v42, %s10567_s22  ;;  %v7455_v42 = vsel %vm12000_vm5, %v9969_v11, %v7454_v61  ;;  %v3476_v61 = vor.u32 %v3475_v47, %v3472_v43  ;;  %v4023_v10 = vrot.slane %v13739_v35, 7  ;;  %v13757_v30 = vld [vmem:[#allocation2 + $0x144] sm:$0xf]  ;;  %v5408_v29 = vld [vmem:[#allocation2 + $0x150] sm:$0xc]  ;;  %v5816_v47 = vshrl.u32 %v5409_v39, 16 }
 0x30e   : > { %v13711_v56 = vsel %vm8113_vm9, %v8001_v20, %v8145_v37  ;;  %v6065_v19 = vpop.permute.xlu1 %6064  ;;  %7571 = vst.msk [vmem:[#allocation4 + $0x54] sm:$0xf] %vm786_vm8, %v7455_v42  ;;  %v3457_v32 = vor.u32 %v3456_v54, %v3453_v5  ;;  %v6655_v37 = vsel %vm10969_vm4, %v9937_v34, %v6654_v1  ;;  %v9866_v5 = vrot.slane %v13755_v14, 11  ;;  %v10415_v43 = vld [vmem:[#allocation4 + $0x24] ss:$8 sps:$4 sm:$0xff]  }
 0x30f   : > { %v8976_v60 = vpack.c.bf16 %v13711_v56, %v13709_v48  ;;  %6156 = vst.msk [vmem:[#allocation4 + $0x20] sm:$0xf] %vm5958_vm15, %v6065_v19  ;;  %v6435_v53 = vpop.permute.xlu0 %6434  ;;  %v13762_v19 = vld [vmem:[#allocation2 + $0x148] sm:$0xf]  ;;  %v4025_v23 = vrot.slane %v4023_v10, 4  ;;  %v4306_v34 = vrot.slane %v4304_v26, 4  ;;  %10082 = vmatprep.mubr.msk.bf16.mxu1 %vm7898_vm2, %v10415_v43 }
 0x310   : > { %5914 = vrot.lane.b32.xlu1 %v5795_v62, %s10567_s22  ;;  %6510 = vst.msk [vmem:[#allocation3 + $0xa8] sm:$0xf] %vm6488_vm1, %v6435_v53  ;;  %v7458_v62 = vsel %vm12000_vm5, %v7456_v4, %v7457_v25  ;;  %v3458_v49 = vrot.slane %v3457_v32, 4  ;;  %v3477_v4 = vsel %vm11396_vm13, %v3468_v6, %v3476_v61  ;;  %v3648_v53 = vld [vmem:[#allocation2 + $0xc4] sm:$0xf]  ;;  %v4871_v33 = vshrl.u32 %v13762_v19, 16 }
 0x311   : > { %6078 = vrot.lane.b32.xlu0 %v6003_v57, %s10567_s22  ;;  %7572 = vst.msk [vmem:[#allocation4 + $0x5c] sm:$0xf] %vm786_vm8, %v7458_v62  ;;  %v3871_v57 = vld [vmem:[#allocation2 + $0x148] sm:$0x7]  ;;  %v5810_v14 = vshll.u32 %v5408_v29, 16 }
 0x312   : > { %v6433_v7 = vpop.permute.xlu1 %6432  ;;  %v4026_v25 = vrot.slane %v3871_v57, 7  ;;  %v3467_v42 = vsel %vm11396_vm13, %v3458_v49, %v13728_v15  ;;  %v3647_v15 = vld [vmem:[#allocation2 + $0xc0] sm:$0xf]  ;;  %v5807_v57 = vshrl.u32 %v5408_v29, 16 }
 0x313   : > { %6509 = vst.msk [vmem:[#allocation3 + $0xa0] sm:$0xf] %vm6488_vm1, %v6433_v7  ;;  %v6740_v22 = vpop.permute.xlu0 %6739 }
 0x314   : > { %6076 = vrot.lane.b32.xlu1 %v6002_v63, %s10567_s22  ;;  %6830 = vst.msk [vmem:[#allocation4 + $0x28] sm:$0xf] %vm6488_vm1, %v6740_v22  ;;  %v4184_v63 = vld [vmem:[#allocation2 + $0xc8] sm:$0x7]  ;;  %v4027_v61 = vsel %vm10969_vm4, %v4025_v23, %v4026_v25  ;;  %v4865_v25 = vshll.u32 %v13757_v30, 16 }
 0x315   : > { %6446 = vrot.lane.b32.xlu0 %v6377_v17, %s10568_s13  ;;  %v4862_v17 = vshrl.u32 %v13757_v30, 16 }
 0x316   : > { %v6738_v20 = vpop.permute.xlu1 %6737 }
 0x317   : > { %6829 = vst.msk [vmem:[#allocation4 + $0x20] sm:$0xf] %vm6488_vm1, %v6738_v20  ;;  %v3553_v50 = vpop.permute.xlu0 %3552  ;;  %v7614_v24 = vld [vmem:[#allocation3 + $0xa8] sm:$0xff]  ;;  %v4182_v20 = vld [vmem:[#allocation2 + $0xc0] sm:$0x8]  ;;  %v4864_v49 = vrot.slane %v4862_v17, 7 }
 0x318   : > { %6444 = vrot.lane.b32.xlu1 %v6374_v16, %s10568_s13  ;;  %3626 = vst.msk [vmem:[#allocation3 + $0xb8] sm:$0xf] %vm3602_vm11, %v3553_v50  ;;  %v4307_v50 = vrot.slane %v4184_v63, 7  ;;  %v5809_v63 = vrot.slane %v5807_v57, 6  ;;  %v5812_v17 = vrot.slane %v5810_v14, 7 }
 0x319   : > { %v8005_v0 = vpop.f32.mrf.mxu0  ;;  %6751 = vrot.lane.b32.xlu0 %v6658_v55, %s10568_s13  ;;  %v5819_v55 = vshll.u32 %v5409_v39, 16 }
 0x31a   : > { %v3551_v58 = vpop.permute.xlu1 %3550  ;;  %v8006_v9 = vadd.f32 %v13485_v31, %v8005_v0  ;;  %v7613_v51 = vld [vmem:[#allocation3 + $0xa0] sm:$0xff]  ;;  %v4874_v0 = vshll.u32 %v13762_v19, 16  ;;  %v4308_v29 = vsel %vm10969_vm4, %v4306_v34, %v4307_v50 }
 0x31b   : > { %3625 = vst.msk [vmem:[#allocation3 + $0xb0] sm:$0xf] %vm3602_vm11, %v3551_v58  ;;  %v8007_v8 = vpop.f32.mrf.mxu0  ;;  %v3714_v40 = vpop.permute.xlu0 %3713  ;;  %v10001_v1 = vcombine.low %v7613_v51, %v7614_v24  ;;  %v7648_v11 = vld [vmem:[#allocation4 + $0x28] sm:$0xff]  ;;  %v5410_v24 = vld [vmem:[#allocation2 + $0x158] sm:$0x7]  ;;  %v5821_v19 = vrot.slane %v5819_v55, 7 }
 0x31c   : > { %6749 = vrot.lane.b32.xlu1 %v6655_v37, %s10568_s13  ;;  %3802 = vst.msk [vmem:[#allocation4 + $0x38] sm:$0xf] %vm3602_vm11, %v3714_v40  ;;  %v8146_v62 = vmul.f32 0.01, %v8006_v9  ;;  %vm8114_vm10 = vcmp.ge.f32.partialorder %v8006_v9, 0.0  ;;  %v5818_v40 = vrot.slane %v5816_v47, 6 }
 0x31d   : > { %v8008_v54 = vpop.f32.mrf.mxu0  ;;  %8060 = vmatmul.mubr.bf16.gmra.mxu0 %v10001_v1  ;;  %3564 = vrot.lane.b32.xlu0 %v3477_v4, %s10564_s24  ;;  %v4542_v37 = vld [vmem:[#allocation2 + $0x140] sm:$0x8]  ;;  %v4873_v4 = vrot.slane %v4871_v33, 7  ;;  %v5048_v8 = vld [vmem:[#allocation2 + $0xc8] sm:$0xf] }
 0x31e   : > { %v3712_v7 = vpop.permute.xlu1 %3711  ;;  %v8009_v52 = vadd.f32 %v13485_v31, %v8008_v54  ;;  %v7647_v21 = vld [vmem:[#allocation4 + $0x20] sm:$0xff]  ;;  %v13790_v58 = vsel %vm8114_vm10, %v8006_v9, %v8146_v62  ;;  %v9874_v9 = vrot.slane %v4182_v20, 11  ;;  %v4857_v23 = vshrl.u32 %v4542_v37, 16  ;;  %v13820_v55 = vld [vmem:[#allocation2 + $0x154] sm:$0xf] }
 0x31f   : > { %3801 = vst.msk [vmem:[#allocation4 + $0x30] sm:$0xf] %vm3602_vm11, %v3712_v7  ;;  %v8010_v22 = vpop.f32.mrf.mxu0  ;;  %v4082_v32 = vpop.permute.xlu0 %4081  ;;  %v10043_v16 = vcombine.low %v7647_v21, %v7648_v11  ;;  %v5826_v11 = vshrl.u32 %v5410_v24, 16  ;;  %v4024_v54 = vsel %vm10969_vm4, %v9866_v5, %v4023_v10  ;;  %v4869_v62 = vrot.slane %v4864_v49, 4  ;;  %v5047_v21 = vld [vmem:[#allocation2 + $0xc4] sm:$0xc] }
 0x320   : > { %vm8115_vm3 = vcmp.ge.f32.partialorder %v8009_v52, 0.0  ;;  %v8147_v6 = vmul.f32 0.01, %v8009_v52  ;;  %3562 = vrot.lane.b32.xlu1 %v3467_v42, %s10564_s24  ;;  %4155 = vst.msk [vmem:[#allocation3 + $0xb8] sm:$0xf] %vm4131_vm12, %v4082_v32  ;;  %v5169_v42 = vrot.slane %v5048_v8, 6  ;;  %v4876_v7 = vor.u32 %v4874_v0, %v4873_v4 }
 0x321   : > { %8506 = vmatmul.mubr.bf16.gmra.mxu1 %v10043_v16  ;;  %3725 = vrot.lane.b32.xlu0 %v3648_v53, %s10564_s24  ;;  %v5829_v53 = vshll.u32 %v5410_v24, 16  ;;  %v13809_v43 = vor.u32 %v5821_v19, %v5818_v40  ;;  %v5828_v35 = vrot.slane %v5826_v11, 6  ;;  %v4305_v10 = vsel %vm10969_vm4, %v9874_v9, %v4304_v26  ;;  %v13817_v32 = vld [vmem:[#allocation2 + $0x154] sm:$0xf]  ;;  %v6901_v0 = vld [vmem:[#allocation2 + $0x158] sm:$0xf] }
 0x322   : > { %v13793_v51 = vsel %vm8115_vm3, %v8009_v52, %v8147_v6  ;;  %v4080_v59 = vpop.permute.xlu1 %4079  ;;  %v5049_v52 = vld [vmem:[#allocation2 + $0xcc] sm:$0x3]  ;;  %v9898_v5 = vrot.slane %v4857_v23, 11  ;;  %v4867_v22 = vor.u32 %v4865_v25, %v4864_v49  ;;  %v5171_v16 = vrot.slane %v5169_v42, 4  ;;  %v6900_v49 = vld [vmem:[#allocation2 + $0x154] sm:$0xf] }
 0x323   : > { %v8977_v1 = vpack.c.bf16 %v13793_v51, %v13790_v58  ;;  %4154 = vst.msk [vmem:[#allocation3 + $0xb0] sm:$0xf] %vm4131_vm12, %v4080_v59  ;;  %v4387_v39 = vpop.permute.xlu0 %4386  ;;  %v5831_v47 = vrot.slane %v5829_v53, 7  ;;  %v9906_v34 = vrot.slane %v5047_v21, 10  ;;  %v5813_v20 = vor.u32 %v5812_v17, %v5809_v63  ;;  %v13829_v37 = vld [vmem:[#allocation2 + $0x158] sm:$0x7] }
 0x324   : > { %3723 = vrot.lane.b32.xlu1 %v3647_v15, %s10564_s24  ;;  %4475 = vst.msk [vmem:[#allocation4 + $0x38] sm:$0xf] %vm4131_vm12, %v4387_v39  ;;  %v5172_v15 = vrot.slane %v5049_v52, 6  ;;  %v5824_v26 = vrot.slane %v13809_v43, 4  ;;  %v6380_v24 = vrot.slane %v13817_v32, 7  ;;  %v3488_v57 = vshrl.u32 %v13820_v55, 16 }
 0x325   : > { %4093 = vrot.lane.b32.xlu0 %v4027_v61, %s10565_s25  ;;  %v4877_v61 = vsel %vm11463_vm0, %v4869_v62, %v4876_v7  ;;  %v5832_v50 = vor.u32 %v5831_v47, %v5828_v35  ;;  %v7219_v14 = vshrl.u32 %v6900_v49, 16  ;;  %v7228_v59 = vshrl.u32 %v6901_v0, 16  ;;  %v13841_v11 = vld [vmem:[#allocation2 + $0x124] sm:$0xf]  ;;  %v6899_v53 = vld [vmem:[#allocation2 + $0x150] sm:$0x8] }
 0x326   : > { %v4385_v33 = vpop.permute.xlu1 %4384  ;;  %v4868_v8 = vsel %vm11463_vm0, %v9898_v5, %v4867_v22  ;;  %v5173_v40 = vsel %vm12000_vm5, %v5171_v16, %v5172_v15  ;;  %v5170_v39 = vsel %vm12000_vm5, %v9906_v34, %v5169_v42  ;;  %v13839_v19 = vrot.slane %v5813_v20, 4  ;;  %v13844_v25 = vld [vmem:[#allocation2 + $0x158] sm:$0x7]  ;;  %v3055_v52 = vld [vmem:[#allocation2 + $0x150] sm:$0xc] }
 0x327   : > { %4474 = vst.msk [vmem:[#allocation4 + $0x30] sm:$0xf] %vm4131_vm12, %v4385_v33  ;;  %v4947_v30 = vpop.permute.xlu0 %4946  ;;  %v7221_v63 = vrot.slane %v7219_v14, 7  ;;  %v7222_v17 = vshll.u32 %v6900_v49, 16  ;;  %v5833_v42 = vsel %vm11396_vm13, %v5824_v26, %v5832_v50  ;;  %v13851_v62 = vrot.slane %v6380_v24, 4 }
 0x328   : > { %4091 = vrot.lane.b32.xlu1 %v4024_v54, %s10565_s25  ;;  %5020 = vst.msk [vmem:[#allocation3 + $0xb8] sm:$0xf] %vm4996_vm14, %v4947_v30  ;;  %v7214_v54 = vshrl.u32 %v6899_v53, 16  ;;  %v6383_v7 = vrot.slane %v13829_v37, 7  ;;  %v6661_v21 = vrot.slane %v13841_v11, 7  ;;  %v13857_v30 = vrot.slane %v3488_v57, 6 }
 0x329   : > { %4398 = vrot.lane.b32.xlu0 %v4308_v29, %s10565_s25  ;;  %v7224_v47 = vor.u32 %v7222_v17, %v7221_v63  ;;  %v3491_v5 = vshll.u32 %v13820_v55, 16  ;;  %v3498_v22 = vshrl.u32 %v13844_v25, 16  ;;  %v7226_v16 = vrot.slane %v7221_v63, 4  ;;  %v7340_v50 = vld [vmem:[#allocation2 + $0x128] sm:$0xf] }
 0x32a   : > { %v4945_v6 = vpop.permute.xlu1 %4944  ;;  %v9962_v35 = vrot.slane %v7214_v54, 11  ;;  %v7231_v15 = vshll.u32 %v6901_v0, 16  ;;  %v5823_v0 = vsel %vm11396_vm13, %v13839_v19, %v13809_v43  ;;  %v7339_v14 = vld [vmem:[#allocation2 + $0x124] sm:$0xc]  ;;  %v3501_v54 = vshll.u32 %v13844_v25, 16 }
 0x32b   : > { %5019 = vst.msk [vmem:[#allocation3 + $0xb0] sm:$0xf] %vm4996_vm14, %v4945_v6  ;;  %v5252_v18 = vpop.permute.xlu0 %5251  ;;  %v13865_v6 = vld [vmem:[%s15079_s4] ss:$0 sm:$0xff]  ;;  %v9970_v53 = vrot.slane %v7339_v14, 10 }
 0x32c   : > { %4396 = vrot.lane.b32.xlu1 %v4305_v10, %s10565_s25  ;;  %5340 = vst.msk [vmem:[#allocation4 + $0x38] sm:$0xf] %vm4996_vm14, %v5252_v18  ;;  %v3479_v18 = vshrl.u32 %v3055_v52, 16  ;;  %v7225_v26 = vsel %vm11463_vm0, %v9962_v35, %v7224_v47  ;;  %v6541_v35 = vld [vmem:[#allocation2 + $0x128] sm:$0x7] }
 0x32d   : > { %v8013_v4 = vpop.f32.mrf.mxu0  ;;  %4958 = vrot.lane.b32.xlu0 %v4877_v61, %s10566_s12  ;;  %7317 = vst.msk [vmem:[#allocation3 + $0xe4] sm:$0xf] %vm786_vm8, %v7225_v26  ;;  %v13921_v14 = vld [vmem:[#allocation2 + $0x154] sm:$0xf] }
 0x32e   : > { %v5250_v9 = vpop.permute.xlu1 %5249  ;;  %v8014_v23 = vadd.f32 %v13485_v31, %v8013_v4  ;;  %v7230_v31 = vrot.slane %v7228_v59, 7  ;;  %v7341_v59 = vld [vmem:[#allocation2 + $0x12c] sm:$0x3]  ;;  %v7461_v4 = vrot.slane %v7340_v50, 6  ;;  %v3500_v50 = vrot.slane %v3498_v22, 6 }
 0x32f   : > { %5339 = vst.msk [vmem:[#allocation4 + $0x30] sm:$0xf] %vm4996_vm14, %v5250_v9  ;;  %v8015_v33 = vpop.f32.mrf.mxu0  ;;  %v5909_v29 = vpop.permute.xlu0 %5908  ;;  %v3493_v9 = vrot.slane %v3491_v5, 7  ;;  %v6004_v5 = vld [vmem:[#allocation2 + $0x120] sm:$0xf] }
 0x330   : > { %4956 = vrot.lane.b32.xlu1 %v4868_v8, %s10566_s12  ;;  %5982 = vst.msk [vmem:[#allocation3 + $0xb8] sm:$0xf] %vm5958_vm15, %v5909_v29  ;;  %v8148_v34 = vmul.f32 0.01, %v8014_v23  ;;  %vm8116_vm7 = vcmp.ge.f32.partialorder %v8014_v23, 0.0  ;;  %v7233_v57 = vor.u32 %v7231_v15, %v7230_v31  ;;  %v7463_v19 = vrot.slane %v7461_v4, 4 }
 0x331   : > { %v8016_v10 = vpop.f32.mrf.mxu0  ;;  %5263 = vrot.lane.b32.xlu0 %v5173_v40, %s10566_s12  ;;  %v3482_v40 = vshll.u32 %v3055_v52, 16  ;;  %v6226_v29 = vld [vmem:[#allocation2 + $0x150] sm:$0x8]  ;;  %v7464_v52 = vrot.slane %v7341_v59, 6  ;;  %v13908_v26 = vor.u32 %v3493_v9, %v13857_v30  ;;  %v13932_v9 = vld [vmem:[#allocation2 + $0xd4] sm:$0xf] }
 0x332   : > { %v5907_v20 = vpop.permute.xlu1 %5906  ;;  %v8017_v61 = vadd.f32 %v13865_v6, %v8016_v10  ;;  %v7234_v43 = vsel %vm11463_vm0, %v7226_v16, %v7233_v57  ;;  %v13883_v63 = vsel %vm8116_vm7, %v8014_v23, %v8148_v34  ;;  %v3481_v23 = vrot.slane %v3479_v18, 6  ;;  %v6539_v18 = vld [vmem:[#allocation2 + $0x120] sm:$0x8] }
 0x333   : > { %5981 = vst.msk [vmem:[#allocation3 + $0xb0] sm:$0xf] %vm5958_vm15, %v5907_v20  ;;  %v8018_v55 = vpop.f32.mrf.mxu0  ;;  %v6071_v49 = vpop.permute.xlu0 %6070  ;;  %v3484_v47 = vrot.slane %v3482_v40, 7  ;;  %v7465_v10 = vsel %vm12000_vm5, %v7463_v19, %v7464_v52  ;;  %v6384_v16 = vsel %vm10969_vm4, %v13851_v62, %v6383_v7  ;;  %v9930_v15 = vrot.slane %v6226_v29, 11  ;;  %v3874_v40 = vld [vmem:[#allocation2 + $0x158] sm:$0x7] }
 0x334   : > { %vm8117_vm9 = vcmp.ge.f32.partialorder %v8017_v61, 0.0  ;;  %v8149_v8 = vmul.f32 0.01, %v8017_v61  ;;  %5261 = vrot.lane.b32.xlu1 %v5170_v39, %s10566_s12  ;;  %6159 = vst.msk [vmem:[#allocation4 + $0x38] sm:$0xf] %vm5958_vm15, %v6071_v49  ;;  %v6663_v34 = vrot.slane %v6661_v21, 4 }
 0x335   : > { %5920 = vrot.lane.b32.xlu0 %v5833_v42, %s10567_s22  ;;  %v6005_v39 = vld [vmem:[#allocation2 + $0x124] sm:$0xf]  ;;  %7318 = vst.msk [vmem:[#allocation3 + $0xec] sm:$0xf] %vm786_vm8, %v7234_v43  ;;  %v7462_v42 = vsel %vm12000_vm5, %v9970_v53, %v7461_v4  ;;  %7574 = vst.msk [vmem:[#allocation4 + $0x6c] sm:$0xf] %vm786_vm8, %v7465_v10  ;;  %v3485_v62 = vor.u32 %v3484_v47, %v3481_v23  ;;  %v6381_v7 = vsel %vm10969_vm4, %v9930_v15, %v6380_v24 }
 0x336   : > { %v13885_v17 = vsel %vm8117_vm9, %v8017_v61, %v8149_v8  ;;  %v6069_v33 = vpop.permute.xlu1 %6068  ;;  %7573 = vst.msk [vmem:[#allocation4 + $0x64] sm:$0xf] %vm786_vm8, %v7462_v42  ;;  %v6664_v61 = vrot.slane %v6541_v35, 7  ;;  %v3503_v55 = vrot.slane %v3501_v54, 7  ;;  %v9938_v49 = vrot.slane %v6539_v18, 11 }
 0x337   : > { %v8978_v25 = vpack.c.bf16 %v13885_v17, %v13883_v63  ;;  %6158 = vst.msk [vmem:[#allocation4 + $0x30] sm:$0xf] %vm5958_vm15, %v6069_v33  ;;  %v6439_v31 = vpop.permute.xlu0 %6438  ;;  %v3486_v4 = vrot.slane %v3485_v62, 4  ;;  %v4030_v53 = vrot.slane %v13921_v14, 7  ;;  %v10417_v33 = vld [vmem:[#allocation3 + $0xb4] ss:$8 sps:$4 sm:$0xff]  }
 0x338   : > { %5918 = vrot.lane.b32.xlu1 %v5823_v0, %s10567_s22  ;;  %6512 = vst.msk [vmem:[#allocation3 + $0xb8] sm:$0xf] %vm6488_vm1, %v6439_v31  ;;  %v6665_v22 = vsel %vm10969_vm4, %v6663_v34, %v6664_v61  ;;  %v3496_v0 = vrot.slane %v13908_v26, 4  ;;  %v3504_v57 = vor.u32 %v3503_v55, %v3500_v50  ;;  %v6662_v8 = vsel %vm10969_vm4, %v9938_v49, %v6661_v21  ;;  %v13937_v29 = vld [vmem:[#allocation2 + $0x154] sm:$0xf] }
 0x339   : > { %6082 = vrot.lane.b32.xlu0 %v6005_v39, %s10567_s22  ;;  %v13940_v52 = vld [vmem:[#allocation2 + $0x158] sm:$0xf]  ;;  %10033 = vmatprep.mubr.msk.bf16.mxu0 %vm7898_vm2, %v10417_v33  ;;  %v3495_v31 = vsel %vm11396_vm13, %v3486_v4, %v13908_v26  ;;  %v3650_v23 = vld [vmem:[#allocation2 + $0xd4] sm:$0xf]  ;;  %v3872_v47 = vld [vmem:[#allocation2 + $0x150] sm:$0x8] }
 0x33a   : > { %v6437_v20 = vpop.permute.xlu1 %6436  ;;  %v3505_v39 = vsel %vm11396_vm13, %v3496_v0, %v3504_v57  ;;  %v5412_v10 = vld [vmem:[#allocation2 + $0x164] sm:$0xf]  ;;  %v4033_v15 = vrot.slane %v3874_v40, 7  ;;  %v4187_v34 = vld [vmem:[#allocation2 + $0xd8] sm:$0x7]  ;;  %v4884_v61 = vshrl.u32 %v13937_v29, 16 }
 0x33b   : > { %6511 = vst.msk [vmem:[#allocation3 + $0xb0] sm:$0xf] %vm6488_vm1, %v6437_v20  ;;  %v6744_v37 = vpop.permute.xlu0 %6743  ;;  %v4311_v20 = vrot.slane %v13932_v9, 7  ;;  %v4893_v62 = vshrl.u32 %v13940_v52, 16  ;;  %v9867_v0 = vrot.slane %v3872_v47, 11  ;;  %v5847_v4 = vshll.u32 %v5412_v10, 16 }
 0x33c   : > { %6080 = vrot.lane.b32.xlu1 %v6004_v5, %s10567_s22  ;;  %6832 = vst.msk [vmem:[#allocation4 + $0x38] sm:$0xf] %vm6488_vm1, %v6744_v37  ;;  %v10419_v37 = vld [vmem:[#allocation4 + $0x34] ss:$8 sps:$4 sm:$0xff]   ;;  %v4185_v57 = vld [vmem:[#allocation2 + $0xd0] sm:$0x8] }
 0x33d   : > { %6450 = vrot.lane.b32.xlu0 %v6384_v16, %s10568_s13  ;;  %v4032_v16 = vrot.slane %v4030_v53, 4  ;;  %10083 = vmatprep.mubr.msk.bf16.mxu1 %vm7898_vm2, %v10419_v37  ;;  %v4313_v40 = vrot.slane %v4311_v20, 4  ;;  %v5413_v33 = vld [vmem:[#allocation2 + $0x168] sm:$0x7] }
 0x33e   : > { %v6742_v30 = vpop.permute.xlu1 %6741 }
 0x33f   : > { %6831 = vst.msk [vmem:[#allocation4 + $0x30] sm:$0xf] %vm6488_vm1, %v6742_v30  ;;  %v3557_v59 = vpop.permute.xlu0 %3556  ;;  %v7616_v32 = vld [vmem:[#allocation3 + $0xb8] sm:$0xff] }
 0x340   : > { %6448 = vrot.lane.b32.xlu1 %v6381_v7, %s10568_s13  ;;  %3628 = vst.msk [vmem:[#allocation3 + $0xc8] sm:$0xf] %vm3602_vm11, %v3557_v59  ;;  %v5844_v59 = vshrl.u32 %v5412_v10, 16 }
 0x341   : > { %v8021_v24 = vpop.f32.mrf.mxu0  ;;  %6755 = vrot.lane.b32.xlu0 %v6665_v22, %s10568_s13  ;;  %v3649_v22 = vld [vmem:[#allocation2 + $0xd0] sm:$0xf] }
 0x342   : > { %v3555_v54 = vpop.permute.xlu1 %3554  ;;  %v8022_v43 = vadd.f32 %v13865_v6, %v8021_v24  ;;  %v7615_v19 = vld [vmem:[#allocation3 + $0xb0] sm:$0xff]  ;;  %v5411_v24 = vld [vmem:[#allocation2 + $0x160] sm:$0xc] }
 0x343   : > { %3627 = vst.msk [vmem:[#allocation3 + $0xc0] sm:$0xf] %vm3602_vm11, %v3555_v54  ;;  %v8023_v11 = vpop.f32.mrf.mxu0  ;;  %v3718_v42 = vpop.permute.xlu0 %3717  ;;  %v10003_v21 = vcombine.low %v7615_v19, %v7616_v32  ;;  %v7650_v35 = vld [vmem:[#allocation4 + $0x38] sm:$0xff]  ;;  %v4314_v54 = vrot.slane %v4187_v34, 7  ;;  %v4896_v19 = vshll.u32 %v13940_v52, 16  ;;  %v5835_v52 = vshrl.u32 %v5411_v24, 16 }
 0x344   : > { %6753 = vrot.lane.b32.xlu1 %v6662_v8, %s10568_s13  ;;  %3804 = vst.msk [vmem:[#allocation4 + $0x48] sm:$0xf] %vm3602_vm11, %v3718_v42  ;;  %v8150_v18 = vmul.f32 0.01, %v8022_v43  ;;  %vm8118_vm10 = vcmp.ge.f32.partialorder %v8022_v43, 0.0  ;;  %v4034_v8 = vsel %vm10969_vm4, %v4032_v16, %v4033_v15  ;;  %v5838_v16 = vshll.u32 %v5411_v24, 16 }
 0x345   : > { %v8024_v5 = vpop.f32.mrf.mxu0  ;;  %8068 = vmatmul.mubr.bf16.gmra.mxu0 %v10003_v21  ;;  %3568 = vrot.lane.b32.xlu0 %v3505_v39, %s10564_s24  ;;  %v4886_v21 = vrot.slane %v4884_v61, 7  ;;  %v5849_v15 = vrot.slane %v5847_v4, 7  ;;  %v5854_v34 = vshrl.u32 %v5413_v33, 16  ;;  %v5857_v61 = vshll.u32 %v5413_v33, 16  ;;  %v13998_v33 = vld [vmem:[#allocation2 + $0x164] sm:$0xf] }
 0x346   : > { %v3716_v50 = vpop.permute.xlu1 %3715  ;;  %v8025_v26 = vadd.f32 %v13865_v6, %v8024_v5  ;;  %v7649_v55 = vld [vmem:[#allocation4 + $0x30] sm:$0xff]  ;;  %v13966_v39 = vsel %vm8118_vm10, %v8022_v43, %v8150_v18  ;;  %v9875_v5 = vrot.slane %v4185_v57, 11  ;;  %v5846_v43 = vrot.slane %v5844_v59, 6  ;;  %v8714_v59 = vld [vmem:[%s10736_s16] sm:$0xff] }
 0x347   : > { %3803 = vst.msk [vmem:[#allocation4 + $0x40] sm:$0xf] %vm3602_vm11, %v3716_v50  ;;  %v8026_v7 = vpop.f32.mrf.mxu0  ;;  %v4086_v49 = vpop.permute.xlu0 %4085  ;;  %v10045_v30 = vcombine.low %v7649_v55, %v7650_v35  ;;  %v4545_v35 = vld [vmem:[#allocation2 + $0x150] sm:$0x8]  ;;  %v4031_v18 = vsel %vm10969_vm4, %v9867_v0, %v4030_v53  ;;  %v5837_v57 = vrot.slane %v5835_v52, 6  ;;  %v5840_v14 = vrot.slane %v5838_v16, 7 }
 0x348   : > { %vm8119_vm3 = vcmp.ge.f32.partialorder %v8025_v26, 0.0  ;;  %v8151_v32 = vmul.f32 0.01, %v8025_v26  ;;  %3566 = vrot.lane.b32.xlu1 %v3495_v31, %s10564_s24  ;;  %4157 = vst.msk [vmem:[#allocation3 + $0xc8] sm:$0xf] %vm4131_vm12, %v4086_v49  ;;  %v4895_v31 = vrot.slane %v4893_v62, 7  ;;  %v4315_v62 = vsel %vm10969_vm4, %v4313_v40, %v4314_v54 }
 0x349   : > { %8514 = vmatmul.mubr.bf16.gmra.mxu1 %v10045_v30  ;;  %3729 = vrot.lane.b32.xlu0 %v3650_v23, %s10564_s24  ;;  %v13970_v23 = vld [vmem:[#allocation2 + $0xd8] sm:$0xf]  ;;  %v4879_v50 = vshrl.u32 %v4545_v35, 16  ;;  %v4891_v7 = vrot.slane %v4886_v21, 4  ;;  %v5052_v30 = vld [vmem:[#allocation2 + $0xdc] sm:$0x3]  ;;  %v4312_v53 = vsel %vm10969_vm4, %v9875_v5, %v4311_v20  ;;  %v13995_v0 = vor.u32 %v5849_v15, %v5846_v43 }
 0x34a   : > { %v13968_v11 = vsel %vm8119_vm3, %v8025_v26, %v8151_v32  ;;  %v4084_v42 = vpop.permute.xlu1 %4083  ;;  %v4887_v26 = vshll.u32 %v13937_v29, 16  ;;  %v5176_v55 = vrot.slane %v13970_v23, 6  ;;  %v4898_v49 = vor.u32 %v4896_v19, %v4895_v31  ;;  %v8715_v32 = vld [vmem:[%s10736_s16 + $0x8] sm:$0xff]  ;;  %v5050_v29 = vld [vmem:[#allocation2 + $0xd4] sm:$0xc] }
 0x34b   : > { %v8979_v47 = vpack.c.bf16 %v13968_v11, %v13966_v39  ;;  %4156 = vst.msk [vmem:[#allocation3 + $0xc0] sm:$0xf] %vm4131_vm12, %v4084_v42  ;;  %v4391_v10 = vpop.permute.xlu0 %4390  ;;  %v5856_v4 = vrot.slane %v5854_v34, 6  ;;  %v5859_v24 = vrot.slane %v5857_v61, 7  ;;  %v5179_v19 = vrot.slane %v5052_v30, 6  ;;  %v8716_v5 = vld [vmem:[%s10736_s16 + $0x10] sm:$0xff] }
 0x34c   : > { %3727 = vrot.lane.b32.xlu1 %v3649_v22, %s10564_s24  ;;  %4477 = vst.msk [vmem:[#allocation4 + $0x48] sm:$0xf] %vm4131_vm12, %v4391_v10  ;;  %v4889_v40 = vor.u32 %v4887_v26, %v4886_v21  ;;  %v5178_v54 = vrot.slane %v5176_v55, 4  ;;  %v4899_v9 = vsel %vm11463_vm0, %v4891_v7, %v4898_v49  ;;  %v8746_v20 = vsel %vm7898_vm2, %v8714_v59, 0.0  ;;  %v6903_v43 = vld [vmem:[#allocation2 + $0x164] sm:$0xf] }
 0x34d   : > { %4097 = vrot.lane.b32.xlu0 %v4034_v8, %s10565_s25  ;;  %v9899_v8 = vrot.slane %v4879_v50, 11  ;;  %v8747_v31 = vsel %vm7898_vm2, %v8715_v32, 0.0  ;;  %v9907_v23 = vrot.slane %v5050_v29, 10  ;;  %v5841_v10 = vor.u32 %v5840_v14, %v5837_v57  ;;  %v6902_v50 = vld [vmem:[#allocation2 + $0x160] sm:$0x8]  ;;  %v8717_v57 = vld [vmem:[%s10736_s16 + $0x18] sm:$0xff] }
 0x34e   : > { %v4389_v37 = vpop.permute.xlu1 %4388  ;;  %v5852_v21 = vrot.slane %v13995_v0, 4  ;;  %v5860_v52 = vor.u32 %v5859_v24, %v5856_v4  ;;  %v6387_v16 = vrot.slane %v13998_v33, 7  ;;  %v5180_v61 = vsel %vm12000_vm5, %v5178_v54, %v5179_v19  ;;  %v14018_v49 = vld [vmem:[#allocation2 + $0x134] sm:$0xf]  ;;  %v6904_v4 = vld [vmem:[#allocation2 + $0x168] sm:$0xf] }
 0x34f   : > { %4476 = vst.msk [vmem:[#allocation4 + $0x40] sm:$0xf] %vm4131_vm12, %v4389_v37  ;;  %v4951_v22 = vpop.permute.xlu0 %4950  ;;  %v4890_v34 = vsel %vm11463_vm0, %v9899_v8, %v4889_v40  ;;  %v7241_v26 = vshrl.u32 %v6903_v43, 16  ;;  %v8748_v37 = vadd.f32 %v8747_v31, %v8746_v20  ;;  %v7236_v30 = vshrl.u32 %v6902_v50, 16  ;;  %v8718_v20 = vld [vmem:[%s10736_s16 + $0x20] sm:$0xff] }
 0x350   : > { %4095 = vrot.lane.b32.xlu1 %v4031_v18, %s10565_s25  ;;  %5022 = vst.msk [vmem:[#allocation3 + $0xc8] sm:$0xf] %vm4996_vm14, %v4951_v22  ;;  %v14015_v18 = vld [vmem:[#allocation2 + $0x168] sm:$0x7]  ;;  %v7244_v22 = vshll.u32 %v6903_v43, 16  ;;  %v8749_v14 = vsel %vm7898_vm2, %v8716_v5, 0.0  ;;  %v5861_v8 = vsel %vm11396_vm13, %v5852_v21, %v5860_v52 }
 0x351   : > { %4402 = vrot.lane.b32.xlu0 %v4315_v62, %s10565_s25  ;;  %v5842_v29 = vrot.slane %v5841_v10, 4  ;;  %v7243_v24 = vrot.slane %v7241_v26, 7  ;;  %v14031_v40 = vrot.slane %v6387_v16, 4  ;;  %v6390_v54 = vrot.slane %v14015_v18, 7  ;;  %v7343_v52 = vld [vmem:[#allocation2 + $0x138] sm:$0xf] }
 0x352   : > { %v4949_v42 = vpop.permute.xlu1 %4948  ;;  %v9963_v19 = vrot.slane %v7236_v30, 11  ;;  %v8750_v31 = vadd.f32 %v8749_v14, %v8748_v37  ;;  %v7250_v21 = vshrl.u32 %v6904_v4, 16  ;;  %v7253_v18 = vshll.u32 %v6904_v4, 16  ;;  %v7342_v50 = vld [vmem:[#allocation2 + $0x134] sm:$0xc] }
 0x353   : > { %5021 = vst.msk [vmem:[#allocation3 + $0xc0] sm:$0xf] %vm4996_vm14, %v4949_v42  ;;  %v5256_v35 = vpop.permute.xlu0 %5255  ;;  %v7344_v26 = vld [vmem:[#allocation2 + $0x13c] sm:$0x3]  ;;  %v7468_v37 = vrot.slane %v7343_v52, 6  ;;  %v7248_v30 = vrot.slane %v7243_v24, 4  ;;  %v6391_v52 = vsel %vm10969_vm4, %v14031_v40, %v6390_v54 }
 0x354   : > { %4400 = vrot.lane.b32.xlu1 %v4312_v53, %s10565_s25  ;;  %5342 = vst.msk [vmem:[#allocation4 + $0x48] sm:$0xf] %vm4996_vm14, %v5256_v35  ;;  %v5177_v53 = vsel %vm12000_vm5, %v9907_v23, %v5176_v55  ;;  %v6668_v55 = vrot.slane %v14018_v49, 7  ;;  %v8751_v35 = vsel %vm7898_vm2, %v8717_v57, 0.0  ;;  %v9971_v44 = vrot.slane %v7342_v50, 10 }
 0x355   : > { %v8029_v15 = vpop.f32.mrf.mxu0  ;;  %4962 = vrot.lane.b32.xlu0 %v4899_v9, %s10566_s12  ;;  %v7246_v9 = vor.u32 %v7244_v22, %v7243_v24  ;;  %v7252_v22 = vrot.slane %v7250_v21, 7  ;;  %v7471_v57 = vrot.slane %v7344_v26, 6  ;;  %v8752_v14 = vadd.f32 %v8751_v35, %v8750_v31  ;;  %v6229_v4 = vld [vmem:[#allocation2 + $0x160] sm:$0x8]  ;;  %v8719_v35 = vld [vmem:[%s10736_s16 + $0x28] sm:$0xff] }
 0x356   : > { %v5254_v62 = vpop.permute.xlu1 %5253  ;;  %v8030_v7 = vadd.f32 %v13865_v6, %v8029_v15  ;;  %v8753_v24 = vsel %vm7898_vm2, %v8718_v20, 0.0  ;;  %v7469_v31 = vsel %vm12000_vm5, %v9971_v44, %v7468_v37  ;;  %v6670_v36 = vrot.slane %v6668_v55, 4  ;;  %v4188_v44 = vld [vmem:[#allocation2 + $0xe0] sm:$0x8] }
 0x357   : > { %5341 = vst.msk [vmem:[#allocation4 + $0x40] sm:$0xf] %vm4996_vm14, %v5254_v62  ;;  %v8031_v59 = vpop.f32.mrf.mxu0  ;;  %v5913_v32 = vpop.permute.xlu0 %5912 }
 0x358   : > { %4960 = vrot.lane.b32.xlu1 %v4890_v34, %s10566_s12  ;;  %5984 = vst.msk [vmem:[#allocation3 + $0xc8] sm:$0xf] %vm5958_vm15, %v5913_v32  ;;  %vm8120_vm7 = vcmp.ge.f32.partialorder %v8030_v7, 0.0  ;;  %v8152_v23 = vmul.f32 0.01, %v8030_v7  ;;  %v5851_v34 = vsel %vm11396_vm13, %v5842_v29, %v13995_v0  ;;  %v7470_v0 = vrot.slane %v7468_v37, 4 }
 0x359   : > { %v8032_v42 = vpop.f32.mrf.mxu0  ;;  %5267 = vrot.lane.b32.xlu0 %v5180_v61, %s10566_s12  ;;  %v7247_v61 = vsel %vm11463_vm0, %v9963_v19, %v7246_v9  ;;  %v7255_v19 = vor.u32 %v7253_v18, %v7252_v22  ;;  %v6544_v9 = vld [vmem:[#allocation2 + $0x138] sm:$0x7]  ;;  %7575 = vst.msk [vmem:[#allocation4 + $0x74] sm:$0xf] %vm786_vm8, %v7469_v31  ;;  %v8720_v18 = vld [vmem:[%s10736_s16 + $0x30] sm:$0xff] }
 0x35a   : > { %v5911_v10 = vpop.permute.xlu1 %5910  ;;  %v8033_v5 = vadd.f32 %v13865_v6, %v8032_v42  ;;  %7319 = vst.msk [vmem:[#allocation3 + $0xf4] sm:$0xf] %vm786_vm8, %v7247_v61  ;;  %v14050_v59 = vsel %vm8120_vm7, %v8030_v7, %v8152_v23  ;;  %v7472_v7 = vsel %vm12000_vm5, %v7470_v0, %v7471_v57  ;;  %v6006_v23 = vld [vmem:[#allocation2 + $0x130] sm:$0xf]  ;;  %v8721_v0 = vld [vmem:[%s10736_s16 + $0x38] sm:$0xff]  ;;  %v10570_v57 = vmov 0.0  }
 0x35b   : > { %5983 = vst.msk [vmem:[#allocation3 + $0xc0] sm:$0xf] %vm5958_vm15, %v5911_v10  ;;  %v8034_v43 = vpop.f32.mrf.mxu0  ;;  %v6075_v15 = vpop.permute.xlu0 %6074  ;;  %v7256_v20 = vsel %vm11463_vm0, %v7248_v30, %v7255_v19  ;;  %v9931_v10 = vrot.slane %v6229_v4, 11  ;;  %v8757_v30 = vsel %vm7898_vm2, %v8720_v18, 0.0  ;;  %10218 = vmatprep.subr.mxu0 %v10570_v57  ;;  %v2830_v4 = vrot.slane %v2828_v41, 4  ;;  %10225 = vmatprep.subr.mxu1 %v10570_v57 }
 0x35c   : > { %vm8121_vm9 = vcmp.ge.f32.partialorder %v8033_v5, 0.0  ;;  %v8153_v62 = vmul.f32 0.01, %v8033_v5  ;;  %5265 = vrot.lane.b32.xlu1 %v5177_v53, %s10566_s12  ;;  %6161 = vst.msk [vmem:[#allocation4 + $0x48] sm:$0xf] %vm5958_vm15, %v6075_v15  ;;  %v6671_v43 = vrot.slane %v6544_v9, 7 }
 0x35d   : > { %5924 = vrot.lane.b32.xlu0 %v5861_v8, %s10567_s22  ;;  %v6007_v53 = vld [vmem:[#allocation2 + $0x134] sm:$0xf]  ;;  %7576 = vst.msk [vmem:[#allocation4 + $0x7c] sm:$0xf] %vm786_vm8, %v7472_v7  ;;  %7320 = vst.msk [vmem:[#allocation3 + $0xfc] sm:$0xf] %vm786_vm8, %v7256_v20  ;;  %v6388_v40 = vsel %vm10969_vm4, %v9931_v10, %v6387_v16 }
 0x35e   : > { %v14052_v32 = vsel %vm8121_vm9, %v8033_v5, %v8153_v62  ;;  %v6073_v29 = vpop.permute.xlu1 %6072  ;;  %v8754_v5 = vadd.f32 %v8753_v24, %v8752_v14  ;;  %v6542_v15 = vld [vmem:[#allocation2 + $0x130] sm:$0x8]  ;;  %v6672_v37 = vsel %vm10969_vm4, %v6670_v36, %v6671_v43  ;;  %v2697_v62 = vld [vmem:[#allocation2 + $0x8c] sm:$0x3]  ;;  %v4189_v16 = vld [vmem:[#allocation2 + $0xe4] sm:$0xf] }
 0x35f   : > { %v8980_v42 = vpack.c.bf16 %v14052_v32, %v14050_v59  ;;  %6160 = vst.msk [vmem:[#allocation4 + $0x40] sm:$0xf] %vm5958_vm15, %v6073_v29  ;;  %v6443_v8 = vpop.permute.xlu0 %6442  ;;  %v9939_v54 = vrot.slane %v6542_v15, 11  ;;  %v8818_v14 = vld [vmem:[%s15078_s3 + $0x8] sm:$0xff]  ;;  %v2831_v19 = vrot.slane %v2697_v62, 6  ;;  %v8759_v41 = vsel %vm7898_vm2, %v8721_v0, 0.0 }
 0x360   : > { %5922 = vrot.lane.b32.xlu1 %v5851_v34, %s10567_s22  ;;  %6514 = vst.msk [vmem:[#allocation3 + $0xc8] sm:$0xf] %vm6488_vm1, %v6443_v8  ;;  %v8755_v34 = vsel %vm7898_vm2, %v8719_v35, 0.0  ;;  %v3651_v24 = vld [vmem:[#allocation2 + $0xe0] sm:$0xf]  ;;  %10219 = vmatpush3.msra.mxu0 %v8818_v14  ;;  %v10437_v36 = vld [vmem:[%s15083_s8 + $0x8] sm:$0xff]  }
 0x361   : > { %6086 = vrot.lane.b32.xlu0 %v6007_v53, %s10567_s22  ;;  %v8756_v50 = vadd.f32 %v8755_v34, %v8754_v5  ;;  %v6669_v53 = vsel %vm10969_vm4, %v9939_v54, %v6668_v55  ;;  %v14104_v8 = vld [vmem:[#allocation2 + $0xe4] sm:$0xc]  ;;  %10220 = vmatprep.subr.mxu0 %v10570_v57  ;;  %v4318_v5 = vrot.slane %v4189_v16, 7  ;;  %v2832_v15 = vsel %vm12000_vm5, %v2830_v4, %v2831_v19  ;;  %v4190_v34 = vld [vmem:[#allocation2 + $0xe8] sm:$0x7] }
 0x362   : > { %v6441_v21 = vpop.permute.xlu1 %6440  ;;  %v10421_v20 = vld [vmem:[#allocation3 + $0xc4] ss:$8 sps:$4 sm:$0xff]   ;;  %10221 = vmatpush3.msra.mxu0 %v8817_v38  ;;  %v9908_v18 = vrot.slane %v14104_v8, 10 }
 0x363   : > { %6513 = vst.msk [vmem:[#allocation3 + $0xc0] sm:$0xf] %vm6488_vm1, %v6441_v21  ;;  %v6748_v61 = vpop.permute.xlu0 %6747  ;;  %v8758_v9 = vadd.f32 %v8757_v30, %v8756_v50  ;;  %v8722_v21 = vld [vmem:[%s10736_s16 + $0x40] sm:$0xff]  ;;  %10034 = vmatprep.mubr.msk.bf16.mxu0 %vm7898_vm2, %v10421_v20  ;;  %10236 = vmatprep.subr.bf16.mxu0 %v10437_v36  ;;  %v4320_v16 = vrot.slane %v4318_v5, 4  ;;  %v8723_v14 = vld [vmem:[%s10736_s16 + $0x48] sm:$0xff] }
 0x364   : > { %6084 = vrot.lane.b32.xlu1 %v6006_v23, %s10567_s22  ;;  %6834 = vst.msk [vmem:[#allocation4 + $0x48] sm:$0xf] %vm6488_vm1, %v6748_v61  ;;  %v9876_v23 = vrot.slane %v4188_v44, 11  ;;  %v5054_v61 = vld [vmem:[#allocation2 + $0xe8] sm:$0xf]  ;;  %v8763_v20 = vsel %vm7898_vm2, %v8723_v14, 0.0 }
 0x365   : > { %6454 = vrot.lane.b32.xlu0 %v6391_v52, %s10568_s13  ;;  %v10423_v62 = vld [vmem:[#allocation4 + $0x44] ss:$8 sps:$4 sm:$0xff]  }
 0x366   : > { %v6746_v26 = vpop.permute.xlu1 %6745  ;;  %v4319_v30 = vsel %vm10969_vm4, %v9876_v23, %v4318_v5  ;;  %10084 = vmatprep.mubr.msk.bf16.mxu1 %vm7898_vm2, %v10423_v62  ;;  %v3652_v4 = vld [vmem:[#allocation2 + $0xe4] sm:$0xf]  ;;  %v5055_v19 = vld [vmem:[#allocation2 + $0xec] sm:$0x3]  ;;  %v7346_v23 = vld [vmem:[#allocation2 + $0x148] sm:$0xf] }
 0x367   : > { %6833 = vst.msk [vmem:[#allocation4 + $0x40] sm:$0xf] %vm6488_vm1, %v6746_v26  ;;  %v3561_v22 = vpop.permute.xlu0 %3560  ;;  %v7618_v33 = vld [vmem:[#allocation3 + $0xc8] sm:$0xff]  ;;  %v2698_v62 = vld [vmem:[#allocation2 + $0x94] sm:$0xc] }
 0x368   : > { %6452 = vrot.lane.b32.xlu1 %v6388_v40, %s10568_s13  ;;  %3630 = vst.msk [vmem:[#allocation3 + $0xd8] sm:$0xf] %vm3602_vm11, %v3561_v22  ;;  %v8760_v40 = vadd.f32 %v8759_v41, %v8758_v9  ;;  %v8761_v22 = vsel %vm7898_vm2, %v8722_v21, 0.0  ;;  %v5186_v21 = vrot.slane %v5055_v19, 6  ;;  %v7347_v36 = vld [vmem:[#allocation2 + $0x14c] sm:$0x3] }
 0x369   : > { %v8037_v29 = vpop.f32.mrf.mxu0  ;;  %6759 = vrot.lane.b32.xlu0 %v6672_v37, %s10568_s13  ;;  %v8743_v38 = vld [vmem:[%s10736_s16 + $0xe8] sm:$0xff] }
 0x36a   : > { %v3559_v31 = vpop.permute.xlu1 %3558  ;;  %v8038_v7 = vadd.f32 %v13865_v6, %v8037_v29  ;;  %v7617_v35 = vld [vmem:[#allocation3 + $0xc0] sm:$0xff] }
 0x36b   : > { %3629 = vst.msk [vmem:[#allocation3 + $0xd0] sm:$0xf] %vm3602_vm11, %v3559_v31  ;;  %v8039_v49 = vpop.f32.mrf.mxu0  ;;  %v3722_v55 = vpop.permute.xlu0 %3721  ;;  %v10005_v10 = vcombine.low %v7617_v35, %v7618_v33  ;;  %v7652_v52 = vld [vmem:[#allocation4 + $0x48] sm:$0xff] }
 0x36c   : > { %6757 = vrot.lane.b32.xlu1 %v6669_v53, %s10568_s13  ;;  %3806 = vst.msk [vmem:[#allocation4 + $0x58] sm:$0xf] %vm3602_vm11, %v3722_v55  ;;  %v8154_v54 = vmul.f32 0.01, %v8038_v7  ;;  %vm8122_vm13 = vcmp.ge.f32.partialorder %v8038_v7, 0.0  ;;  %v5183_v53 = vrot.slane %v5054_v61, 6 }
 0x36d   : > { %v8040_v43 = vpop.f32.mrf.mxu0  ;;  %8076 = vmatmul.mubr.bf16.gmra.mxu0 %v10005_v10  ;;  %3731 = vrot.lane.b32.xlu0 %v3651_v24, %s10564_s24  ;;  %v8762_v24 = vadd.f32 %v8761_v22, %v8760_v40  ;;  %v6545_v49 = vld [vmem:[#allocation2 + $0x140] sm:$0x8]  ;;  %v8724_v55 = vld [vmem:[%s10736_s16 + $0x50] sm:$0xff]  ;;  %v7475_v10 = vrot.slane %v7346_v23, 6 }
 0x36e   : > { %v3720_v50 = vpop.permute.xlu1 %3719  ;;  %v8041_v26 = vadd.f32 %v13865_v6, %v8040_v43  ;;  %v7651_v37 = vld [vmem:[#allocation4 + $0x40] sm:$0xff]  ;;  %v4321_v6 = vrot.slane %v4190_v34, 7  ;;  %v14136_v8 = vsel %vm8122_vm13, %v8038_v7, %v8154_v54  ;;  %v5184_v35 = vsel %vm12000_vm5, %v9908_v18, %v5183_v53 }
 0x36f   : > { %3805 = vst.msk [vmem:[#allocation4 + $0x50] sm:$0xf] %vm3602_vm11, %v3720_v50  ;;  %v8042_v44 = vpop.f32.mrf.mxu0  ;;  %v4090_v0 = vpop.permute.xlu0 %4089  ;;  %v10047_v33 = vcombine.low %v7651_v37, %v7652_v52  ;;  %v5185_v5 = vrot.slane %v5183_v53, 4  ;;  %v7345_v52 = vld [vmem:[#allocation2 + $0x144] sm:$0xc]  ;;  %v7477_v61 = vrot.slane %v7475_v10, 4 }
 0x370   : > { %vm8123_vm0 = vcmp.ge.f32.partialorder %v8041_v26, 0.0  ;;  %v8155_v29 = vmul.f32 0.01, %v8041_v26  ;;  %2916 = vrot.lane.b32.xlu1 %v2832_v15, %s10563_s28  ;;  %4159 = vst.msk [vmem:[#allocation3 + $0xd8] sm:$0xf] %vm4131_vm12, %v4090_v0  ;;  %v4322_v7 = vsel %vm10969_vm4, %v4320_v16, %v4321_v6  ;;  %v8764_v15 = vadd.f32 %v8763_v20, %v8762_v24 }
 0x371   : > { %8522 = vmatmul.mubr.bf16.gmra.mxu1 %v10047_v33  ;;  %4404 = vrot.lane.b32.xlu0 %v4319_v30, %s10565_s25  ;;  %v6546_v43 = vld [vmem:[#allocation2 + $0x144] sm:$0xf]  ;;  %v9972_v34 = vrot.slane %v7345_v52, 10  ;;  %v7478_v18 = vrot.slane %v7347_v36, 6  ;;  %v6008_v54 = vld [vmem:[#allocation2 + $0x140] sm:$0xf]  ;;  %v5187_v33 = vsel %vm12000_vm5, %v5185_v5, %v5186_v21 }
 0x372   : > { %v14138_v9 = vsel %vm8123_vm0, %v8041_v26, %v8155_v29  ;;  %v4088_v31 = vpop.permute.xlu1 %4087  ;;  %v9940_v50 = vrot.slane %v6545_v49, 11  ;;  %v8765_v26 = vsel %vm7898_vm2, %v8724_v55, 0.0  ;;  %v8725_v30 = vld [vmem:[%s10736_s16 + $0x58] sm:$0xff]  ;;  %v6675_v0 = vrot.slane %v6546_v43, 7  ;;  %v6547_v53 = vld [vmem:[#allocation2 + $0x148] sm:$0x7] }
 0x373   : > { %4158 = vst.msk [vmem:[#allocation3 + $0xd0] sm:$0xf] %vm4131_vm12, %v4088_v31  ;;  %v4395_v41 = vpop.permute.xlu0 %4394  ;;  %v7476_v22 = vsel %vm12000_vm5, %v9972_v34, %v7475_v10  ;;  %v7479_v44 = vsel %vm12000_vm5, %v7477_v61, %v7478_v18  ;;  %v2699_v16 = vld [vmem:[#allocation2 + $0x98] sm:$0xf]  ;;  %v8766_v14 = vadd.f32 %v8765_v26, %v8764_v15  ;;  %v8767_v19 = vsel %vm7898_vm2, %v8725_v30, 0.0  ;;  %v8726_v31 = vld [vmem:[%s10736_s16 + $0x60] sm:$0xff] }
 0x374   : > { %3733 = vrot.lane.b32.xlu1 %v3652_v4, %s10564_s24  ;;  %4479 = vst.msk [vmem:[#allocation4 + $0x58] sm:$0xf] %vm4131_vm12, %v4395_v41  ;;  %v6676_v6 = vsel %vm10969_vm4, %v9940_v50, %v6675_v0  ;;  %v9845_v4 = vrot.slane %v2698_v62, 10  ;;  %v6009_v20 = vld [vmem:[#allocation2 + $0x144] sm:$0xf]  ;;  %v6677_v23 = vrot.slane %v6675_v0, 4  ;;  %v15113_v58 = vpack.c.bf16 %v14138_v9, %v14136_v8 }
 0x375   : > { %5269 = vrot.lane.b32.xlu0 %v5184_v35, %s10566_s12  ;;  %7577 = vst.msk [vmem:[#allocation4 + $0x84] sm:$0xf] %vm786_vm8, %v7476_v22  ;;  %7578 = vst.msk [vmem:[#allocation4 + $0x8c] sm:$0xf] %vm786_vm8, %v7479_v44  ;;  %v2835_v35 = vrot.slane %v2699_v16, 6  ;;  %v6678_v41 = vrot.slane %v6547_v53, 7  ;;  %v8768_v49 = vadd.f32 %v8767_v19, %v8766_v14 }
 0x376   : > { %v4393_v40 = vpop.permute.xlu1 %4392  ;;  %v8769_v5 = vsel %vm7898_vm2, %v8726_v31, 0.0  ;;  %v4191_v52 = vld [vmem:[#allocation2 + $0xf0] sm:$0x8]  ;;  %v8727_v36 = vld [vmem:[%s10736_s16 + $0x68] sm:$0xff]  ;;  %v4192_v61 = vld [vmem:[#allocation2 + $0xf4] sm:$0xf] }
 0x377   : > { %4478 = vst.msk [vmem:[#allocation4 + $0x50] sm:$0xf] %vm4131_vm12, %v4393_v40  ;;  %v4955_v37 = vpop.permute.xlu0 %4954  ;;  %v2836_v10 = vsel %vm12000_vm5, %v9845_v4, %v2835_v35  ;;  %v6679_v43 = vsel %vm10969_vm4, %v6677_v23, %v6678_v41  ;;  %v2837_v15 = vrot.slane %v2835_v35, 4  ;;  %v8770_v18 = vadd.f32 %v8769_v5, %v8768_v49  ;;  %v5056_v62 = vld [vmem:[#allocation2 + $0xf4] sm:$0xc] }
 0x378   : > { %4406 = vrot.lane.b32.xlu1 %v4322_v7, %s10565_s25  ;;  %5024 = vst.msk [vmem:[#allocation3 + $0xd8] sm:$0xf] %vm4996_vm14, %v4955_v37  ;;  %v2700_v7 = vld [vmem:[#allocation2 + $0x9c] sm:$0x3]  ;;  %v9877_v50 = vrot.slane %v4191_v52, 11  ;;  %v8771_v26 = vsel %vm7898_vm2, %v8727_v36, 0.0 }
 0x379   : > { %6088 = vrot.lane.b32.xlu0 %v6008_v54, %s10567_s22  ;;  %v2838_v34 = vrot.slane %v2700_v7, 6  ;;  %v3653_v54 = vld [vmem:[#allocation2 + $0xf0] sm:$0xf]  ;;  %v4325_v22 = vrot.slane %v4192_v61, 7  ;;  %v5057_v44 = vld [vmem:[#allocation2 + $0xf8] sm:$0xf]  ;;  %v8772_v16 = vadd.f32 %v8771_v26, %v8770_v18 }
 0x37a   : > { %v4953_v29 = vpop.permute.xlu1 %4952  ;;  %v8728_v30 = vld [vmem:[%s10736_s16 + $0x70] sm:$0xff]  ;;  %v5190_v19 = vrot.slane %v5057_v44, 6  ;;  %v7349_v7 = vld [vmem:[#allocation2 + $0x158] sm:$0xf]  ;;  %v14213_v44 = vld [vmem:[%s15079_s4] ss:$0 sm:$0xff] }
 0x37b   : > { %5023 = vst.msk [vmem:[#allocation3 + $0xd0] sm:$0xf] %vm4996_vm14, %v4953_v29  ;;  %v5260_v24 = vpop.permute.xlu0 %5259  ;;  %v2839_v0 = vsel %vm12000_vm5, %v2837_v15, %v2838_v34  ;;  %v4326_v29 = vsel %vm10969_vm4, %v9877_v50, %v4325_v22  ;;  %v8773_v53 = vsel %vm7898_vm2, %v8728_v30, 0.0  ;;  %v4327_v31 = vrot.slane %v4325_v22, 4  ;;  %v3654_v23 = vld [vmem:[#allocation2 + $0xf4] sm:$0xf] }
 0x37c   : > { %5271 = vrot.lane.b32.xlu1 %v5187_v33, %s10566_s12  ;;  %5344 = vst.msk [vmem:[#allocation4 + $0x58] sm:$0xf] %vm4996_vm14, %v5260_v24  ;;  %v4193_v33 = vld [vmem:[#allocation2 + $0xf8] sm:$0x7]  ;;  %v8774_v41 = vadd.f32 %v8773_v53, %v8772_v16  ;;  %v6548_v36 = vld [vmem:[#allocation2 + $0x150] sm:$0x8] }
 0x37d   : > { %6761 = vrot.lane.b32.xlu0 %v6676_v6, %s10568_s13  ;;  %v9909_v6 = vrot.slane %v5056_v62, 10  ;;  %v8729_v24 = vld [vmem:[%s10736_s16 + $0x78] sm:$0xff]  ;;  %v4328_v35 = vrot.slane %v4193_v33, 7  ;;  %v7482_v15 = vrot.slane %v7349_v7, 6  ;;  %v6549_v61 = vld [vmem:[#allocation2 + $0x154] sm:$0xf] }
 0x37e   : > { %v5258_v55 = vpop.permute.xlu1 %5257  ;;  %v7348_v18 = vld [vmem:[#allocation2 + $0x154] sm:$0xc]  ;;  %v6010_v50 = vld [vmem:[#allocation2 + $0x150] sm:$0xf]  ;;  %v9941_v33 = vrot.slane %v6548_v36, 11 }
 0x37f   : > { %5343 = vst.msk [vmem:[#allocation4 + $0x50] sm:$0xf] %vm4996_vm14, %v5258_v55  ;;  %v5917_v21 = vpop.permute.xlu0 %5916  ;;  %v5191_v55 = vsel %vm12000_vm5, %v9909_v6, %v5190_v19  ;;  %v4329_v34 = vsel %vm10969_vm4, %v4327_v31, %v4328_v35  ;;  %v7484_v62 = vrot.slane %v7482_v15, 4  ;;  %v2701_v16 = vld [vmem:[#allocation2 + $0xa4] sm:$0xc]  ;;  %v6682_v35 = vrot.slane %v6549_v61, 7 }
 0x380   : > { %6090 = vrot.lane.b32.xlu1 %v6009_v20, %s10567_s22  ;;  %5986 = vst.msk [vmem:[#allocation3 + $0xd8] sm:$0xf] %vm5958_vm15, %v5917_v21  ;;  %v5058_v20 = vld [vmem:[#allocation2 + $0xfc] sm:$0x3]  ;;  %v5192_v21 = vrot.slane %v5190_v19, 4 }
 0x381   : > { %2918 = vrot.lane.b32.xlu0 %v2836_v10, %s10563_s28  ;;  %v8775_v10 = vsel %vm7898_vm2, %v8729_v24, 0.0  ;;  %v5193_v52 = vrot.slane %v5058_v20, 6  ;;  %v14230_v20 = vld [vmem:[#allocation2 + $0xa8] sm:$0xf] }
 0x382   : > { %v5915_v40 = vpop.permute.xlu1 %5914  ;;  %v8776_v26 = vadd.f32 %v8775_v10, %v8774_v41  ;;  %v9846_v10 = vrot.slane %v2701_v16, 10  ;;  %v6011_v16 = vld [vmem:[#allocation2 + $0x154] sm:$0xf] }
 0x383   : > { %5985 = vst.msk [vmem:[#allocation3 + $0xd0] sm:$0xf] %vm5958_vm15, %v5915_v40  ;;  %v6079_v37 = vpop.permute.xlu0 %6078  ;;  %v7350_v40 = vld [vmem:[#allocation2 + $0x15c] sm:$0x3] }
 0x384   : > { %6763 = vrot.lane.b32.xlu1 %v6679_v43, %s10568_s13  ;;  %6163 = vst.msk [vmem:[#allocation4 + $0x58] sm:$0xf] %vm5958_vm15, %v6079_v37  ;;  %v8730_v43 = vld [vmem:[%s10736_s16 + $0x80] sm:$0xff]  ;;  %v9973_v37 = vrot.slane %v7348_v18, 10  ;;  %v7485_v30 = vrot.slane %v7350_v40, 6  ;;  %v6683_v40 = vsel %vm10969_vm4, %v9941_v33, %v6682_v35 }
 0x385   : > { %3735 = vrot.lane.b32.xlu0 %v3653_v54, %s10564_s24  ;;  %v10425_v18 = vld [vmem:[#allocation3 + $0xd4] ss:$8 sps:$4 sm:$0xff]  }
 0x386   : > { %v6077_v14 = vpop.permute.xlu1 %6076  ;;  %v7483_v19 = vsel %vm12000_vm5, %v9973_v37, %v7482_v15  ;;  %v7486_v24 = vsel %vm12000_vm5, %v7484_v62, %v7485_v30  ;;  %10035 = vmatprep.mubr.msk.bf16.mxu0 %vm7898_vm2, %v10425_v18 }
 0x387   : > { %6162 = vst.msk [vmem:[#allocation4 + $0x50] sm:$0xf] %vm5958_vm15, %v6077_v14  ;;  %v6447_v4 = vpop.permute.xlu0 %6446  ;;  %v8731_v14 = vld [vmem:[%s10736_s16 + $0x88] sm:$0xff] }
 0x388   : > { %2920 = vrot.lane.b32.xlu1 %v2839_v0, %s10563_s28  ;;  %6516 = vst.msk [vmem:[#allocation3 + $0xd8] sm:$0xf] %vm6488_vm1, %v6447_v4  ;;  %v14222_v4 = vld [vmem:[%s15080_s5] ss:$0 sm:$0xff] }
 0x389   : > { %4408 = vrot.lane.b32.xlu0 %v4326_v29, %s10565_s25  ;;  %v8777_v29 = vsel %vm7898_vm2, %v8730_v43, 0.0  ;;  %7579 = vst.msk [vmem:[#allocation4 + $0x94] sm:$0xf] %vm786_vm8, %v7483_v19  ;;  %7580 = vst.msk [vmem:[#allocation4 + $0x9c] sm:$0xf] %vm786_vm8, %v7486_v24 }
 0x38a   : > { %v6445_v49 = vpop.permute.xlu1 %6444  ;;  %v8778_v7 = vadd.f32 %v8777_v29, %v8776_v26  ;;  %v2842_v26 = vrot.slane %v14230_v20, 6 }
 0x38b   : > { %6515 = vst.msk [vmem:[#allocation3 + $0xd0] sm:$0xf] %vm6488_vm1, %v6445_v49  ;;  %v6752_v5 = vpop.permute.xlu0 %6751  ;;  %v5194_v49 = vsel %vm12000_vm5, %v5192_v21, %v5193_v52 }
 0x38c   : > { %3737 = vrot.lane.b32.xlu1 %v3654_v23, %s10564_s24  ;;  %6836 = vst.msk [vmem:[#allocation4 + $0x58] sm:$0xf] %vm6488_vm1, %v6752_v5  ;;  %v8779_v5 = vsel %vm7898_vm2, %v8731_v14, 0.0  ;;  %v2843_v29 = vsel %vm12000_vm5, %v9846_v10, %v2842_v26 }
 0x38d   : > { %v8045_v54 = vpop.f32.mrf.mxu0  ;;  %5273 = vrot.lane.b32.xlu0 %v5191_v55, %s10566_s12  ;;  %v6550_v55 = vld [vmem:[#allocation2 + $0x158] sm:$0x7] }
 0x38e   : > { %v6750_v22 = vpop.permute.xlu1 %6749  ;;  %v8046_v0 = vadd.f32 %v14213_v44, %v8045_v54  ;;  %v8732_v54 = vld [vmem:[%s10736_s16 + $0x90] sm:$0xff]  ;;  %v6685_v14 = vrot.slane %v6550_v55, 7 }
 0x38f   : > { %6835 = vst.msk [vmem:[#allocation4 + $0x50] sm:$0xf] %vm6488_vm1, %v6750_v22  ;;  %v8047_v6 = vpop.f32.mrf.mxu0  ;;  %v3565_v53 = vpop.permute.xlu0 %3564  ;;  %v7620_v31 = vld [vmem:[#allocation3 + $0xd8] sm:$0xff]  ;;  %v6684_v22 = vrot.slane %v6682_v35, 4  ;;  %v8781_v19 = vsel %vm7898_vm2, %v8732_v54, 0.0 }
 0x390   : > { %4410 = vrot.lane.b32.xlu1 %v4329_v34, %s10565_s25  ;;  %3632 = vst.msk [vmem:[#allocation3 + $0xe8] sm:$0xf] %vm3602_vm11, %v3565_v53  ;;  %v8491_v23 = vpop.f32.mrf.mxu1  ;;  %v8156_v36 = vmul.f32 0.01, %v8046_v0  ;;  %vm8124_vm10 = vcmp.ge.f32.partialorder %v8046_v0, 0.0  ;;  %v8780_v53 = vadd.f32 %v8779_v5, %v8778_v7 }
 0x391   : > { %v8048_v41 = vpop.f32.mrf.mxu0  ;;  %6092 = vrot.lane.b32.xlu0 %v6010_v50, %s10567_s22  ;;  %v8492_v43 = vadd.f32 %v14222_v4, %v8491_v23  ;;  %v2703_v6 = vld [vmem:[#allocation2 + $0xac] sm:$0x3]  ;;  %v4194_v5 = vld [vmem:[#allocation2 + $0x100] sm:$0x8] }
 0x392   : > { %v3563_v15 = vpop.permute.xlu1 %3562  ;;  %v8049_v34 = vadd.f32 %v14213_v44, %v8048_v41  ;;  %v7619_v61 = vld [vmem:[#allocation3 + $0xd0] sm:$0xff]  ;;  %v8493_v21 = vpop.f32.mrf.mxu1  ;;  %v14253_v24 = vsel %vm8124_vm10, %v8046_v0, %v8156_v36  ;;  %v8733_v0 = vld [vmem:[%s10736_s16 + $0x98] sm:$0xff]  ;;  %v2845_v18 = vrot.slane %v2703_v6, 6  ;;  %v8782_v54 = vadd.f32 %v8781_v19, %v8780_v53  ;;  %v5060_v6 = vld [vmem:[#allocation2 + $0x108] sm:$0xf] }
 0x393   : > { %3631 = vst.msk [vmem:[#allocation3 + $0xe0] sm:$0xf] %vm3602_vm11, %v3563_v15  ;;  %v8050_v52 = vpop.f32.mrf.mxu0  ;;  %v10007_v50 = vcombine.low %v7619_v61, %v7620_v31  ;;  %v3726_v62 = vpop.permute.xlu0 %3725  ;;  %v7654_v30 = vld [vmem:[#allocation4 + $0x58] sm:$0xff]  ;;  %v8650_v31 = vmul.f32 0.01, %v8492_v43  ;;  %vm8618_vm7 = vcmp.ge.f32.partialorder %v8492_v43, 0.0 }
 0x394   : > { %vm8125_vm3 = vcmp.ge.f32.partialorder %v8049_v34, 0.0  ;;  %v8157_v37 = vmul.f32 0.01, %v8049_v34  ;;  %5275 = vrot.lane.b32.xlu1 %v5194_v49, %s10566_s12  ;;  %3808 = vst.msk [vmem:[#allocation4 + $0x68] sm:$0xf] %vm3602_vm11, %v3726_v62  ;;  %v8494_v33 = vpop.f32.mrf.mxu1  ;;  %v2844_v61 = vrot.slane %v2842_v26, 4 }
 0x395   : > { %8084 = vmatmul.mubr.bf16.gmra.mxu0 %v10007_v50  ;;  %6765 = vrot.lane.b32.xlu0 %v6683_v40, %s10568_s13  ;;  %v8495_v20 = vadd.f32 %v14222_v4, %v8494_v33  ;;  %v10427_v49 = vld [vmem:[#allocation4 + $0x54] ss:$8 sps:$4 sm:$0xff]   ;;  %v4195_v40 = vld [vmem:[#allocation2 + $0x104] sm:$0xf]  ;;  %v14270_v21 = vsel %vm8618_vm7, %v8492_v43, %v8650_v31  ;;  %v9878_v62 = vrot.slane %v4194_v5, 11  ;;  %v5197_v5 = vrot.slane %v5060_v6, 6 }
 0x396   : > { %v14256_v35 = vsel %vm8125_vm3, %v8049_v34, %v8157_v37  ;;  %v3724_v23 = vpop.permute.xlu1 %3723  ;;  %v7653_v41 = vld [vmem:[#allocation4 + $0x50] sm:$0xff]  ;;  %v8496_v10 = vpop.f32.mrf.mxu1  ;;  %10085 = vmatprep.mubr.msk.bf16.mxu1 %vm7898_vm2, %v10427_v49  ;;  %v6686_v34 = vsel %vm10969_vm4, %v6684_v22, %v6685_v14  ;;  %v3655_v37 = vld [vmem:[#allocation2 + $0x100] sm:$0xf]  ;;  %v5059_v22 = vld [vmem:[#allocation2 + $0x104] sm:$0xc]  ;;  %v4332_v43 = vrot.slane %v4195_v40, 7  ;;  %v2846_v14 = vsel %vm12000_vm5, %v2844_v61, %v2845_v18 }
 0x397   : > { %3807 = vst.msk [vmem:[#allocation4 + $0x60] sm:$0xf] %vm3602_vm11, %v3724_v23  ;;  %v10049_v7 = vcombine.low %v7653_v41, %v7654_v30  ;;  %vm8619_vm9 = vcmp.ge.f32.partialorder %v8495_v20, 0.0  ;;  %v8651_v36 = vmul.f32 0.01, %v8495_v20  ;;  %v4094_v15 = vpop.permute.xlu0 %4093  ;;  %v8783_v30 = vsel %vm7898_vm2, %v8733_v0, 0.0 }
 0x398   : > { %6094 = vrot.lane.b32.xlu1 %v6011_v16, %s10567_s22  ;;  %4161 = vst.msk [vmem:[#allocation3 + $0xe8] sm:$0xf] %vm4131_vm12, %v4094_v15  ;;  %v8734_v26 = vld [vmem:[%s10736_s16 + $0xa0] sm:$0xff]  ;;  %v8784_v53 = vadd.f32 %v8783_v30, %v8782_v54  ;;  %v4333_v31 = vsel %vm10969_vm4, %v9878_v62, %v4332_v43  ;;  %v8735_v41 = vld [vmem:[%s10736_s16 + $0xa8] sm:$0xff]  ;;  %v4334_v10 = vrot.slane %v4332_v43, 4  ;;  %vm10571_vm7 = vmmov 0  }
 0x399   : > { %8530 = vmatmul.mubr.bf16.gmra.mxu1 %v10049_v7  ;;  %2922 = vrot.lane.b32.xlu0 %v2843_v29, %s10563_s28  ;;  %v14272_v52 = vsel %vm8619_vm9, %v8495_v20, %v8651_v36  ;;  %v4196_v29 = vld [vmem:[#allocation2 + $0x108] sm:$0x7]  ;;  %v9910_v20 = vrot.slane %v5059_v22, 10  ;;  %v8785_v23 = vsel %vm7898_vm2, %v8734_v26, 0.0  ;;  %v3656_v0 = vld [vmem:[#allocation2 + $0x104] sm:$0xf]  ;;  %v15114_v51 = vpack.c.bf16 %v14256_v35, %v14253_v24 }
 0x39a   : > { %v4092_v50 = vpop.permute.xlu1 %4091  ;;  %v8994_v33 = vpack.c.bf16 %v14272_v52, %v14270_v21  ;;  %v4335_v7 = vrot.slane %v4196_v29, 7  ;;  %v5061_v36 = vld [vmem:[#allocation2 + $0x10c] sm:$0x3]  ;;  %v8786_v15 = vadd.f32 %v8785_v23, %v8784_v53  ;;  %v8787_v18 = vsel %vm7898_vm2, %v8735_v41, 0.0  ;;  %v7352_v40 = vld [vmem:[#allocation2 + $0x168] sm:$0xf] }
 0x39b   : > { %4160 = vst.msk [vmem:[#allocation3 + $0xe0] sm:$0xf] %vm4131_vm12, %v4092_v50  ;;  %v4399_v16 = vpop.permute.xlu0 %4398  ;;  %v5198_v61 = vsel %vm12000_vm5, %v9910_v20, %v5197_v5  ;;  %v6551_v54 = vld [vmem:[#allocation2 + $0x160] sm:$0x8]  ;;  %v8736_v50 = vld [vmem:[%s10736_s16 + $0xb0] sm:$0xff]  ;;  %v5199_v22 = vrot.slane %v5197_v5, 4 }
 0x39c   : > { %6767 = vrot.lane.b32.xlu1 %v6686_v34, %s10568_s13  ;;  %4481 = vst.msk [vmem:[#allocation4 + $0x68] sm:$0xf] %vm4131_vm12, %v4399_v16  ;;  %v4336_v30 = vsel %vm10969_vm4, %v4334_v10, %v4335_v7  ;;  %v5200_v26 = vrot.slane %v5061_v36, 6  ;;  %v7351_v16 = vld [vmem:[#allocation2 + $0x164] sm:$0xc]  ;;  %v8788_v29 = vadd.f32 %v8787_v18, %v8786_v15  ;;  %v9942_v23 = vrot.slane %v6551_v54, 11 }
 0x39d   : > { %3739 = vrot.lane.b32.xlu0 %v3655_v37, %s10564_s24  ;;  %v7489_v37 = vrot.slane %v7352_v40, 6  ;;  %v7353_v43 = vld [vmem:[#allocation2 + $0x16c] sm:$0x3]  ;;  %v9974_v6 = vrot.slane %v7351_v16, 10  ;;  %v6012_v20 = vld [vmem:[#allocation2 + $0x160] sm:$0xf] }
 0x39e   : > { %v4397_v19 = vpop.permute.xlu1 %4396  ;;  %v8789_v41 = vsel %vm7898_vm2, %v8736_v50, 0.0  ;;  %v8737_v10 = vld [vmem:[%s10736_s16 + $0xb8] sm:$0xff]  ;;  %v5201_v15 = vsel %vm12000_vm5, %v5199_v22, %v5200_v26  ;;  %v6553_v54 = vld [vmem:[#allocation2 + $0x168] sm:$0x7]  ;;  %v6013_v26 = vld [vmem:[#allocation2 + $0x164] sm:$0xf] }
 0x39f   : > { %4480 = vst.msk [vmem:[#allocation4 + $0x60] sm:$0xf] %vm4131_vm12, %v4397_v19  ;;  %v4959_v49 = vpop.permute.xlu0 %4958  ;;  %v7491_v53 = vrot.slane %v7489_v37, 4  ;;  %v7492_v19 = vrot.slane %v7353_v43, 6  ;;  %v7490_v7 = vsel %vm12000_vm5, %v9974_v6, %v7489_v37  ;;  %v8791_v37 = vsel %vm7898_vm2, %v8737_v10, 0.0 }
 0x3a0   : > { %2924 = vrot.lane.b32.xlu1 %v2846_v14, %s10563_s28  ;;  %5026 = vst.msk [vmem:[#allocation3 + $0xe8] sm:$0xf] %vm4996_vm14, %v4959_v49  ;;  %v6552_v14 = vld [vmem:[#allocation2 + $0x164] sm:$0xf]  ;;  %v2704_v49 = vld [vmem:[#allocation2 + $0xb4] sm:$0xc] }
 0x3a1   : > { %4412 = vrot.lane.b32.xlu0 %v4333_v31, %s10565_s25  ;;  %v7493_v5 = vsel %vm12000_vm5, %v7491_v53, %v7492_v19  ;;  %v6689_v36 = vrot.slane %v6552_v14, 7  ;;  %7581 = vst.msk [vmem:[#allocation4 + $0xa4] sm:$0xf] %vm786_vm8, %v7490_v7  ;;  %v9847_v50 = vrot.slane %v2704_v49, 10  ;;  %v6692_v43 = vrot.slane %v6553_v54, 7 }
 0x3a2   : > { %v4957_v34 = vpop.permute.xlu1 %4956  ;;  %7582 = vst.msk [vmem:[#allocation4 + $0xac] sm:$0xf] %vm786_vm8, %v7493_v5  ;;  %v2706_v53 = vld [vmem:[#allocation2 + $0xbc] sm:$0x3]  ;;  %v4198_v7 = vld [vmem:[#allocation2 + $0x114] sm:$0xf] }
 0x3a3   : > { %5025 = vst.msk [vmem:[#allocation3 + $0xe0] sm:$0xf] %vm4996_vm14, %v4957_v34  ;;  %v5264_v62 = vpop.permute.xlu0 %5263  ;;  %v2705_v34 = vld [vmem:[#allocation2 + $0xb8] sm:$0xf]  ;;  %v6690_v40 = vsel %vm10969_vm4, %v9942_v23, %v6689_v36  ;;  %v6691_v16 = vrot.slane %v6689_v36, 4  ;;  %v2852_v10 = vrot.slane %v2706_v53, 6 }
 0x3a4   : > { %3741 = vrot.lane.b32.xlu1 %v3656_v0, %s10564_s24  ;;  %5346 = vst.msk [vmem:[#allocation4 + $0x68] sm:$0xf] %vm4996_vm14, %v5264_v62  ;;  %v8738_v62 = vld [vmem:[%s10736_s16 + $0xc0] sm:$0xff]  ;;  %v2849_v22 = vrot.slane %v2705_v34, 6  ;;  %v3657_v36 = vld [vmem:[#allocation2 + $0x110] sm:$0xf] }
 0x3a5   : > { %5277 = vrot.lane.b32.xlu0 %v5198_v61, %s10566_s12  ;;  %v8790_v61 = vadd.f32 %v8789_v41, %v8788_v29  ;;  %v8793_v19 = vsel %vm7898_vm2, %v8738_v62, 0.0  ;;  %v6693_v41 = vsel %vm10969_vm4, %v6691_v16, %v6692_v43  ;;  %v5063_v34 = vld [vmem:[#allocation2 + $0x118] sm:$0xf]  ;;  %vm8900_vm9 = vcmask 261120  }
 0x3a6   : > { %v5262_v31 = vpop.permute.xlu1 %5261  ;;  %v2850_v6 = vsel %vm12000_vm5, %v9847_v50, %v2849_v22  ;;  %v2851_v49 = vrot.slane %v2849_v22, 4  ;;  %v4339_v50 = vrot.slane %v4198_v7, 7 }
 0x3a7   : > { %5345 = vst.msk [vmem:[#allocation4 + $0x60] sm:$0xf] %vm4996_vm14, %v5262_v31  ;;  %v5921_v0 = vpop.permute.xlu0 %5920  ;;  %v8792_v14 = vadd.f32 %v8791_v37, %v8790_v61  ;;  %v4197_v31 = vld [vmem:[#allocation2 + $0x110] sm:$0x8] }
 0x3a8   : > { %4414 = vrot.lane.b32.xlu1 %v4336_v30, %s10565_s25  ;;  %5988 = vst.msk [vmem:[#allocation3 + $0xe8] sm:$0xf] %vm5958_vm15, %v5921_v0  ;;  %v2853_v62 = vsel %vm12000_vm5, %v2851_v49, %v2852_v10  ;;  %v14349_v49 = vld [vmem:[#allocation2 + $0x11c] sm:$0x3] }
 0x3a9   : > { %6096 = vrot.lane.b32.xlu0 %v6012_v20, %s10567_s22  ;;  %v8739_v20 = vld [vmem:[%s10736_s16 + $0xc8] sm:$0xff]  ;;  %v8794_v5 = vadd.f32 %v8793_v19, %v8792_v14  ;;  %v4199_v14 = vld [vmem:[#allocation2 + $0x118] sm:$0x7] }
 0x3aa   : > { %v5919_v18 = vpop.permute.xlu1 %5918  ;;  %v8795_v61 = vsel %vm7898_vm2, %v8739_v20, 0.0  ;;  %v8741_v19 = vld [vmem:[%s10736_s16 + $0xd8] sm:$0xff]  ;;  %v3658_v20 = vld [vmem:[#allocation2 + $0x114] sm:$0xf] }
 0x3ab   : > { %5987 = vst.msk [vmem:[#allocation3 + $0xe0] sm:$0xf] %vm5958_vm15, %v5919_v18  ;;  %v6083_v30 = vpop.permute.xlu0 %6082  ;;  %v5062_v18 = vld [vmem:[#allocation2 + $0x114] sm:$0xc]  ;;  %v8796_v22 = vadd.f32 %v8795_v61, %v8794_v5 }
 0x3ac   : > { %5279 = vrot.lane.b32.xlu1 %v5201_v15, %s10566_s12  ;;  %6165 = vst.msk [vmem:[#allocation4 + $0x68] sm:$0xf] %vm5958_vm15, %v6083_v30  ;;  %v9879_v15 = vrot.slane %v4197_v31, 11  ;;  %v5204_v30 = vrot.slane %v5063_v34, 6 }
 0x3ad   : > { %6769 = vrot.lane.b32.xlu0 %v6690_v40, %s10568_s13  ;;  %v8740_v40 = vld [vmem:[%s10736_s16 + $0xd0] sm:$0xff] }
 0x3ae   : > { %v6081_v29 = vpop.permute.xlu1 %6080  ;;  %v4340_v43 = vsel %vm10969_vm4, %v9879_v15, %v4339_v50  ;;  %v14355_v15 = vld [vmem:[#allocation2 + $0x170] sm:$0x8] }
 0x3af   : > { %6164 = vst.msk [vmem:[#allocation4 + $0x60] sm:$0xf] %vm5958_vm15, %v6081_v29  ;;  %v6451_v23 = vpop.permute.xlu0 %6450  ;;  %v9911_v29 = vrot.slane %v5062_v18, 10 }
 0x3b0   : > { %6098 = vrot.lane.b32.xlu1 %v6013_v26, %s10567_s22  ;;  %6518 = vst.msk [vmem:[#allocation3 + $0xe8] sm:$0xf] %vm6488_vm1, %v6451_v23 }
 0x3b1   : > { %2926 = vrot.lane.b32.xlu0 %v2850_v6, %s10563_s28  ;;  %v8797_v6 = vsel %vm7898_vm2, %v8740_v40, 0.0 }
 0x3b2   : > { %v6449_v0 = vpop.permute.xlu1 %6448  ;;  %v8798_v34 = vadd.f32 %v8797_v6, %v8796_v22  ;;  %v6555_v22 = vld [vmem:[#allocation2 + $0x174] sm:$0xf]  ;;  %v8742_v6 = vld [vmem:[%s10736_s16 + $0xe0] sm:$0xff] }
 0x3b3   : > { %6517 = vst.msk [vmem:[#allocation3 + $0xe0] sm:$0xf] %vm6488_vm1, %v6449_v0  ;;  %v6756_v54 = vpop.permute.xlu0 %6755  ;;  %v4342_v0 = vrot.slane %v4199_v14, 7  ;;  %v8801_v55 = vsel %vm7898_vm2, %v8742_v6, 0.0 }
 0x3b4   : > { %6771 = vrot.lane.b32.xlu1 %v6693_v41, %s10568_s13  ;;  %6838 = vst.msk [vmem:[#allocation4 + $0x68] sm:$0xf] %vm6488_vm1, %v6756_v54  ;;  %v4341_v41 = vrot.slane %v4339_v50, 4  ;;  %v10429_v54 = vld [vmem:[#allocation3 + $0xe4] ss:$8 sps:$4 sm:$0xff]   ;;  %v5205_v50 = vsel %vm12000_vm5, %v9911_v29, %v5204_v30 }
 0x3b5   : > { %v8053_v37 = vpop.f32.mrf.mxu0  ;;  %3743 = vrot.lane.b32.xlu0 %v3657_v36, %s10564_s24  ;;  %v5206_v36 = vrot.slane %v5204_v30, 4  ;;  %10036 = vmatprep.mubr.msk.bf16.mxu0 %vm7898_vm2, %v10429_v54  ;;  %v6014_v29 = vld [vmem:[#allocation2 + $0x170] sm:$0xf] }
 0x3b6   : > { %v6754_v26 = vpop.permute.xlu1 %6753  ;;  %v8054_v16 = vadd.f32 %v14213_v44, %v8053_v37  ;;  %v8799_v37 = vsel %vm7898_vm2, %v8741_v19, 0.0  ;;  %v9943_v19 = vrot.slane %v14355_v15, 11 }
 0x3b7   : > { %6837 = vst.msk [vmem:[#allocation4 + $0x60] sm:$0xf] %vm6488_vm1, %v6754_v26  ;;  %v8055_v53 = vpop.f32.mrf.mxu0  ;;  %v3569_v31 = vpop.permute.xlu0 %3568  ;;  %v7622_v23 = vld [vmem:[#allocation3 + $0xe8] sm:$0xff] }
 0x3b8   : > { %2928 = vrot.lane.b32.xlu1 %v2853_v62, %s10563_s28  ;;  %v8158_v10 = vmul.f32 0.01, %v8054_v16  ;;  %3634 = vst.msk [vmem:[#allocation3 + $0xf8] sm:$0xf] %vm3602_vm11, %v3569_v31  ;;  %v7355_v62 = vld [vmem:[#allocation2 + $0x178] sm:$0xf] }
 0x3b9   : > { %v14352_v7 = vpop.f32.mrf.mxu1  ;;  %v8056_v5 = vpop.f32.mrf.mxu0  ;;  %4416 = vrot.lane.b32.xlu0 %v4340_v43, %s10565_s25  ;;  %vm8126_vm13 = vcmp.ge.f32.partialorder %v8054_v16, 0.0  ;;  %v5207_v53 = vrot.slane %v14349_v49, 6  ;;  %v7496_v31 = vrot.slane %v7355_v62, 6  ;;  %v7356_v62 = vld [vmem:[#allocation2 + $0x17c] sm:$0x3] }
 0x3ba   : > { %v3567_v61 = vpop.permute.xlu1 %3566  ;;  %v8057_v18 = vadd.f32 %v14213_v44, %v8056_v5  ;;  %v7621_v40 = vld [vmem:[#allocation3 + $0xe0] sm:$0xff] }
 0x3bb   : > { %3633 = vst.msk [vmem:[#allocation3 + $0xf0] sm:$0xf] %vm3602_vm11, %v3567_v61  ;;  %v8501_v26 = vpop.f32.mrf.mxu1  ;;  %v8058_v43 = vpop.f32.mrf.mxu0  ;;  %v10009_v14 = vcombine.low %v7621_v40, %v7622_v23  ;;  %v4343_v23 = vsel %vm10969_vm4, %v4341_v41, %v4342_v0  ;;  %v7656_v49 = vld [vmem:[#allocation4 + $0x68] sm:$0xff]  ;;  %v8800_v40 = vadd.f32 %v8799_v37, %v8798_v34  ;;  %v7498_v54 = vrot.slane %v7496_v31, 4  ;;  %v2707_v37 = vld [vmem:[#allocation2 + $0xc4] sm:$0xc] }
 0x3bc   : > { %vm8127_vm0 = vcmp.ge.f32.partialorder %v8057_v18, 0.0  ;;  %v8159_v5 = vmul.f32 0.01, %v8057_v18  ;;  %3745 = vrot.lane.b32.xlu1 %v3658_v20, %s10564_s24  ;;  %v3730_v30 = vpop.permute.xlu0 %3729  ;;  %v7354_v20 = vld [vmem:[#allocation2 + $0x174] sm:$0xc]  ;;  %v14374_v26 = vsel %vm8126_vm13, %v8054_v16, %v8158_v10  ;;  %v7499_v16 = vrot.slane %v7356_v62, 6 }
 0x3bd   : > { %3810 = vst.msk [vmem:[#allocation4 + $0x78] sm:$0xf] %vm3602_vm11, %v3730_v30  ;;  %v14368_v61 = vpop.f32.mrf.mxu1  ;;  %8092 = vmatmul.mubr.bf16.gmra.mxu0 %v10009_v14  ;;  %5281 = vrot.lane.b32.xlu0 %v5205_v50, %s10566_s12  ;;  %v10431_v14 = vld [vmem:[#allocation4 + $0x64] ss:$8 sps:$4 sm:$0xff]   ;;  %v9975_v41 = vrot.slane %v7354_v20, 10  ;;  %v8802_v20 = vadd.f32 %v8801_v55, %v8800_v40 }
 0x3be   : > { %v14377_v15 = vsel %vm8127_vm0, %v8057_v18, %v8159_v5  ;;  %v3728_v43 = vpop.permute.xlu1 %3727  ;;  %v7655_v30 = vld [vmem:[#allocation4 + $0x60] sm:$0xff]  ;;  %10086 = vmatprep.mubr.msk.bf16.mxu1 %vm7898_vm2, %v10431_v14  ;;  %v6696_v18 = vrot.slane %v6555_v22, 7  ;;  %v5208_v5 = vsel %vm12000_vm5, %v5206_v36, %v5207_v53  ;;  %v6556_v62 = vld [vmem:[#allocation2 + $0x178] sm:$0x7]  ;;  %v8744_v36 = vld [vmem:[%s10736_s16 + $0xf0] sm:$0xff] }
 0x3bf   : > { %3809 = vst.msk [vmem:[#allocation4 + $0x70] sm:$0xf] %vm3602_vm11, %v3728_v43  ;;  %v8504_v34 = vpop.f32.mrf.mxu1  ;;  %v10051_v50 = vcombine.low %v7655_v30, %v7656_v49  ;;  %v7497_v6 = vsel %vm12000_vm5, %v9975_v41, %v7496_v31  ;;  %v2708_v49 = vld [vmem:[#allocation2 + $0xc8] sm:$0xf]  ;;  %v9848_v43 = vrot.slane %v2707_v37, 10  ;;  %v8803_v30 = vsel %vm7898_vm2, %v8743_v38, 0.0 }
 0x3c0   : > { %4418 = vrot.lane.b32.xlu1 %v4343_v23, %s10565_s25  ;;  %v4098_v10 = vpop.permute.xlu0 %4097  ;;  %v7500_v23 = vsel %vm12000_vm5, %v7498_v54, %v7499_v16  ;;  %7583 = vst.msk [vmem:[#allocation4 + $0xb4] sm:$0xf] %vm786_vm8, %v7497_v6  ;;  %v6697_v31 = vsel %vm10969_vm4, %v9943_v19, %v6696_v18  ;;  %v2856_v53 = vrot.slane %v2708_v49, 6  ;;  %v6698_v19 = vrot.slane %v6696_v18, 4  ;;  %v2709_v41 = vld [vmem:[#allocation2 + $0xcc] sm:$0x3] }
 0x3c1   : > { %4163 = vst.msk [vmem:[#allocation3 + $0xf8] sm:$0xf] %vm4131_vm12, %v4098_v10  ;;  %8538 = vmatmul.mubr.bf16.gmra.mxu1 %v10051_v50  ;;  %6100 = vrot.lane.b32.xlu0 %v6014_v29, %s10567_s22  ;;  %v6015_v29 = vld [vmem:[#allocation2 + $0x174] sm:$0xf]  ;;  %v6699_v40 = vrot.slane %v6556_v62, 7  ;;  %v8804_v54 = vadd.f32 %v8803_v30, %v8802_v20  ;;  %v8805_v34 = vsel %vm7898_vm2, %v8744_v36, 0.0  ;;  %v15115_v17 = vpack.c.bf16 %v14377_v15, %v14374_v26 }
 0x3c2   : > { %v4096_v22 = vpop.permute.xlu1 %4095  ;;  %7584 = vst.msk [vmem:[#allocation4 + $0xbc] sm:$0xf] %vm786_vm8, %v7500_v23  ;;  %v2857_v38 = vsel %vm12000_vm5, %v9848_v43, %v2856_v53  ;;  %v4200_v50 = vld [vmem:[#allocation2 + $0x120] sm:$0x8]  ;;  %v8745_v37 = vld [vmem:[%s10736_s16 + $0xf8] sm:$0xff]  ;;  %v2858_v18 = vrot.slane %v2856_v53, 4  ;;  %s15028_s16 = scalar_lea.hbm %s15086_s11, %s10173_s15 }
 0x3c3   : > { %4162 = vst.msk [vmem:[#allocation3 + $0xf0] sm:$0xf] %vm4131_vm12, %v4096_v22  ;;  %v6700_v10 = vsel %vm10969_vm4, %v6698_v19, %v6699_v40  ;;  %v2859_v6 = vrot.slane %v2709_v41, 6  ;;  %v8806_v49 = vadd.f32 %v8805_v34, %v8804_v54  ;;  %v3659_v23 = vld [vmem:[#allocation2 + $0x120] sm:$0xf]  ;;  %v9880_v22 = vrot.slane %v4200_v50, 11 }
 0x3c4   : > { %5283 = vrot.lane.b32.xlu1 %v5208_v5, %s10566_s12  ;;  %v4403_v55 = vpop.permute.xlu0 %4402  ;;  %v4201_v5 = vld [vmem:[#allocation2 + $0x124] sm:$0xf]  ;;  %v5066_v53 = vld [vmem:[#allocation2 + $0x128] sm:$0xf] }
 0x3c5   : > { %4483 = vst.msk [vmem:[#allocation4 + $0x78] sm:$0xf] %vm4131_vm12, %v4403_v55  ;;  %6773 = vrot.lane.b32.xlu0 %v6697_v31, %s10568_s13  ;;  %v8807_v31 = vsel %vm7898_vm2, %v8745_v37, 0.0  ;;  %v5065_v62 = vld [vmem:[#allocation2 + $0x124] sm:$0xc]  ;;  %v4346_v30 = vrot.slane %v4201_v5, 7  ;;  %v2860_v36 = vsel %vm12000_vm5, %v2858_v18, %v2859_v6 }
 0x3c6   : > { %v4401_v14 = vpop.permute.xlu1 %4400  ;;  %v4202_v55 = vld [vmem:[#allocation2 + $0x128] sm:$0x7]  ;;  %v9912_v54 = vrot.slane %v5065_v62, 10  ;;  %v5211_v34 = vrot.slane %v5066_v53, 6  ;;  %v3660_v50 = vld [vmem:[#allocation2 + $0x124] sm:$0xf] }
 0x3c7   : > { %4482 = vst.msk [vmem:[#allocation4 + $0x70] sm:$0xf] %vm4131_vm12, %v4401_v14  ;;  %v4347_v40 = vsel %vm10969_vm4, %v9880_v22, %v4346_v30  ;;  %v4349_v41 = vrot.slane %v4202_v55, 7  ;;  %v5067_v37 = vld [vmem:[#allocation2 + $0x12c] sm:$0x3] }
 0x3c8   : > { %6102 = vrot.lane.b32.xlu1 %v6015_v29, %s10567_s22  ;;  %v4963_v16 = vpop.permute.xlu0 %4962  ;;  %v8808_v29 = vadd.f32 %v8807_v31, %v8806_v49  ;;  %v5212_v18 = vsel %vm12000_vm5, %v9912_v54, %v5211_v34  ;;  %v7358_v6 = vld [vmem:[#allocation2 + $0x188] sm:$0xf]  ;;  %v6557_v5 = vld [vmem:[#allocation2 + $0x180] sm:$0x8]  ;;  %v5213_v22 = vrot.slane %v5211_v34, 4  ;;  %v5214_v31 = vrot.slane %v5067_v37, 6 }
 0x3c9   : > { %5028 = vst.msk [vmem:[#allocation3 + $0xf8] sm:$0xf] %vm4996_vm14, %v4963_v16  ;;  %2930 = vrot.lane.b32.xlu0 %v2857_v38, %s10563_s28  ;;  %v4348_v38 = vrot.slane %v4346_v30, 4  ;;  %v7503_v49 = vrot.slane %v7358_v6, 6  ;;  %v7357_v62 = vld [vmem:[#allocation2 + $0x184] sm:$0xc] }
 0x3ca   : > { %v4961_v20 = vpop.permute.xlu1 %4960  ;;  %v8809_v16 = vrot.slane %v8808_v29, 4  ;;  %v6558_v30 = vld [vmem:[#allocation2 + $0x184] sm:$0xf]  ;;  %v9976_v55 = vrot.slane %v7357_v62, 10  ;;  %v6016_v54 = vld [vmem:[#allocation2 + $0x180] sm:$0xf] }
 0x3cb   : > { %5027 = vst.msk [vmem:[#allocation3 + $0xf0] sm:$0xf] %vm4996_vm14, %v4961_v20  ;;  %v7505_v53 = vrot.slane %v7503_v49, 4  ;;  %v6703_v37 = vrot.slane %v6558_v30, 7 }
 0x3cc   : > { %6775 = vrot.lane.b32.xlu1 %v6700_v10, %s10568_s13  ;;  %v5268_v43 = vpop.permute.xlu0 %5267 }
 0x3cd   : > { %5348 = vst.msk [vmem:[#allocation4 + $0x78] sm:$0xf] %vm4996_vm14, %v5268_v43  ;;  %3747 = vrot.lane.b32.xlu0 %v3659_v23, %s10564_s24  ;;  %v4350_v23 = vsel %vm10969_vm4, %v4348_v38, %v4349_v41  ;;  %v7359_v43 = vld [vmem:[#allocation2 + $0x18c] sm:$0x3]  ;;  %v7504_v38 = vsel %vm12000_vm5, %v9976_v55, %v7503_v49 }
 0x3ce   : > { %v5266_v19 = vpop.permute.xlu1 %5265  ;;  %7585 = vst.msk [vmem:[#allocation4 + $0xc4] sm:$0xf] %vm786_vm8, %v7504_v38 }
 0x3cf   : > { %5347 = vst.msk [vmem:[#allocation4 + $0x70] sm:$0xf] %vm4996_vm14, %v5266_v19  ;;  %v7506_v19 = vrot.slane %v7359_v43, 6 }
 0x3d0   : > { %2932 = vrot.lane.b32.xlu1 %v2860_v36, %s10563_s28  ;;  %v5925_v14 = vpop.permute.xlu0 %5924  ;;  %v8810_v36 = vadd.f32 %v8809_v16, %v8808_v29  ;;  %v5215_v29 = vsel %vm12000_vm5, %v5213_v22, %v5214_v31  ;;  %v2711_v16 = vld [vmem:[#allocation2 + $0xd8] sm:$0xf]  ;;  %v6017_v22 = vld [vmem:[#allocation2 + $0x184] sm:$0xf]  ;;  %v6705_v31 = vrot.slane %v6703_v37, 4 }
 0x3d1   : > { %5990 = vst.msk [vmem:[#allocation3 + $0xf8] sm:$0xf] %vm5958_vm15, %v5925_v14  ;;  %4420 = vrot.lane.b32.xlu0 %v4347_v40, %s10565_s25  ;;  %v9944_v14 = vrot.slane %v6557_v5, 11  ;;  %v7507_v41 = vsel %vm12000_vm5, %v7505_v53, %v7506_v19  ;;  %v6559_v5 = vld [vmem:[#allocation2 + $0x188] sm:$0x7] }
 0x3d2   : > { %v5923_v10 = vpop.permute.xlu1 %5922  ;;  %7586 = vst.msk [vmem:[#allocation4 + $0xcc] sm:$0xf] %vm786_vm8, %v7507_v41  ;;  %v6706_v43 = vrot.slane %v6559_v5, 7 }
 0x3d3   : > { %5989 = vst.msk [vmem:[#allocation3 + $0xf0] sm:$0xf] %vm5958_vm15, %v5923_v10  ;;  %v8811_v10 = vrot.slane %v8810_v36, 2  ;;  %v6704_v6 = vsel %vm10969_vm4, %v9944_v14, %v6703_v37  ;;  %v4203_v14 = vld [vmem:[#allocation2 + $0x130] sm:$0x8] }
 0x3d4   : > { %3749 = vrot.lane.b32.xlu1 %v3660_v50, %s10564_s24  ;;  %v6087_v20 = vpop.permute.xlu0 %6086  ;;  %v2710_v50 = vld [vmem:[#allocation2 + $0xd4] sm:$0xc] }
 0x3d5   : > { %6167 = vst.msk [vmem:[#allocation4 + $0x78] sm:$0xf] %vm5958_vm15, %v6087_v20  ;;  %5285 = vrot.lane.b32.xlu0 %v5212_v18, %s10566_s12  ;;  %v9849_v49 = vrot.slane %v2710_v50, 10  ;;  %v8812_v30 = vadd.f32 %v8811_v10, %v8810_v36 }
 0x3d6   : > { %v6085_v40 = vpop.permute.xlu1 %6084 }
 0x3d7   : > { %6166 = vst.msk [vmem:[#allocation4 + $0x70] sm:$0xf] %vm5958_vm15, %v6085_v40  ;;  %v2712_v40 = vld [vmem:[#allocation2 + $0xdc] sm:$0x3]  ;;  %v8813_v10 = vrot.slane %v8812_v30, 1 }
 0x3d8   : > { %4422 = vrot.lane.b32.xlu1 %v4350_v23, %s10565_s25  ;;  %v6455_v34 = vpop.permute.xlu0 %6454  ;;  %v2863_v23 = vrot.slane %v2711_v16, 6  ;;  %v2866_v16 = vrot.slane %v2712_v40, 6 }
 0x3d9   : > { %6520 = vst.msk [vmem:[#allocation3 + $0xf8] sm:$0xf] %vm6488_vm1, %v6455_v34  ;;  %6104 = vrot.lane.b32.xlu0 %v6016_v54, %s10567_s22  ;;  %v3661_v34 = vld [vmem:[#allocation2 + $0x130] sm:$0xf] }
 0x3da   : > { %v6453_v18 = vpop.permute.xlu1 %6452  ;;  %v2864_v19 = vsel %vm12000_vm5, %v9849_v49, %v2863_v23  ;;  %v2865_v41 = vrot.slane %v2863_v23, 4 }
 0x3db   : > { %6519 = vst.msk [vmem:[#allocation3 + $0xf0] sm:$0xf] %vm6488_vm1, %v6453_v18  ;;  %v4204_v18 = vld [vmem:[#allocation2 + $0x134] sm:$0xf] }
 0x3dc   : > { %5287 = vrot.lane.b32.xlu1 %v5215_v29, %s10566_s12  ;;  %v6760_v20 = vpop.permute.xlu0 %6759  ;;  %v6707_v29 = vsel %vm10969_vm4, %v6705_v31, %v6706_v43 }
 0x3dd   : > { %6840 = vst.msk [vmem:[#allocation4 + $0x78] sm:$0xf] %vm6488_vm1, %v6760_v20  ;;  %v8061_v62 = vpop.f32.mrf.mxu0  ;;  %6777 = vrot.lane.b32.xlu0 %v6704_v6, %s10568_s13  ;;  %v5069_v6 = vld [vmem:[#allocation2 + $0x138] sm:$0xf] }
 0x3de   : > { %v6758_v55 = vpop.permute.xlu1 %6757  ;;  %v8062_v53 = vadd.f32 %v14213_v44, %v8061_v62  ;;  %v10433_v62 = vld [vmem:[#allocation3 + $0xf4] ss:$8 sps:$4 sm:$0xff]  }
 0x3df   : > { %6839 = vst.msk [vmem:[#allocation4 + $0x70] sm:$0xf] %vm6488_vm1, %v6758_v55  ;;  %v8063_v54 = vpop.f32.mrf.mxu0  ;;  %10037 = vmatprep.mubr.msk.bf16.mxu0 %vm7898_vm2, %v10433_v62 }
 0x3e0   : > { %6106 = vrot.lane.b32.xlu1 %v6017_v22, %s10567_s22  ;;  %v7624_v50 = vld [vmem:[#allocation3 + $0xf8] sm:$0xff]  ;;  %v3732_v38 = vpop.permute.xlu0 %3731  ;;  %v8160_v5 = vmul.f32 0.01, %v8062_v53  ;;  %v9881_v22 = vrot.slane %v4203_v14, 11  ;;  %vm8128_vm10 = vcmp.ge.f32.partialorder %v8062_v53, 0.0 }
 0x3e1   : > { %v14458_v37 = vpop.f32.mrf.mxu1  ;;  %v8064_v36 = vpop.f32.mrf.mxu0  ;;  %3811 = vst.msk [vmem:[#allocation4 + $0x80] sm:$0xf] %vm3602_vm11, %v3732_v38  ;;  %2934 = vrot.lane.b32.xlu0 %v2864_v19, %s10563_s28  ;;  %v5068_v54 = vld [vmem:[#allocation2 + $0x134] sm:$0xc]  ;;  %v4353_v38 = vrot.slane %v4204_v18, 7 }
 0x3e2   : > { %v2917_v49 = vpop.permute.xlu1 %2916  ;;  %v8065_v20 = vadd.f32 %v14213_v44, %v8064_v36  ;;  %v7623_v23 = vld [vmem:[#allocation3 + $0xf0] sm:$0xff]  ;;  %v2867_v44 = vsel %vm12000_vm5, %v2865_v41, %v2866_v16  ;;  %v4205_v36 = vld [vmem:[#allocation2 + $0x138] sm:$0x7] }
 0x3e3   : > { %2995 = vst.msk [vmem:[#allocation4 + $0x88] sm:$0xf] %vm2638_vm6, %v2917_v49  ;;  %v8509_v55 = vpop.f32.mrf.mxu1  ;;  %v8066_v31 = vpop.f32.mrf.mxu0  ;;  %v10011_v43 = vcombine.low %v7623_v23, %v7624_v50  ;;  %v8814_v50 = vadd.f32 %v8813_v10, %v8812_v30  ;;  %v5218_v49 = vrot.slane %v5069_v6, 6  ;;  %v14473_v23 = vsel %vm8128_vm10, %v8062_v53, %v8160_v5  ;;  %v14487_v6 = vld [vmem:[#allocation2 + $0x13c] sm:$0x3] }
 0x3e4   : > { %vm8129_vm3 = vcmp.ge.f32.partialorder %v8065_v20, 0.0  ;;  %v8161_v19 = vmul.f32 0.01, %v8065_v20  ;;  %6779 = vrot.lane.b32.xlu1 %v6707_v29, %s10568_s13  ;;  %v4405_v40 = vpop.permute.xlu0 %4404  ;;  %v7658_v14 = vld [vmem:[#allocation4 + $0x78] sm:$0xff]  ;;  %v4354_v41 = vsel %vm10969_vm4, %v9881_v22, %v4353_v38  ;;  %v8503_v30 = vadd.f32 %v14222_v4, %v14368_v61  ;;  %v3662_v61 = vld [vmem:[#allocation2 + $0x134] sm:$0xf] }
 0x3e5   : > { %v8510_v0 = vpop.f32.mrf.mxu1  ;;  %8100 = vmatmul.mubr.bf16.gmra.mxu0 %v10011_v43  ;;  %4484 = vst.msk [vmem:[#allocation4 + $0x80] sm:$0xf] %vm4131_vm12, %v4405_v40  ;;  %3751 = vrot.lane.b32.xlu0 %v3661_v34, %s10564_s24  ;;  %v10435_v55 = vld [vmem:[#allocation4 + $0x74] ss:$8 sps:$4 sm:$0xff]   ;;  %v9913_v34 = vrot.slane %v5068_v54, 10  ;;  %v4356_v22 = vrot.slane %v4205_v36, 7  ;;  %v8500_v54 = vadd.f32 %v14222_v4, %v14352_v7 }
 0x3e6   : > { %v14476_v29 = vsel %vm8129_vm3, %v8065_v20, %v8161_v19  ;;  %v3734_v18 = vpop.permute.xlu1 %3733  ;;  %v7657_v62 = vld [vmem:[#allocation4 + $0x70] sm:$0xff]  ;;  %10222 = vmatprep.mubr.msk.f32.mxu0 %vm10571_vm7, %v10570_v57  ;;  %10087 = vmatprep.mubr.msk.bf16.mxu1 %vm7898_vm2, %v10435_v55  ;;  %v4355_v20 = vrot.slane %v4353_v38, 4  ;;  %v8511_v31 = vadd.f32 %v14222_v4, %v8510_v0  ;;  %v8816_v43 = vmul.f32 0.00390625, %v8814_v50  ;;  %v10438_v40 = vld [vmem:[%s15083_s8] sm:$0xff]  }
 0x3e7   : > { %v8984_v53 = vpack.c.bf16 %v14476_v29, %v14473_v23  ;;  %3812 = vst.msk [vmem:[#allocation4 + $0x88] sm:$0xf] %vm3602_vm11, %v3734_v18  ;;  %v8512_v16 = vpop.f32.mrf.mxu1  ;;  %v10053_v10 = vcombine.low %v7657_v62, %v7658_v14  ;;  %v5219_v38 = vsel %vm12000_vm5, %v9913_v34, %v5218_v49  ;;  %v5220_v0 = vrot.slane %v5218_v49, 4  ;;  %v7361_v14 = vld [vmem:[#allocation2 + $0x198] sm:$0xf] }
 0x3e8   : > { %2936 = vrot.lane.b32.xlu1 %v2867_v44, %s10563_s28  ;;  %v5270_v5 = vpop.permute.xlu0 %5269  ;;  %v5221_v44 = vrot.slane %v14487_v6, 6  ;;  %vm8621_vm13 = vcmp.ge.f32.partialorder %v8503_v30, 0.0  ;;  %v8508_v50 = vadd.f32 %v14222_v4, %v14458_v37  ;;  %v6560_v36 = vld [vmem:[#allocation2 + $0x190] sm:$0x8]  ;;  %v6561_v7 = vld [vmem:[#allocation2 + $0x194] sm:$0xf]  ;;  %v4357_v55 = vsel %vm10969_vm4, %v4355_v20, %v4356_v22 }
 0x3e9   : > { %8546 = vmatmul.mubr.bf16.gmra.mxu1 %v10053_v10  ;;  %5349 = vst.msk [vmem:[#allocation4 + $0x80] sm:$0xf] %vm4996_vm14, %v5270_v5  ;;  %4424 = vrot.lane.b32.xlu0 %v4354_v41, %s10565_s25  ;;  %v7510_v18 = vrot.slane %v7361_v14, 6  ;;  %v8653_v62 = vmul.f32 0.01, %v8503_v30  ;;  %vm8623_vm0 = vcmp.ge.f32.partialorder %v8511_v31, 0.0 }
 0x3ea   : > { %v4407_v19 = vpop.permute.xlu1 %4406  ;;  %v7360_v49 = vld [vmem:[#allocation2 + $0x194] sm:$0xc]  ;;  %v7362_v34 = vld [vmem:[#allocation2 + $0x19c] sm:$0x3]  ;;  %v8655_v16 = vmul.f32 0.01, %v8511_v31 }
 0x3eb   : > { %4485 = vst.msk [vmem:[#allocation4 + $0x88] sm:$0xf] %vm4131_vm12, %v4407_v19  ;;  %v9977_v4 = vrot.slane %v7360_v49, 10  ;;  %v7512_v37 = vrot.slane %v7510_v18, 4  ;;  %v7513_v10 = vrot.slane %v7362_v34, 6  ;;  %v10460_v20 = vld [vmem:[%s15083_s8 + $0x8] sm:$0xff]  }
 0x3ec   : > { %3753 = vrot.lane.b32.xlu1 %v3662_v61, %s10564_s24  ;;  %v6089_v41 = vpop.permute.xlu0 %6088  ;;  %v8652_v6 = vmul.f32 0.01, %v8500_v54  ;;  %v6018_v22 = vld [vmem:[#allocation2 + $0x190] sm:$0xf]  ;;  %v9945_v61 = vrot.slane %v6560_v36, 11  ;;  %vm8620_vm10 = vcmp.ge.f32.partialorder %v8500_v54, 0.0  ;;  %v5222_v36 = vsel %vm12000_vm5, %v5220_v0, %v5221_v44 }
 0x3ed   : > { %10223 = vmatmul.mubr.msk.f32.vlgmr.msra.gmra.mxu0 %vm7898_vm2, %v8816_v43  ;;  %6168 = vst.msk [vmem:[#allocation4 + $0x80] sm:$0xf] %vm5958_vm15, %v6089_v41  ;;  %5289 = vrot.lane.b32.xlu0 %v5219_v38, %s10566_s12  ;;  %v8654_v43 = vmul.f32 0.01, %v8508_v50  ;;  %v2713_v19 = vld [vmem:[#allocation2 + $0xe4] sm:$0xc]  ;;  %v7511_v38 = vsel %vm12000_vm5, %v9977_v4, %v7510_v18  ;;  %v7514_v14 = vsel %vm12000_vm5, %v7512_v37, %v7513_v10 }
 0x3ee   : > { %v5272_v5 = vpop.permute.xlu1 %5271  ;;  %10237 = vmatpush3.bf16.msra.mxu0 %v10460_v20  ;;  %10240 = vmatprep.mubr.msk.bf16.mxu0 %vm8900_vm9, %v8994_v33  ;;  %v8685_v41 = vsel %vm8621_vm13, %v8503_v30, %v8653_v62  ;;  %vm8622_vm3 = vcmp.ge.f32.partialorder %v8508_v50, 0.0  ;;  %v6710_v52 = vrot.slane %v6561_v7, 7  ;;  %7587 = vst.msk [vmem:[#allocation4 + $0xd4] sm:$0xf] %vm786_vm8, %v7511_v38  ;;  %7588 = vst.msk [vmem:[#allocation4 + $0xdc] sm:$0xf] %vm786_vm8, %v7514_v14 }
 0x3ef   : > { %5350 = vst.msk [vmem:[#allocation4 + $0x88] sm:$0xf] %vm4996_vm14, %v5272_v5  ;;  %10238 = vmatprep.subr.bf16.mxu0 %v10438_v40  ;;  %v8687_v33 = vsel %vm8623_vm0, %v8511_v31, %v8655_v16  ;;  %v2714_v18 = vld [vmem:[#allocation2 + $0xe8] sm:$0xf]  ;;  %v8684_v30 = vsel %vm8620_vm10, %v8500_v54, %v8652_v6  ;;  %v9850_v49 = vrot.slane %v2713_v19, 10  ;;  %v8686_v31 = vsel %vm8622_vm3, %v8508_v50, %v8654_v43 }
 0x3f0   : > { %4426 = vrot.lane.b32.xlu1 %v4357_v55, %s10565_s25  ;;  %v6762_v21 = vpop.permute.xlu0 %6761  ;;  %v6711_v7 = vsel %vm10969_vm4, %v9945_v61, %v6710_v52  ;;  %v6562_v55 = vld [vmem:[#allocation2 + $0x198] sm:$0x7]  ;;  %v8995_v34 = vpack.c.bf16 %v8685_v41, %v8684_v30  ;;  %v8996_v0 = vpack.c.bf16 %v8687_v33, %v8686_v31  ;;  %v2870_v16 = vrot.slane %v2714_v18, 6  ;;  %v6019_v54 = vld [vmem:[#allocation2 + $0x194] sm:$0xf] }
 0x3f1   : > { %6841 = vst.msk [vmem:[#allocation4 + $0x80] sm:$0xf] %vm6488_vm1, %v6762_v21  ;;  %6108 = vrot.lane.b32.xlu0 %v6018_v22, %s10567_s22  ;;  %v6713_v4 = vrot.slane %v6562_v55, 7  ;;  %v2715_v10 = vld [vmem:[#allocation2 + $0xec] sm:$0x3] }
 0x3f2   : > { %v6091_v62 = vpop.permute.xlu1 %6090  ;;  %10239 = vmatpush3.bf16.msra.mxu0 %v10438_v40  ;;  %v6712_v40 = vrot.slane %v6710_v52, 4  ;;  %v2871_v50 = vsel %vm12000_vm5, %v9850_v49, %v2870_v16  ;;  %v4206_v6 = vld [vmem:[#allocation2 + $0x140] sm:$0x8]  ;;  %v2872_v22 = vrot.slane %v2870_v16, 4  ;;  %v2873_v61 = vrot.slane %v2715_v10, 6 }
 0x3f3   : > { %6169 = vst.msk [vmem:[#allocation4 + $0x88] sm:$0xf] %vm5958_vm15, %v6091_v62  ;;  %v4207_v43 = vld [vmem:[#allocation2 + $0x144] sm:$0xf]  ;;  %v3663_v38 = vld [vmem:[#allocation2 + $0x140] sm:$0xf] }
 0x3f4   : > { %5291 = vrot.lane.b32.xlu1 %v5222_v36, %s10566_s12  ;;  %v2919_v44 = vpop.permute.xlu0 %2918  ;;  %v6714_v20 = vsel %vm10969_vm4, %v6712_v40, %v6713_v4  ;;  %v9882_v14 = vrot.slane %v4206_v6, 11  ;;  %v5071_v41 = vld [vmem:[#allocation2 + $0x144] sm:$0xc]  ;;  %v4360_v33 = vrot.slane %v4207_v43, 7  ;;  %v2874_v36 = vsel %vm12000_vm5, %v2872_v22, %v2873_v61  ;;  %v4208_v18 = vld [vmem:[#allocation2 + $0x148] sm:$0x7] }
 0x3f5   : > { %10241 = vmatmul.mubr.msk.bf16.vlgmr.msra.gmra.mxu0 %vm8900_vm9, %v8995_v34  ;;  %2996 = vst.msk [vmem:[#allocation4 + $0x90] sm:$0xf] %vm2638_vm6, %v2919_v44  ;;  %6781 = vrot.lane.b32.xlu0 %v6711_v7, %s10568_s13  ;;  %v5072_v30 = vld [vmem:[#allocation2 + $0x148] sm:$0xf]  ;;  %v10439_v55 = vld [vmem:[#allocation4 + $0x84] ss:$8 sps:$4 sm:$0xff]  }
 0x3f6   : > { %v6764_v37 = vpop.permute.xlu1 %6763  ;;  %10244 = vmatprep.mubr.msk.bf16.mxu0 %vm8900_vm9, %v8996_v0  ;;  %v4361_v49 = vsel %vm10969_vm4, %v9882_v14, %v4360_v33  ;;  %v9914_v34 = vrot.slane %v5071_v41, 10  ;;  %10088 = vmatprep.mubr.msk.bf16.mxu1 %vm7898_vm2, %v10439_v55  ;;  %v4362_v44 = vrot.slane %v4360_v33, 4  ;;  %v4363_v16 = vrot.slane %v4208_v18, 7  ;;  %v3664_v40 = vld [vmem:[#allocation2 + $0x144] sm:$0xf] }
 0x3f7   : > { %6842 = vst.msk [vmem:[#allocation4 + $0x88] sm:$0xf] %vm6488_vm1, %v6764_v37  ;;  %v7364_v10 = vld [vmem:[#allocation2 + $0x1a8] sm:$0xf]  ;;  %v6563_v6 = vld [vmem:[#allocation2 + $0x1a0] sm:$0x8] }
 0x3f8   : > { %6110 = vrot.lane.b32.xlu1 %v6019_v54, %s10567_s22  ;;  %v3736_v5 = vpop.permute.xlu0 %3735  ;;  %v7659_v21 = vld [vmem:[#allocation4 + $0x80] sm:$0xff]  ;;  %v5225_v54 = vrot.slane %v5072_v30, 6  ;;  %v2716_v55 = vld [vmem:[#allocation2 + $0xf4] sm:$0xc] }
 0x3f9   : > { %3813 = vst.msk [vmem:[#allocation4 + $0x90] sm:$0xf] %vm3602_vm11, %v3736_v5  ;;  %2938 = vrot.lane.b32.xlu0 %v2871_v50, %s10563_s28  ;;  %v5073_v50 = vld [vmem:[#allocation2 + $0x14c] sm:$0x3]  ;;  %v7517_v5 = vrot.slane %v7364_v10, 6 }
 0x3fa   : > { %v2921_v19 = vpop.permute.xlu1 %2920  ;;  %v5226_v37 = vsel %vm12000_vm5, %v9914_v34, %v5225_v54  ;;  %v5227_v61 = vrot.slane %v5225_v54, 4  ;;  %v7363_v43 = vld [vmem:[#allocation2 + $0x1a4] sm:$0xc]  ;;  %v5228_v14 = vrot.slane %v5073_v50, 6  ;;  %v14574_v18 = vld [vmem:[%s15079_s4] ss:$0 sm:$0xff] }
 0x3fb   : > { %2997 = vst.msk [vmem:[#allocation4 + $0x98] sm:$0xf] %vm2638_vm6, %v2921_v19  ;;  %v7365_v19 = vld [vmem:[#allocation2 + $0x1ac] sm:$0x3]  ;;  %v6564_v41 = vld [vmem:[#allocation2 + $0x1a4] sm:$0xf] }
 0x3fc   : > { %6783 = vrot.lane.b32.xlu1 %v6714_v20, %s10568_s13  ;;  %v4409_v52 = vpop.permute.xlu0 %4408  ;;  %v4364_v20 = vsel %vm10969_vm4, %v4362_v44, %v4363_v16  ;;  %v7520_v33 = vrot.slane %v7365_v19, 6  ;;  %v6717_v44 = vrot.slane %v6564_v41, 7  ;;  %v2717_v16 = vld [vmem:[#allocation2 + $0xf8] sm:$0xf]  ;;  %v14592_v10 = vld [vmem:[%s15080_s5] ss:$0 sm:$0xff] }
 0x3fd   : > { %4486 = vst.msk [vmem:[#allocation4 + $0x90] sm:$0xf] %vm4131_vm12, %v4409_v52  ;;  %3755 = vrot.lane.b32.xlu0 %v3663_v38, %s10564_s24  ;;  %v7519_v52 = vrot.slane %v7517_v5, 4 }
 0x3fe   : > { %v3738_v62 = vpop.permute.xlu1 %3737  ;;  %v7660_v7 = vld [vmem:[#allocation4 + $0x88] sm:$0xff] }
 0x3ff   : > { %3814 = vst.msk [vmem:[#allocation4 + $0x98] sm:$0xf] %vm3602_vm11, %v3738_v62  ;;  %v10055_v31 = vcombine.low %v7659_v21, %v7660_v7  ;;  %v9978_v21 = vrot.slane %v7363_v43, 10  ;;  %v6020_v62 = vld [vmem:[#allocation2 + $0x1a0] sm:$0xf]  ;;  %v9946_v7 = vrot.slane %v6563_v6, 11 }
 0x400   : > { %2940 = vrot.lane.b32.xlu1 %v2874_v36, %s10563_s28  ;;  %v5274_v0 = vpop.permute.xlu0 %5273 }
 0x401   : > { %8554 = vmatmul.mubr.bf16.gmra.mxu1 %v10055_v31  ;;  %5351 = vst.msk [vmem:[#allocation4 + $0x90] sm:$0xf] %vm4996_vm14, %v5274_v0  ;;  %4428 = vrot.lane.b32.xlu0 %v4361_v49, %s10565_s25  ;;  %v7518_v34 = vsel %vm12000_vm5, %v9978_v21, %v7517_v5  ;;  %v7521_v31 = vsel %vm12000_vm5, %v7519_v52, %v7520_v33  ;;  %v6021_v52 = vld [vmem:[#allocation2 + $0x1a4] sm:$0xf]  ;;  %v6719_v33 = vrot.slane %v6717_v44, 4 }
 0x402   : > { %v4411_v4 = vpop.permute.xlu1 %4410  ;;  %7589 = vst.msk [vmem:[#allocation4 + $0xe4] sm:$0xf] %vm786_vm8, %v7518_v34  ;;  %7590 = vst.msk [vmem:[#allocation4 + $0xec] sm:$0xf] %vm786_vm8, %v7521_v31 }
 0x403   : > { %4487 = vst.msk [vmem:[#allocation4 + $0x98] sm:$0xf] %vm4131_vm12, %v4411_v4  ;;  %v5229_v4 = vsel %vm12000_vm5, %v5227_v61, %v5228_v14  ;;  %v6565_v61 = vld [vmem:[#allocation2 + $0x1a8] sm:$0x7] }
 0x404   : > { %3757 = vrot.lane.b32.xlu1 %v3664_v40, %s10564_s24  ;;  %v6093_v22 = vpop.permute.xlu0 %6092 }
 0x405   : > { %v8069_v38 = vpop.f32.mrf.mxu0  ;;  %6170 = vst.msk [vmem:[#allocation4 + $0x90] sm:$0xf] %vm5958_vm15, %v6093_v22  ;;  %5293 = vrot.lane.b32.xlu0 %v5226_v37, %s10566_s12  ;;  %v9851_v37 = vrot.slane %v2716_v55, 10  ;;  %v6718_v22 = vsel %vm10969_vm4, %v9946_v7, %v6717_v44 }
 0x406   : > { %v5276_v36 = vpop.permute.xlu1 %5275  ;;  %v8070_v30 = vadd.f32 %v14574_v18, %v8069_v38  ;;  %v2877_v38 = vrot.slane %v2717_v16, 6 }
 0x407   : > { %5352 = vst.msk [vmem:[#allocation4 + $0x98] sm:$0xf] %vm4996_vm14, %v5276_v36  ;;  %v8071_v49 = vpop.f32.mrf.mxu0  ;;  %v6720_v36 = vrot.slane %v6565_v61, 7 }
 0x408   : > { %4430 = vrot.lane.b32.xlu1 %v4364_v20, %s10565_s25  ;;  %v6766_v0 = vpop.permute.xlu0 %6765  ;;  %v8162_v50 = vmul.f32 0.01, %v8070_v30  ;;  %vm8130_vm13 = vcmp.ge.f32.partialorder %v8070_v30, 0.0 }
 0x409   : > { %v8515_v54 = vpop.f32.mrf.mxu1  ;;  %v8072_v40 = vpop.f32.mrf.mxu0  ;;  %6843 = vst.msk [vmem:[#allocation4 + $0x90] sm:$0xf] %vm6488_vm1, %v6766_v0  ;;  %6112 = vrot.lane.b32.xlu0 %v6020_v62, %s10567_s22  ;;  %v2878_v62 = vsel %vm12000_vm5, %v9851_v37, %v2877_v38  ;;  %v2718_v0 = vld [vmem:[#allocation2 + $0xfc] sm:$0x3]  ;;  %v2879_v37 = vrot.slane %v2877_v38, 4 }
 0x40a   : > { %v8516_v6 = vadd.f32 %v14592_v10, %v8515_v54  ;;  %v6095_v5 = vpop.permute.xlu1 %6094  ;;  %v8073_v20 = vadd.f32 %v14574_v18, %v8072_v40  ;;  %v14605_v7 = vsel %vm8130_vm13, %v8070_v30, %v8162_v50  ;;  %v4209_v54 = vld [vmem:[#allocation2 + $0x150] sm:$0x8]  ;;  %v2880_v50 = vrot.slane %v2718_v0, 6 }
 0x40b   : > { %6171 = vst.msk [vmem:[#allocation4 + $0x98] sm:$0xf] %vm5958_vm15, %v6095_v5  ;;  %v8517_v43 = vpop.f32.mrf.mxu1  ;;  %v8074_v19 = vpop.f32.mrf.mxu0  ;;  %v4210_v5 = vld [vmem:[#allocation2 + $0x154] sm:$0xf] }
 0x40c   : > { %vm8131_vm0 = vcmp.ge.f32.partialorder %v8073_v20, 0.0  ;;  %v8163_v14 = vmul.f32 0.01, %v8073_v20  ;;  %5295 = vrot.lane.b32.xlu1 %v5229_v4, %s10566_s12  ;;  %v2923_v41 = vpop.permute.xlu0 %2922  ;;  %v8656_v55 = vmul.f32 0.01, %v8516_v6  ;;  %vm8624_vm10 = vcmp.ge.f32.partialorder %v8516_v6, 0.0 }
 0x40d   : > { %v8518_v21 = vpop.f32.mrf.mxu1  ;;  %2998 = vst.msk [vmem:[#allocation4 + $0xa0] sm:$0xf] %vm2638_vm6, %v2923_v41  ;;  %6785 = vrot.lane.b32.xlu0 %v6718_v22, %s10568_s13  ;;  %v6721_v4 = vsel %vm10969_vm4, %v6719_v33, %v6720_v36  ;;  %v3665_v43 = vld [vmem:[#allocation2 + $0x150] sm:$0xf]  ;;  %v9883_v19 = vrot.slane %v4209_v54, 11  ;;  %v4367_v33 = vrot.slane %v4210_v5, 7  ;;  %v2881_v38 = vsel %vm12000_vm5, %v2879_v37, %v2880_v50 }
 0x40e   : > { %v14607_v49 = vsel %vm8131_vm0, %v8073_v20, %v8163_v14  ;;  %v8519_v34 = vadd.f32 %v14592_v10, %v8518_v21  ;;  %v6768_v31 = vpop.permute.xlu1 %6767  ;;  %v8688_v20 = vsel %vm8624_vm10, %v8516_v6, %v8656_v55  ;;  %v5074_v41 = vld [vmem:[#allocation2 + $0x154] sm:$0xc]  ;;  %v4211_v6 = vld [vmem:[#allocation2 + $0x158] sm:$0x7] }
 0x40f   : > { %v8985_v16 = vpack.c.bf16 %v14607_v49, %v14605_v7  ;;  %6844 = vst.msk [vmem:[#allocation4 + $0x98] sm:$0xf] %vm6488_vm1, %v6768_v31  ;;  %v8520_v44 = vpop.f32.mrf.mxu1  ;;  %v5075_v36 = vld [vmem:[#allocation2 + $0x158] sm:$0xf]  ;;  %v4368_v31 = vsel %vm10969_vm4, %v9883_v19, %v4367_v33  ;;  %v9915_v0 = vrot.slane %v5074_v41, 10 }
 0x410   : > { %vm8625_vm3 = vcmp.ge.f32.partialorder %v8519_v34, 0.0  ;;  %v8657_v40 = vmul.f32 0.01, %v8519_v34  ;;  %6114 = vrot.lane.b32.xlu1 %v6021_v52, %s10567_s22  ;;  %v3740_v30 = vpop.permute.xlu0 %3739  ;;  %v7661_v21 = vld [vmem:[#allocation4 + $0x90] sm:$0xff] }
 0x411   : > { %3815 = vst.msk [vmem:[#allocation4 + $0xa0] sm:$0xf] %vm3602_vm11, %v3740_v30  ;;  %2942 = vrot.lane.b32.xlu0 %v2878_v62, %s10563_s28  ;;  %v4370_v30 = vrot.slane %v4211_v6, 7  ;;  %v3666_v37 = vld [vmem:[#allocation2 + $0x154] sm:$0xf] }
 0x412   : > { %v8689_v22 = vsel %vm8625_vm3, %v8519_v34, %v8657_v40  ;;  %v2925_v61 = vpop.permute.xlu1 %2924  ;;  %v10441_v34 = vld [vmem:[#allocation4 + $0x94] ss:$8 sps:$4 sm:$0xff]   ;;  %v4369_v40 = vrot.slane %v4367_v33, 4 }
 0x413   : > { %v8997_v14 = vpack.c.bf16 %v8689_v22, %v8688_v20  ;;  %2999 = vst.msk [vmem:[#allocation4 + $0xa8] sm:$0xf] %vm2638_vm6, %v2925_v61  ;;  %10089 = vmatprep.mubr.msk.bf16.mxu1 %vm7898_vm2, %v10441_v34  ;;  %v5076_v20 = vld [vmem:[#allocation2 + $0x15c] sm:$0x3]  ;;  %v7367_v22 = vld [vmem:[#allocation2 + $0x1b8] sm:$0xf] }
 0x414   : > { %6787 = vrot.lane.b32.xlu1 %v6721_v4, %s10568_s13  ;;  %v4413_v52 = vpop.permute.xlu0 %4412  ;;  %v5232_v4 = vrot.slane %v5075_v36, 6  ;;  %v6566_v61 = vld [vmem:[#allocation2 + $0x1b0] sm:$0x8]  ;;  %v4371_v19 = vsel %vm10969_vm4, %v4369_v40, %v4370_v30  ;;  %v5235_v33 = vrot.slane %v5076_v20, 6  ;;  %v6023_v20 = vld [vmem:[#allocation2 + $0x1b4] sm:$0xf] }
 0x415   : > { %10245 = vmatmul.mubr.msk.bf16.gmra.mxu0 %vm8900_vm9, %v8997_v14  ;;  %4488 = vst.msk [vmem:[#allocation4 + $0xa0] sm:$0xf] %vm4131_vm12, %v4413_v52  ;;  %3759 = vrot.lane.b32.xlu0 %v3665_v43, %s10564_s24  ;;  %v7524_v43 = vrot.slane %v7367_v22, 6  ;;  %v7368_v52 = vld [vmem:[#allocation2 + $0x1bc] sm:$0x3] }
 0x416   : > { %v3742_v62 = vpop.permute.xlu1 %3741  ;;  %v7662_v55 = vld [vmem:[#allocation4 + $0x98] sm:$0xff]  ;;  %v5233_v5 = vsel %vm12000_vm5, %v9915_v0, %v5232_v4  ;;  %v5234_v41 = vrot.slane %v5232_v4, 4  ;;  %v6022_v34 = vld [vmem:[#allocation2 + $0x1b0] sm:$0xf] }
 0x417   : > { %3816 = vst.msk [vmem:[#allocation4 + $0xa8] sm:$0xf] %vm3602_vm11, %v3742_v62  ;;  %v10057_v44 = vcombine.low %v7661_v21, %v7662_v55  ;;  %v7366_v21 = vld [vmem:[#allocation2 + $0x1b4] sm:$0xc]  ;;  %v7526_v36 = vrot.slane %v7524_v43, 4  ;;  %v7527_v62 = vrot.slane %v7368_v52, 6 }
 0x418   : > { %2944 = vrot.lane.b32.xlu1 %v2881_v38, %s10563_s28  ;;  %v5278_v54 = vpop.permute.xlu0 %5277  ;;  %v6567_v38 = vld [vmem:[#allocation2 + $0x1b4] sm:$0xf]  ;;  %v9979_v6 = vrot.slane %v7366_v21, 10  ;;  %v5236_v30 = vsel %vm12000_vm5, %v5234_v41, %v5235_v33  ;;  %v8899_v41 = vld [vmem:[%s15084_s9 + $0x18] sm:$0xff]  ;;  %s10572_s28 = smov [#allocation8]  }
 0x419   : > { %8562 = vmatmul.mubr.bf16.gmra.mxu1 %v10057_v44  ;;  %5353 = vst.msk [vmem:[#allocation4 + $0xa0] sm:$0xf] %vm4996_vm14, %v5278_v54  ;;  %4432 = vrot.lane.b32.xlu0 %v4368_v31, %s10565_s25  ;;  %v9947_v31 = vrot.slane %v6566_v61, 11  ;;  %v7528_v44 = vsel %vm12000_vm5, %v7526_v36, %v7527_v62  ;;  %v6724_v40 = vrot.slane %v6567_v38, 7  ;;  %v10443_v62 = vld [vmem:[#allocation4 + $0xa4] ss:$8 sps:$4 sm:$0xff]  }
 0x41a   : > { %v4415_v50 = vpop.permute.xlu1 %4414  ;;  %v7525_v0 = vsel %vm12000_vm5, %v9979_v6, %v7524_v43  ;;  %7592 = vst.msk [vmem:[#allocation4 + $0xfc] sm:$0xf] %vm786_vm8, %v7528_v44  ;;  %10226 = vmatpush3.msra.mxu1 %v8899_v41  ;;  %10090 = vmatprep.mubr.msk.bf16.mxu1 %vm7898_vm2, %v10443_v62 }
 0x41b   : > { %4489 = vst.msk [vmem:[#allocation4 + $0xa8] sm:$0xf] %vm4131_vm12, %v4415_v50  ;;  %v6568_v50 = vld [vmem:[#allocation2 + $0x1b8] sm:$0x7]  ;;  %v6726_v45 = vrot.slane %v6724_v40, 4  ;;  %10227 = vmatprep.subr.mxu1 %v10570_v57 }
 0x41c   : > { %3761 = vrot.lane.b32.xlu1 %v3666_v37, %s10564_s24  ;;  %v6097_v14 = vpop.permute.xlu0 %6096  ;;  %7591 = vst.msk [vmem:[#allocation4 + $0xf4] sm:$0xf] %vm786_vm8, %v7525_v0  ;;  %v6725_v37 = vsel %vm10969_vm4, %v9947_v31, %v6724_v40  ;;  %v6727_v22 = vrot.slane %v6568_v50, 7  ;;  %10228 = vmatpush3.msra.mxu1 %v8898_v3  ;;  %v8897_v31 = vld [vmem:[%s15084_s9 + $0x8] sm:$0xff]  ;;  %v8896_v40 = vld [vmem:[%s15084_s9] sm:$0xff]  ;;  %s10496_s24 = sshll.u32 %s10572_s28, 4  ;;  %s10497_s24 = int_to_ptr.vmem [resolvable:$false] %s10496_s24 }
 0x41d   : > { %6172 = vst.msk [vmem:[#allocation4 + $0xa0] sm:$0xf] %vm5958_vm15, %v6097_v14  ;;  %5297 = vrot.lane.b32.xlu0 %v5233_v5, %s10566_s12  ;;  %10229 = vmatprep.subr.mxu1 %v10570_v57  ;;  %p10499_p7 = scmp.lt.s32.totalorder %s15030_s14, %s10497_s24 }
 0x41e   : > { %v5280_v55 = vpop.permute.xlu1 %5279  ;;  %10230 = vmatpush3.msra.mxu1 %v8897_v31 }
 0x41f   : > { %5354 = vst.msk [vmem:[#allocation4 + $0xa8] sm:$0xf] %vm4996_vm14, %v5280_v55  ;;  %10231 = vmatprep.subr.mxu1 %v10570_v57 }
 0x420   : > { %4434 = vrot.lane.b32.xlu1 %v4371_v19, %s10565_s25  ;;  %v6770_v54 = vpop.permute.xlu0 %6769  ;;  %v6728_v19 = vsel %vm10969_vm4, %v6726_v45, %v6727_v22  ;;  %10232 = vmatpush3.msra.mxu1 %v8896_v40  ;;  %s10498_s25 = scalar_lea.vmem %s10497_s24, 8192 }
 0x421   : > { %6845 = vst.msk [vmem:[#allocation4 + $0xa0] sm:$0xf] %vm6488_vm1, %v6770_v54  ;;  %6116 = vrot.lane.b32.xlu0 %v6022_v34, %s10567_s22  ;;  %p10500_p8 = scmp.lt.s32.totalorder %s10498_s25, %s10492_s23 }
 0x422   : > { %v6099_v4 = vpop.permute.xlu1 %6098 }
 0x423   : > { %6173 = vst.msk [vmem:[#allocation4 + $0xa8] sm:$0xf] %vm5958_vm15, %v6099_v4  ;;  %p10501_p10 = por %p10500_p8, %p10499_p7 }
 0x424   : > { %5299 = vrot.lane.b32.xlu1 %v5236_v30, %s10566_s12  ;;  %v2927_v5 = vpop.permute.xlu0 %2926  ;;  %v14688_v30 = vld [vmem:[%s15082_s7 + $0x8] sm:$0xff]  }
 0x425   : > { %3000 = vst.msk [vmem:[#allocation4 + $0xb0] sm:$0xf] %vm2638_vm6, %v2927_v5  ;;  %6789 = vrot.lane.b32.xlu0 %v6725_v37, %s10568_s13  ;;  %10272 = vmatprep.subr.bf16.mxu1 %v14688_v30  ;;  %p10502_p0 = pnand %p10501_p10, %p10495_p5 }
 0x426   : > { %v6772_v61 = vpop.permute.xlu1 %6771 }
 0x427   : > { %6846 = vst.msk [vmem:[#allocation4 + $0xa8] sm:$0xf] %vm6488_vm1, %v6772_v61 }
 0x428   : > { %6118 = vrot.lane.b32.xlu1 %v6023_v20, %s10567_s22  ;;  %v3744_v43 = vpop.permute.xlu0 %3743  ;;  %v7663_v21 = vld [vmem:[#allocation4 + $0xa0] sm:$0xff] }
 0x429   : > { %3817 = vst.msk [vmem:[#allocation4 + $0xb0] sm:$0xf] %vm3602_vm11, %v3744_v43 }
 0x42a   : > { %v2929_v14 = vpop.permute.xlu1 %2928 }
 0x42b   : > { %3001 = vst.msk [vmem:[#allocation4 + $0xb8] sm:$0xf] %vm2638_vm6, %v2929_v14 }
 0x42c   : > { %6791 = vrot.lane.b32.xlu1 %v6728_v19, %s10568_s13  ;;  %v4417_v52 = vpop.permute.xlu0 %4416 }
 0x42d   : > { %v8077_v33 = vpop.f32.mrf.mxu0  ;;  %4490 = vst.msk [vmem:[#allocation4 + $0xb0] sm:$0xf] %vm4131_vm12, %v4417_v52 }
 0x42e   : > { %v3746_v38 = vpop.permute.xlu1 %3745  ;;  %v8078_v6 = vadd.f32 %v14574_v18, %v8077_v33  ;;  %v7664_v36 = vld [vmem:[#allocation4 + $0xa8] sm:$0xff] }
 0x42f   : > { %3818 = vst.msk [vmem:[#allocation4 + $0xb8] sm:$0xf] %vm3602_vm11, %v3746_v38  ;;  %v8079_v55 = vpop.f32.mrf.mxu0  ;;  %v10059_v34 = vcombine.low %v7663_v21, %v7664_v36 }
 0x430   : > { %v5282_v0 = vpop.permute.xlu0 %5281  ;;  %v8164_v4 = vmul.f32 0.01, %v8078_v6  ;;  %vm8132_vm4 = vcmp.ge.f32.partialorder %v8078_v6, 0.0 }
 0x431   : > { %v8523_v44 = vpop.f32.mrf.mxu1  ;;  %v8080_v54 = vpop.f32.mrf.mxu0  ;;  %8570 = vmatmul.mubr.bf16.gmra.mxu1 %v10059_v34  ;;  %5355 = vst.msk [vmem:[#allocation4 + $0xb0] sm:$0xf] %vm4996_vm14, %v5282_v0 }
 0x432   : > { %v8524_v37 = vadd.f32 %v14592_v10, %v8523_v44  ;;  %v4419_v50 = vpop.permute.xlu1 %4418  ;;  %v8081_v5 = vadd.f32 %v14574_v18, %v8080_v54  ;;  %v14695_v19 = vsel %vm8132_vm4, %v8078_v6, %v8164_v4 }
 0x433   : > { %4491 = vst.msk [vmem:[#allocation4 + $0xb8] sm:$0xf] %vm4131_vm12, %v4419_v50  ;;  %v8082_v20 = vpop.f32.mrf.mxu0  ;;  %v8525_v45 = vpop.f32.mrf.mxu1 }
 0x434   : > { %vm8133_vm8 = vcmp.ge.f32.partialorder %v8081_v5, 0.0  ;;  %v8165_v22 = vmul.f32 0.01, %v8081_v5  ;;  %v6101_v61 = vpop.permute.xlu0 %6100  ;;  %v8658_v14 = vmul.f32 0.01, %v8524_v37  ;;  %vm8626_vm5 = vcmp.ge.f32.partialorder %v8524_v37, 0.0 }
 0x435   : > { %v8526_v43 = vpop.f32.mrf.mxu1  ;;  %6174 = vst.msk [vmem:[#allocation4 + $0xb0] sm:$0xf] %vm5958_vm15, %v6101_v61 }
 0x436   : > { %v14697_v41 = vsel %vm8133_vm8, %v8081_v5, %v8165_v22  ;;  %v8527_v21 = vadd.f32 %v14592_v10, %v8526_v43  ;;  %v5284_v52 = vpop.permute.xlu1 %5283  ;;  %v8690_v6 = vsel %vm8626_vm5, %v8524_v37, %v8658_v14  ;;  %v10445_v5 = vld [vmem:[#allocation4 + $0xb4] ss:$8 sps:$4 sm:$0xff]  }
 0x437   : > { %v8986_v33 = vpack.c.bf16 %v14697_v41, %v14695_v19  ;;  %5356 = vst.msk [vmem:[#allocation4 + $0xb8] sm:$0xf] %vm4996_vm14, %v5284_v52  ;;  %v8528_v3 = vpop.f32.mrf.mxu1  ;;  %10091 = vmatprep.mubr.msk.bf16.mxu1 %vm7898_vm2, %v10445_v5 }
 0x438   : > { %vm8627_vm13 = vcmp.ge.f32.partialorder %v8527_v21, 0.0  ;;  %v8659_v38 = vmul.f32 0.01, %v8527_v21  ;;  %v6774_v36 = vpop.permute.xlu0 %6773 }
 0x439   : > { %6847 = vst.msk [vmem:[#allocation4 + $0xb0] sm:$0xf] %vm6488_vm1, %v6774_v36 }
 0x43a   : > { %v8691_v62 = vsel %vm8627_vm13, %v8527_v21, %v8659_v38  ;;  %v6103_v55 = vpop.permute.xlu1 %6102 }
 0x43b   : > { %v8998_v34 = vpack.c.bf16 %v8691_v62, %v8690_v6  ;;  %6175 = vst.msk [vmem:[#allocation4 + $0xb8] sm:$0xf] %vm5958_vm15, %v6103_v55 }
 0x43c   : > { %v2931_v31 = vpop.permute.xlu0 %2930 }
 0x43d   : > { %10248 = vmatprep.mubr.msk.bf16.mxu0 %vm8900_vm9, %v8998_v34  ;;  %3002 = vst.msk [vmem:[#allocation4 + $0xc0] sm:$0xf] %vm2638_vm6, %v2931_v31 }
 0x43e   : > { %v6776_v0 = vpop.permute.xlu1 %6775 }
 0x43f   : > { %6848 = vst.msk [vmem:[#allocation4 + $0xb8] sm:$0xf] %vm6488_vm1, %v6776_v0 }
 0x440   : > { %v3748_v44 = vpop.permute.xlu0 %3747  ;;  %v7665_v40 = vld [vmem:[#allocation4 + $0xb0] sm:$0xff] }
 0x441   : > { %3819 = vst.msk [vmem:[#allocation4 + $0xc0] sm:$0xf] %vm3602_vm11, %v3748_v44 }
 0x442   : > { %v2933_v54 = vpop.permute.xlu1 %2932 }
 0x443   : > { %3003 = vst.msk [vmem:[#allocation4 + $0xc8] sm:$0xf] %vm2638_vm6, %v2933_v54 }
 0x444   : > { %v4421_v4 = vpop.permute.xlu0 %4420 }
 0x445   : > { %4492 = vst.msk [vmem:[#allocation4 + $0xc0] sm:$0xf] %vm4131_vm12, %v4421_v4 }
 0x446   : > { %v3750_v37 = vpop.permute.xlu1 %3749  ;;  %v7666_v50 = vld [vmem:[#allocation4 + $0xb8] sm:$0xff] }
 0x447   : > { %3820 = vst.msk [vmem:[#allocation4 + $0xc8] sm:$0xf] %vm3602_vm11, %v3750_v37  ;;  %v10061_v20 = vcombine.low %v7665_v40, %v7666_v50 }
 0x448   : > { %v5286_v45 = vpop.permute.xlu0 %5285 }
 0x449   : > { %8578 = vmatmul.mubr.bf16.gmra.mxu1 %v10061_v20  ;;  %5357 = vst.msk [vmem:[#allocation4 + $0xc0] sm:$0xf] %vm4996_vm14, %v5286_v45 }
 0x44a   : > { %v4423_v22 = vpop.permute.xlu1 %4422 }
 0x44b   : > { %4493 = vst.msk [vmem:[#allocation4 + $0xc8] sm:$0xf] %vm4131_vm12, %v4423_v22 }
 0x44c   : > { %v6105_v61 = vpop.permute.xlu0 %6104 }
 0x44d   : > { %6176 = vst.msk [vmem:[#allocation4 + $0xc0] sm:$0xf] %vm5958_vm15, %v6105_v61 }
 0x44e   : > { %v5288_v43 = vpop.permute.xlu1 %5287 }
 0x44f   : > { %5358 = vst.msk [vmem:[#allocation4 + $0xc8] sm:$0xf] %vm4996_vm14, %v5288_v43 }
 0x450   : > { %v6778_v14 = vpop.permute.xlu0 %6777 }
 0x451   : > { %6849 = vst.msk [vmem:[#allocation4 + $0xc0] sm:$0xf] %vm6488_vm1, %v6778_v14 }
 0x452   : > { %v6107_v21 = vpop.permute.xlu1 %6106 }
 0x453   : > { %6177 = vst.msk [vmem:[#allocation4 + $0xc8] sm:$0xf] %vm5958_vm15, %v6107_v21 }
 0x454   : > { %v2935_v52 = vpop.permute.xlu0 %2934 }
 0x455   : > { %v8085_v3 = vpop.f32.mrf.mxu0  ;;  %3004 = vst.msk [vmem:[#allocation4 + $0xd0] sm:$0xf] %vm2638_vm6, %v2935_v52  ;;  %v10447_v52 = vld [vmem:[#allocation4 + $0xc4] ss:$8 sps:$4 sm:$0xff]  }
 0x456   : > { %v6780_v38 = vpop.permute.xlu1 %6779  ;;  %v8086_v36 = vadd.f32 %v14574_v18, %v8085_v3  ;;  %10092 = vmatprep.mubr.msk.bf16.mxu1 %vm7898_vm2, %v10447_v52  ;;  %v10449_v52 = vld [vmem:[#allocation4 + $0xd4] ss:$8 sps:$4 sm:$0xff]  }
 0x457   : > { %6850 = vst.msk [vmem:[#allocation4 + $0xc8] sm:$0xf] %vm6488_vm1, %v6780_v38  ;;  %v8087_v6 = vpop.f32.mrf.mxu0 }
 0x458   : > { %v3752_v62 = vpop.permute.xlu0 %3751  ;;  %v8166_v31 = vmul.f32 0.01, %v8086_v36  ;;  %vm8134_vm0 = vcmp.ge.f32.partialorder %v8086_v36, 0.0  ;;  %v7667_v50 = vld [vmem:[#allocation4 + $0xc0] sm:$0xff] }
 0x459   : > { %v8531_v55 = vpop.f32.mrf.mxu1  ;;  %v8088_v34 = vpop.f32.mrf.mxu0  ;;  %3821 = vst.msk [vmem:[#allocation4 + $0xd0] sm:$0xf] %vm3602_vm11, %v3752_v62 }
 0x45a   : > { %v8532_v0 = vadd.f32 %v14592_v10, %v8531_v55  ;;  %v2937_v44 = vpop.permute.xlu1 %2936  ;;  %v8089_v54 = vadd.f32 %v14574_v18, %v8088_v34  ;;  %v14727_v45 = vsel %vm8134_vm0, %v8086_v36, %v8166_v31 }
 0x45b   : > { %3005 = vst.msk [vmem:[#allocation4 + $0xd8] sm:$0xf] %vm2638_vm6, %v2937_v44  ;;  %v8090_v40 = vpop.f32.mrf.mxu0  ;;  %v8533_v4 = vpop.f32.mrf.mxu1 }
 0x45c   : > { %vm8135_vm10 = vcmp.ge.f32.partialorder %v8089_v54, 0.0  ;;  %v8167_v37 = vmul.f32 0.01, %v8089_v54  ;;  %v4425_v5 = vpop.permute.xlu0 %4424  ;;  %v8660_v22 = vmul.f32 0.01, %v8532_v0  ;;  %vm8628_vm3 = vcmp.ge.f32.partialorder %v8532_v0, 0.0 }
 0x45d   : > { %v8534_v20 = vpop.f32.mrf.mxu1  ;;  %4494 = vst.msk [vmem:[#allocation4 + $0xd0] sm:$0xf] %vm4131_vm12, %v4425_v5 }
 0x45e   : > { %v14729_v61 = vsel %vm8135_vm10, %v8089_v54, %v8167_v37  ;;  %v8535_v43 = vadd.f32 %v14592_v10, %v8534_v20  ;;  %v3754_v14 = vpop.permute.xlu1 %3753  ;;  %v7668_v21 = vld [vmem:[#allocation4 + $0xc8] sm:$0xff]  ;;  %v8692_v55 = vsel %vm8628_vm3, %v8532_v0, %v8660_v22 }
 0x45f   : > { %v8987_v3 = vpack.c.bf16 %v14729_v61, %v14727_v45  ;;  %3822 = vst.msk [vmem:[#allocation4 + $0xd8] sm:$0xf] %vm3602_vm11, %v3754_v14  ;;  %v8536_v38 = vpop.f32.mrf.mxu1  ;;  %v10063_v6 = vcombine.low %v7667_v50, %v7668_v21 }
 0x460   : > { %vm8629_vm4 = vcmp.ge.f32.partialorder %v8535_v43, 0.0  ;;  %v8661_v62 = vmul.f32 0.01, %v8535_v43  ;;  %v5290_v36 = vpop.permute.xlu0 %5289 }
 0x461   : > { %8586 = vmatmul.mubr.bf16.gmra.mxu1 %v10063_v6  ;;  %5359 = vst.msk [vmem:[#allocation4 + $0xd0] sm:$0xf] %vm4996_vm14, %v5290_v36 }
 0x462   : > { %v8693_v34 = vsel %vm8629_vm4, %v8535_v43, %v8661_v62  ;;  %v4427_v31 = vpop.permute.xlu1 %4426  ;;  %10093 = vmatprep.mubr.msk.bf16.mxu1 %vm7898_vm2, %v10449_v52 }
 0x463   : > { %v8999_v44 = vpack.c.bf16 %v8693_v34, %v8692_v55  ;;  %4495 = vst.msk [vmem:[#allocation4 + $0xd8] sm:$0xf] %vm4131_vm12, %v4427_v31 }
 0x464   : > { %v6109_v54 = vpop.permute.xlu0 %6108 }
 0x465   : > { %10249 = vmatmul.mubr.msk.bf16.gmra.mxu0 %vm8900_vm9, %v8999_v44  ;;  %6178 = vst.msk [vmem:[#allocation4 + $0xd0] sm:$0xf] %vm5958_vm15, %v6109_v54 }
 0x466   : > { %v5292_v40 = vpop.permute.xlu1 %5291 }
 0x467   : > { %5360 = vst.msk [vmem:[#allocation4 + $0xd8] sm:$0xf] %vm4996_vm14, %v5292_v40 }
 0x468   : > { %v6782_v4 = vpop.permute.xlu0 %6781 }
 0x469   : > { %6851 = vst.msk [vmem:[#allocation4 + $0xd0] sm:$0xf] %vm6488_vm1, %v6782_v4 }
 0x46a   : > { %v6111_v37 = vpop.permute.xlu1 %6110 }
 0x46b   : > { %6179 = vst.msk [vmem:[#allocation4 + $0xd8] sm:$0xf] %vm5958_vm15, %v6111_v37 }
 0x46c   : > { %v2939_v0 = vpop.permute.xlu0 %2938 }
 0x46d   : > { %3006 = vst.msk [vmem:[#allocation4 + $0xe0] sm:$0xf] %vm2638_vm6, %v2939_v0 }
 0x46e   : > { %v6784_v50 = vpop.permute.xlu1 %6783 }
 0x46f   : > { %6852 = vst.msk [vmem:[#allocation4 + $0xd8] sm:$0xf] %vm6488_vm1, %v6784_v50 }
 0x470   : > { %v3756_v5 = vpop.permute.xlu0 %3755  ;;  %v7669_v22 = vld [vmem:[#allocation4 + $0xd0] sm:$0xff] }
 0x471   : > { %3823 = vst.msk [vmem:[#allocation4 + $0xe0] sm:$0xf] %vm3602_vm11, %v3756_v5 }
 0x472   : > { %v2941_v20 = vpop.permute.xlu1 %2940 }
 0x473   : > { %3007 = vst.msk [vmem:[#allocation4 + $0xe8] sm:$0xf] %vm2638_vm6, %v2941_v20 }
 0x474   : > { %v4429_v43 = vpop.permute.xlu0 %4428 }
 0x475   : > { %4496 = vst.msk [vmem:[#allocation4 + $0xe0] sm:$0xf] %vm4131_vm12, %v4429_v43 }
 0x476   : > { %v3758_v14 = vpop.permute.xlu1 %3757  ;;  %v7670_v21 = vld [vmem:[#allocation4 + $0xd8] sm:$0xff] }
 0x477   : > { %3824 = vst.msk [vmem:[#allocation4 + $0xe8] sm:$0xf] %vm3602_vm11, %v3758_v14  ;;  %v10065_v38 = vcombine.low %v7669_v22, %v7670_v21 }
 0x478   : > { %v5294_v6 = vpop.permute.xlu0 %5293 }
 0x479   : > { %8594 = vmatmul.mubr.bf16.gmra.mxu1 %v10065_v38  ;;  %5361 = vst.msk [vmem:[#allocation4 + $0xe0] sm:$0xf] %vm4996_vm14, %v5294_v6 }
 0x47a   : > { %v4431_v62 = vpop.permute.xlu1 %4430 }
 0x47b   : > { %4497 = vst.msk [vmem:[#allocation4 + $0xe8] sm:$0xf] %vm4131_vm12, %v4431_v62 }
 0x47c   : > { %v6113_v36 = vpop.permute.xlu0 %6112 }
 0x47d   : > { %v8093_v55 = vpop.f32.mrf.mxu0  ;;  %6180 = vst.msk [vmem:[#allocation4 + $0xe0] sm:$0xf] %vm5958_vm15, %v6113_v36 }
 0x47e   : > { %v5296_v34 = vpop.permute.xlu1 %5295  ;;  %v8094_v31 = vadd.f32 %v14574_v18, %v8093_v55 }
 0x47f   : > { %5362 = vst.msk [vmem:[#allocation4 + $0xe8] sm:$0xf] %vm4996_vm14, %v5296_v34  ;;  %v8095_v44 = vpop.f32.mrf.mxu0 }
 0x480   : > { %v6786_v54 = vpop.permute.xlu0 %6785  ;;  %v8168_v37 = vmul.f32 0.01, %v8094_v31  ;;  %vm8136_vm8 = vcmp.ge.f32.partialorder %v8094_v31, 0.0 }
 0x481   : > { %v8096_v40 = vpop.f32.mrf.mxu0  ;;  %v8539_v4 = vpop.f32.mrf.mxu1  ;;  %6853 = vst.msk [vmem:[#allocation4 + $0xe0] sm:$0xf] %vm6488_vm1, %v6786_v54 }
 0x482   : > { %v6115_v0 = vpop.permute.xlu1 %6114  ;;  %v8097_v50 = vadd.f32 %v14574_v18, %v8096_v40  ;;  %v8540_v5 = vadd.f32 %v14592_v10, %v8539_v4  ;;  %v14760_v52 = vsel %vm8136_vm8, %v8094_v31, %v8168_v37 }
 0x483   : > { %6181 = vst.msk [vmem:[#allocation4 + $0xe8] sm:$0xf] %vm5958_vm15, %v6115_v0  ;;  %v8098_v20 = vpop.f32.mrf.mxu0  ;;  %v8541_v22 = vpop.f32.mrf.mxu1 }
 0x484   : > { %vm8137_vm5 = vcmp.ge.f32.partialorder %v8097_v50, 0.0  ;;  %v8169_v43 = vmul.f32 0.01, %v8097_v50  ;;  %v2943_v14 = vpop.permute.xlu0 %2942  ;;  %v8662_v6 = vmul.f32 0.01, %v8540_v5  ;;  %vm8630_vm13 = vcmp.ge.f32.partialorder %v8540_v5, 0.0 }
 0x485   : > { %v8542_v21 = vpop.f32.mrf.mxu1  ;;  %3008 = vst.msk [vmem:[#allocation4 + $0xf0] sm:$0xf] %vm2638_vm6, %v2943_v14 }
 0x486   : > { %v14762_v38 = vsel %vm8137_vm5, %v8097_v50, %v8169_v43  ;;  %v6788_v62 = vpop.permute.xlu1 %6787  ;;  %v8543_v36 = vadd.f32 %v14592_v10, %v8542_v21  ;;  %v8694_v31 = vsel %vm8630_vm13, %v8540_v5, %v8662_v6  ;;  %v10451_v43 = vld [vmem:[#allocation4 + $0xe4] ss:$8 sps:$4 sm:$0xff]  }
 0x487   : > { %v8988_v55 = vpack.c.bf16 %v14762_v38, %v14760_v52  ;;  %6854 = vst.msk [vmem:[#allocation4 + $0xe8] sm:$0xf] %vm6488_vm1, %v6788_v62  ;;  %v8544_v34 = vpop.f32.mrf.mxu1  ;;  %10094 = vmatprep.mubr.msk.bf16.mxu1 %vm7898_vm2, %v10451_v43 }
 0x488   : > { %vm8631_vm0 = vcmp.ge.f32.partialorder %v8543_v36, 0.0  ;;  %v8663_v44 = vmul.f32 0.01, %v8543_v36  ;;  %v3760_v54 = vpop.permute.xlu0 %3759  ;;  %v7671_v0 = vld [vmem:[#allocation4 + $0xe0] sm:$0xff] }
 0x489   : > { %3825 = vst.msk [vmem:[#allocation4 + $0xf0] sm:$0xf] %vm3602_vm11, %v3760_v54 }
 0x48a   : > { %v8695_v40 = vsel %vm8631_vm0, %v8543_v36, %v8663_v44  ;;  %v2945_v4 = vpop.permute.xlu1 %2944 }
 0x48b   : > { %v9000_v37 = vpack.c.bf16 %v8695_v40, %v8694_v31  ;;  %3009 = vst.msk [vmem:[#allocation4 + $0xf8] sm:$0xf] %vm2638_vm6, %v2945_v4  ;;  %v10453_v40 = vld [vmem:[#allocation4 + $0xf4] ss:$8 sps:$4 sm:$0xff]  }
 0x48c   : > { %v4433_v50 = vpop.permute.xlu0 %4432 }
 0x48d   : > { %10252 = vmatprep.mubr.msk.bf16.mxu0 %vm8900_vm9, %v9000_v37  ;;  %4498 = vst.msk [vmem:[#allocation4 + $0xf0] sm:$0xf] %vm4131_vm12, %v4433_v50 }
 0x48e   : > { %v3762_v20 = vpop.permute.xlu1 %3761  ;;  %v7672_v22 = vld [vmem:[#allocation4 + $0xe8] sm:$0xff] }
 0x48f   : > { %3826 = vst.msk [vmem:[#allocation4 + $0xf8] sm:$0xf] %vm3602_vm11, %v3762_v20  ;;  %v10067_v14 = vcombine.low %v7671_v0, %v7672_v22 }
 0x490   : > { %v5298_v5 = vpop.permute.xlu0 %5297 }
 0x491   : > { %8602 = vmatmul.mubr.bf16.gmra.mxu1 %v10067_v14  ;;  %5363 = vst.msk [vmem:[#allocation4 + $0xf0] sm:$0xf] %vm4996_vm14, %v5298_v5 }
 0x492   : > { %v4435_v21 = vpop.permute.xlu1 %4434  ;;  %10095 = vmatprep.mubr.msk.bf16.mxu1 %vm7898_vm2, %v10453_v40 }
 0x493   : > { %4499 = vst.msk [vmem:[#allocation4 + $0xf8] sm:$0xf] %vm4131_vm12, %v4435_v21  ;;  %v8819_v21 = vld [vmem:[%s15081_s6] sm:$0x1] }
 0x494   : > { %v6117_v6 = vpop.permute.xlu0 %6116 }
 0x495   : > { %6182 = vst.msk [vmem:[#allocation4 + $0xf0] sm:$0xf] %vm5958_vm15, %v6117_v6 }
 0x496   : > { %v5300_v62 = vpop.permute.xlu1 %5299 }
 0x497   : > { %5364 = vst.msk [vmem:[#allocation4 + $0xf8] sm:$0xf] %vm4996_vm14, %v5300_v62 }
 0x498   : > { %v6790_v36 = vpop.permute.xlu0 %6789 }
 0x499   : > { %6855 = vst.msk [vmem:[#allocation4 + $0xf0] sm:$0xf] %vm6488_vm1, %v6790_v36 }
 0x49a   : > { %v6119_v34 = vpop.permute.xlu1 %6118 }
 0x49b   : > { %6183 = vst.msk [vmem:[#allocation4 + $0xf8] sm:$0xf] %vm5958_vm15, %v6119_v34 }
 0x49e   : > { %v6792_v44 = vpop.permute.xlu1 %6791 }
 0x49f   : > { %6856 = vst.msk [vmem:[#allocation4 + $0xf8] sm:$0xf] %vm6488_vm1, %v6792_v44 }
 0x4a5   : > { %v8101_v54 = vpop.f32.mrf.mxu0 }
 0x4a6   : > { %v8102_v31 = vadd.f32 %v14574_v18, %v8101_v54  ;;  %v10455_v4 = vld [vmem:[#allocation4 + $0xf0] ss:$8 sps:$4 sm:$0xff]  }
 0x4a7   : > { %v8103_v37 = vpop.f32.mrf.mxu0  ;;  %8610 = vmatmul.mubr.bf16.gmra.mxu1 %v10455_v4 }
 0x4a8   : > { %v8170_v0 = vmul.f32 0.01, %v8102_v31  ;;  %vm8138_vm6 = vcmp.ge.f32.partialorder %v8102_v31, 0.0  ;;  %10233 = vmatprep.mubr.msk.f32.mxu1 %vm10571_vm7, %v10570_v57 }
 0x4a9   : > { %v8104_v50 = vpop.f32.mrf.mxu0  ;;  %v8547_v20 = vpop.f32.mrf.mxu1 }
 0x4aa   : > { %v8105_v22 = vadd.f32 %v14574_v18, %v8104_v50  ;;  %v8548_v43 = vadd.f32 %v14592_v10, %v8547_v20  ;;  %v14790_v62 = vsel %vm8138_vm6, %v8102_v31, %v8170_v0  ;;  %v10457_v31 = vld [vmem:[%s15082_s7] sm:$0xff]  }
 0x4ab   : > { %v8106_v14 = vpop.f32.mrf.mxu0  ;;  %v8549_v5 = vpop.f32.mrf.mxu1 }
 0x4ac   : > { %vm8139_vm11 = vcmp.ge.f32.partialorder %v8105_v22, 0.0  ;;  %v8171_v6 = vmul.f32 0.01, %v8105_v22  ;;  %v8664_v18 = vmul.f32 0.01, %v8548_v43  ;;  %vm8632_vm12 = vcmp.ge.f32.partialorder %v8548_v43, 0.0 }
 0x4ad   : > { %v8550_v36 = vpop.f32.mrf.mxu1  ;;  %v8889_v34 = vpop.f32.mrf.mxu0 }
 0x4ae   : > { %v14792_v44 = vsel %vm8139_vm11, %v8105_v22, %v8171_v6  ;;  %v8551_v54 = vadd.f32 %v14592_v10, %v8550_v36  ;;  %v8890_v40 = vadd.f32 %v8889_v34, %v8819_v21  ;;  %v8696_v0 = vsel %vm8632_vm12, %v8548_v43, %v8664_v18 }
 0x4af   : > { %v8989_v57 = vpack.c.bf16 %v14792_v44, %v14790_v62  ;;  %v8552_v4 = vpop.f32.mrf.mxu1  ;;  %v10224_v37 = vpop.f32.mrf.mxu0 }
 0x4b0   : > { %vm8633_vm14 = vcmp.ge.f32.partialorder %v8551_v54, 0.0  ;;  %v8665_v50 = vmul.f32 0.01, %v8551_v54  ;;  %vm8893_vm15 = vcmp.ge.f32.partialorder %v8890_v40, 0.0  ;;  %v8894_v20 = vmul.f32 0.01, %v8890_v40 }
 0x4b2   : > { %v8697_v22 = vsel %vm8633_vm14, %v8551_v54, %v8665_v50  ;;  %v8895_v14 = vsel %vm8893_vm15, %v8890_v40, %v8894_v20 }
 0x4b3   : > { %v9001_v5 = vpack.c.bf16 %v8697_v22, %v8696_v0  ;;  %10234 = vmatmul.mubr.msk.f32.vlgmr.msra.gmra.mxu1 %vm8900_vm9, %v8895_v14 }
 0x4b4   : > { %10273 = vmatpush3.bf16.msra.mxu1 %v14688_v30  ;;  %10276 = vmatprep.mubr.msk.bf16.mxu1 %vm8900_vm9, %v8974_v46 }
 0x4b5   : > { %10253 = vmatmul.mubr.msk.bf16.gmra.mxu0 %vm8900_vm9, %v9001_v5  ;;  %10274 = vmatprep.subr.bf16.mxu1 %v10457_v31 }
 0x4b8   : > { %10275 = vmatpush3.bf16.msra.mxu1 %v10457_v31 }
 0x4bb   : > { %10277 = vmatmul.mubr.msk.bf16.vlgmr.msra.gmra.mxu1 %vm8900_vm9, %v8975_v2 }
 0x4bc   : > { %10280 = vmatprep.mubr.msk.bf16.mxu1 %vm8900_vm9, %v8976_v60 }
 0x4c1   : > { %v8555_v30 = vpop.f32.mrf.mxu1 }
 0x4c2   : > { %v8556_v43 = vadd.f32 %v14592_v10, %v8555_v30 }
 0x4c3   : > { %10281 = vmatmul.mubr.msk.bf16.gmra.mxu1 %vm8900_vm9, %v8977_v1  ;;  %v8557_v27 = vpop.f32.mrf.mxu1 }
 0x4c4   : > { %10284 = vmatprep.mubr.msk.bf16.mxu1 %vm8900_vm9, %v8978_v25  ;;  %v8666_v46 = vmul.f32 0.01, %v8556_v43  ;;  %vm8634_vm1 = vcmp.ge.f32.partialorder %v8556_v43, 0.0 }
 0x4c5   : > { %v8558_v12 = vpop.f32.mrf.mxu1 }
 0x4c6   : > { %v8559_v28 = vadd.f32 %v14592_v10, %v8558_v12  ;;  %v8698_v48 = vsel %vm8634_vm1, %v8556_v43, %v8666_v46 }
 0x4c7   : > { %v8560_v13 = vpop.f32.mrf.mxu1 }
 0x4c8   : > { %vm8635_vm2 = vcmp.ge.f32.partialorder %v8559_v28, 0.0  ;;  %v8667_v2 = vmul.f32 0.01, %v8559_v28 }
 0x4ca   : > { %v8699_v56 = vsel %vm8635_vm2, %v8559_v28, %v8667_v2  ;;  %v10463_v2 = vld [vmem:[%s15080_s5] ss:$0 sm:$0xff] }
 0x4cb   : > { %v9002_v60 = vpack.c.bf16 %v8699_v56, %v8698_v48  ;;  %10285 = vmatmul.mubr.msk.bf16.gmra.mxu1 %vm8900_vm9, %v8979_v47 }
 0x4cc   : > { %10288 = vmatprep.mubr.msk.bf16.mxu1 %vm8900_vm9, %v8980_v42 }
 0x4cd   : > { %10256 = vmatprep.mubr.msk.bf16.mxu0 %vm8900_vm9, %v9002_v60 }
 0x4d3   : > { %10289 = vmatmul.mubr.msk.bf16.gmra.mxu1 %vm8900_vm9, %v15113_v58 }
 0x4d4   : > { %10292 = vmatprep.mubr.msk.bf16.mxu1 %vm8900_vm9, %v15114_v51 }
 0x4d9   : > { %v8563_v1 = vpop.f32.mrf.mxu1 }
 0x4da   : > { %v8564_v63 = vadd.f32 %v14592_v10, %v8563_v1 }
 0x4db   : > { %10293 = vmatmul.mubr.msk.bf16.gmra.mxu1 %vm8900_vm9, %v15115_v17  ;;  %v8565_v25 = vpop.f32.mrf.mxu1 }
 0x4dc   : > { %10296 = vmatprep.mubr.msk.bf16.mxu1 %vm8900_vm9, %v8984_v53  ;;  %v8668_v11 = vmul.f32 0.01, %v8564_v63  ;;  %vm8636_vm7 = vcmp.ge.f32.partialorder %v8564_v63, 0.0 }
 0x4dd   : > { %v8566_v39 = vpop.f32.mrf.mxu1 }
 0x4de   : > { %v8567_v47 = vadd.f32 %v14592_v10, %v8566_v39  ;;  %v8700_v42 = vsel %vm8636_vm7, %v8564_v63, %v8668_v11  ;;  %v10242_v39 = vpop.f32.mrf.mxu0 }
 0x4df   : > { %v8568_v59 = vpop.f32.mrf.mxu1 }
 0x4e0   : > { %vm8637_vm10 = vcmp.ge.f32.partialorder %v8567_v47, 0.0  ;;  %v8669_v32 = vmul.f32 0.01, %v8567_v47  ;;  %v9108_v11 = vpop.f32.mrf.mxu0 }
 0x4e2   : > { %v8701_v8 = vsel %vm8637_vm10, %v8567_v47, %v8669_v32  ;;  %v10243_v32 = vpop.f32.mrf.mxu0 }
 0x4e3   : > { %v9003_v9 = vpack.c.bf16 %v8701_v8, %v8700_v42  ;;  %10297 = vmatmul.mubr.msk.bf16.gmra.mxu1 %vm8900_vm9, %v8985_v16 }
 0x4e4   : > { %10300 = vmatprep.mubr.msk.bf16.mxu1 %vm8900_vm9, %v8986_v33 }
 0x4e5   : > { %10257 = vmatmul.mubr.msk.bf16.gmra.mxu0 %vm8900_vm9, %v9003_v9 }
 0x4eb   : > { %10301 = vmatmul.mubr.msk.bf16.gmra.mxu1 %vm8900_vm9, %v8987_v3 }
 0x4ec   : > { %10304 = vmatprep.mubr.msk.bf16.mxu1 %vm8900_vm9, %v8988_v55 }
 0x4f1   : > { %v8571_v24 = vpop.f32.mrf.mxu1 }
 0x4f2   : > { %v8572_v35 = vadd.f32 %v14592_v10, %v8571_v24 }
 0x4f3   : > { %10305 = vmatmul.mubr.msk.bf16.gmra.mxu1 %vm8900_vm9, %v8989_v57  ;;  %v8573_v26 = vpop.f32.mrf.mxu1 }
 0x4f4   : > { %v8670_v23 = vmul.f32 0.01, %v8572_v35  ;;  %vm8638_vm3 = vcmp.ge.f32.partialorder %v8572_v35, 0.0  ;;  %v9111_v26 = vpop.f32.mrf.mxu0 }
 0x4f5   : > { %v8574_v15 = vpop.f32.mrf.mxu1 }
 0x4f6   : > { %v8575_v29 = vadd.f32 %v14592_v10, %v8574_v15  ;;  %v8702_v49 = vsel %vm8638_vm3, %v8572_v35, %v8670_v23  ;;  %v9456_v35 = vlaneseq }
 0x4f7   : > { %v8576_v53 = vpop.f32.mrf.mxu1 }
 0x4f8   : > { %vm8639_vm4 = vcmp.ge.f32.partialorder %v8575_v29, 0.0  ;;  %v8671_v7 = vmul.f32 0.01, %v8575_v29 }
 0x4fa   : > { %v8703_v16 = vsel %vm8639_vm4, %v8575_v29, %v8671_v7  ;;  %v10246_v29 = vpop.f32.mrf.mxu0 }
 0x4fb   : > { %v9004_v19 = vpack.c.bf16 %v8703_v16, %v8702_v49  ;;  %v9457_v49 = vshrl.u32 %v9456_v35, 7 }
 0x4fd   : > { %10260 = vmatprep.mubr.msk.bf16.mxu0 %vm8900_vm9, %v9004_v19 }
 0x509   : > { %v8579_v41 = vpop.f32.mrf.mxu1 }
 0x50a   : > { %v8580_v33 = vadd.f32 %v14592_v10, %v8579_v41  ;;  %v9124_v41 = vpop.f32.mrf.mxu0 }
 0x50b   : > { %v8581_v45 = vpop.f32.mrf.mxu1 }
 0x50c   : > { %v8672_v3 = vmul.f32 0.01, %v8580_v33  ;;  %vm8640_vm8 = vcmp.ge.f32.partialorder %v8580_v33, 0.0  ;;  %v9458_v45 = vsub.s32 0, %v9457_v49 }
 0x50d   : > { %v8582_v61 = vpop.f32.mrf.mxu1 }
 0x50e   : > { %v8583_v52 = vadd.f32 %v14592_v10, %v8582_v61  ;;  %v8704_v21 = vsel %vm8640_vm8, %v8580_v33, %v8672_v3  ;;  %v10247_v61 = vpop.f32.mrf.mxu0 }
 0x50f   : > { %v8584_v38 = vpop.f32.mrf.mxu1 }
 0x510   : > { %vm8641_vm5 = vcmp.ge.f32.partialorder %v8583_v52, 0.0  ;;  %v8673_v55 = vmul.f32 0.01, %v8583_v52 }
 0x512   : > { %v8705_v6 = vsel %vm8641_vm5, %v8583_v52, %v8673_v55  ;;  %v9127_v55 = vpop.f32.mrf.mxu0 }
 0x513   : > { %v9005_v62 = vpack.c.bf16 %v8705_v6, %v8704_v21  ;;  %v14895_v21 = vld [vmem:[%s15085_s10] ss:$0 sm:$0xff] }
 0x515   : > { %10261 = vmatmul.mubr.msk.bf16.gmra.mxu0 %vm8900_vm9, %v9005_v62 }
 0x521   : > { %v8587_v36 = vpop.f32.mrf.mxu1 }
 0x522   : > { %v8588_v34 = vadd.f32 %v14592_v10, %v8587_v36 }
 0x523   : > { %v8589_v44 = vpop.f32.mrf.mxu1 }
 0x524   : > { %v8674_v54 = vmul.f32 0.01, %v8588_v34  ;;  %vm8642_vm13 = vcmp.ge.f32.partialorder %v8588_v34, 0.0 }
 0x525   : > { %v8590_v18 = vpop.f32.mrf.mxu1 }
 0x526   : > { %v8591_v40 = vadd.f32 %v14592_v10, %v8590_v18  ;;  %v8706_v37 = vsel %vm8642_vm13, %v8588_v34, %v8674_v54  ;;  %v10250_v34 = vpop.f32.mrf.mxu0 }
 0x527   : > { %v8592_v57 = vpop.f32.mrf.mxu1 }
 0x528   : > { %vm8643_vm0 = vcmp.ge.f32.partialorder %v8591_v40, 0.0  ;;  %v8675_v4 = vmul.f32 0.01, %v8591_v40 }
 0x52a   : > { %v8707_v50 = vsel %vm8643_vm0, %v8591_v40, %v8675_v4 }
 0x52b   : > { %v9006_v20 = vpack.c.bf16 %v8707_v50, %v8706_v37 }
 0x52d   : > { %10264 = vmatprep.mubr.msk.bf16.mxu0 %vm8900_vm9, %v9006_v20  ;;  %v9140_v20 = vpop.f32.mrf.mxu0 }
 0x539   : > { %v8595_v31 = vpop.f32.mrf.mxu1 }
 0x53a   : > { %v8596_v0 = vadd.f32 %v14592_v10, %v8595_v31 }
 0x53b   : > { %v8597_v22 = vpop.f32.mrf.mxu1 }
 0x53c   : > { %v8676_v5 = vmul.f32 0.01, %v8596_v0  ;;  %vm8644_vm6 = vcmp.ge.f32.partialorder %v8596_v0, 0.0 }
 0x53d   : > { %v8598_v14 = vpop.f32.mrf.mxu1 }
 0x53e   : > { %v8599_v30 = vadd.f32 %v14592_v10, %v8598_v14  ;;  %v8708_v12 = vsel %vm8644_vm6, %v8596_v0, %v8676_v5 }
 0x53f   : > { %v8600_v43 = vpop.f32.mrf.mxu1 }
 0x540   : > { %vm8645_vm11 = vcmp.ge.f32.partialorder %v8599_v30, 0.0  ;;  %v8677_v27 = vmul.f32 0.01, %v8599_v30 }
 0x542   : > { %v8709_v46 = vsel %vm8645_vm11, %v8599_v30, %v8677_v27 }
 0x543   : > { %v9007_v28 = vpack.c.bf16 %v8709_v46, %v8708_v12 }
 0x545   : > { %10265 = vmatmul.mubr.msk.bf16.gmra.mxu0 %vm8900_vm9, %v9007_v28 }
 0x551   : > { %v8603_v13 = vpop.f32.mrf.mxu1 }
 0x552   : > { %v8604_v48 = vadd.f32 %v10463_v2, %v8603_v13  ;;  %v10251_v13 = vpop.f32.mrf.mxu0 }
 0x553   : > { %v8605_v56 = vpop.f32.mrf.mxu1 }
 0x554   : > { %v8678_v58 = vmul.f32 0.01, %v8604_v48  ;;  %vm8646_vm12 = vcmp.ge.f32.partialorder %v8604_v48, 0.0 }
 0x555   : > { %v8606_v60 = vpop.f32.mrf.mxu1 }
 0x556   : > { %v8607_v51 = vadd.f32 %v10463_v2, %v8606_v60  ;;  %v8710_v63 = vsel %vm8646_vm12, %v8604_v48, %v8678_v58 }
 0x557   : > { %v8608_v10 = vpop.f32.mrf.mxu1 }
 0x558   : > { %vm8647_vm14 = vcmp.ge.f32.partialorder %v8607_v51, 0.0  ;;  %v8679_v1 = vmul.f32 0.01, %v8607_v51 }
 0x55a   : > { %v8711_v17 = vsel %vm8647_vm14, %v8607_v51, %v8679_v1 }
 0x55b   : > { %v9008_v25 = vpack.c.bf16 %v8711_v17, %v8710_v63 }
 0x55d   : > { %10268 = vmatprep.mubr.msk.bf16.mxu0 %vm8900_vm9, %v9008_v25 }
 0x567   : > { %v8611_v47 = vpop.f32.mrf.mxu1 }
 0x568   : > { %v8612_v59 = vadd.f32 %v10463_v2, %v8611_v47 }
 0x569   : > { %v8613_v42 = vpop.f32.mrf.mxu1 }
 0x56a   : > { %v8680_v9 = vmul.f32 0.01, %v8612_v59  ;;  %vm8648_vm15 = vcmp.ge.f32.partialorder %v8612_v59, 0.0 }
 0x56b   : > { %v8614_v8 = vpop.f32.mrf.mxu1 }
 0x56c   : > { %v8615_v24 = vadd.f32 %v10463_v2, %v8614_v8  ;;  %v8712_v53 = vsel %vm8648_vm15, %v8612_v59, %v8680_v9 }
 0x56d   : > { %v8616_v15 = vpop.f32.mrf.mxu1 }
 0x56e   : > { %vm8649_vm1 = vcmp.ge.f32.partialorder %v8615_v24, 0.0  ;;  %v8681_v23 = vmul.f32 0.01, %v8615_v24 }
 0x570   : > { %v8713_v7 = vsel %vm8649_vm1, %v8615_v24, %v8681_v23 }
 0x571   : > { %v9009_v16 = vpack.c.bf16 %v8713_v7, %v8712_v53 }
 0x573   : > { %v8970_v19 = vpop.f32.mrf.mxu1  ;;  %10269 = vmatmul.mubr.msk.bf16.gmra.mxu0 %vm8900_vm9, %v9009_v16 }
 0x574   : > { %v14890_v3 = vrot.slane %v8970_v19, %v9458_v45 }
 0x575   : > { %v10235_v33 = vpop.f32.mrf.mxu1 }
 0x57b   : > { %v10278_v52 = vpop.f32.mrf.mxu1 }
 0x57c   : > { %v9338_v38 = vadd.f32 %v10278_v52, %v10242_v39 }
 0x57d   : > { %v9329_v6 = vpop.f32.mrf.mxu1 }
 0x57e   : > { %v9462_v62 = vadd.f32 %v14890_v3, %v9338_v38  ;;  %v9330_v36 = vadd.f32 %v9329_v6, %v9108_v11  ;;  %v9143_v11 = vpop.f32.mrf.mxu0 }
 0x57f   : > { %v10279_v44 = vpop.f32.mrf.mxu1 }
 0x580   : > { %v9501_v18 = vadd.f32 %v14895_v21, %v9462_v62  ;;  %v9460_v54 = vadd.f32 %v14890_v3, %v9330_v36  ;;  %v9341_v40 = vadd.f32 %v10279_v44, %v10243_v32  ;;  %v10254_v24 = vpop.f32.mrf.mxu0 }
 0x581   : > { %v9332_v57 = vpop.f32.mrf.mxu1 }
 0x582   : > { %vm9533_vm2 = vcmp.ge.f32.partialorder %v9501_v18, 0.0  ;;  %v9565_v4 = vmul.f32 0.01, %v9501_v18  ;;  %v9499_v37 = vadd.f32 %v14895_v21, %v9460_v54  ;;  %v9463_v50 = vadd.f32 %v14890_v3, %v9341_v40  ;;  %v9156_v45 = vpop.f32.mrf.mxu0 }
 0x583   : > { %v9333_v31 = vadd.f32 %v9332_v57, %v9111_v26  ;;  %v10282_v0 = vpop.f32.mrf.mxu1 }
 0x584   : > { %v9597_v22 = vsel %vm9533_vm2, %v9501_v18, %v9565_v4  ;;  %vm9531_vm7 = vcmp.ge.f32.partialorder %v9499_v37, 0.0  ;;  %v9563_v14 = vmul.f32 0.01, %v9499_v37  ;;  %v9502_v5 = vadd.f32 %v14895_v21, %v9463_v50  ;;  %v10255_v57 = vpop.f32.mrf.mxu0 }
 0x585   : > { %9629 = vst.msk [vmem:[%s10742_s19 + $0x10] sm:$0xff] %vm8900_vm9, %v9597_v22  ;;  %v9461_v30 = vadd.f32 %v14890_v3, %v9333_v31  ;;  %v9354_v43 = vadd.f32 %v10282_v0, %v10246_v29  ;;  %v9345_v27 = vpop.f32.mrf.mxu1 }
 0x586   : > { %v9595_v12 = vsel %vm9531_vm7, %v9499_v37, %v9563_v14  ;;  %vm9534_vm10 = vcmp.ge.f32.partialorder %v9502_v5, 0.0  ;;  %v9566_v46 = vmul.f32 0.01, %v9502_v5  ;;  %v9346_v28 = vadd.f32 %v9345_v27, %v9124_v41 }
 0x587   : > { %9627 = vst.msk [vmem:[%s10742_s19] sm:$0xff] %vm8900_vm9, %v9595_v12  ;;  %v9500_v2 = vadd.f32 %v14895_v21, %v9461_v30  ;;  %v9466_v48 = vadd.f32 %v14890_v3, %v9354_v43  ;;  %v10283_v56 = vpop.f32.mrf.mxu1  ;;  %v9159_v12 = vpop.f32.mrf.mxu0 }
 0x588   : > { %v9598_v60 = vsel %vm9534_vm10, %v9502_v5, %v9566_v46  ;;  %v9464_v58 = vadd.f32 %v14890_v3, %v9346_v28  ;;  %v9357_v51 = vadd.f32 %v10283_v56, %v10247_v61 }
 0x589   : > { %9630 = vst.msk [vmem:[%s10742_s19 + $0x18] sm:$0xff] %vm8900_vm9, %v9598_v60  ;;  %vm9532_vm3 = vcmp.ge.f32.partialorder %v9500_v2, 0.0  ;;  %v9564_v10 = vmul.f32 0.01, %v9500_v2  ;;  %v9505_v1 = vadd.f32 %v14895_v21, %v9466_v48  ;;  %v9348_v63 = vpop.f32.mrf.mxu1 }
 0x58a   : > { %v9503_v17 = vadd.f32 %v14895_v21, %v9464_v58  ;;  %v9467_v25 = vadd.f32 %v14890_v3, %v9357_v51  ;;  %v9349_v39 = vadd.f32 %v9348_v63, %v9127_v55 }
 0x58b   : > { %v9596_v47 = vsel %vm9532_vm3, %v9500_v2, %v9564_v10  ;;  %vm9537_vm4 = vcmp.ge.f32.partialorder %v9505_v1, 0.0  ;;  %v9569_v59 = vmul.f32 0.01, %v9505_v1  ;;  %v10286_v32 = vpop.f32.mrf.mxu1 }
 0x58c   : > { %9628 = vst.msk [vmem:[%s10742_s19 + $0x8] sm:$0xff] %vm8900_vm9, %v9596_v47  ;;  %vm9535_vm8 = vcmp.ge.f32.partialorder %v9503_v17, 0.0  ;;  %v9567_v42 = vmul.f32 0.01, %v9503_v17  ;;  %v9506_v8 = vadd.f32 %v14895_v21, %v9467_v25  ;;  %v9465_v9 = vadd.f32 %v14890_v3, %v9349_v39 }
 0x58d   : > { %v9601_v35 = vsel %vm9537_vm4, %v9505_v1, %v9569_v59  ;;  %v9370_v26 = vadd.f32 %v10286_v32, %v10250_v34  ;;  %v9361_v15 = vpop.f32.mrf.mxu1 }
 0x58e   : > { %9633 = vst.msk [vmem:[%s10742_s19 + $0x30] sm:$0xff] %vm8900_vm9, %v9601_v35  ;;  %v9599_v23 = vsel %vm9535_vm8, %v9503_v17, %v9567_v42  ;;  %vm9538_vm5 = vcmp.ge.f32.partialorder %v9506_v8, 0.0  ;;  %v9570_v29 = vmul.f32 0.01, %v9506_v8  ;;  %v9504_v53 = vadd.f32 %v14895_v21, %v9465_v9 }
 0x58f   : > { %9631 = vst.msk [vmem:[%s10742_s19 + $0x20] sm:$0xff] %vm8900_vm9, %v9599_v23  ;;  %v9470_v7 = vadd.f32 %v14890_v3, %v9370_v26  ;;  %v9362_v49 = vadd.f32 %v9361_v15, %v9140_v20  ;;  %v10287_v16 = vpop.f32.mrf.mxu1 }
 0x590   : > { %v9602_v19 = vsel %vm9538_vm5, %v9506_v8, %v9570_v29  ;;  %vm9536_vm13 = vcmp.ge.f32.partialorder %v9504_v53, 0.0  ;;  %v9568_v41 = vmul.f32 0.01, %v9504_v53  ;;  %v9373_v33 = vadd.f32 %v10287_v16, %v10251_v13 }
 0x591   : > { %9634 = vst.msk [vmem:[%s10742_s19 + $0x38] sm:$0xff] %vm8900_vm9, %v9602_v19  ;;  %v9509_v61 = vadd.f32 %v14895_v21, %v9470_v7  ;;  %v9468_v52 = vadd.f32 %v14890_v3, %v9362_v49  ;;  %v9364_v38 = vpop.f32.mrf.mxu1 }
 0x592   : > { %v9600_v55 = vsel %vm9536_vm13, %v9504_v53, %v9568_v41  ;;  %v9471_v6 = vadd.f32 %v14890_v3, %v9373_v33  ;;  %v9365_v62 = vadd.f32 %v9364_v38, %v9143_v11 }
 0x593   : > { %9632 = vst.msk [vmem:[%s10742_s19 + $0x28] sm:$0xff] %vm8900_vm9, %v9600_v55  ;;  %vm9541_vm0 = vcmp.ge.f32.partialorder %v9509_v61, 0.0  ;;  %v9573_v36 = vmul.f32 0.01, %v9509_v61  ;;  %v9507_v34 = vadd.f32 %v14895_v21, %v9468_v52  ;;  %v10290_v44 = vpop.f32.mrf.mxu1 }
 0x594   : > { %v9510_v18 = vadd.f32 %v14895_v21, %v9471_v6  ;;  %v9469_v54 = vadd.f32 %v14890_v3, %v9365_v62  ;;  %v9386_v40 = vadd.f32 %v10290_v44, %v10254_v24 }
 0x595   : > { %v9605_v4 = vsel %vm9541_vm0, %v9509_v61, %v9573_v36  ;;  %vm9539_vm6 = vcmp.ge.f32.partialorder %v9507_v34, 0.0  ;;  %v9571_v37 = vmul.f32 0.01, %v9507_v34  ;;  %v9377_v50 = vpop.f32.mrf.mxu1 }
 0x596   : > { %9637 = vst.msk [vmem:[%s10742_s19 + $0x50] sm:$0xff] %vm8900_vm9, %v9605_v4  ;;  %vm9542_vm11 = vcmp.ge.f32.partialorder %v9510_v18, 0.0  ;;  %v9574_v20 = vmul.f32 0.01, %v9510_v18  ;;  %v9508_v31 = vadd.f32 %v14895_v21, %v9469_v54  ;;  %v9474_v0 = vadd.f32 %v14890_v3, %v9386_v40 }
 0x597   : > { %v9603_v22 = vsel %vm9539_vm6, %v9507_v34, %v9571_v37  ;;  %v9378_v14 = vadd.f32 %v9377_v50, %v9156_v45  ;;  %v10291_v5 = vpop.f32.mrf.mxu1 }
 0x598   : > { %9635 = vst.msk [vmem:[%s10742_s19 + $0x40] sm:$0xff] %vm8900_vm9, %v9603_v22  ;;  %v9606_v30 = vsel %vm9542_vm11, %v9510_v18, %v9574_v20  ;;  %vm9540_vm12 = vcmp.ge.f32.partialorder %v9508_v31, 0.0  ;;  %v9572_v43 = vmul.f32 0.01, %v9508_v31  ;;  %v9513_v27 = vadd.f32 %v14895_v21, %v9474_v0 }
 0x599   : > { %9638 = vst.msk [vmem:[%s10742_s19 + $0x58] sm:$0xff] %vm8900_vm9, %v9606_v30  ;;  %v9472_v46 = vadd.f32 %v14890_v3, %v9378_v14  ;;  %v9389_v28 = vadd.f32 %v10291_v5, %v10255_v57  ;;  %v9380_v13 = vpop.f32.mrf.mxu1 }
 0x59a   : > { %v9604_v2 = vsel %vm9540_vm12, %v9508_v31, %v9572_v43  ;;  %vm9545_vm14 = vcmp.ge.f32.partialorder %v9513_v27, 0.0  ;;  %v9577_v48 = vmul.f32 0.01, %v9513_v27  ;;  %v9381_v56 = vadd.f32 %v9380_v13, %v9159_v12 }
 0x59b   : > { %9636 = vst.msk [vmem:[%s10742_s19 + $0x48] sm:$0xff] %vm8900_vm9, %v9604_v2  ;;  %v9511_v60 = vadd.f32 %v14895_v21, %v9472_v46  ;;  %v9475_v58 = vadd.f32 %v14890_v3, %v9389_v28  ;;  %v10294_v47 = vpop.f32.mrf.mxu1 }
 0x59c   : > { %v9609_v51 = vsel %vm9545_vm14, %v9513_v27, %v9577_v48  ;;  %v9473_v10 = vadd.f32 %v14890_v3, %v9381_v56 }
 0x59d   : > { %9641 = vst.msk [vmem:[%s10742_s19 + $0x70] sm:$0xff] %vm8900_vm9, %v9609_v51  ;;  %vm9543_vm15 = vcmp.ge.f32.partialorder %v9511_v60, 0.0  ;;  %v9575_v1 = vmul.f32 0.01, %v9511_v60  ;;  %v9514_v63 = vadd.f32 %v14895_v21, %v9475_v58  ;;  %v9393_v42 = vpop.f32.mrf.mxu1 }
 0x59e   : > { %v9512_v17 = vadd.f32 %v14895_v21, %v9473_v10 }
 0x59f   : > { %v9607_v25 = vsel %vm9543_vm15, %v9511_v60, %v9575_v1  ;;  %vm9546_vm1 = vcmp.ge.f32.partialorder %v9514_v63, 0.0  ;;  %v9578_v39 = vmul.f32 0.01, %v9514_v63  ;;  %v10295_v35 = vpop.f32.mrf.mxu1 }
 0x5a0   : > { %9639 = vst.msk [vmem:[%s10742_s19 + $0x60] sm:$0xff] %vm8900_vm9, %v9607_v25  ;;  %vm9544_vm2 = vcmp.ge.f32.partialorder %v9512_v17, 0.0  ;;  %v9576_v11 = vmul.f32 0.01, %v9512_v17 }
 0x5a1   : > { %v9610_v59 = vsel %vm9546_vm1, %v9514_v63, %v9578_v39  ;;  %v9396_v16 = vpop.f32.mrf.mxu1 }
 0x5a2   : > { %9642 = vst.msk [vmem:[%s10742_s19 + $0x78] sm:$0xff] %vm8900_vm9, %v9610_v59  ;;  %v9608_v32 = vsel %vm9544_vm2, %v9512_v17, %v9576_v11 }
 0x5a3   : > { %9640 = vst.msk [vmem:[%s10742_s19 + $0x68] sm:$0xff] %vm8900_vm9, %v9608_v32  ;;  %v10298_v54 = vpop.f32.mrf.mxu1 }
 0x5a5   : > { %v10258_v8 = vpop.f32.mrf.mxu0  ;;  %v9409_v40 = vpop.f32.mrf.mxu1 }
 0x5a6   : > { %v9402_v9 = vadd.f32 %v10294_v47, %v10258_v8 }
 0x5a7   : > { %v9172_v24 = vpop.f32.mrf.mxu0  ;;  %v10299_v50 = vpop.f32.mrf.mxu1 }
 0x5a8   : > { %v9478_v26 = vadd.f32 %v14890_v3, %v9402_v9  ;;  %v9394_v15 = vadd.f32 %v9393_v42, %v9172_v24 }
 0x5a9   : > { %v10259_v23 = vpop.f32.mrf.mxu0  ;;  %v9412_v43 = vpop.f32.mrf.mxu1 }
 0x5aa   : > { %v9517_v29 = vadd.f32 %v14895_v21, %v9478_v26  ;;  %v9476_v53 = vadd.f32 %v14890_v3, %v9394_v15  ;;  %v9405_v7 = vadd.f32 %v10295_v35, %v10259_v23 }
 0x5ab   : > { %v9175_v49 = vpop.f32.mrf.mxu0  ;;  %v10302_v17 = vpop.f32.mrf.mxu1 }
 0x5ac   : > { %vm9549_vm7 = vcmp.ge.f32.partialorder %v9517_v29, 0.0  ;;  %v9581_v19 = vmul.f32 0.01, %v9517_v29  ;;  %v9515_v41 = vadd.f32 %v14895_v21, %v9476_v53  ;;  %v9479_v33 = vadd.f32 %v14890_v3, %v9405_v7 }
 0x5ad   : > { %v9397_v45 = vadd.f32 %v9396_v16, %v9175_v49  ;;  %v9425_v25 = vpop.f32.mrf.mxu1 }
 0x5ae   : > { %v9613_v61 = vsel %vm9549_vm7, %v9517_v29, %v9581_v19  ;;  %vm9547_vm10 = vcmp.ge.f32.partialorder %v9515_v41, 0.0  ;;  %v9579_v52 = vmul.f32 0.01, %v9515_v41  ;;  %v9518_v38 = vadd.f32 %v14895_v21, %v9479_v33 }
 0x5af   : > { %9645 = vst.msk [vmem:[%s10742_s19 + $0x90] sm:$0xff] %vm8900_vm9, %v9613_v61  ;;  %v9477_v55 = vadd.f32 %v14890_v3, %v9397_v45  ;;  %v10303_v59 = vpop.f32.mrf.mxu1 }
 0x5b0   : > { %v9611_v6 = vsel %vm9547_vm10, %v9515_v41, %v9579_v52  ;;  %vm9550_vm3 = vcmp.ge.f32.partialorder %v9518_v38, 0.0  ;;  %v9582_v62 = vmul.f32 0.01, %v9518_v38 }
 0x5b1   : > { %9643 = vst.msk [vmem:[%s10742_s19 + $0x80] sm:$0xff] %vm8900_vm9, %v9611_v6  ;;  %v9516_v36 = vadd.f32 %v14895_v21, %v9477_v55  ;;  %v9428_v15 = vpop.f32.mrf.mxu1 }
 0x5b2   : > { %v9614_v34 = vsel %vm9550_vm3, %v9518_v38, %v9582_v62 }
 0x5b3   : > { %9646 = vst.msk [vmem:[%s10742_s19 + $0x98] sm:$0xff] %vm8900_vm9, %v9614_v34  ;;  %vm9548_vm4 = vcmp.ge.f32.partialorder %v9516_v36, 0.0  ;;  %v9580_v44 = vmul.f32 0.01, %v9516_v36  ;;  %v10306_v6 = vpop.f32.mrf.mxu1 }
 0x5b5   : > { %v9612_v18 = vsel %vm9548_vm4, %v9516_v36, %v9580_v44  ;;  %v9441_v62 = vpop.f32.mrf.mxu1 }
 0x5b6   : > { %9644 = vst.msk [vmem:[%s10742_s19 + $0x88] sm:$0xff] %vm8900_vm9, %v9612_v18 }
 0x5b7   : > { %v10307_v18 = vpop.f32.mrf.mxu1 }
 0x5d5   : > { %v10262_v57 = vpop.f32.mrf.mxu0 }
 0x5d6   : > { %v9418_v4 = vadd.f32 %v10298_v54, %v10262_v57 }
 0x5d7   : > { %v9188_v37 = vpop.f32.mrf.mxu0 }
 0x5d8   : > { %v9482_v20 = vadd.f32 %v14890_v3, %v9418_v4  ;;  %v9410_v31 = vadd.f32 %v9409_v40, %v9188_v37 }
 0x5d9   : > { %v10263_v0 = vpop.f32.mrf.mxu0 }
 0x5da   : > { %v9521_v22 = vadd.f32 %v14895_v21, %v9482_v20  ;;  %v9480_v14 = vadd.f32 %v14890_v3, %v9410_v31  ;;  %v9421_v5 = vadd.f32 %v10299_v50, %v10263_v0  ;;  %v9444_v31 = vpop.f32.mrf.mxu1 }
 0x5db   : > { %v9191_v30 = vpop.f32.mrf.mxu0 }
 0x5dc   : > { %vm9553_vm8 = vcmp.ge.f32.partialorder %v9521_v22, 0.0  ;;  %v9585_v27 = vmul.f32 0.01, %v9521_v22  ;;  %v9519_v12 = vadd.f32 %v14895_v21, %v9480_v14  ;;  %v9483_v46 = vadd.f32 %v14890_v3, %v9421_v5 }
 0x5dd   : > { %v9413_v28 = vadd.f32 %v9412_v43, %v9191_v30 }
 0x5de   : > { %v9617_v13 = vsel %vm9553_vm8, %v9521_v22, %v9585_v27  ;;  %vm9551_vm5 = vcmp.ge.f32.partialorder %v9519_v12, 0.0  ;;  %v9583_v2 = vmul.f32 0.01, %v9519_v12  ;;  %v9522_v48 = vadd.f32 %v14895_v21, %v9483_v46 }
 0x5df   : > { %9649 = vst.msk [vmem:[%s10742_s19 + $0xb0] sm:$0xff] %vm8900_vm9, %v9617_v13  ;;  %v9481_v56 = vadd.f32 %v14890_v3, %v9413_v28 }
 0x5e0   : > { %v9615_v60 = vsel %vm9551_vm5, %v9519_v12, %v9583_v2  ;;  %vm9554_vm13 = vcmp.ge.f32.partialorder %v9522_v48, 0.0  ;;  %v9586_v58 = vmul.f32 0.01, %v9522_v48 }
 0x5e1   : > { %9647 = vst.msk [vmem:[%s10742_s19 + $0xa0] sm:$0xff] %vm8900_vm9, %v9615_v60  ;;  %v9520_v51 = vadd.f32 %v14895_v21, %v9481_v56 }
 0x5e2   : > { %v9618_v10 = vsel %vm9554_vm13, %v9522_v48, %v9586_v58 }
 0x5e3   : > { %9650 = vst.msk [vmem:[%s10742_s19 + $0xb8] sm:$0xff] %vm8900_vm9, %v9618_v10  ;;  %vm9552_vm0 = vcmp.ge.f32.partialorder %v9520_v51, 0.0  ;;  %v9584_v1 = vmul.f32 0.01, %v9520_v51 }
 0x5e5   : > { %v9616_v63 = vsel %vm9552_vm0, %v9520_v51, %v9584_v1 }
 0x5e6   : > { %9648 = vst.msk [vmem:[%s10742_s19 + $0xa8] sm:$0xff] %vm8900_vm9, %v9616_v63 }
 0x605   : > { %v10266_v39 = vpop.f32.mrf.mxu0 }
 0x606   : > { %v9434_v11 = vadd.f32 %v10302_v17, %v10266_v39 }
 0x607   : > { %v9204_v47 = vpop.f32.mrf.mxu0 }
 0x608   : > { %v9486_v32 = vadd.f32 %v14890_v3, %v9434_v11  ;;  %v9426_v42 = vadd.f32 %v9425_v25, %v9204_v47 }
 0x609   : > { %v10267_v8 = vpop.f32.mrf.mxu0 }
 0x60a   : > { %v9525_v9 = vadd.f32 %v14895_v21, %v9486_v32  ;;  %v9484_v24 = vadd.f32 %v14890_v3, %v9426_v42  ;;  %v9437_v35 = vadd.f32 %v10303_v59, %v10267_v8 }
 0x60b   : > { %v9207_v26 = vpop.f32.mrf.mxu0 }
 0x60c   : > { %vm9557_vm6 = vcmp.ge.f32.partialorder %v9525_v9, 0.0  ;;  %v9589_v23 = vmul.f32 0.01, %v9525_v9  ;;  %v9523_v29 = vadd.f32 %v14895_v21, %v9484_v24  ;;  %v9487_v53 = vadd.f32 %v14890_v3, %v9437_v35 }
 0x60d   : > { %v9429_v7 = vadd.f32 %v9428_v15, %v9207_v26 }
 0x60e   : > { %v9621_v49 = vsel %vm9557_vm6, %v9525_v9, %v9589_v23  ;;  %vm9555_vm11 = vcmp.ge.f32.partialorder %v9523_v29, 0.0  ;;  %v9587_v16 = vmul.f32 0.01, %v9523_v29  ;;  %v9526_v19 = vadd.f32 %v14895_v21, %v9487_v53 }
 0x60f   : > { %9653 = vst.msk [vmem:[%s10742_s19 + $0xd0] sm:$0xff] %vm8900_vm9, %v9621_v49  ;;  %v9485_v41 = vadd.f32 %v14890_v3, %v9429_v7 }
 0x610   : > { %v9619_v33 = vsel %vm9555_vm11, %v9523_v29, %v9587_v16  ;;  %vm9558_vm12 = vcmp.ge.f32.partialorder %v9526_v19, 0.0  ;;  %v9590_v45 = vmul.f32 0.01, %v9526_v19 }
 0x611   : > { %9651 = vst.msk [vmem:[%s10742_s19 + $0xc0] sm:$0xff] %vm8900_vm9, %v9619_v33  ;;  %v9524_v61 = vadd.f32 %v14895_v21, %v9485_v41 }
 0x612   : > { %v9622_v52 = vsel %vm9558_vm12, %v9526_v19, %v9590_v45 }
 0x613   : > { %9654 = vst.msk [vmem:[%s10742_s19 + $0xd8] sm:$0xff] %vm8900_vm9, %v9622_v52  ;;  %vm9556_vm14 = vcmp.ge.f32.partialorder %v9524_v61, 0.0  ;;  %v9588_v38 = vmul.f32 0.01, %v9524_v61 }
 0x615   : > { %v9620_v55 = vsel %vm9556_vm14, %v9524_v61, %v9588_v38 }
 0x616   : > { %9652 = vst.msk [vmem:[%s10742_s19 + $0xc8] sm:$0xff] %vm8900_vm9, %v9620_v55 }
 0x633   : > { %v10270_v36 = vpop.f32.mrf.mxu0 }
 0x634   : > { %v9450_v34 = vadd.f32 %v10306_v6, %v10270_v36 }
 0x635   : > { %v9220_v44 = vpop.f32.mrf.mxu0 }
 0x636   : > { %v9490_v54 = vadd.f32 %v14890_v3, %v9450_v34  ;;  %v9442_v40 = vadd.f32 %v9441_v62, %v9220_v44 }
 0x637   : > { %v10271_v57 = vpop.f32.mrf.mxu0 }
 0x638   : > { %v9529_v4 = vadd.f32 %v14895_v21, %v9490_v54  ;;  %v9488_v37 = vadd.f32 %v14890_v3, %v9442_v40  ;;  %v9453_v50 = vadd.f32 %v10307_v18, %v10271_v57 }
 0x639   : > { %v9223_v20 = vpop.f32.mrf.mxu0 }
 0x63a   : > { %vm9561_vm15 = vcmp.ge.f32.partialorder %v9529_v4, 0.0  ;;  %v9593_v0 = vmul.f32 0.01, %v9529_v4  ;;  %v9527_v22 = vadd.f32 %v14895_v21, %v9488_v37  ;;  %v9491_v14 = vadd.f32 %v14890_v3, %v9453_v50 }
 0x63b   : > { %v9445_v5 = vadd.f32 %v9444_v31, %v9223_v20 }
 0x63c   : > { %v9625_v30 = vsel %vm9561_vm15, %v9529_v4, %v9593_v0  ;;  %vm9559_vm1 = vcmp.ge.f32.partialorder %v9527_v22, 0.0  ;;  %v9591_v43 = vmul.f32 0.01, %v9527_v22  ;;  %v9530_v27 = vadd.f32 %v14895_v21, %v9491_v14 }
 0x63d   : > { %9657 = vst.msk [vmem:[%s10742_s19 + $0xf0] sm:$0xff] %vm8900_vm9, %v9625_v30  ;;  %v9489_v12 = vadd.f32 %v14890_v3, %v9445_v5 }
 0x63e   : > { %v9623_v46 = vsel %vm9559_vm1, %v9527_v22, %v9591_v43  ;;  %vm9562_vm2 = vcmp.ge.f32.partialorder %v9530_v27, 0.0  ;;  %v9594_v28 = vmul.f32 0.01, %v9530_v27 }
 0x63f   : > { %9655 = vst.msk [vmem:[%s10742_s19 + $0xe0] sm:$0xff] %vm8900_vm9, %v9623_v46  ;;  %v9528_v13 = vadd.f32 %v14895_v21, %v9489_v12 }
 0x640   : > { %v9626_v2 = vsel %vm9562_vm2, %v9530_v27, %v9594_v28 }
 0x641   : > { %9658 = vst.msk [vmem:[%s10742_s19 + $0xf8] sm:$0xff] %vm8900_vm9, %v9626_v2  ;;  %vm9560_vm7 = vcmp.ge.f32.partialorder %v9528_v13, 0.0  ;;  %v9592_v48 = vmul.f32 0.01, %v9528_v13 }
 0x643   : > { %v9624_v3 = vsel %vm9560_vm7, %v9528_v13, %v9592_v48 }
 0x644   : > { %9656 = vst.msk [vmem:[%s10742_s19 + $0xe8] sm:$0xff] %vm8900_vm9, %v9624_v3 }
 0x645   : > { %10505 = shalt.err (!%p10502_p0)
}
 0x646   : > { %s10506_s19 = scalar_lea.hbm %s15028_s16, 4096  ;;  %s10510_s13 = scalar_lea.hbm %s15086_s11, 8192 }
 0x647   : > { %p10507_p2 = scmp.ne.s32.totalorder %s15028_s16, %s10506_s19  ;;  %p10511_p3 = scmp.lt.s32.totalorder %s15028_s16, %s15086_s11 }
 0x648   : > { %p10512_p6 = scmp.lt.s32.totalorder %s10510_s13, %s10506_s19 }
 0x649   : > { %p10508_p9 = pnand %p10507_p2, %p15116_p13 }
 0x64a   : > { %p10513_p11 = por %p10512_p6, %p10511_p3 }
 0x64b   : > { %p10509_p1 = pneg %p10508_p9 }
 0x64d   : > { %p10514_p12 = pnand %p10513_p11, %p10509_p1 }
 0x64f   : > { %10517 = shalt.err (!%p10514_p12)
}
 0x650   : > { %s10573_s26 = smov 128   ;;  %s10574_s23 = smov 8  }
 0x651   : > { %10310 = dma.vmem_to_hbm [thread:$0]  (%p15116_p13), %s15030_s14, 4096, %s15028_s16, %s9660_s21, %s10573_s26, %s10573_s26, %s10574_s23  }
 0x652 PF: > { %s15117_s28 = sld [smem:[#allocation14_spill]]  ;;  %s9688_s24 = sand.u32 1, %s10544_s17  }
 0x653   : > { %p15119_p5 = scmp.ge.s32.totalorder %s10556_s20, 2  ;;  %s9689_s25 = scalar_lea.sflag [#allocation7], %s9688_s24 }
 0x658   : > { %p15118_p4 = scmp.ne.s32.totalorder %s15117_s28, 0 }
 0x65a   : > { %p10317_p7 = pnand %p15119_p5, %p15118_p4 }
 0x65c   : > { %p10318_p8 = pneg %p10317_p7 }
 0x65e   : > { %10539 = dma.done.wait (%p10318_p8), %s9689_s25, 4096  }
 0x65f   : > { %10541 = vsyncadd (%p10318_p8), %s9689_s25, 4294963200  ;;  %s15120_s20 = sld [smem:[#allocation12_spill]]  ;;  %s15123_s17 = smov %s10548_s18 }
 0x660   : > { %s15121_s19 = sld [smem:[#allocation11_spill]] }
 0x661   : > { %s15122_s12 = sld [smem:[#allocation13_spill]] }
 0x665   : > { %p24_p10 = scmp.ge.s32.totalorder %s15120_s20, 4  }
 0x666   : > { %s15124_s18 = smov %s15121_s19 }
 0x667   : > { %s15125_s19 = smov %s15122_s12  ;;  %26 = sbr.rel (!%p24_p10) target bundleno = 5 (0x5), region = 117 }
 0x66c   :  { %9694 = vsyncpa [#allocation6], 1 }
 0x66d   :  { %9696 = vsyncpa [#allocation6 + $0x1], 1 }
 0x66e   :  { %9697 = vsyncpa [#allocation7], 1 }
 0x66f   :  { %9699 = vsyncpa [#allocation7 + $0x1], 1 }

</bundles_post_ra>
